<compile_context>
chip_gen: v6e
topology: v6e:2x2x1
jax: 0.10.0
libtpu: 0.0.40
codegen_flags: <defaults>
</compile_context>

<pallas_src>
from functools import partial

import jax
import jax.numpy as jnp
from jax.experimental import pallas as pl
from jax.experimental.pallas import tpu as pltpu

# ---------------- configuration (cfg.* stand-ins) ----------------
SCORE_THRESH = 0.3          # cfg.RPN.SCORE_THRESH
C_IN    = 3                 # xyz input channels (use_xyz=True)
C_H1    = 32                # hidden width of the shared MLP
C_FEAT  = 128               # rcnn_input_channels = 128 (backbone feature dim)
C_REG   = 7                 # simplified box regression (x,y,z,h,w,l,ry)
C_HEADS = 1 + C_REG         # fused cls|reg head width = 8
SLAB_W  = C_HEADS + 3       # [cls | reg(7) | score | seg_mask | depth] = 11
C_RCNN_IN = C_FEAT + 2      # pooled features + seg_mask + pts_depth
C_RCNN_H  = 64
TILE_N  = 512               # point tile (256-multiple -> fills MXU M dim)


# ======================= Pallas kernels =======================

def _rpn_kernel(xyz_ref, w1_ref, b1_ref, w2_ref, b2_ref, wh_ref, bh_ref,
                feat_t_ref, slab_ref):
    """Fused RPN backbone (shared MLP) + fused cls/reg head + forward glue."""
    xyz = xyz_ref[0]                                            # (tile, 3)

    # layer 1 (3 -> 32): a K=3 MXU pass is ~all padding, use VPU FMAs instead.
    w1 = w1_ref[...]                                            # (3, 32)
    h1 = (xyz[:, 0:1] * w1[0:1, :]
          + xyz[:, 1:2] * w1[1:2, :]
          + xyz[:, 2:3] * w1[2:3, :]
          + b1_ref[...])
    h1 = jnp.maximum(h1, 0.0)                                   # (tile, 32)

    # layer 2 (32 -> 128) on the MXU.
    feat = jnp.maximum(
        jnp.dot(h1, w2_ref[...], preferred_element_type=jnp.float32)
        + b2_ref[...], 0.0)                                     # (tile, 128)

    # fused cls|reg heads (128 -> 8): one MXU pass instead of two.
    heads = (jnp.dot(feat, wh_ref[...], preferred_element_type=jnp.float32)
             + bh_ref[...])                                     # (tile, 8)

    # PointRCNN.forward glue (sigmoid score, seg mask, point depth) fused here.
    cls = heads[:, 0:1]
    score = jax.nn.sigmoid(cls)
    mask = (score > SCORE_THRESH).astype(jnp.float32)
    depth = jnp.sqrt(jnp.sum(xyz * xyz, axis=-1, keepdims=True))

    # One packed narrow-output slab -> one store / one output DMA per tile:
    #   cols: 0=cls, 1:8=reg, 8=score_norm, 9=seg_mask, 10=pts_depth
    slab_ref[0] = jnp.concatenate([heads, score, mask, depth], axis=-1)

    # Backbone features stored transposed (C_FEAT, tile): lane-dense store and
    # removes the wrapper-side (B,N,C)->(B,C,N) transpose of the big tensor.
    feat_t_ref[0] = feat.T


def _rcnn_kernel(x_ref, w1_ref, b1_ref, wh_ref, bh_ref, out_ref):
    """Simplified RCNN head: (feat|seg|depth) -> 64 -> fused {cls|reg}."""
    h = jnp.maximum(
        jnp.dot(x_ref[...], w1_ref[...], preferred_element_type=jnp.float32)
        + b1_ref[...], 0.0)
    out_ref[...] = (jnp.dot(h, wh_ref[...], preferred_element_type=jnp.float32)
                    + bh_ref[...])


# ======================= wrappers =======================

def rpn_forward(pts, p, *, tile=TILE_N):
    """pts: (B, N, 3) float32.  Returns (feat_t (B,C,N), slab (B,N,11))."""
    B, N, _ = pts.shape
    tile = min(tile, N)
    assert N % tile == 0 and tile % 8 == 0
    grid = (B, N // tile)                          # 2-D parallel grid

    # fuse the cls / reg head weights once, outside the kernel
    wh = jnp.concatenate([p['wc'], p['wr']], axis=1)            # (128, 8)
    bh = jnp.concatenate([p['bc'], p['br']], axis=1)            # (1, 8)

    def const(shape):
        return pl.BlockSpec(shape, lambda b, i: (0,) * len(shape))

    feat_t, slab = pl.pallas_call(
        _rpn_kernel,
        grid=grid,
        in_specs=[pl.BlockSpec((1, tile, C_IN), lambda b, i: (b, i, 0)),
                  const((C_IN, C_H1)),   const((1, C_H1)),
                  const((C_H1, C_FEAT)), const((1, C_FEAT)),
                  const((C_FEAT, C_HEADS)), const((1, C_HEADS))],
        out_specs=[pl.BlockSpec((1, C_FEAT, tile), lambda b, i: (b, 0, i)),
                   pl.BlockSpec((1, tile, SLAB_W), lambda b, i: (b, i, 0))],
        out_shape=[jax.ShapeDtypeStruct((B, C_FEAT, N), jnp.float32),
                   jax.ShapeDtypeStruct((B, N, SLAB_W), jnp.float32)],
        compiler_params=pltpu.CompilerParams(
            dimension_semantics=("parallel", "parallel"),
            vmem_limit_bytes=32 * 1024 * 1024),
    )(pts, p['w1'], p['b1'], p['w2'], p['b2'], wh, bh)
    return feat_t, slab


def rcnn_forward(x_pool, p):
    """x_pool: (B*K, 130).  Tiny -> whole-array blocks, no grid."""
    R = x_pool.shape[0]
    wh = jnp.concatenate([p['wc'], p['wr']], axis=1)            # (64, 8)
    bh = jnp.concatenate([p['bc'], p['br']], axis=1)            # (1, 8)
    out = pl.pallas_call(
        _rcnn_kernel,
        out_shape=jax.ShapeDtypeStruct((R, C_HEADS), jnp.float32),
    )(x_pool, p['w1'], p['b1'], wh, bh)
    return out[:, 0:1], out[:, 1:]                              # cls, reg


def proposal_layer(rpn_scores_raw, rpn_reg, backbone_xyz, k):
    """Simplified self.rpn.proposal_layer: top-K scoring points -> ROIs.
    TODO(synk): bin-based center/angle decoding + oriented 3D NMS omitted."""
    scores, idx = jax.lax.top_k(rpn_scores_raw, k)              # (B, K)
    idx = idx.astype(jnp.int32)
    gather = lambda a: jnp.take_along_axis(a, idx[..., None], axis=1)
    centers = gather(backbone_xyz) + gather(rpn_reg[..., :3])   # (B, K, 3)
    sizes = gather(rpn_reg[..., 3:])                            # (B, K, 4)
    rois = jnp.concatenate([centers, sizes], axis=-1)           # (B, K, 7)
    return rois, scores, idx


def init_params(key):
    ks = jax.random.split(key, 8)
    n = lambda k, s: (0.1 * jax.random.normal(k, s)).astype(jnp.float32)
    rpn = dict(
        w1=n(ks[0], (C_IN, C_H1)),    b1=jnp.zeros((1, C_H1), jnp.float32),
        w2=n(ks[1], (C_H1, C_FEAT)),  b2=jnp.zeros((1, C_FEAT), jnp.float32),
        wc=n(ks[2], (C_FEAT, 1)),     bc=jnp.zeros((1, 1), jnp.float32),
        wr=n(ks[3], (C_FEAT, C_REG)), br=jnp.zeros((1, C_REG), jnp.float32),
    )
    rcnn = dict(
        w1=n(ks[4], (C_RCNN_IN, C_RCNN_H)), b1=jnp.zeros((1, C_RCNN_H), jnp.float32),
        wc=n(ks[5], (C_RCNN_H, 1)),         bc=jnp.zeros((1, 1), jnp.float32),
        wr=n(ks[6], (C_RCNN_H, C_REG)),     br=jnp.zeros((1, C_REG), jnp.float32),
    )
    return rpn, rcnn


@partial(jax.jit, static_argnames=('num_rois',))
def point_rcnn_forward(pts_input, rpn_params, rcnn_params, num_rois=16):
    """pts_input: (B, N, 3) float32.  Mirrors PointRCNN.forward (inference)."""
    B, N, _ = pts_input.shape
    feat_t, slab = rpn_forward(pts_input, rpn_params)

    backbone_xyz = pts_input                                    # (B, N, 3)
    backbone_features = feat_t                                  # (B, C_FEAT, N)
    rpn_cls = slab[..., 0:1]                                    # (B, N, 1)
    rpn_reg = slab[..., 1:1 + C_REG]                            # (B, N, 7)
    rpn_scores_raw = slab[..., 0]                               # (B, N)
    seg_result = slab[..., 1 + C_REG + 1]                       # (B, N)
    pts_depth = slab[..., 1 + C_REG + 2]                        # (B, N)

    rois, roi_scores_raw, idx = proposal_layer(
        rpn_scores_raw, rpn_reg, backbone_xyz, num_rois)

    # RCNN input: gather per-ROI point feature + seg_mask + depth (pooling glue)
    feat_pool = jnp.take_along_axis(
        backbone_features, idx[:, None, :], axis=2)             # (B, C, K)
    feat_pool = feat_pool.transpose(0, 2, 1)                    # (B, K, C)
    seg_pool = jnp.take_along_axis(seg_result, idx, axis=1)[..., None]
    depth_pool = jnp.take_along_axis(pts_depth, idx, axis=1)[..., None]
    pooled = jnp.concatenate([feat_pool, seg_pool, depth_pool], axis=-1)

    rcnn_cls, rcnn_reg = rcnn_forward(
        pooled.reshape(B * num_rois, C_RCNN_IN), rcnn_params)

    return {
        'backbone_xyz': backbone_xyz,
        'backbone_features': backbone_features,
        'rpn_cls': rpn_cls,
        'rpn_reg': rpn_reg,
        'rois': rois,
        'roi_scores_raw': roi_scores_raw,
        'seg_result': seg_result,
        'rcnn_cls': rcnn_cls,
        'rcnn_reg': rcnn_reg,
    }


# ======================= reference (correctness check) =======================

def _rpn_reference(pts, p):
    B, N, _ = pts.shape
    x = pts.reshape(B * N, C_IN)
    hp = jax.lax.Precision.HIGHEST
    h1 = jnp.maximum(jnp.dot(x, p['w1'], precision=hp) + p['b1'], 0.0)
    feat = jnp.maximum(jnp.dot(h1, p['w2'], precision=hp) + p['b2'], 0.0)
    cls = jnp.dot(feat, p['wc'], precision=hp) + p['bc']
    depth = jnp.sqrt(jnp.sum(x * x, axis=-1))
    mask = (jax.nn.sigmoid(cls[:, 0]) > SCORE_THRESH).astype(jnp.float32)
    return (feat.reshape(B, N, C_FEAT),
            cls.reshape(B, N, 1),
            depth.reshape(B, N),
            mask.reshape(B, N))


if __name__ == "__main__":
    key = jax.random.PRNGKey(0)
    k_pts, k_par = jax.random.split(key)

    B, N, K = 2, 1024, 16
    pts_input = jax.random.normal(k_pts, (B, N, C_IN), dtype=jnp.float32)
    rpn_params, rcnn_params = init_params(k_par)

    out = point_rcnn_forward(pts_input, rpn_params, rcnn_params, num_rois=K)
    out = jax.tree_util.tree_map(jax.block_until_ready, out)

    # shape checks matching the PyTorch conventions
    assert out['backbone_features'].shape == (B, C_FEAT, N)
    assert out['rpn_cls'].shape == (B, N, 1)
    assert out['rpn_reg'].shape == (B, N, C_REG)
    assert out['rois'].shape == (B, K, 7)
    assert out['roi_scores_raw'].shape == (B, K)
    assert out['seg_result'].shape == (B, N)
    assert out['rcnn_cls'].shape == (B * K, 1)
    assert out['rcnn_reg'].shape == (B * K, C_REG)

    # numerical check of the fused / transposed RPN kernel vs pure-JAX reference
    ref_feat, ref_cls, ref_depth, ref_mask = _rpn_reference(pts_input, rpn_params)
    feat_kernel = out['backbone_features'].transpose(0, 2, 1)   # (B, N, C)
    assert jnp.allclose(feat_kernel, ref_feat, rtol=2e-2, atol=2e-2)
    assert jnp.allclose(out['rpn_cls'], ref_cls, rtol=2e-2, atol=2e-2)
    assert jnp.allclose(out['seg_result'], ref_mask)
    assert bool(jnp.all(jnp.isfinite(out['rpn_reg'])))
    assert bool(jnp.all(jnp.isfinite(out['rcnn_reg'])))
    assert bool(jnp.all(jnp.isfinite(out['rcnn_cls'])))

    print("KERNEL_OK")
</pallas_src>

<mosaic_0001>
module attributes {stable_mosaic.version = 11 : i64} {
  func.func @_rpn_kernel(%arg0: i32, %arg1: i32, %arg2: memref<1x512x3xf32, #tpu.memory_space<vmem>>, %arg3: memref<3x32xf32, #tpu.memory_space<vmem>>, %arg4: memref<1x32xf32, #tpu.memory_space<vmem>>, %arg5: memref<32x128xf32, #tpu.memory_space<vmem>>, %arg6: memref<1x128xf32, #tpu.memory_space<vmem>>, %arg7: memref<128x8xf32, #tpu.memory_space<vmem>>, %arg8: memref<1x8xf32, #tpu.memory_space<vmem>>, %arg9: memref<1x128x512xf32, #tpu.memory_space<vmem>>, %arg10: memref<1x512x11xf32, #tpu.memory_space<vmem>>) attributes {dimension_semantics = [#tpu.dimension_semantics<parallel>, #tpu.dimension_semantics<parallel>], iteration_bounds = array<i64: 2, 2>, scalar_prefetch = 0 : i64, scratch_operands = 0 : i64, tpu.core_type = #tpu.core_type<tc>, window_params = [{transform_indices = @transform_0, window_bounds = array<i64: 1, 512, 3>}, {pipeline_mode = #tpu.pipeline_mode<synchronous>, transform_indices = @transform_1, window_bounds = array<i64: 3, 32>}, {pipeline_mode = #tpu.pipeline_mode<synchronous>, transform_indices = @transform_2, window_bounds = array<i64: 1, 32>}, {pipeline_mode = #tpu.pipeline_mode<synchronous>, transform_indices = @transform_3, window_bounds = array<i64: 32, 128>}, {pipeline_mode = #tpu.pipeline_mode<synchronous>, transform_indices = @transform_4, window_bounds = array<i64: 1, 128>}, {pipeline_mode = #tpu.pipeline_mode<synchronous>, transform_indices = @transform_5, window_bounds = array<i64: 128, 8>}, {pipeline_mode = #tpu.pipeline_mode<synchronous>, transform_indices = @transform_6, window_bounds = array<i64: 1, 8>}, {transform_indices = @transform_7, window_bounds = array<i64: 1, 128, 512>}, {transform_indices = @transform_8, window_bounds = array<i64: 1, 512, 11>}]} {
    %c0 = arith.constant 0 : index
    %c0_0 = arith.constant 0 : index
    %c0_1 = arith.constant 0 : index
    %0 = vector.load %arg2[%c0, %c0_0, %c0_1] : memref<1x512x3xf32, #tpu.memory_space<vmem>>, vector<1x512x3xf32>
    %1 = vector.shape_cast %0 : vector<1x512x3xf32> to vector<512x3xf32>
    %c0_2 = arith.constant 0 : index
    %c0_3 = arith.constant 0 : index
    %2 = vector.load %arg3[%c0_2, %c0_3] : memref<3x32xf32, #tpu.memory_space<vmem>>, vector<3x32xf32>
    %3 = vector.extract_strided_slice %1 {offsets = [0, 0], sizes = [512, 1], strides = [1, 1]} : vector<512x3xf32> to vector<512x1xf32>
    %4 = vector.extract_strided_slice %2 {offsets = [0, 0], sizes = [1, 32], strides = [1, 1]} : vector<3x32xf32> to vector<1x32xf32>
    %5 = vector.broadcast %3 : vector<512x1xf32> to vector<512x32xf32>
    %6 = vector.broadcast %4 : vector<1x32xf32> to vector<512x32xf32>
    %7 = arith.mulf %5, %6 : vector<512x32xf32>
    %8 = vector.extract_strided_slice %1 {offsets = [0, 1], sizes = [512, 1], strides = [1, 1]} : vector<512x3xf32> to vector<512x1xf32>
    %9 = vector.extract_strided_slice %2 {offsets = [1, 0], sizes = [1, 32], strides = [1, 1]} : vector<3x32xf32> to vector<1x32xf32>
    %10 = vector.broadcast %8 : vector<512x1xf32> to vector<512x32xf32>
    %11 = vector.broadcast %9 : vector<1x32xf32> to vector<512x32xf32>
    %12 = arith.mulf %10, %11 : vector<512x32xf32>
    %13 = arith.addf %7, %12 : vector<512x32xf32>
    %14 = vector.extract_strided_slice %1 {offsets = [0, 2], sizes = [512, 1], strides = [1, 1]} : vector<512x3xf32> to vector<512x1xf32>
    %15 = vector.extract_strided_slice %2 {offsets = [2, 0], sizes = [1, 32], strides = [1, 1]} : vector<3x32xf32> to vector<1x32xf32>
    %16 = vector.broadcast %14 : vector<512x1xf32> to vector<512x32xf32>
    %17 = vector.broadcast %15 : vector<1x32xf32> to vector<512x32xf32>
    %18 = arith.mulf %16, %17 : vector<512x32xf32>
    %19 = arith.addf %13, %18 : vector<512x32xf32>
    %c0_4 = arith.constant 0 : index
    %c0_5 = arith.constant 0 : index
    %20 = vector.load %arg4[%c0_4, %c0_5] : memref<1x32xf32, #tpu.memory_space<vmem>>, vector<1x32xf32>
    %21 = vector.broadcast %20 : vector<1x32xf32> to vector<512x32xf32>
    %22 = arith.addf %19, %21 : vector<512x32xf32>
    %cst = arith.constant 0.000000e+00 : f32
    %23 = vector.broadcast %cst : f32 to vector<512x32xf32>
    %24 = arith.maximumf %22, %23 : vector<512x32xf32>
    %c0_6 = arith.constant 0 : index
    %c0_7 = arith.constant 0 : index
    %25 = vector.load %arg5[%c0_6, %c0_7] : memref<32x128xf32, #tpu.memory_space<vmem>>, vector<32x128xf32>
    %cst_8 = arith.constant dense<0.000000e+00> : vector<512x128xf32>
    %26 = tpu.matmul %24, %25, %cst_8 {dimension_numbers = #tpu.dot_dimension_numbers<[1], [0], [0], [1], [0, 0, 1, 1], [], []>} : vector<512x32xf32>, vector<32x128xf32>, vector<512x128xf32> -> vector<512x128xf32>
    %c0_9 = arith.constant 0 : index
    %c0_10 = arith.constant 0 : index
    %27 = vector.load %arg6[%c0_9, %c0_10] : memref<1x128xf32, #tpu.memory_space<vmem>>, vector<1x128xf32>
    %28 = vector.broadcast %27 : vector<1x128xf32> to vector<512x128xf32>
    %29 = arith.addf %26, %28 : vector<512x128xf32>
    %cst_11 = arith.constant 0.000000e+00 : f32
    %30 = vector.broadcast %cst_11 : f32 to vector<512x128xf32>
    %31 = arith.maximumf %29, %30 : vector<512x128xf32>
    %c0_12 = arith.constant 0 : index
    %c0_13 = arith.constant 0 : index
    %32 = vector.load %arg7[%c0_12, %c0_13] : memref<128x8xf32, #tpu.memory_space<vmem>>, vector<128x8xf32>
    %cst_14 = arith.constant dense<0.000000e+00> : vector<512x8xf32>
    %33 = tpu.matmul %31, %32, %cst_14 {dimension_numbers = #tpu.dot_dimension_numbers<[1], [0], [0], [1], [0, 0, 1, 1], [], []>} : vector<512x128xf32>, vector<128x8xf32>, vector<512x8xf32> -> vector<512x8xf32>
    %c0_15 = arith.constant 0 : index
    %c0_16 = arith.constant 0 : index
    %34 = vector.load %arg8[%c0_15, %c0_16] : memref<1x8xf32, #tpu.memory_space<vmem>>, vector<1x8xf32>
    %35 = vector.broadcast %34 : vector<1x8xf32> to vector<512x8xf32>
    %36 = arith.addf %33, %35 : vector<512x8xf32>
    %37 = vector.extract_strided_slice %36 {offsets = [0, 0], sizes = [512, 1], strides = [1, 1]} : vector<512x8xf32> to vector<512x1xf32>
    %38 = arith.negf %37 : vector<512x1xf32>
    %39 = math.exp %38 : vector<512x1xf32>
    %cst_17 = arith.constant 1.000000e+00 : f32
    %40 = vector.broadcast %cst_17 : f32 to vector<512x1xf32>
    %41 = arith.addf %40, %39 : vector<512x1xf32>
    %42 = arith.divf %40, %41 : vector<512x1xf32>
    %cst_18 = arith.constant 3.000000e-01 : f32
    %43 = vector.broadcast %cst_18 : f32 to vector<512x1xf32>
    %44 = arith.cmpf ogt, %42, %43 : vector<512x1xf32>
    %45 = arith.extui %44 : vector<512x1xi1> to vector<512x1xi32>
    %46 = arith.sitofp %45 : vector<512x1xi32> to vector<512x1xf32>
    %47 = arith.mulf %1, %1 : vector<512x3xf32>
    %cst_19 = arith.constant dense<0.000000e+00> : vector<512xf32>
    %48 = vector.multi_reduction <add>, %47, %cst_19 [1] : vector<512x3xf32> to vector<512xf32>
    %49 = vector.shape_cast %48 : vector<512xf32> to vector<512x1xf32>
    %50 = math.sqrt %49 : vector<512x1xf32>
    %51 = tpu.concatenate %36, %42, %46, %50 in 1 : vector<512x8xf32>, vector<512x1xf32>, vector<512x1xf32>, vector<512x1xf32> -> vector<512x11xf32>
    %c0_20 = arith.constant 0 : index
    %c0_21 = arith.constant 0 : index
    %c0_22 = arith.constant 0 : index
    %52 = vector.load %arg10[%c0_20, %c0_21, %c0_22] : memref<1x512x11xf32, #tpu.memory_space<vmem>>, vector<1x512x11xf32>
    %53 = vector.shape_cast %52 : vector<1x512x11xf32> to vector<512x11xf32>
    %54 = vector.shape_cast %51 : vector<512x11xf32> to vector<1x512x11xf32>
    tpu.vector_store %arg10[%c0_20, %c0_21, %c0_22], %54 {strides = array<i32>} : memref<1x512x11xf32, #tpu.memory_space<vmem>>, vector<1x512x11xf32>,
    %55 = tpu.transpose %31, [1, 0] : vector<512x128xf32> -> vector<128x512xf32>
    %c0_23 = arith.constant 0 : index
    %c0_24 = arith.constant 0 : index
    %c0_25 = arith.constant 0 : index
    %56 = vector.load %arg9[%c0_23, %c0_24, %c0_25] : memref<1x128x512xf32, #tpu.memory_space<vmem>>, vector<1x128x512xf32>
    %57 = vector.shape_cast %56 : vector<1x128x512xf32> to vector<128x512xf32>
    %58 = vector.shape_cast %55 : vector<128x512xf32> to vector<1x128x512xf32>
    tpu.vector_store %arg9[%c0_23, %c0_24, %c0_25], %58 {strides = array<i32>} : memref<1x128x512xf32, #tpu.memory_space<vmem>>, vector<1x128x512xf32>,
    return
  }
  func.func @transform_0(%arg0: i32, %arg1: i32) -> (i32, i32, i32) {
    %c0_i32 = arith.constant 0 : i32
    %c0_i32_0 = arith.constant 0 : i32
    return %arg0, %arg1, %c0_i32 : i32, i32, i32
  }
  func.func @transform_1(%arg0: i32, %arg1: i32) -> (i32, i32) {
    %c0_i32 = arith.constant 0 : i32
    %c0_i32_0 = arith.constant 0 : i32
    %c0_i32_1 = arith.constant 0 : i32
    return %c0_i32, %c0_i32_0 : i32, i32
  }
  func.func @transform_2(%arg0: i32, %arg1: i32) -> (i32, i32) {
    %c0_i32 = arith.constant 0 : i32
    %c0_i32_0 = arith.constant 0 : i32
    %c0_i32_1 = arith.constant 0 : i32
    return %c0_i32, %c0_i32_0 : i32, i32
  }
  func.func @transform_3(%arg0: i32, %arg1: i32) -> (i32, i32) {
    %c0_i32 = arith.constant 0 : i32
    %c0_i32_0 = arith.constant 0 : i32
    %c0_i32_1 = arith.constant 0 : i32
    return %c0_i32, %c0_i32_0 : i32, i32
  }
  func.func @transform_4(%arg0: i32, %arg1: i32) -> (i32, i32) {
    %c0_i32 = arith.constant 0 : i32
    %c0_i32_0 = arith.constant 0 : i32
    %c0_i32_1 = arith.constant 0 : i32
    return %c0_i32, %c0_i32_0 : i32, i32
  }
  func.func @transform_5(%arg0: i32, %arg1: i32) -> (i32, i32) {
    %c0_i32 = arith.constant 0 : i32
    %c0_i32_0 = arith.constant 0 : i32
    %c0_i32_1 = arith.constant 0 : i32
    return %c0_i32, %c0_i32_0 : i32, i32
  }
  func.func @transform_6(%arg0: i32, %arg1: i32) -> (i32, i32) {
    %c0_i32 = arith.constant 0 : i32
    %c0_i32_0 = arith.constant 0 : i32
    %c0_i32_1 = arith.constant 0 : i32
    return %c0_i32, %c0_i32_0 : i32, i32
  }
  func.func @transform_7(%arg0: i32, %arg1: i32) -> (i32, i32, i32) {
    %c0_i32 = arith.constant 0 : i32
    %c0_i32_0 = arith.constant 0 : i32
    return %arg0, %c0_i32, %arg1 : i32, i32, i32
  }
  func.func @transform_8(%arg0: i32, %arg1: i32) -> (i32, i32, i32) {
    %c0_i32 = arith.constant 0 : i32
    %c0_i32_0 = arith.constant 0 : i32
    return %arg0, %arg1, %c0_i32 : i32, i32, i32
  }
}

module attributes {stable_mosaic.version = 11 : i64} {
  func.func @_rcnn_kernel(%arg0: memref<32x130xf32, #tpu.memory_space<vmem>>, %arg1: memref<130x64xf32, #tpu.memory_space<vmem>>, %arg2: memref<1x64xf32, #tpu.memory_space<vmem>>, %arg3: memref<64x8xf32, #tpu.memory_space<vmem>>, %arg4: memref<1x8xf32, #tpu.memory_space<vmem>>, %arg5: memref<32x8xf32, #tpu.memory_space<vmem>>) attributes {dimension_semantics = [], scalar_prefetch = 0 : i64, scratch_operands = 0 : i64, tpu.core_type = #tpu.core_type<tc>} {
    %c0 = arith.constant 0 : index
    %c0_0 = arith.constant 0 : index
    %0 = vector.load %arg0[%c0, %c0_0] : memref<32x130xf32, #tpu.memory_space<vmem>>, vector<32x130xf32>
    %c0_1 = arith.constant 0 : index
    %c0_2 = arith.constant 0 : index
    %1 = vector.load %arg1[%c0_1, %c0_2] : memref<130x64xf32, #tpu.memory_space<vmem>>, vector<130x64xf32>
    %cst = arith.constant dense<0.000000e+00> : vector<32x64xf32>
    %2 = tpu.matmul %0, %1, %cst {dimension_numbers = #tpu.dot_dimension_numbers<[1], [0], [0], [1], [0, 0, 1, 1], [], []>} : vector<32x130xf32>, vector<130x64xf32>, vector<32x64xf32> -> vector<32x64xf32>
    %c0_3 = arith.constant 0 : index
    %c0_4 = arith.constant 0 : index
    %3 = vector.load %arg2[%c0_3, %c0_4] : memref<1x64xf32, #tpu.memory_space<vmem>>, vector<1x64xf32>
    %4 = vector.broadcast %3 : vector<1x64xf32> to vector<32x64xf32>
    %5 = arith.addf %2, %4 : vector<32x64xf32>
    %cst_5 = arith.constant 0.000000e+00 : f32
    %6 = vector.broadcast %cst_5 : f32 to vector<32x64xf32>
    %7 = arith.maximumf %5, %6 : vector<32x64xf32>
    %c0_6 = arith.constant 0 : index
    %c0_7 = arith.constant 0 : index
    %8 = vector.load %arg3[%c0_6, %c0_7] : memref<64x8xf32, #tpu.memory_space<vmem>>, vector<64x8xf32>
    %cst_8 = arith.constant dense<0.000000e+00> : vector<32x8xf32>
    %9 = tpu.matmul %7, %8, %cst_8 {dimension_numbers = #tpu.dot_dimension_numbers<[1], [0], [0], [1], [0, 0, 1, 1], [], []>} : vector<32x64xf32>, vector<64x8xf32>, vector<32x8xf32> -> vector<32x8xf32>
    %c0_9 = arith.constant 0 : index
    %c0_10 = arith.constant 0 : index
    %10 = vector.load %arg4[%c0_9, %c0_10] : memref<1x8xf32, #tpu.memory_space<vmem>>, vector<1x8xf32>
    %11 = vector.broadcast %10 : vector<1x8xf32> to vector<32x8xf32>
    %12 = arith.addf %9, %11 : vector<32x8xf32>
    %c0_11 = arith.constant 0 : index
    %c0_12 = arith.constant 0 : index
    %13 = vector.load %arg5[%c0_11, %c0_12] : memref<32x8xf32, #tpu.memory_space<vmem>>, vector<32x8xf32>
    tpu.vector_store %arg5[%c0_11, %c0_12], %12 {strides = array<i32>} : memref<32x8xf32, #tpu.memory_space<vmem>>, vector<32x8xf32>,
    return
  }
}

</mosaic_0001>

<bundles_post_ra>
// kernel: point_rcnn_forward.2
= control target key start
LH: loop header
LB: loop body
LE: loop exit
PB: predicated region body
PF: predicated region fallthrough
CT: control target
= control target key end

     0   :  { %s6711_s27 = smov 0   ;;  %s6713_s28 = smov 0   ;;  %s11141_s0 = inlined_call_operand.vmem [shape: f32[2,1024,3], index: 0, kind: input, shape index: {}]   ;;  %s11142_s1 = inlined_call_operand.vmem [shape: f32[3,32], index: 1, kind: input, shape index: {}]   ;;  %s11143_s2 = inlined_call_operand.vmem [shape: f32[1,32], index: 2, kind: input, shape index: {}]   ;;  %s11144_s3 = inlined_call_operand.vmem [shape: f32[32,128], index: 3, kind: input, shape index: {}]   ;;  %s11145_s4 = inlined_call_operand.vmem [shape: f32[1,128], index: 4, kind: input, shape index: {}]   ;;  %s11146_s5 = inlined_call_operand.vmem [shape: f32[128,8], index: 5, kind: input, shape index: {}]   ;;  %s11147_s6 = inlined_call_operand.vmem [shape: f32[1,8], index: 6, kind: input, shape index: {}]   ;;  %s11148_s7 = inlined_call_operand.vmem [shape: f32[2,128,1024], index: 7, kind: output, shape index: {0}]   ;;  %s11149_s8 = inlined_call_operand.vmem [shape: f32[2,1024,11], index: 8, kind: output, shape index: {1}]  }
   0x1   :  { %s6715_s29 = smov 0   ;;  %s6717_s30 = smov 0  }
   0x2   :  { %s6719_s9 = smov 0   ;;  %s6721_s10 = smov 0  }
   0x3   :  { %s6723_s11 = smov 0  }
   0x4 LB: > { %s28_s12 = sadd.s32 1, %s6650_s9  ;;  %s31_s13 = sadd.s32 1, %s6654_s10  ;;  %s6658_s11 = sphi %s6723_s11, %s19_s11   ;;  %s6654_s10 = sphi %s6721_s10, %s12342_s10   ;;  %s6650_s9 = sphi %s6719_s9, %s12341_s9   ;;  %s6646_s30 = sphi %s6717_s30, %s12340_s30   ;;  %s6642_s29 = sphi %s6715_s29, %s12339_s29   ;;  %s6638_s28 = sphi %s6713_s28, %s12338_s28   ;;  %s6634_s27 = sphi %s6711_s27, %s12337_s27  }
   0x5   : > { %p29_p0 = scmp.ge.s32.totalorder %s28_s12, 2  ;;  %s5301_s14 = sadd.s32 4294967295, %s6658_s11  }
   0x6   : > { %p204_p1 = scmp.ne.s32.totalorder %s6638_s28, %s6634_s27  ;;  %p205_p2 = scmp.eq.s32.totalorder %s5301_s14, 3 }
   0x7   : > { %s12344_s12 = smov (%p29_p0, %s28_s12), 0  ;;  %s12346_s13 = smov (!%p29_p0, %s31_s13), %s6654_s10 }
   0x8   : > { %s190_s15 = ssub.s32 %s6650_s9, %s12344_s12  ;;  %p33_p3 = scmp.ge.s32.totalorder %s12346_s13, 2 }
   0x9   : > { %p5305_p4 = scmp.ge.s32.totalorder %s6658_s11, 1  ;;  %p6757_p5 = por %p205_p2, %p204_p1 }
   0xa   : > { %p288_p6 = scmp.lt.s32.totalorder %s6658_s11, 5  ;;  %s12348_s13 = smov (%p33_p3, %s12346_s13), 0 }
   0xb   : > { %s189_s17 = ssub.s32 %s6654_s10, %s12348_s13  ;;  %s194_s19 = sadd.s32 1, %s6638_s28 }
   0xc   : > { %p289_p7 = pnand %p5305_p4, %p288_p6  ;;  %s191_s18 = sor.u32 %s190_s15, %s189_s17 }
   0xd   : > { %p192_p8 = scmp.eq.s32.totalorder %s191_s18, 0 }
   0xe   : > { %292 = sbr.rel (%p289_p7) target bundleno = 1355 (0x54b), region = 48 }
   0xf   : > { %s6768_s20 = scalar_select %p192_p8, %s6638_s28, %s194_s19  }
  0x13   : > { %s5307_s21 = sshll.u32 %s6642_s29, 6  ;;  %p335_p9 = scmp.lt.s32.totalorder %s6646_s30, 1  ;;  %v6660_v0 = vmov 0   ;;  %vm1730_vm0 = vcmask 261120   ;;  %vm3420_vm1 = vcmask 23552  }
  0x14   : > { %5989 = vset.pattern.permute.xlu1 %v6660_v0  ;;  %5988 = vset.pattern.permute.xlu0 %v6660_v0  ;;  %p337_p10 = scmp.lt.s32.totalorder %s5307_s21, 127  ;;  %s6663_s18 = smov 8  }
  0x15   : > { %s336_s22 = scalar_select %p335_p9, %s6646_s30, 1 }
  0x16   : > { %s12350_s21 = smov (!%p337_p10, %s5307_s21), 127  ;;  %s6665_s19 = smov 9  }
  0x17   : > { %s5308_s23 = sshll.u32 %s336_s22, 7  ;;  %s5510_s17 = sshll.u32 (%p6757_p5), %s6646_s30, 7 }
  0x18   : > { %s6773_s24 = sadd.s32 %s5308_s23, %s12350_s21 }
  0x19   : > { %s5309_s25 = sshll.u32 %s6773_s24, 3  ;;  %s320_s24 = sand.u32 1, %s6634_s27  }
  0x1a   : > { %s6781_s15 = scalar_lea.vmem %s11141_s0, %s5309_s25  ;;  %s9388_s14 = scalar_lea.vmem %s11149_s8, %s5309_s25 }
  0x1b   : > { %v6784_v1 = vld [vmem:[%s6781_s15 + $0x10] sm:$0xff]  ;;  %v6787_v2 = vld [vmem:[%s6781_s15] sm:$0xff]  ;;  %v6792_v3 = vld [vmem:[%s6781_s15 + $0x18] sm:$0xff]  ;;  %s5306_s25 = sshll.u32 %s320_s24, 9  ;;  %s5509_s27 = sshll.u32 (%p6757_p5), %s6642_s29, 2 }
  0x1c   : > { %432 = vperm.xlu1 %5989, %v6784_v1   ;;  %422 = vperm.xlu0 %5988, %v6787_v2   ;;  %v6795_v4 = vld [vmem:[%s6781_s15 + $0x8] sm:$0xff]  ;;  %v6803_v6 = vld [vmem:[%s6781_s15 + $0x20] sm:$0xff]  ;;  %v6808_v7 = vld [vmem:[%s6781_s15 + $0x38] sm:$0xff]  ;;  %s5043_s16 = sadd.s32 (%p6757_p5), %s5510_s17, %s5509_s27 }
  0x1d   : > { %v6800_v5 = vld [vmem:[%s6781_s15 + $0x28] sm:$0xff]  ;;  %v6811_v8 = vld [vmem:[%s6781_s15 + $0x30] sm:$0xff]  ;;  %v6819_v10 = vld [vmem:[%s6781_s15 + $0x40] sm:$0xff] }
  0x1e   : > { %v6816_v9 = vld [vmem:[%s6781_s15 + $0x48] sm:$0xff]  ;;  %v6824_v11 = vld [vmem:[%s6781_s15 + $0x58] sm:$0xff]  ;;  %v6827_v12 = vld [vmem:[%s6781_s15 + $0x50] sm:$0xff] }
  0x1f   : > { %v6832_v13 = vld [vmem:[%s6781_s15 + $0x68] sm:$0xff]  ;;  %v6835_v14 = vld [vmem:[%s6781_s15 + $0x60] sm:$0xff]  ;;  %v6840_v15 = vld [vmem:[%s6781_s15 + $0x78] sm:$0xff] }
  0x20   : > { %437 = vperm.xlu1 %5989, %v6792_v3   ;;  %427 = vperm.xlu0 %5988, %v6795_v4   ;;  %v6843_v16 = vld [vmem:[%s6781_s15 + $0x70] sm:$0xff]  ;;  %v6848_v17 = vld [vmem:[%s6781_s15 + $0x88] sm:$0xff]  ;;  %v6851_v18 = vld [vmem:[%s6781_s15 + $0x80] sm:$0xff] }
  0x21   : > { %v6856_v19 = vld [vmem:[%s6781_s15 + $0x98] sm:$0xff]  ;;  %v6859_v20 = vld [vmem:[%s6781_s15 + $0x90] sm:$0xff]  ;;  %v6864_v21 = vld [vmem:[%s6781_s15 + $0xa8] sm:$0xff] }
  0x22   : > { %v6867_v22 = vld [vmem:[%s6781_s15 + $0xa0] sm:$0xff]  ;;  %v6872_v23 = vld [vmem:[%s6781_s15 + $0xb8] sm:$0xff]  ;;  %v6875_v24 = vld [vmem:[%s6781_s15 + $0xb0] sm:$0xff] }
  0x23   : > { %v6880_v25 = vld [vmem:[%s6781_s15 + $0xc8] sm:$0xff]  ;;  %v6883_v26 = vld [vmem:[%s6781_s15 + $0xc0] sm:$0xff]  ;;  %v6888_v27 = vld [vmem:[%s6781_s15 + $0xd8] sm:$0xff] }
  0x24   : > { %447 = vperm.xlu1 %5989, %v6800_v5   ;;  %442 = vperm.xlu0 %5988, %v6803_v6   ;;  %v6891_v28 = vld [vmem:[%s6781_s15 + $0xd0] sm:$0xff]  ;;  %v6896_v29 = vld [vmem:[%s6781_s15 + $0xe8] sm:$0xff]  ;;  %v6899_v30 = vld [vmem:[%s6781_s15 + $0xe0] sm:$0xff] }
  0x25   : > { %v6904_v31 = vld [vmem:[%s6781_s15 + $0xf8] sm:$0xff]  ;;  %v6907_v32 = vld [vmem:[%s6781_s15 + $0xf0] sm:$0xff]  ;;  %v6912_v33 = vld [vmem:[%s6781_s15 + $0x108] sm:$0xff] }
  0x26   : > { %v6915_v34 = vld [vmem:[%s6781_s15 + $0x100] sm:$0xff]  ;;  %v6920_v35 = vld [vmem:[%s6781_s15 + $0x118] sm:$0xff]  ;;  %v6923_v36 = vld [vmem:[%s6781_s15 + $0x110] sm:$0xff] }
  0x27   : > { %v6928_v37 = vld [vmem:[%s6781_s15 + $0x128] sm:$0xff]  ;;  %v6931_v38 = vld [vmem:[%s6781_s15 + $0x120] sm:$0xff]  ;;  %v6936_v39 = vld [vmem:[%s6781_s15 + $0x138] sm:$0xff] }
  0x28   : > { %457 = vperm.xlu1 %5989, %v6808_v7   ;;  %452 = vperm.xlu0 %5988, %v6811_v8   ;;  %v6939_v40 = vld [vmem:[%s6781_s15 + $0x130] sm:$0xff]  ;;  %v6944_v41 = vld [vmem:[%s6781_s15 + $0x148] sm:$0xff]  ;;  %v6947_v42 = vld [vmem:[%s6781_s15 + $0x140] sm:$0xff] }
  0x29   : > { %v6952_v43 = vld [vmem:[%s6781_s15 + $0x158] sm:$0xff]  ;;  %v6955_v44 = vld [vmem:[%s6781_s15 + $0x150] sm:$0xff]  ;;  %v6960_v45 = vld [vmem:[%s6781_s15 + $0x168] sm:$0xff] }
  0x2a   : > { %v6963_v46 = vld [vmem:[%s6781_s15 + $0x160] sm:$0xff]  ;;  %v6968_v47 = vld [vmem:[%s6781_s15 + $0x178] sm:$0xff]  ;;  %v6971_v48 = vld [vmem:[%s6781_s15 + $0x170] sm:$0xff] }
  0x2b   : > { %v6976_v49 = vld [vmem:[%s6781_s15 + $0x188] sm:$0xff]  ;;  %v6979_v50 = vld [vmem:[%s6781_s15 + $0x180] sm:$0xff]  ;;  %v6984_v51 = vld [vmem:[%s6781_s15 + $0x198] sm:$0xff] }
  0x2c   : > { %467 = vperm.xlu1 %5989, %v6816_v9   ;;  %462 = vperm.xlu0 %5988, %v6819_v10   ;;  %11438 = vst [vmem:[#allocation3_spill] sm:$0xff] %v6976_v49  ;;  %11439 = vst [vmem:[#allocation4_spill] sm:$0xff] %v6984_v51  ;;  %v6987_v52 = vld [vmem:[%s6781_s15 + $0x190] sm:$0xff]  ;;  %v6992_v53 = vld [vmem:[%s6781_s15 + $0x1a8] sm:$0xff] }
  0x2d   : > { %11440 = vst [vmem:[#allocation5_spill] sm:$0xff] %v6992_v53  ;;  %v6995_v54 = vld [vmem:[%s6781_s15 + $0x1a0] sm:$0xff]  ;;  %v7000_v55 = vld [vmem:[%s6781_s15 + $0x1b8] sm:$0xff]  ;;  %v7003_v56 = vld [vmem:[%s6781_s15 + $0x1b0] sm:$0xff] }
  0x2e   : > { %11441 = vst [vmem:[#allocation6_spill] sm:$0xff] %v6995_v54  ;;  %11442 = vst [vmem:[#allocation7_spill] sm:$0xff] %v7000_v55  ;;  %v7008_v57 = vld [vmem:[%s6781_s15 + $0x1c8] sm:$0xff]  ;;  %v7011_v58 = vld [vmem:[%s6781_s15 + $0x1c0] sm:$0xff] }
  0x2f   : > { %11443 = vst [vmem:[#allocation8_spill] sm:$0xff] %v7003_v56  ;;  %11444 = vst [vmem:[#allocation9_spill] sm:$0xff] %v7008_v57  ;;  %v7016_v59 = vld [vmem:[%s6781_s15 + $0x1d8] sm:$0xff]  ;;  %v7019_v60 = vld [vmem:[%s6781_s15 + $0x1d0] sm:$0xff] }
  0x30   : > { %477 = vperm.xlu1 %5989, %v6824_v11   ;;  %472 = vperm.xlu0 %5988, %v6827_v12   ;;  %11445 = vst [vmem:[#allocation10_spill] sm:$0xff] %v7011_v58  ;;  %11446 = vst [vmem:[#allocation11_spill] sm:$0xff] %v7016_v59  ;;  %v7024_v61 = vld [vmem:[%s6781_s15 + $0x1e8] sm:$0xff]  ;;  %v7027_v62 = vld [vmem:[%s6781_s15 + $0x1e0] sm:$0xff] }
  0x31   : > { %11447 = vst [vmem:[#allocation12_spill] sm:$0xff] %v7019_v60  ;;  %11448 = vst [vmem:[#allocation13_spill] sm:$0xff] %v7024_v61  ;;  %v7032_v63 = vld [vmem:[%s6781_s15 + $0x1f8] sm:$0xff]  ;;  %v7035_v0 = vld [vmem:[%s6781_s15 + $0x1f0] sm:$0xff] }
  0x32   : > { %11449 = vst [vmem:[#allocation14_spill] sm:$0xff] %v7032_v63 }
  0x34   : > { %487 = vperm.xlu1 %5989, %v6832_v13   ;;  %482 = vperm.xlu0 %5988, %v6835_v14  }
  0x38   : > { %497 = vperm.xlu1 %5989, %v6840_v15   ;;  %492 = vperm.xlu0 %5988, %v6843_v16  }
  0x3c   : > { %507 = vperm.xlu1 %5989, %v6848_v17   ;;  %502 = vperm.xlu0 %5988, %v6851_v18  }
  0x40   : > { %517 = vperm.xlu1 %5989, %v6856_v19   ;;  %512 = vperm.xlu0 %5988, %v6859_v20  }
  0x44   : > { %527 = vperm.xlu1 %5989, %v6864_v21   ;;  %522 = vperm.xlu0 %5988, %v6867_v22  }
  0x48   : > { %537 = vperm.xlu1 %5989, %v6872_v23   ;;  %532 = vperm.xlu0 %5988, %v6875_v24  }
  0x4c   : > { %547 = vperm.xlu1 %5989, %v6880_v25   ;;  %542 = vperm.xlu0 %5988, %v6883_v26  }
  0x50   : > { %557 = vperm.xlu1 %5989, %v6888_v27   ;;  %552 = vperm.xlu0 %5988, %v6891_v28  }
  0x54   : > { %567 = vperm.xlu1 %5989, %v6896_v29   ;;  %562 = vperm.xlu0 %5988, %v6899_v30  }
  0x58   : > { %577 = vperm.xlu1 %5989, %v6904_v31   ;;  %572 = vperm.xlu0 %5988, %v6907_v32  }
  0x5c   : > { %587 = vperm.xlu1 %5989, %v6912_v33   ;;  %582 = vperm.xlu0 %5988, %v6915_v34  }
  0x60   : > { %597 = vperm.xlu1 %5989, %v6920_v35   ;;  %592 = vperm.xlu0 %5988, %v6923_v36  }
  0x64   : > { %607 = vperm.xlu1 %5989, %v6928_v37   ;;  %602 = vperm.xlu0 %5988, %v6931_v38  }
  0x68   : > { %617 = vperm.xlu1 %5989, %v6936_v39   ;;  %612 = vperm.xlu0 %5988, %v6939_v40  }
  0x6c   : > { %627 = vperm.xlu1 %5989, %v6944_v41   ;;  %622 = vperm.xlu0 %5988, %v6947_v42  }
  0x70   : > { %637 = vperm.xlu1 %5989, %v6952_v43   ;;  %632 = vperm.xlu0 %5988, %v6955_v44  }
  0x74   : > { %647 = vperm.xlu1 %5989, %v6960_v45   ;;  %642 = vperm.xlu0 %5988, %v6963_v46  }
  0x78   : > { %657 = vperm.xlu1 %5989, %v6968_v47   ;;  %652 = vperm.xlu0 %5988, %v6971_v48  }
  0x7c   : > { %667 = vperm.xlu1 %5989, %v6976_v49   ;;  %662 = vperm.xlu0 %5988, %v6979_v50  }
  0x80   : > { %677 = vperm.xlu1 %5989, %v6984_v51   ;;  %672 = vperm.xlu0 %5988, %v6987_v52  }
  0x84   : > { %687 = vperm.xlu1 %5989, %v6992_v53   ;;  %682 = vperm.xlu0 %5988, %v6995_v54  }
  0x88   : > { %697 = vperm.xlu1 %5989, %v7000_v55   ;;  %692 = vperm.xlu0 %5988, %v7003_v56   ;;  %v6661_v55 = vmov 1  }
  0x8c   : > { %707 = vperm.xlu1 %5989, %v7008_v57   ;;  %702 = vperm.xlu0 %5988, %v7011_v58  }
  0x90   : > { %717 = vperm.xlu1 %5989, %v7016_v59   ;;  %712 = vperm.xlu0 %5988, %v7019_v60  }
  0x94   : > { %727 = vperm.xlu1 %5989, %v7024_v61   ;;  %722 = vperm.xlu0 %5988, %v7027_v62  }
  0x97   : > { %v7037_v57 = vpop.permute.xlu1 %432  ;;  %v7039_v58 = vpop.permute.xlu0 %422 }
  0x98   : > { %11450 = vst [vmem:[#allocation15_spill] sm:$0xff] %v7037_v57  ;;  %11451 = vst [vmem:[#allocation16_spill] sm:$0xff] %v7039_v58  ;;  %737 = vperm.xlu1 %5989, %v7032_v63   ;;  %732 = vperm.xlu0 %5988, %v7035_v0  }
  0x9b   : > { %v7043_v59 = vpop.permute.xlu1 %437  ;;  %v7045_v60 = vpop.permute.xlu0 %427 }
  0x9c   : > { %11452 = vst [vmem:[#allocation17_spill] sm:$0xff] %v7043_v59  ;;  %11453 = vst [vmem:[#allocation18_spill] sm:$0xff] %v7045_v60  ;;  %5991 = vset.pattern.permute.xlu1 %v6661_v55  ;;  %5990 = vset.pattern.permute.xlu0 %v6661_v55 }
  0x9d   : > { %813 = vperm.xlu1 %5991, %v6795_v4   ;;  %809 = vperm.xlu0 %5990, %v6787_v2  }
  0x9f   : > { %v7049_v61 = vpop.permute.xlu1 %447  ;;  %v7051_v57 = vpop.permute.xlu0 %442 }
  0xa0   : > { %11454 = vst [vmem:[#allocation19_spill] sm:$0xff] %v7049_v61  ;;  %11455 = vst [vmem:[#allocation20_spill] sm:$0xff] %v7051_v57 }
  0xa1   : > { %817 = vperm.xlu1 %5991, %v6784_v1   ;;  %821 = vperm.xlu0 %5990, %v6792_v3  }
  0xa3   : > { %v7055_v58 = vpop.permute.xlu1 %457  ;;  %v7057_v59 = vpop.permute.xlu0 %452 }
  0xa4   : > { %11456 = vst [vmem:[#allocation21_spill] sm:$0xff] %v7055_v58  ;;  %11457 = vst [vmem:[#allocation22_spill] sm:$0xff] %v7057_v59 }
  0xa5   : > { %825 = vperm.xlu1 %5991, %v6803_v6   ;;  %829 = vperm.xlu0 %5990, %v6800_v5  }
  0xa7   : > { %v7061_v55 = vpop.permute.xlu1 %467  ;;  %v7063_v60 = vpop.permute.xlu0 %462 }
  0xa8   : > { %11458 = vst [vmem:[#allocation23_spill] sm:$0xff] %v7061_v55  ;;  %11459 = vst [vmem:[#allocation24_spill] sm:$0xff] %v7063_v60 }
  0xa9   : > { %833 = vperm.xlu1 %5991, %v6811_v8   ;;  %837 = vperm.xlu0 %5990, %v6808_v7  }
  0xab   : > { %v7067_v61 = vpop.permute.xlu1 %477  ;;  %v7069_v57 = vpop.permute.xlu0 %472 }
  0xac   : > { %11460 = vst [vmem:[#allocation25_spill] sm:$0xff] %v7067_v61  ;;  %11461 = vst [vmem:[#allocation26_spill] sm:$0xff] %v7069_v57 }
  0xad   : > { %841 = vperm.xlu1 %5991, %v6819_v10   ;;  %845 = vperm.xlu0 %5990, %v6816_v9  }
  0xaf   : > { %v7073_v58 = vpop.permute.xlu1 %487  ;;  %v7075_v59 = vpop.permute.xlu0 %482 }
  0xb0   : > { %11462 = vst [vmem:[#allocation27_spill] sm:$0xff] %v7073_v58  ;;  %11463 = vst [vmem:[#allocation28_spill] sm:$0xff] %v7075_v59 }
  0xb1   : > { %849 = vperm.xlu1 %5991, %v6827_v12   ;;  %853 = vperm.xlu0 %5990, %v6824_v11  }
  0xb3   : > { %v7079_v55 = vpop.permute.xlu1 %497  ;;  %v7081_v60 = vpop.permute.xlu0 %492 }
  0xb4   : > { %11464 = vst [vmem:[#allocation29_spill] sm:$0xff] %v7079_v55  ;;  %11465 = vst [vmem:[#allocation30_spill] sm:$0xff] %v7081_v60 }
  0xb5   : > { %857 = vperm.xlu1 %5991, %v6835_v14   ;;  %861 = vperm.xlu0 %5990, %v6832_v13  }
  0xb7   : > { %v7085_v61 = vpop.permute.xlu1 %507  ;;  %v7087_v57 = vpop.permute.xlu0 %502 }
  0xb8   : > { %11466 = vst [vmem:[#allocation31_spill] sm:$0xff] %v7085_v61  ;;  %11467 = vst [vmem:[#allocation32_spill] sm:$0xff] %v7087_v57 }
  0xb9   : > { %865 = vperm.xlu1 %5991, %v6843_v16   ;;  %869 = vperm.xlu0 %5990, %v6840_v15  }
  0xbb   : > { %v7091_v58 = vpop.permute.xlu1 %517  ;;  %v7093_v59 = vpop.permute.xlu0 %512 }
  0xbc   : > { %11468 = vst [vmem:[#allocation33_spill] sm:$0xff] %v7091_v58  ;;  %11469 = vst [vmem:[#allocation34_spill] sm:$0xff] %v7093_v59 }
  0xbd   : > { %873 = vperm.xlu1 %5991, %v6851_v18   ;;  %877 = vperm.xlu0 %5990, %v6848_v17  }
  0xbf   : > { %v7097_v55 = vpop.permute.xlu1 %527  ;;  %v7099_v60 = vpop.permute.xlu0 %522 }
  0xc0   : > { %11470 = vst [vmem:[#allocation35_spill] sm:$0xff] %v7097_v55  ;;  %11471 = vst [vmem:[#allocation36_spill] sm:$0xff] %v7099_v60 }
  0xc1   : > { %881 = vperm.xlu1 %5991, %v6859_v20   ;;  %885 = vperm.xlu0 %5990, %v6856_v19  }
  0xc3   : > { %v7103_v61 = vpop.permute.xlu1 %537  ;;  %v7105_v57 = vpop.permute.xlu0 %532 }
  0xc4   : > { %11472 = vst [vmem:[#allocation37_spill] sm:$0xff] %v7103_v61  ;;  %11473 = vst [vmem:[#allocation38_spill] sm:$0xff] %v7105_v57 }
  0xc5   : > { %889 = vperm.xlu1 %5991, %v6867_v22   ;;  %893 = vperm.xlu0 %5990, %v6864_v21  }
  0xc7   : > { %v7109_v58 = vpop.permute.xlu1 %547  ;;  %v7111_v59 = vpop.permute.xlu0 %542 }
  0xc8   : > { %11474 = vst [vmem:[#allocation39_spill] sm:$0xff] %v7109_v58  ;;  %11475 = vst [vmem:[#allocation40_spill] sm:$0xff] %v7111_v59 }
  0xc9   : > { %897 = vperm.xlu1 %5991, %v6875_v24   ;;  %901 = vperm.xlu0 %5990, %v6872_v23  }
  0xcb   : > { %v7115_v55 = vpop.permute.xlu1 %557  ;;  %v7117_v60 = vpop.permute.xlu0 %552 }
  0xcc   : > { %11476 = vst [vmem:[#allocation41_spill] sm:$0xff] %v7115_v55  ;;  %11477 = vst [vmem:[#allocation42_spill] sm:$0xff] %v7117_v60 }
  0xcd   : > { %905 = vperm.xlu1 %5991, %v6883_v26   ;;  %909 = vperm.xlu0 %5990, %v6880_v25  }
  0xcf   : > { %v7121_v61 = vpop.permute.xlu1 %567  ;;  %v7123_v57 = vpop.permute.xlu0 %562 }
  0xd0   : > { %11478 = vst [vmem:[#allocation43_spill] sm:$0xff] %v7121_v61  ;;  %11479 = vst [vmem:[#allocation44_spill] sm:$0xff] %v7123_v57 }
  0xd1   : > { %913 = vperm.xlu1 %5991, %v6891_v28   ;;  %917 = vperm.xlu0 %5990, %v6888_v27  }
  0xd3   : > { %v7127_v58 = vpop.permute.xlu1 %577  ;;  %v7129_v59 = vpop.permute.xlu0 %572 }
  0xd4   : > { %11480 = vst [vmem:[#allocation45_spill] sm:$0xff] %v7127_v58  ;;  %11481 = vst [vmem:[#allocation46_spill] sm:$0xff] %v7129_v59 }
  0xd5   : > { %921 = vperm.xlu1 %5991, %v6899_v30   ;;  %925 = vperm.xlu0 %5990, %v6896_v29  }
  0xd7   : > { %v7133_v55 = vpop.permute.xlu1 %587  ;;  %v7135_v60 = vpop.permute.xlu0 %582 }
  0xd8   : > { %11482 = vst [vmem:[#allocation47_spill] sm:$0xff] %v7133_v55  ;;  %11483 = vst [vmem:[#allocation48_spill] sm:$0xff] %v7135_v60 }
  0xd9   : > { %929 = vperm.xlu1 %5991, %v6907_v32   ;;  %933 = vperm.xlu0 %5990, %v6904_v31  }
  0xdb   : > { %v7139_v61 = vpop.permute.xlu1 %597  ;;  %v7141_v57 = vpop.permute.xlu0 %592 }
  0xdc   : > { %11484 = vst [vmem:[#allocation49_spill] sm:$0xff] %v7139_v61  ;;  %11485 = vst [vmem:[#allocation50_spill] sm:$0xff] %v7141_v57 }
  0xdd   : > { %937 = vperm.xlu1 %5991, %v6915_v34   ;;  %941 = vperm.xlu0 %5990, %v6912_v33  }
  0xdf   : > { %v7145_v58 = vpop.permute.xlu1 %607  ;;  %v7147_v59 = vpop.permute.xlu0 %602 }
  0xe0   : > { %11486 = vst [vmem:[#allocation51_spill] sm:$0xff] %v7145_v58  ;;  %11487 = vst [vmem:[#allocation52_spill] sm:$0xff] %v7147_v59 }
  0xe1   : > { %945 = vperm.xlu1 %5991, %v6923_v36   ;;  %949 = vperm.xlu0 %5990, %v6920_v35  }
  0xe3   : > { %v7151_v55 = vpop.permute.xlu1 %617  ;;  %v7153_v60 = vpop.permute.xlu0 %612 }
  0xe4   : > { %11488 = vst [vmem:[#allocation53_spill] sm:$0xff] %v7151_v55  ;;  %11489 = vst [vmem:[#allocation54_spill] sm:$0xff] %v7153_v60 }
  0xe5   : > { %953 = vperm.xlu1 %5991, %v6931_v38   ;;  %957 = vperm.xlu0 %5990, %v6928_v37  }
  0xe7   : > { %v7157_v61 = vpop.permute.xlu1 %627  ;;  %v7159_v57 = vpop.permute.xlu0 %622 }
  0xe8   : > { %11490 = vst [vmem:[#allocation55_spill] sm:$0xff] %v7157_v61  ;;  %11491 = vst [vmem:[#allocation56_spill] sm:$0xff] %v7159_v57 }
  0xe9   : > { %961 = vperm.xlu1 %5991, %v6939_v40   ;;  %965 = vperm.xlu0 %5990, %v6936_v39  }
  0xeb   : > { %v7163_v58 = vpop.permute.xlu1 %637  ;;  %v7165_v59 = vpop.permute.xlu0 %632 }
  0xec   : > { %11492 = vst [vmem:[#allocation57_spill] sm:$0xff] %v7163_v58  ;;  %11493 = vst [vmem:[#allocation58_spill] sm:$0xff] %v7165_v59 }
  0xed   : > { %969 = vperm.xlu1 %5991, %v6947_v42   ;;  %973 = vperm.xlu0 %5990, %v6944_v41  }
  0xef   : > { %v7169_v55 = vpop.permute.xlu1 %647  ;;  %v7171_v60 = vpop.permute.xlu0 %642 }
  0xf0   : > { %11494 = vst [vmem:[#allocation59_spill] sm:$0xff] %v7169_v55  ;;  %11495 = vst [vmem:[#allocation60_spill] sm:$0xff] %v7171_v60 }
  0xf1   : > { %977 = vperm.xlu1 %5991, %v6955_v44   ;;  %981 = vperm.xlu0 %5990, %v6952_v43  }
  0xf3   : > { %v7175_v61 = vpop.permute.xlu1 %657  ;;  %v7177_v57 = vpop.permute.xlu0 %652 }
  0xf4   : > { %11496 = vst [vmem:[#allocation61_spill] sm:$0xff] %v7175_v61  ;;  %11497 = vst [vmem:[#allocation62_spill] sm:$0xff] %v7177_v57 }
  0xf5   : > { %985 = vperm.xlu1 %5991, %v6963_v46   ;;  %989 = vperm.xlu0 %5990, %v6960_v45  }
  0xf7   : > { %v7181_v58 = vpop.permute.xlu1 %667  ;;  %v7183_v59 = vpop.permute.xlu0 %662 }
  0xf8   : > { %11498 = vst [vmem:[#allocation63_spill] sm:$0xff] %v7181_v58  ;;  %11499 = vst [vmem:[#allocation64_spill] sm:$0xff] %v7183_v59 }
  0xf9   : > { %993 = vperm.xlu1 %5991, %v6971_v48   ;;  %997 = vperm.xlu0 %5990, %v6968_v47  }
  0xfb   : > { %v7187_v55 = vpop.permute.xlu1 %677  ;;  %v7189_v60 = vpop.permute.xlu0 %672 }
  0xfc   : > { %11500 = vst [vmem:[#allocation65_spill] sm:$0xff] %v7187_v55  ;;  %11501 = vst [vmem:[#allocation66_spill] sm:$0xff] %v7189_v60 }
  0xfd   : > { %1001 = vperm.xlu1 %5991, %v6979_v50   ;;  %1005 = vperm.xlu0 %5990, %v6976_v49  }
  0xff   : > { %v7193_v61 = vpop.permute.xlu1 %687  ;;  %v7195_v57 = vpop.permute.xlu0 %682 }
 0x100   : > { %11502 = vst [vmem:[#allocation67_spill] sm:$0xff] %v7193_v61  ;;  %11503 = vst [vmem:[#allocation68_spill] sm:$0xff] %v7195_v57  ;;  %v11508_v61 = vld [vmem:[#allocation7_spill] sm:$0xff] }
 0x101   : > { %1009 = vperm.xlu1 %5991, %v6987_v52   ;;  %1013 = vperm.xlu0 %5990, %v6984_v51   ;;  %v11511_v51 = vld [vmem:[#allocation10_spill] sm:$0xff] }
 0x103   : > { %v7199_v58 = vpop.permute.xlu1 %697  ;;  %v7201_v59 = vpop.permute.xlu0 %692 }
 0x104   : > { %11504 = vst [vmem:[#allocation69_spill] sm:$0xff] %v7199_v58  ;;  %11505 = vst [vmem:[#allocation70_spill] sm:$0xff] %v7201_v59  ;;  %v11512_v58 = vld [vmem:[#allocation9_spill] sm:$0xff] }
 0x105   : > { %1017 = vperm.xlu1 %5991, %v6995_v54   ;;  %1021 = vperm.xlu0 %5990, %v6992_v53   ;;  %v11515_v53 = vld [vmem:[#allocation12_spill] sm:$0xff] }
 0x107   : > { %v7205_v55 = vpop.permute.xlu1 %707  ;;  %v7207_v60 = vpop.permute.xlu0 %702 }
 0x108   : > { %11506 = vst [vmem:[#allocation71_spill] sm:$0xff] %v7205_v55  ;;  %11507 = vst [vmem:[#allocation72_spill] sm:$0xff] %v7207_v60  ;;  %v11516_v55 = vld [vmem:[#allocation11_spill] sm:$0xff] }
 0x109   : > { %1025 = vperm.xlu1 %5991, %v7003_v56   ;;  %1029 = vperm.xlu0 %5990, %v11508_v61  }
 0x10b   : > { %v7211_v57 = vpop.permute.xlu1 %717  ;;  %v7213_v49 = vpop.permute.xlu0 %712 }
 0x10c   : > { %11509 = vst [vmem:[#allocation73_spill] sm:$0xff] %v7211_v57  ;;  %11510 = vst [vmem:[#allocation74_spill] sm:$0xff] %v7213_v49  ;;  %v11519_v57 = vld [vmem:[#allocation13_spill] sm:$0xff] }
 0x10d   : > { %1033 = vperm.xlu1 %5991, %v11511_v51   ;;  %1037 = vperm.xlu0 %5990, %v11512_v58  }
 0x10f   : > { %v7217_v59 = vpop.permute.xlu1 %727  ;;  %v7219_v54 = vpop.permute.xlu0 %722 }
 0x110   : > { %11513 = vst [vmem:[#allocation10_spill] sm:$0xff] %v7217_v59  ;;  %11514 = vst [vmem:[#allocation9_spill] sm:$0xff] %v7219_v54  ;;  %v1722_v59 = vld [vmem:[%s11144_s3 + $0x18] sm:$0xff]  ;;  %v1721_v54 = vld [vmem:[%s11144_s3 + $0x10] sm:$0xff] }
 0x111   : > { %1041 = vperm.xlu1 %5991, %v11515_v53   ;;  %1045 = vperm.xlu0 %5990, %v11516_v55  }
 0x112   : > { %5662 = vmatprep.subr.mxu0 %v1722_v59 }
 0x113   : > { %v7223_v60 = vpop.permute.xlu1 %737  ;;  %v7225_v56 = vpop.permute.xlu0 %732  ;;  %5663 = vmatpush3.msra.mxu0 %v1722_v59  ;;  %v1719_v59 = vld [vmem:[%s11144_s3] sm:$0xff] }
 0x114   : > { %11517 = vst [vmem:[#allocation12_spill] sm:$0xff] %v7223_v60  ;;  %11518 = vst [vmem:[#allocation11_spill] sm:$0xff] %v7225_v56  ;;  %5664 = vmatprep.subr.mxu0 %v1721_v54 }
 0x115   : > { %1049 = vperm.xlu1 %5991, %v7027_v62   ;;  %1053 = vperm.xlu0 %5990, %v11519_v57   ;;  %v6662_v57 = vmov 2  }
 0x116   : > { %5665 = vmatpush3.msra.mxu0 %v1721_v54 }
 0x118   : > { %v7229_v49 = vpop.permute.xlu1 %813  ;;  %v7231_v61 = vpop.permute.xlu0 %809 }
 0x119   : > { %1057 = vperm.xlu1 %5991, %v7035_v0   ;;  %1061 = vperm.xlu0 %5990, %v7032_v63   ;;  %v1720_v63 = vld [vmem:[%s11144_s3 + $0x8] sm:$0xff] }
 0x11a   : > { %5666 = vmatprep.subr.mxu0 %v1720_v63 }
 0x11b   : > { %5667 = vmatpush3.msra.mxu0 %v1720_v63 }
 0x11c   : > { %v7238_v60 = vpop.permute.xlu1 %817  ;;  %v7240_v56 = vpop.permute.xlu0 %821  ;;  %5668 = vmatprep.subr.mxu0 %v1719_v59 }
 0x11d   : > { %11520 = vst [vmem:[#allocation75_spill] sm:$0xff] %v7238_v60  ;;  %11521 = vst [vmem:[#allocation76_spill] sm:$0xff] %v7240_v56  ;;  %5992 = vset.pattern.permute.xlu1 %v6662_v57  ;;  %5993 = vset.pattern.permute.xlu0 %v6662_v57 }
 0x11e   : > { %1197 = vperm.xlu1 %5992, %v6787_v2   ;;  %1201 = vperm.xlu0 %5993, %v6795_v4  }
 0x11f   : > { %5669 = vmatpush3.msra.mxu0 %v1719_v59 }
 0x120   : > { %v7250_v60 = vpop.permute.xlu1 %825  ;;  %v7252_v56 = vpop.permute.xlu0 %829 }
 0x122   : > { %1205 = vperm.xlu1 %5992, %v6784_v1   ;;  %1213 = vperm.xlu0 %5993, %v6803_v6  }
 0x124   : > { %v7259_v2 = vpop.permute.xlu1 %833  ;;  %v7261_v4 = vpop.permute.xlu0 %837 }
 0x126   : > { %1209 = vperm.xlu1 %5992, %v6792_v3   ;;  %1221 = vperm.xlu0 %5993, %v6811_v8  }
 0x128   : > { %v7265_v54 = vpop.permute.xlu1 %841  ;;  %v7267_v57 = vpop.permute.xlu0 %845 }
 0x12a   : > { %1217 = vperm.xlu1 %5992, %v6800_v5   ;;  %1229 = vperm.xlu0 %5993, %v6819_v10  }
 0x12c   : > { %v7271_v1 = vpop.permute.xlu1 %849  ;;  %v7273_v6 = vpop.permute.xlu0 %853 }
 0x12e   : > { %1225 = vperm.xlu1 %5992, %v6808_v7   ;;  %1237 = vperm.xlu0 %5993, %v6827_v12  }
 0x130   : > { %v7277_v63 = vpop.permute.xlu1 %857  ;;  %v7279_v3 = vpop.permute.xlu0 %861 }
 0x132   : > { %1233 = vperm.xlu1 %5992, %v6816_v9   ;;  %1245 = vperm.xlu0 %5993, %v6835_v14  }
 0x134   : > { %v7283_v8 = vpop.permute.xlu1 %865  ;;  %v7285_v5 = vpop.permute.xlu0 %869 }
 0x136   : > { %1241 = vperm.xlu1 %5992, %v6824_v11   ;;  %1253 = vperm.xlu0 %5993, %v6843_v16  }
 0x138   : > { %v7289_v10 = vpop.permute.xlu1 %873  ;;  %v7291_v7 = vpop.permute.xlu0 %877 }
 0x13a   : > { %1249 = vperm.xlu1 %5992, %v6832_v13   ;;  %1261 = vperm.xlu0 %5993, %v6851_v18  }
 0x13c   : > { %v7295_v12 = vpop.permute.xlu1 %881  ;;  %v7297_v9 = vpop.permute.xlu0 %885 }
 0x13e   : > { %1257 = vperm.xlu1 %5992, %v6840_v15   ;;  %1269 = vperm.xlu0 %5993, %v6859_v20  }
 0x140   : > { %v7301_v14 = vpop.permute.xlu1 %889  ;;  %v7303_v11 = vpop.permute.xlu0 %893 }
 0x142   : > { %1265 = vperm.xlu1 %5992, %v6848_v17   ;;  %1277 = vperm.xlu0 %5993, %v6867_v22  }
 0x144   : > { %v7307_v16 = vpop.permute.xlu1 %897  ;;  %v7309_v13 = vpop.permute.xlu0 %901 }
 0x146   : > { %1273 = vperm.xlu1 %5992, %v6856_v19   ;;  %1285 = vperm.xlu0 %5993, %v6875_v24  }
 0x148   : > { %v7313_v18 = vpop.permute.xlu1 %905  ;;  %v7315_v15 = vpop.permute.xlu0 %909 }
 0x14a   : > { %1281 = vperm.xlu1 %5992, %v6864_v21   ;;  %1293 = vperm.xlu0 %5993, %v6883_v26  }
 0x14c   : > { %v7319_v20 = vpop.permute.xlu1 %913  ;;  %v7321_v17 = vpop.permute.xlu0 %917 }
 0x14e   : > { %1289 = vperm.xlu1 %5992, %v6872_v23   ;;  %1301 = vperm.xlu0 %5993, %v6891_v28  }
 0x150   : > { %v7325_v22 = vpop.permute.xlu1 %921  ;;  %v7327_v19 = vpop.permute.xlu0 %925 }
 0x152   : > { %1297 = vperm.xlu1 %5992, %v6880_v25   ;;  %1309 = vperm.xlu0 %5993, %v6899_v30  }
 0x154   : > { %v7331_v24 = vpop.permute.xlu1 %929  ;;  %v7333_v21 = vpop.permute.xlu0 %933 }
 0x156   : > { %1305 = vperm.xlu1 %5992, %v6888_v27   ;;  %1317 = vperm.xlu0 %5993, %v6907_v32  }
 0x158   : > { %v7337_v26 = vpop.permute.xlu1 %937  ;;  %v7339_v23 = vpop.permute.xlu0 %941 }
 0x15a   : > { %1313 = vperm.xlu1 %5992, %v6896_v29   ;;  %1325 = vperm.xlu0 %5993, %v6915_v34  }
 0x15c   : > { %v7343_v28 = vpop.permute.xlu1 %945  ;;  %v7345_v25 = vpop.permute.xlu0 %949 }
 0x15e   : > { %1321 = vperm.xlu1 %5992, %v6904_v31   ;;  %1333 = vperm.xlu0 %5993, %v6923_v36  }
 0x160   : > { %v7349_v30 = vpop.permute.xlu1 %953  ;;  %v7351_v27 = vpop.permute.xlu0 %957 }
 0x161   : > { %11522 = vst [vmem:[#allocation77_spill] sm:$0xff] %v7351_v27 }
 0x162   : > { %1329 = vperm.xlu1 %5992, %v6912_v33   ;;  %1341 = vperm.xlu0 %5993, %v6931_v38  }
 0x164   : > { %v7355_v32 = vpop.permute.xlu1 %961  ;;  %v7357_v29 = vpop.permute.xlu0 %965 }
 0x165   : > { %11523 = vst [vmem:[#allocation78_spill] sm:$0xff] %v7357_v29 }
 0x166   : > { %1337 = vperm.xlu1 %5992, %v6920_v35   ;;  %1349 = vperm.xlu0 %5993, %v6939_v40   ;;  %v7380_v40 = vld [vmem:[%s11146_s5 + $0x78] sm:$0xff] }
 0x167   : > { %5766 = vmatprep.subr.mxu0 %v7380_v40  ;;  %5894 = vmatprep.subr.mxu1 %v7380_v40 }
 0x168   : > { %v7361_v34 = vpop.permute.xlu1 %969  ;;  %v7363_v31 = vpop.permute.xlu0 %973  ;;  %5910 = vmatpush3.msra.mxu1 %v7380_v40 }
 0x169   : > { %11524 = vst [vmem:[#allocation79_spill] sm:$0xff] %v7361_v34  ;;  %11525 = vst [vmem:[#allocation80_spill] sm:$0xff] %v7363_v31  ;;  %v11561_v34 = vld [vmem:[#allocation14_spill] sm:$0xff] }
 0x16a   : > { %1345 = vperm.xlu1 %5992, %v6928_v37   ;;  %1357 = vperm.xlu0 %5993, %v6947_v42  }
 0x16c   : > { %v7367_v36 = vpop.permute.xlu1 %977  ;;  %v7369_v33 = vpop.permute.xlu0 %981 }
 0x16d   : > { %11526 = vst [vmem:[#allocation81_spill] sm:$0xff] %v7367_v36  ;;  %11527 = vst [vmem:[#allocation82_spill] sm:$0xff] %v7369_v33 }
 0x16e   : > { %1353 = vperm.xlu1 %5992, %v6936_v39   ;;  %1365 = vperm.xlu0 %5993, %v6955_v44  }
 0x170   : > { %v7373_v38 = vpop.permute.xlu1 %985  ;;  %v7375_v35 = vpop.permute.xlu0 %989 }
 0x171   : > { %11528 = vst [vmem:[#allocation83_spill] sm:$0xff] %v7373_v38  ;;  %11529 = vst [vmem:[#allocation84_spill] sm:$0xff] %v7375_v35  ;;  %v11556_v35 = vld [vmem:[#allocation75_spill] sm:$0xff] }
 0x172   : > { %1361 = vperm.xlu1 %5992, %v6944_v41   ;;  %1373 = vperm.xlu0 %5993, %v6963_v46   ;;  %v7400_v41 = vld [vmem:[%s11146_s5 + $0x70] sm:$0xff] }
 0x173   : > { %5895 = vmatprep.subr.mxu1 %v7400_v41 }
 0x174   : > { %v7387_v37 = vpop.permute.xlu1 %993  ;;  %v7389_v39 = vpop.permute.xlu0 %997  ;;  %5911 = vmatpush3.msra.mxu1 %v7400_v41 }
 0x175   : > { %11530 = vst [vmem:[#allocation85_spill] sm:$0xff] %v7387_v37  ;;  %11531 = vst [vmem:[#allocation86_spill] sm:$0xff] %v7389_v39 }
 0x176   : > { %1369 = vperm.xlu1 %5992, %v6952_v43   ;;  %1381 = vperm.xlu0 %5993, %v6971_v48  }
 0x178   : > { %v7393_v42 = vpop.permute.xlu1 %1001  ;;  %v7395_v44 = vpop.permute.xlu0 %1005 }
 0x179   : > { %11532 = vst [vmem:[#allocation87_spill] sm:$0xff] %v7393_v42  ;;  %11533 = vst [vmem:[#allocation88_spill] sm:$0xff] %v7395_v44  ;;  %v11539_v44 = vld [vmem:[#allocation6_spill] sm:$0xff] }
 0x17a   : > { %1377 = vperm.xlu1 %5992, %v6960_v45   ;;  %1389 = vperm.xlu0 %5993, %v6979_v50   ;;  %v7419_v45 = vld [vmem:[%s11146_s5 + $0x68] sm:$0xff]  ;;  %v11538_v50 = vld [vmem:[#allocation3_spill] sm:$0xff] }
 0x17b   : > { %5896 = vmatprep.subr.mxu1 %v7419_v45 }
 0x17c   : > { %v7406_v43 = vpop.permute.xlu1 %1009  ;;  %v7408_v46 = vpop.permute.xlu0 %1013  ;;  %5912 = vmatpush3.msra.mxu1 %v7419_v45 }
 0x17d   : > { %11534 = vst [vmem:[#allocation89_spill] sm:$0xff] %v7406_v43  ;;  %11535 = vst [vmem:[#allocation90_spill] sm:$0xff] %v7408_v46  ;;  %v11542_v46 = vld [vmem:[#allocation4_spill] sm:$0xff] }
 0x17e   : > { %1385 = vperm.xlu1 %5992, %v6968_v47   ;;  %1397 = vperm.xlu0 %5993, %v6987_v52  }
 0x180   : > { %v7412_v48 = vpop.permute.xlu1 %1017  ;;  %v7414_v59 = vpop.permute.xlu0 %1021 }
 0x181   : > { %11536 = vst [vmem:[#allocation91_spill] sm:$0xff] %v7412_v48  ;;  %11537 = vst [vmem:[#allocation92_spill] sm:$0xff] %v7414_v59  ;;  %v11543_v59 = vld [vmem:[#allocation8_spill] sm:$0xff]  ;;  %v740_v48 = vlaneseq }
 0x182   : > { %1393 = vperm.xlu1 %5992, %v11538_v50   ;;  %1405 = vperm.xlu0 %5993, %v11539_v44   ;;  %v7438_v50 = vld [vmem:[%s11146_s5 + $0x60] sm:$0xff]  ;;  %v11546_v44 = vld [vmem:[#allocation5_spill] sm:$0xff] }
 0x183   : > { %5897 = vmatprep.subr.mxu1 %v7438_v50 }
 0x184   : > { %v7425_v47 = vpop.permute.xlu1 %1025  ;;  %v7427_v52 = vpop.permute.xlu0 %1029  ;;  %5913 = vmatpush3.msra.mxu1 %v7438_v50 }
 0x185   : > { %11540 = vst [vmem:[#allocation3_spill] sm:$0xff] %v7425_v47  ;;  %11541 = vst [vmem:[#allocation6_spill] sm:$0xff] %v7427_v52  ;;  %v741_v52 = vshrl.u32 %v740_v48, 7  ;;  %v419_v47 = vld [vmem:[%s11142_s1] sm:$0x7] }
 0x186   : > { %1401 = vperm.xlu1 %5992, %v11542_v46   ;;  %1413 = vperm.xlu0 %5993, %v11543_v59  }
 0x187   : > { %v742_v48 = vsub.s32 0, %v741_v52 }
 0x188   : > { %v7431_v43 = vpop.permute.xlu1 %1033  ;;  %v7433_v39 = vpop.permute.xlu0 %1037 }
 0x189   : > { %11544 = vst [vmem:[#allocation4_spill] sm:$0xff] %v7431_v43  ;;  %11545 = vst [vmem:[#allocation8_spill] sm:$0xff] %v7433_v39  ;;  %v1066_v43 = vsub.s32 1, %v741_v52  ;;  %v11549_v39 = vld [vmem:[#allocation7_spill] sm:$0xff] }
 0x18a   : > { %1409 = vperm.xlu1 %5992, %v11546_v44   ;;  %1421 = vperm.xlu0 %5993, %v11511_v51   ;;  %v7460_v51 = vld [vmem:[%s11146_s5 + $0x58] sm:$0xff] }
 0x18b   : > { %5898 = vmatprep.subr.mxu1 %v7460_v51 }
 0x18c   : > { %v7444_v46 = vpop.permute.xlu1 %1041  ;;  %v7446_v59 = vpop.permute.xlu0 %1045  ;;  %5914 = vmatpush3.msra.mxu1 %v7460_v51 }
 0x18d   : > { %11547 = vst [vmem:[#allocation5_spill] sm:$0xff] %v7444_v46  ;;  %11548 = vst [vmem:[#allocation93_spill] sm:$0xff] %v7446_v59  ;;  %v7462_v59 = vrot.slane %v419_v47, %v1066_v43 }
 0x18e   : > { %1417 = vperm.xlu1 %5992, %v11549_v39   ;;  %1429 = vperm.xlu0 %5993, %v11515_v53   ;;  %v1454_v53 = vsub.s32 2, %v741_v52 }
 0x18f   : > { %v1069_v46 = vmul.f32 %v7462_v59, %v7229_v49  ;;  %v1068_v43 = vmul.f32 %v7462_v59, %v7231_v61  ;;  %v1070_v61 = vmul.f32 %v7462_v59, %v11556_v35  ;;  %v7505_v35 = vld [vmem:[%s11143_s2] ss:$0 sm:$0xff] }
 0x190   : > { %v7453_v42 = vpop.permute.xlu1 %1049  ;;  %v7455_v44 = vpop.permute.xlu0 %1053 }
 0x191   : > { %11550 = vst [vmem:[#allocation7_spill] sm:$0xff] %v7453_v42  ;;  %11551 = vst [vmem:[#allocation94_spill] sm:$0xff] %v7455_v44  ;;  %v7472_v42 = vrot.slane %v419_v47, %v742_v48  ;;  %v7489_v48 = vld [vmem:[%s11146_s5 + $0x50] sm:$0xff] }
 0x192   : > { %1425 = vperm.xlu1 %5992, %v11512_v58   ;;  %1437 = vperm.xlu0 %5993, %v7027_v62   ;;  %v7480_v58 = vrot.slane %v419_v47, %v1454_v53  ;;  %v11554_v62 = vld [vmem:[#allocation18_spill] sm:$0xff] }
 0x193   : > { %v745_v52 = vmul.f32 %v7472_v42, %v11554_v62  ;;  %5899 = vmatprep.subr.mxu1 %v7489_v48  ;;  %v11557_v62 = vld [vmem:[#allocation13_spill] sm:$0xff] }
 0x194   : > { %v7468_v39 = vpop.permute.xlu1 %1057  ;;  %v7470_v44 = vpop.permute.xlu0 %1061  ;;  %5915 = vmatpush3.msra.mxu1 %v7489_v48 }
 0x195   : > { %11552 = vst [vmem:[#allocation95_spill] sm:$0xff] %v7468_v39  ;;  %11553 = vst [vmem:[#allocation96_spill] sm:$0xff] %v7470_v44  ;;  %v11555_v39 = vld [vmem:[#allocation16_spill] sm:$0xff]  ;;  %v1133_v49 = vadd.f32 %v1069_v46, %v745_v52  ;;  %v1072_v46 = vmul.f32 %v7462_v59, %v7250_v60 }
 0x196   : > { %1433 = vperm.xlu1 %5992, %v11516_v55   ;;  %1445 = vperm.xlu0 %5993, %v7035_v0   ;;  %v744_v44 = vmul.f32 %v7472_v42, %v11555_v39  ;;  %v11558_v39 = vld [vmem:[#allocation15_spill] sm:$0xff]  ;;  %v11559_v52 = vld [vmem:[#allocation20_spill] sm:$0xff] }
 0x197   : > { %v746_v33 = vmul.f32 %v7472_v42, %v11558_v39 }
 0x198   : > { %v1132_v0 = vadd.f32 %v1068_v43, %v744_v44 }
 0x199   : > { %v1198_v55 = vpop.permute.xlu1 %1197  ;;  %v1202_v37 = vpop.permute.xlu0 %1201 }
 0x19a   : > { %v1456_v47 = vmul.f32 %v7480_v58, %v1198_v55  ;;  %v1457_v53 = vmul.f32 %v7480_v58, %v1202_v37  ;;  %1441 = vperm.xlu1 %5992, %v11557_v62   ;;  %v748_v37 = vmul.f32 %v7472_v42, %v11559_v52  ;;  %v1134_v55 = vadd.f32 %v1070_v61, %v746_v33  ;;  %v11560_v62 = vld [vmem:[#allocation76_spill] sm:$0xff] }
 0x19b   : > { %v1071_v38 = vmul.f32 %v7462_v59, %v11560_v62  ;;  %v1074_v33 = vmul.f32 %v7462_v59, %v7259_v2  ;;  %v1073_v2 = vmul.f32 %v7462_v59, %v7252_v56  ;;  %v11564_v56 = vld [vmem:[#allocation19_spill] sm:$0xff] }
 0x19c   : > { %v1520_v44 = vadd.f32 %v1456_v47, %v1132_v0  ;;  %v1521_v43 = vadd.f32 %v1457_v53, %v1133_v49  ;;  %v11562_v49 = vld [vmem:[#allocation17_spill] sm:$0xff]  ;;  %v1136_v53 = vadd.f32 %v1072_v46, %v748_v37 }
 0x19d   : > { %v1206_v31 = vpop.permute.xlu1 %1205  ;;  %v1214_v36 = vpop.permute.xlu0 %1213  ;;  %v747_v47 = vmul.f32 %v7472_v42, %v11562_v49 }
 0x19e   : > { %v1592_v39 = vadd.f32 %v7505_v35, %v1521_v43  ;;  %v1458_v60 = vmul.f32 %v7480_v58, %v1206_v31  ;;  %v1460_v29 = vmul.f32 %v7480_v58, %v1214_v36  ;;  %1449 = vperm.xlu1 %5992, %v11561_v34   ;;  %v1591_v0 = vadd.f32 %v7505_v35, %v1520_v44  ;;  %v7523_v31 = vld [vmem:[%s11146_s5 + $0x48] sm:$0xff]  ;;  %v11563_v36 = vld [vmem:[#allocation22_spill] sm:$0xff] }
 0x19f   : > { %v750_v34 = vmul.f32 %v7472_v42, %v11563_v36  ;;  %v1135_v44 = vadd.f32 %v1071_v38, %v747_v47  ;;  %5900 = vmatprep.subr.mxu1 %v7523_v31  ;;  %v1076_v38 = vmul.f32 %v7462_v59, %v7265_v54  ;;  %v1075_v54 = vmul.f32 %v7462_v59, %v7261_v4  ;;  %v7561_v4 = vld [vmem:[%s11146_s5 + $0x38] sm:$0xff] }
 0x1a0   : > { %v1656_v61 = vmax.f32 %v1592_v39, 0.0  ;;  %v1522_v52 = vadd.f32 %v1458_v60, %v1134_v55  ;;  %v1655_v62 = vmax.f32 %v1591_v0, 0.0  ;;  %v1524_v43 = vadd.f32 %v1460_v29, %v1136_v53  ;;  %v7540_v29 = vld [vmem:[%s11146_s5 + $0x40] sm:$0xff]  ;;  %5916 = vmatpush3.msra.mxu1 %v7523_v31  ;;  %v11565_v60 = vld [vmem:[#allocation24_spill] sm:$0xff] }
 0x1a1   : > { %v1210_v27 = vpop.permute.xlu1 %1209  ;;  %v1222_v49 = vpop.permute.xlu0 %1221  ;;  %v1138_v39 = vadd.f32 %v1074_v33, %v750_v34  ;;  %v752_v0 = vmul.f32 %v7472_v42, %v11565_v60  ;;  %5901 = vmatprep.subr.mxu1 %v7540_v29 }
 0x1a2   : > { %v1593_v46 = vadd.f32 %v7505_v35, %v1522_v52  ;;  %v1459_v37 = vmul.f32 %v7480_v58, %v1210_v27  ;;  %v1462_v55 = vmul.f32 %v7480_v58, %v1222_v49  ;;  %5670 = vmatprep.mubr.msk.f32.mxu0 %vm1730_vm0, %v1655_v62  ;;  %v749_v27 = vmul.f32 %v7472_v42, %v11564_v56 }
 0x1a3   : > { %5671 = vmatmul.mubr.msk.f32.vlgmr.msra.gmra.mxu0 %vm1730_vm0, %v1656_v61  ;;  %v1595_v33 = vadd.f32 %v7505_v35, %v1524_v43  ;;  %5917 = vmatpush3.msra.mxu1 %v7540_v29  ;;  %v11566_v43 = vld [vmem:[#allocation21_spill] sm:$0xff] }
 0x1a4   : > { %v1657_v47 = vmax.f32 %v1593_v46, 0.0  ;;  %v1523_v53 = vadd.f32 %v1459_v37, %v1135_v44  ;;  %5767 = vmatpush3.msra.mxu0 %v7380_v40  ;;  %v1526_v61 = vadd.f32 %v1462_v55, %v1138_v39  ;;  %v1137_v36 = vadd.f32 %v1073_v2, %v749_v27  ;;  %5902 = vmatprep.subr.mxu1 %v7561_v4  ;;  %v11567_v37 = vld [vmem:[#allocation26_spill] sm:$0xff]  ;;  %v7575_v27 = vld [vmem:[%s11146_s5 + $0x30] sm:$0xff] }
 0x1a5   : > { %v1218_v52 = vpop.permute.xlu1 %1217  ;;  %v1230_v62 = vpop.permute.xlu0 %1229  ;;  %5768 = vmatprep.subr.mxu0 %v7400_v41  ;;  %v751_v49 = vmul.f32 %v7472_v42, %v11566_v43  ;;  %v1140_v46 = vadd.f32 %v1076_v38, %v752_v0  ;;  %v1078_v2 = vmul.f32 %v7462_v59, %v7271_v1  ;;  %v754_v55 = vmul.f32 %v7472_v42, %v11567_v37  ;;  %v7599_v43 = vld [vmem:[%s11146_s5 + $0x28] sm:$0xff] }
 0x1a6   : > { %v1594_v34 = vadd.f32 %v7505_v35, %v1523_v53  ;;  %v1461_v44 = vmul.f32 %v7480_v58, %v1218_v52  ;;  %v1464_v40 = vmul.f32 %v7480_v58, %v1230_v62  ;;  %5673 = vmatprep.mubr.msk.f32.mxu0 %vm1730_vm0, %v1657_v47  ;;  %5769 = vmatpush3.msra.mxu0 %v7400_v41  ;;  %v1659_v1 = vmax.f32 %v1595_v33, 0.0 }
 0x1a7   : > { %5770 = vmatprep.subr.mxu0 %v7419_v45  ;;  %5918 = vmatpush3.msra.mxu1 %v7561_v4  ;;  %v1139_v38 = vadd.f32 %v1075_v54, %v751_v49  ;;  %v1597_v41 = vadd.f32 %v7505_v35, %v1526_v61  ;;  %v1077_v53 = vmul.f32 %v7462_v59, %v7267_v57  ;;  %v11569_v57 = vld [vmem:[#allocation28_spill] sm:$0xff] }
 0x1a8   : > { %v1658_v39 = vmax.f32 %v1594_v34, 0.0  ;;  %v1525_v56 = vadd.f32 %v1461_v44, %v1137_v36  ;;  %v1528_v60 = vadd.f32 %v1464_v40, %v1140_v46  ;;  %5771 = vmatpush3.msra.mxu0 %v7419_v45  ;;  %5903 = vmatprep.subr.mxu1 %v7575_v27  ;;  %v1142_v54 = vadd.f32 %v1078_v2, %v754_v55  ;;  %v11568_v45 = vld [vmem:[#allocation23_spill] sm:$0xff] }
 0x1a9   : > { %v1226_v0 = vpop.permute.xlu1 %1225  ;;  %v1238_v47 = vpop.permute.xlu0 %1237  ;;  %v1080_v33 = vmul.f32 %v7462_v59, %v7277_v63  ;;  %5772 = vmatprep.subr.mxu0 %v7438_v50  ;;  %v753_v61 = vmul.f32 %v7472_v42, %v11568_v45  ;;  %v756_v34 = vmul.f32 %v7472_v42, %v11569_v57  ;;  %5919 = vmatpush3.msra.mxu1 %v7575_v27  ;;  %v1661_v49 = vmax.f32 %v1597_v41, 0.0 }
 0x1aa   : > { %v1596_v52 = vadd.f32 %v7505_v35, %v1525_v56  ;;  %v1463_v62 = vmul.f32 %v7480_v58, %v1226_v0  ;;  %v1466_v36 = vmul.f32 %v7480_v58, %v1238_v47  ;;  %5674 = vmatmul.mubr.msk.f32.gmra.mxu0 %vm1730_vm0, %v1658_v39  ;;  %v1079_v63 = vmul.f32 %v7462_v59, %v7273_v6  ;;  %v11570_v6 = vld [vmem:[#allocation25_spill] sm:$0xff]  ;;  %v11571_v0 = vld [vmem:[#allocation30_spill] sm:$0xff] }
 0x1ab   : > { %5676 = vmatprep.mubr.msk.f32.mxu0 %vm1730_vm0, %v1659_v1  ;;  %5773 = vmatpush3.msra.mxu0 %v7438_v50  ;;  %v1599_v46 = vadd.f32 %v7505_v35, %v1528_v60  ;;  %v1141_v50 = vadd.f32 %v1077_v53, %v753_v61  ;;  %v755_v1 = vmul.f32 %v7472_v42, %v11570_v6 }
 0x1ac   : > { %v1660_v44 = vmax.f32 %v1596_v52, 0.0  ;;  %v1527_v40 = vadd.f32 %v1463_v62, %v1139_v38  ;;  %v1530_v2 = vadd.f32 %v1466_v36, %v1142_v54  ;;  %5774 = vmatprep.subr.mxu0 %v7460_v51  ;;  %5904 = vmatprep.subr.mxu1 %v7599_v43  ;;  %v1144_v41 = vadd.f32 %v1080_v33, %v756_v34  ;;  %v7623_v62 = vld [vmem:[%s11146_s5 + $0x20] sm:$0xff] }
 0x1ad   : > { %v1234_v37 = vpop.permute.xlu1 %1233  ;;  %v1246_v55 = vpop.permute.xlu0 %1245  ;;  %v1082_v60 = vmul.f32 %v7462_v59, %v7283_v8  ;;  %5775 = vmatpush3.msra.mxu0 %v7460_v51  ;;  %v758_v47 = vmul.f32 %v7472_v42, %v11571_v0  ;;  %5920 = vmatpush3.msra.mxu1 %v7599_v43  ;;  %v1143_v36 = vadd.f32 %v1079_v63, %v755_v1  ;;  %v1663_v8 = vmax.f32 %v1599_v46, 0.0 }
 0x1ae   : > { %v1598_v39 = vadd.f32 %v7505_v35, %v1527_v40  ;;  %v1465_v56 = vmul.f32 %v7480_v58, %v1234_v37  ;;  %v1468_v38 = vmul.f32 %v7480_v58, %v1246_v55  ;;  %5677 = vmatmul.mubr.msk.f32.gmra.mxu0 %vm1730_vm0, %v1660_v44  ;;  %5776 = vmatprep.subr.mxu0 %v7489_v48  ;;  %v7647_v55 = vld [vmem:[%s11146_s5 + $0x18] sm:$0xff] }
 0x1af   : > { %5679 = vmatprep.mubr.msk.f32.mxu0 %vm1730_vm0, %v1661_v49  ;;  %v1601_v54 = vadd.f32 %v7505_v35, %v1530_v2  ;;  %5777 = vmatpush3.msra.mxu0 %v7489_v48  ;;  %v1081_v61 = vmul.f32 %v7462_v59, %v7279_v3  ;;  %v1146_v40 = vadd.f32 %v1082_v60, %v758_v47  ;;  %v11572_v48 = vld [vmem:[#allocation27_spill] sm:$0xff]  ;;  %v11573_v3 = vld [vmem:[#allocation32_spill] sm:$0xff] }
 0x1b0   : > { %v1662_v53 = vmax.f32 %v1598_v39, 0.0  ;;  %v1529_v52 = vadd.f32 %v1465_v56, %v1141_v50  ;;  %v1532_v33 = vadd.f32 %v1468_v38, %v1144_v41  ;;  %5905 = vmatprep.subr.mxu1 %v7623_v62  ;;  %v1084_v63 = vmul.f32 %v7462_v59, %v7289_v10  ;;  %5778 = vmatprep.subr.mxu0 %v7523_v31 }
 0x1b1   : > { %v1242_v51 = vpop.permute.xlu1 %1241  ;;  %v1254_v45 = vpop.permute.xlu0 %1253  ;;  %v757_v49 = vmul.f32 %v7472_v42, %v11572_v48  ;;  %v760_v46 = vmul.f32 %v7472_v42, %v11573_v3  ;;  %5779 = vmatpush3.msra.mxu0 %v7523_v31  ;;  %5921 = vmatpush3.msra.mxu1 %v7623_v62  ;;  %v1083_v10 = vmul.f32 %v7462_v59, %v7285_v5  ;;  %v1665_v50 = vmax.f32 %v1601_v54, 0.0  ;;  %v11574_v5 = vld [vmem:[#allocation29_spill] sm:$0xff] }
 0x1b2   : > { %v1600_v57 = vadd.f32 %v7505_v35, %v1529_v52  ;;  %v1467_v34 = vmul.f32 %v7480_v58, %v1242_v51  ;;  %v1470_v44 = vmul.f32 %v7480_v58, %v1254_v45  ;;  %5680 = vmatmul.mubr.msk.f32.gmra.mxu0 %vm1730_vm0, %v1662_v53  ;;  %v1603_v39 = vadd.f32 %v7505_v35, %v1532_v33  ;;  %v11575_v52 = vld [vmem:[#allocation34_spill] sm:$0xff]  ;;  %v7671_v33 = vld [vmem:[%s11146_s5 + $0x10] sm:$0xff] }
 0x1b3   : > { %5682 = vmatprep.mubr.msk.f32.mxu0 %vm1730_vm0, %v1663_v8  ;;  %5780 = vmatprep.subr.mxu0 %v7540_v29  ;;  %v1145_v31 = vadd.f32 %v1081_v61, %v757_v49  ;;  %v759_v0 = vmul.f32 %v7472_v42, %v11574_v5  ;;  %v1148_v47 = vadd.f32 %v1084_v63, %v760_v46 }
 0x1b4   : > { %v1664_v2 = vmax.f32 %v1600_v57, 0.0  ;;  %v1531_v37 = vadd.f32 %v1467_v34, %v1143_v36  ;;  %v1534_v56 = vadd.f32 %v1470_v44, %v1146_v40  ;;  %5906 = vmatprep.subr.mxu1 %v7647_v55  ;;  %v1086_v53 = vmul.f32 %v7462_v59, %v7295_v12  ;;  %5781 = vmatpush3.msra.mxu0 %v7540_v29 }
 0x1b5   : > { %v1250_v38 = vpop.permute.xlu1 %1249  ;;  %v1262_v6 = vpop.permute.xlu0 %1261  ;;  %v762_v36 = vmul.f32 %v7472_v42, %v11575_v52  ;;  %5782 = vmatprep.subr.mxu0 %v7561_v4  ;;  %5922 = vmatpush3.msra.mxu1 %v7647_v55  ;;  %v1147_v51 = vadd.f32 %v1083_v10, %v759_v0  ;;  %v1667_v12 = vmax.f32 %v1603_v39, 0.0  ;;  %v1085_v34 = vmul.f32 %v7462_v59, %v7291_v7  ;;  %v11577_v7 = vld [vmem:[#allocation36_spill] sm:$0xff] }
 0x1b6   : > { %v1602_v1 = vadd.f32 %v7505_v35, %v1531_v37  ;;  %v1469_v41 = vmul.f32 %v7480_v58, %v1250_v38  ;;  %v1472_v60 = vmul.f32 %v7480_v58, %v1262_v6  ;;  %5683 = vmatmul.mubr.msk.f32.gmra.mxu0 %vm1730_vm0, %v1664_v2  ;;  %v1605_v45 = vadd.f32 %v7505_v35, %v1534_v56  ;;  %v7695_v10 = vld [vmem:[%s11146_s5 + $0x8] sm:$0xff] }
 0x1b7   : > { %5685 = vmatprep.mubr.msk.f32.mxu0 %vm1730_vm0, %v1665_v50  ;;  %5783 = vmatpush3.msra.mxu0 %v7561_v4  ;;  %v1150_v48 = vadd.f32 %v1086_v53, %v762_v36  ;;  %v1088_v49 = vmul.f32 %v7462_v59, %v7301_v14  ;;  %v11576_v4 = vld [vmem:[#allocation31_spill] sm:$0xff]  ;;  %v764_v46 = vmul.f32 %v7472_v42, %v11577_v7 }
 0x1b8   : > { %v1666_v8 = vmax.f32 %v1602_v1, 0.0  ;;  %v1533_v54 = vadd.f32 %v1469_v41, %v1145_v31  ;;  %v1536_v61 = vadd.f32 %v1472_v60, %v1148_v47  ;;  %5907 = vmatprep.subr.mxu1 %v7671_v33  ;;  %5784 = vmatprep.subr.mxu0 %v7575_v27  ;;  %v761_v3 = vmul.f32 %v7472_v42, %v11576_v4  ;;  %v11579_v47 = vld [vmem:[#allocation38_spill] sm:$0xff] }
 0x1b9   : > { %v1258_v29 = vpop.permute.xlu1 %1257  ;;  %v1270_v57 = vpop.permute.xlu0 %1269  ;;  %5785 = vmatpush3.msra.mxu0 %v7575_v27  ;;  %5923 = vmatpush3.msra.mxu1 %v7671_v33  ;;  %v1087_v14 = vmul.f32 %v7462_v59, %v7297_v9  ;;  %v1669_v50 = vmax.f32 %v1605_v45, 0.0  ;;  %v11578_v9 = vld [vmem:[#allocation33_spill] sm:$0xff]  ;;  %v1152_v5 = vadd.f32 %v1088_v49, %v764_v46  ;;  %v1090_v0 = vmul.f32 %v7462_v59, %v7307_v16 }
 0x1ba   : > { %v1604_v44 = vadd.f32 %v7505_v35, %v1533_v54  ;;  %v1471_v40 = vmul.f32 %v7480_v58, %v1258_v29  ;;  %v1474_v63 = vmul.f32 %v7480_v58, %v1270_v57  ;;  %5686 = vmatmul.mubr.msk.f32.gmra.mxu0 %vm1730_vm0, %v1666_v8  ;;  %v1607_v39 = vadd.f32 %v7505_v35, %v1536_v61 }
 0x1bb   : > { %5688 = vmatprep.mubr.msk.f32.mxu0 %vm1730_vm0, %v1667_v12  ;;  %5786 = vmatprep.subr.mxu0 %v7599_v43  ;;  %v1149_v27 = vadd.f32 %v1085_v34, %v761_v3  ;;  %v763_v60 = vmul.f32 %v7472_v42, %v11578_v9  ;;  %v766_v53 = vmul.f32 %v7472_v42, %v11579_v47 }
 0x1bc   : > { %v1668_v2 = vmax.f32 %v1604_v44, 0.0  ;;  %v1535_v37 = vadd.f32 %v1471_v40, %v1147_v51  ;;  %v1538_v56 = vadd.f32 %v1474_v63, %v1150_v48  ;;  %5908 = vmatprep.subr.mxu1 %v7695_v10  ;;  %5787 = vmatpush3.msra.mxu0 %v7599_v43  ;;  %v1671_v54 = vmax.f32 %v1607_v39, 0.0 }
 0x1bd   : > { %v1266_v38 = vpop.permute.xlu1 %1265  ;;  %v1278_v6 = vpop.permute.xlu0 %1277  ;;  %5788 = vmatprep.subr.mxu0 %v7623_v62  ;;  %5924 = vmatpush3.msra.mxu1 %v7695_v10  ;;  %v1151_v8 = vadd.f32 %v1087_v14, %v763_v60  ;;  %v1089_v43 = vmul.f32 %v7462_v59, %v7303_v11  ;;  %v1154_v34 = vadd.f32 %v1090_v0, %v766_v53  ;;  %v11581_v11 = vld [vmem:[#allocation40_spill] sm:$0xff] }
 0x1be   : > { %v1606_v31 = vadd.f32 %v7505_v35, %v1535_v37  ;;  %v1473_v1 = vmul.f32 %v7480_v58, %v1266_v38  ;;  %v1476_v41 = vmul.f32 %v7480_v58, %v1278_v6  ;;  %5689 = vmatmul.mubr.msk.f32.gmra.mxu0 %vm1730_vm0, %v1668_v2  ;;  %v1609_v51 = vadd.f32 %v7505_v35, %v1538_v56  ;;  %v11583_v6 = vld [vmem:[#allocation42_spill] sm:$0xff] }
 0x1bf   : > { %5691 = vmatprep.mubr.msk.f32.mxu0 %vm1730_vm0, %v1669_v50  ;;  %5789 = vmatpush3.msra.mxu0 %v7623_v62  ;;  %v1092_v44 = vmul.f32 %v7462_v59, %v7313_v18  ;;  %v11580_v62 = vld [vmem:[#allocation35_spill] sm:$0xff]  ;;  %v768_v63 = vmul.f32 %v7472_v42, %v11581_v11  ;;  %v1091_v4 = vmul.f32 %v7462_v59, %v7309_v13  ;;  %v11586_v11 = vld [vmem:[#allocation41_spill] sm:$0xff] }
 0x1c0   : > { %v1670_v52 = vmax.f32 %v1606_v31, 0.0  ;;  %v1537_v36 = vadd.f32 %v1473_v1, %v1149_v27  ;;  %v1540_v12 = vadd.f32 %v1476_v41, %v1152_v5  ;;  %5790 = vmatprep.subr.mxu0 %v7647_v55  ;;  %v765_v40 = vmul.f32 %v7472_v42, %v11580_v62 }
 0x1c1   : > { %v1274_v45 = vpop.permute.xlu1 %1273  ;;  %v1286_v16 = vpop.permute.xlu0 %1285  ;;  %5791 = vmatpush3.msra.mxu0 %v7647_v55  ;;  %v1673_v3 = vmax.f32 %v1609_v51, 0.0  ;;  %v11582_v55 = vld [vmem:[#allocation37_spill] sm:$0xff]  ;;  %v1156_v56 = vadd.f32 %v1092_v44, %v768_v63  ;;  %v1094_v38 = vmul.f32 %v7462_v59, %v7319_v20  ;;  %v770_v27 = vmul.f32 %v7472_v42, %v11583_v6  ;;  %v11585_v51 = vld [vmem:[#allocation44_spill] sm:$0xff]  ;;  %v11588_v6 = vld [vmem:[#allocation43_spill] sm:$0xff] }
 0x1c2   : > { %v1608_v61 = vadd.f32 %v7505_v35, %v1537_v36  ;;  %v1475_v29 = vmul.f32 %v7480_v58, %v1274_v45  ;;  %v1478_v57 = vmul.f32 %v7480_v58, %v1286_v16  ;;  %5692 = vmatmul.mubr.msk.f32.gmra.mxu0 %vm1730_vm0, %v1670_v52  ;;  %v1611_v18 = vadd.f32 %v7505_v35, %v1540_v12 }
 0x1c3   : > { %5694 = vmatprep.mubr.msk.f32.mxu0 %vm1730_vm0, %v1671_v54  ;;  %5792 = vmatprep.subr.mxu0 %v7671_v33  ;;  %v1153_v37 = vadd.f32 %v1089_v43, %v765_v40  ;;  %v767_v13 = vmul.f32 %v7472_v42, %v11582_v55  ;;  %v1093_v20 = vmul.f32 %v7462_v59, %v7315_v15  ;;  %v11584_v54 = vld [vmem:[#allocation39_spill] sm:$0xff] }
 0x1c4   : > { %v1672_v48 = vmax.f32 %v1608_v61, 0.0  ;;  %v1539_v49 = vadd.f32 %v1475_v29, %v1151_v8  ;;  %v1542_v7 = vadd.f32 %v1478_v57, %v1154_v34  ;;  %5793 = vmatpush3.msra.mxu0 %v7671_v33  ;;  %v1675_v9 = vmax.f32 %v1611_v18, 0.0 }
 0x1c5   : > { %v1282_v46 = vpop.permute.xlu1 %1281  ;;  %v1294_v2 = vpop.permute.xlu0 %1293  ;;  %5794 = vmatprep.subr.mxu0 %v7695_v10  ;;  %v1155_v41 = vadd.f32 %v1091_v4, %v767_v13  ;;  %v1158_v36 = vadd.f32 %v1094_v38, %v770_v27  ;;  %v1096_v8 = vmul.f32 %v7462_v59, %v7325_v22  ;;  %v772_v15 = vmul.f32 %v7472_v42, %v11585_v51 }
 0x1c6   : > { %v1610_v14 = vadd.f32 %v7505_v35, %v1539_v49  ;;  %v1477_v50 = vmul.f32 %v7480_v58, %v1282_v46  ;;  %v1480_v39 = vmul.f32 %v7480_v58, %v1294_v2  ;;  %5695 = vmatmul.mubr.msk.f32.gmra.mxu0 %vm1730_vm0, %v1672_v48  ;;  %v1613_v60 = vadd.f32 %v7505_v35, %v1542_v7  ;;  %v11587_v49 = vld [vmem:[#allocation46_spill] sm:$0xff] }
 0x1c7   : > { %5697 = vmatprep.mubr.msk.f32.mxu0 %vm1730_vm0, %v1673_v3  ;;  %5795 = vmatpush3.msra.mxu0 %v7695_v10  ;;  %v769_v10 = vmul.f32 %v7472_v42, %v11584_v54  ;;  %v1095_v16 = vmul.f32 %v7462_v59, %v7321_v17  ;;  %v771_v63 = vmul.f32 %v7472_v42, %v11586_v11  ;;  %v11592_v11 = vld [vmem:[#allocation47_spill] sm:$0xff] }
 0x1c8   : > { %v1674_v31 = vmax.f32 %v1610_v14, 0.0  ;;  %v1541_v1 = vadd.f32 %v1477_v50, %v1153_v37  ;;  %v1544_v5 = vadd.f32 %v1480_v39, %v1156_v56  ;;  %v1677_v43 = vmax.f32 %v1613_v60, 0.0 }
 0x1c9   : > { %v1290_v0 = vpop.permute.xlu1 %1289  ;;  %v1302_v47 = vpop.permute.xlu0 %1301  ;;  %v1157_v22 = vadd.f32 %v1093_v20, %v769_v10  ;;  %v1160_v48 = vadd.f32 %v1096_v8, %v772_v15  ;;  %v1098_v17 = vmul.f32 %v7462_v59, %v7331_v24  ;;  %v774_v4 = vmul.f32 %v7472_v42, %v11587_v49  ;;  %v11591_v10 = vld [vmem:[#allocation50_spill] sm:$0xff] }
 0x1ca   : > { %v1612_v33 = vadd.f32 %v7505_v35, %v1541_v1  ;;  %v1479_v53 = vmul.f32 %v7480_v58, %v1290_v0  ;;  %v1482_v52 = vmul.f32 %v7480_v58, %v1302_v47  ;;  %5698 = vmatmul.mubr.msk.f32.gmra.mxu0 %vm1730_vm0, %v1674_v31  ;;  %v1615_v61 = vadd.f32 %v7505_v35, %v1544_v5  ;;  %v11589_v31 = vld [vmem:[#allocation48_spill] sm:$0xff] }
 0x1cb   : > { %5700 = vmatprep.mubr.msk.f32.mxu0 %vm1730_vm0, %v1675_v9  ;;  %v1159_v7 = vadd.f32 %v1095_v16, %v771_v63  ;;  %v1097_v39 = vmul.f32 %v7462_v59, %v7327_v19  ;;  %v1162_v56 = vadd.f32 %v1098_v17, %v774_v4  ;;  %v1100_v38 = vmul.f32 %v7462_v59, %v7337_v26 }
 0x1cc   : > { %v1676_v12 = vmax.f32 %v1612_v33, 0.0  ;;  %v1543_v45 = vadd.f32 %v1479_v53, %v1155_v41  ;;  %v1546_v29 = vadd.f32 %v1482_v52, %v1158_v36  ;;  %v1679_v46 = vmax.f32 %v1615_v61, 0.0  ;;  %v11590_v36 = vld [vmem:[#allocation45_spill] sm:$0xff] }
 0x1cd   : > { %v1298_v57 = vpop.permute.xlu1 %1297  ;;  %v1310_v34 = vpop.permute.xlu0 %1309  ;;  %v773_v27 = vmul.f32 %v7472_v42, %v11588_v6  ;;  %v776_v19 = vmul.f32 %v7472_v42, %v11589_v31  ;;  %v1099_v9 = vmul.f32 %v7462_v59, %v7333_v21  ;;  %v775_v8 = vmul.f32 %v7472_v42, %v11590_v36  ;;  %v11599_v36 = vld [vmem:[#allocation56_spill] sm:$0xff] }
 0x1ce   : > { %v1614_v44 = vadd.f32 %v7505_v35, %v1543_v45  ;;  %v1481_v62 = vmul.f32 %v7480_v58, %v1298_v57  ;;  %v1484_v40 = vmul.f32 %v7480_v58, %v1310_v34  ;;  %5701 = vmatmul.mubr.msk.f32.gmra.mxu0 %vm1730_vm0, %v1676_v12  ;;  %v1617_v2 = vadd.f32 %v7505_v35, %v1546_v29 }
 0x1cf   : > { %5703 = vmatprep.mubr.msk.f32.mxu0 %vm1730_vm0, %v1677_v43  ;;  %v1161_v26 = vadd.f32 %v1097_v39, %v773_v27  ;;  %v1164_v54 = vadd.f32 %v1100_v38, %v776_v19  ;;  %v1102_v21 = vmul.f32 %v7462_v59, %v7343_v28  ;;  %v778_v51 = vmul.f32 %v7472_v42, %v11591_v10  ;;  %v11594_v39 = vld [vmem:[#allocation49_spill] sm:$0xff]  ;;  %v11600_v10 = vld [vmem:[#allocation78_spill] sm:$0xff] }
 0x1d0   : > { %v1678_v3 = vmax.f32 %v1614_v44, 0.0  ;;  %v1545_v18 = vadd.f32 %v1481_v62, %v1157_v22  ;;  %v1548_v37 = vadd.f32 %v1484_v40, %v1160_v48  ;;  %v1681_v60 = vmax.f32 %v1617_v2, 0.0  ;;  %v11593_v48 = vld [vmem:[#allocation52_spill] sm:$0xff] }
 0x1d1   : > { %v1306_v14 = vpop.permute.xlu1 %1305  ;;  %v1318_v50 = vpop.permute.xlu0 %1317  ;;  %v1163_v45 = vadd.f32 %v1099_v9, %v775_v8  ;;  %v1101_v34 = vmul.f32 %v7462_v59, %v7339_v23  ;;  %v1166_v62 = vadd.f32 %v1102_v21, %v778_v51  ;;  %v1104_v40 = vmul.f32 %v7462_v59, %v7349_v30 }
 0x1d2   : > { %v1616_v55 = vadd.f32 %v7505_v35, %v1545_v18  ;;  %v1483_v24 = vmul.f32 %v7480_v58, %v1306_v14  ;;  %v1486_v13 = vmul.f32 %v7480_v58, %v1318_v50  ;;  %5704 = vmatmul.mubr.msk.f32.gmra.mxu0 %vm1730_vm0, %v1678_v3  ;;  %v1619_v5 = vadd.f32 %v7505_v35, %v1548_v37 }
 0x1d3   : > { %5706 = vmatprep.mubr.msk.f32.mxu0 %vm1730_vm0, %v1679_v46  ;;  %v777_v63 = vmul.f32 %v7472_v42, %v11592_v11  ;;  %v780_v23 = vmul.f32 %v7472_v42, %v11593_v48  ;;  %v1103_v4 = vmul.f32 %v7462_v59, %v7345_v25  ;;  %v1106_v25 = vmul.f32 %v7462_v59, %v7355_v32 }
 0x1d4   : > { %v1680_v1 = vmax.f32 %v1616_v55, 0.0  ;;  %v1547_v41 = vadd.f32 %v1483_v24, %v1159_v7  ;;  %v1550_v0 = vadd.f32 %v1486_v13, %v1162_v56  ;;  %v1683_v16 = vmax.f32 %v1619_v5, 0.0  ;;  %v11595_v13 = vld [vmem:[#allocation54_spill] sm:$0xff] }
 0x1d5   : > { %v1314_v47 = vpop.permute.xlu1 %1313  ;;  %v1326_v20 = vpop.permute.xlu0 %1325  ;;  %v1165_v30 = vadd.f32 %v1101_v34, %v777_v63  ;;  %v779_v55 = vmul.f32 %v7472_v42, %v11594_v39  ;;  %v1168_v24 = vadd.f32 %v1104_v40, %v780_v23  ;;  %v782_v56 = vmul.f32 %v7472_v42, %v11595_v13  ;;  %v11602_v40 = vld [vmem:[#allocation81_spill] sm:$0xff]  ;;  %v11603_v63 = vld [vmem:[#allocation58_spill] sm:$0xff] }
 0x1d6   : > { %v1618_v33 = vadd.f32 %v7505_v35, %v1547_v41  ;;  %v1485_v53 = vmul.f32 %v7480_v58, %v1314_v47  ;;  %v1488_v52 = vmul.f32 %v7480_v58, %v1326_v20  ;;  %5707 = vmatmul.mubr.msk.f32.gmra.mxu0 %vm1730_vm0, %v1680_v1  ;;  %v1621_v43 = vadd.f32 %v7505_v35, %v1550_v0 }
 0x1d7   : > { %5709 = vmatprep.mubr.msk.f32.mxu0 %vm1730_vm0, %v1681_v60  ;;  %v1167_v27 = vadd.f32 %v1103_v4, %v779_v55  ;;  %v11596_v60 = vld [vmem:[#allocation77_spill] sm:$0xff]  ;;  %v1170_v20 = vadd.f32 %v1106_v25, %v782_v56  ;;  %v784_v8 = vmul.f32 %v7472_v42, %v11599_v36  ;;  %v1107_v51 = vmul.f32 %v7462_v59, %v11600_v10  ;;  %v11605_v55 = vld [vmem:[#allocation83_spill] sm:$0xff]  ;;  %v11607_v56 = vld [vmem:[#allocation60_spill] sm:$0xff] }
 0x1d8   : > { %v1682_v15 = vmax.f32 %v1618_v33, 0.0  ;;  %v1549_v12 = vadd.f32 %v1485_v53, %v1161_v26  ;;  %v1552_v61 = vadd.f32 %v1488_v52, %v1164_v54  ;;  %v1685_v3 = vmax.f32 %v1621_v43, 0.0  ;;  %v11597_v26 = vld [vmem:[#allocation79_spill] sm:$0xff] }
 0x1d9   : > { %v1322_v29 = vpop.permute.xlu1 %1321  ;;  %v1334_v57 = vpop.permute.xlu0 %1333  ;;  %v1105_v5 = vmul.f32 %v7462_v59, %v11596_v60  ;;  %v1108_v33 = vmul.f32 %v7462_v59, %v11597_v26  ;;  %v11598_v53 = vld [vmem:[#allocation51_spill] sm:$0xff]  ;;  %v1110_v11 = vmul.f32 %v7462_v59, %v11602_v40  ;;  %v786_v48 = vmul.f32 %v7472_v42, %v11603_v63  ;;  %v11609_v26 = vld [vmem:[#allocation57_spill] sm:$0xff]  ;;  %v11615_v63 = vld [vmem:[#allocation64_spill] sm:$0xff] }
 0x1da   : > { %v1620_v22 = vadd.f32 %v7505_v35, %v1549_v12  ;;  %v1487_v28 = vmul.f32 %v7480_v58, %v1322_v29  ;;  %v1490_v44 = vmul.f32 %v7480_v58, %v1334_v57  ;;  %5710 = vmatmul.mubr.msk.f32.gmra.mxu0 %vm1730_vm0, %v1682_v15  ;;  %v1623_v18 = vadd.f32 %v7505_v35, %v1552_v61  ;;  %v11606_v25 = vld [vmem:[#allocation55_spill] sm:$0xff] }
 0x1db   : > { %5712 = vmatprep.mubr.msk.f32.mxu0 %vm1730_vm0, %v1683_v16  ;;  %v781_v52 = vmul.f32 %v7472_v42, %v11598_v53  ;;  %v1174_v39 = vadd.f32 %v1110_v11, %v786_v48  ;;  %v785_v13 = vmul.f32 %v7472_v42, %v11606_v25  ;;  %v11614_v40 = vld [vmem:[#allocation59_spill] sm:$0xff]  ;;  %v792_v48 = vmul.f32 %v7472_v42, %v11615_v63  ;;  %v11618_v25 = vld [vmem:[#allocation89_spill] sm:$0xff]  ;;  %v11627_v63 = vld [vmem:[#allocation70_spill] sm:$0xff] }
 0x1dc   : > { %v1684_v17 = vmax.f32 %v1620_v22, 0.0  ;;  %v1551_v49 = vadd.f32 %v1487_v28, %v1163_v45  ;;  %v1554_v7 = vadd.f32 %v1490_v44, %v1166_v62  ;;  %v1687_v31 = vmax.f32 %v1623_v18, 0.0  ;;  %v2372_v22 = vld [vmem:[%s11146_s5] sm:$0xff]  ;;  %v11601_v28 = vld [vmem:[#allocation53_spill] sm:$0xff] }
 0x1dd   : > { %v1330_v46 = vpop.permute.xlu1 %1329  ;;  %v1342_v2 = vpop.permute.xlu0 %1341  ;;  %v1169_v61 = vadd.f32 %v1105_v5, %v781_v52  ;;  %v783_v44 = vmul.f32 %v7472_v42, %v11601_v28  ;;  %v1172_v62 = vadd.f32 %v1108_v33, %v784_v8  ;;  %5796 = vmatprep.subr.mxu0 %v2372_v22  ;;  %5909 = vmatprep.subr.mxu1 %v2372_v22  ;;  %v11610_v52 = vld [vmem:[#allocation85_spill] sm:$0xff]  ;;  %v11611_v8 = vld [vmem:[#allocation62_spill] sm:$0xff] }
 0x1de   : > { %v1622_v37 = vadd.f32 %v7505_v35, %v1551_v49  ;;  %v1489_v14 = vmul.f32 %v7480_v58, %v1330_v46  ;;  %v1492_v50 = vmul.f32 %v7480_v58, %v1342_v2  ;;  %5713 = vmatmul.mubr.msk.f32.gmra.mxu0 %vm1730_vm0, %v1684_v17  ;;  %v1625_v19 = vadd.f32 %v7505_v35, %v1554_v7  ;;  %v11604_v2 = vld [vmem:[#allocation80_spill] sm:$0xff] }
 0x1df   : > { %5715 = vmatprep.mubr.msk.f32.mxu0 %vm1730_vm0, %v1685_v3  ;;  %5797 = vmatpush3.msra.mxu0 %v2372_v22  ;;  %v1171_v49 = vadd.f32 %v1107_v51, %v783_v44  ;;  %v787_v33 = vmul.f32 %v7472_v42, %v11609_v26  ;;  %v1114_v36 = vmul.f32 %v7462_v59, %v11610_v52  ;;  %v11613_v44 = vld [vmem:[#allocation87_spill] sm:$0xff] }
 0x1e0   : > { %v1686_v38 = vmax.f32 %v1622_v37, 0.0  ;;  %v1553_v6 = vadd.f32 %v1489_v14, %v1165_v30  ;;  %v1556_v1 = vadd.f32 %v1492_v50, %v1168_v24  ;;  %v1689_v15 = vmax.f32 %v1625_v19, 0.0  ;;  %5925 = vmatpush3.msra.mxu1 %v2372_v22  ;;  %v11622_v52 = vld [vmem:[#allocation63_spill] sm:$0xff] }
 0x1e1   : > { %v1338_v41 = vpop.permute.xlu1 %1337  ;;  %v1350_v9 = vpop.permute.xlu0 %1349  ;;  %v1109_v30 = vmul.f32 %v7462_v59, %v11604_v2  ;;  %v1112_v24 = vmul.f32 %v7462_v59, %v11605_v55  ;;  %v789_v11 = vmul.f32 %v7472_v42, %v11614_v40  ;;  %v11626_v40 = vld [vmem:[#allocation3_spill] sm:$0xff] }
 0x1e2   : > { %v1624_v0 = vadd.f32 %v7505_v35, %v1553_v6  ;;  %v1491_v32 = vmul.f32 %v7480_v58, %v1338_v41  ;;  %v1494_v47 = vmul.f32 %v7480_v58, %v1350_v9  ;;  %5716 = vmatmul.mubr.msk.f32.gmra.mxu0 %vm1730_vm0, %v1686_v38  ;;  %v1627_v12 = vadd.f32 %v7505_v35, %v1556_v1 }
 0x1e3   : > { %5718 = vmatprep.mubr.msk.f32.mxu0 %vm1730_vm0, %v1687_v31  ;;  %v788_v38 = vmul.f32 %v7472_v42, %v11607_v56  ;;  %v11608_v31 = vld [vmem:[#allocation82_spill] sm:$0xff] }
 0x1e4   : > { %v1688_v54 = vmax.f32 %v1624_v0, 0.0  ;;  %v1555_v21 = vadd.f32 %v1491_v32, %v1167_v27  ;;  %v1558_v45 = vadd.f32 %v1494_v47, %v1170_v20  ;;  %v1691_v4 = vmax.f32 %v1627_v12, 0.0  ;;  %v11619_v56 = vld [vmem:[#allocation66_spill] sm:$0xff] }
 0x1e5   : > { %v1346_v16 = vpop.permute.xlu1 %1345  ;;  %v1358_v43 = vpop.permute.xlu0 %1357  ;;  %v1111_v19 = vmul.f32 %v7462_v59, %v11608_v31  ;;  %v1173_v0 = vadd.f32 %v1109_v30, %v785_v13  ;;  %v1176_v53 = vadd.f32 %v1112_v24, %v788_v38  ;;  %v1118_v13 = vmul.f32 %v7462_v59, %v11618_v25  ;;  %v11630_v25 = vld [vmem:[#allocation67_spill] sm:$0xff] }
 0x1e6   : > { %v1626_v29 = vadd.f32 %v7505_v35, %v1555_v21  ;;  %v1493_v57 = vmul.f32 %v7480_v58, %v1346_v16  ;;  %v1496_v34 = vmul.f32 %v7480_v58, %v1358_v43  ;;  %5719 = vmatmul.mubr.msk.f32.gmra.mxu0 %vm1730_vm0, %v1688_v54  ;;  %v1629_v3 = vadd.f32 %v7505_v35, %v1558_v45 }
 0x1e7   : > { %5721 = vmatprep.mubr.msk.f32.mxu0 %vm1730_vm0, %v1689_v15  ;;  %v790_v54 = vmul.f32 %v7472_v42, %v11611_v8  ;;  %v1175_v51 = vadd.f32 %v1111_v19, %v787_v33  ;;  %v794_v38 = vmul.f32 %v7472_v42, %v11619_v56  ;;  %v11621_v33 = vld [vmem:[#allocation91_spill] sm:$0xff]  ;;  %v11623_v8 = vld [vmem:[#allocation68_spill] sm:$0xff] }
 0x1e8   : > { %v1690_v23 = vmax.f32 %v1626_v29, 0.0  ;;  %v1557_v17 = vadd.f32 %v1493_v57, %v1169_v61  ;;  %v1560_v18 = vadd.f32 %v1496_v34, %v1172_v62  ;;  %v1693_v1 = vmax.f32 %v1629_v3, 0.0  ;;  %v11612_v61 = vld [vmem:[#allocation84_spill] sm:$0xff] }
 0x1e9   : > { %v1354_v7 = vpop.permute.xlu1 %1353  ;;  %v1366_v46 = vpop.permute.xlu0 %1365  ;;  %v1113_v29 = vmul.f32 %v7462_v59, %v11612_v61  ;;  %v1178_v28 = vadd.f32 %v1114_v36, %v790_v54  ;;  %v1116_v62 = vmul.f32 %v7462_v59, %v11613_v44  ;;  %v1182_v26 = vadd.f32 %v1118_v13, %v794_v38  ;;  %v11631_v56 = vld [vmem:[#allocation72_spill] sm:$0xff] }
 0x1ea   : > { %v1628_v37 = vadd.f32 %v7505_v35, %v1557_v17  ;;  %v1495_v14 = vmul.f32 %v7480_v58, %v1354_v7  ;;  %v1498_v50 = vmul.f32 %v7480_v58, %v1366_v46  ;;  %5722 = vmatmul.mubr.msk.f32.gmra.mxu0 %vm1730_vm0, %v1690_v23  ;;  %v1631_v41 = vadd.f32 %v7505_v35, %v1560_v18 }
 0x1eb   : > { %5724 = vmatprep.mubr.msk.f32.mxu0 %vm1730_vm0, %v1691_v4  ;;  %v1177_v30 = vadd.f32 %v1113_v29, %v789_v11  ;;  %v1180_v24 = vadd.f32 %v1116_v62, %v792_v48  ;;  %v793_v36 = vmul.f32 %v7472_v42, %v11622_v52  ;;  %v796_v54 = vmul.f32 %v7472_v42, %v11623_v8  ;;  %v11634_v52 = vld [vmem:[#allocation5_spill] sm:$0xff]  ;;  %v11635_v8 = vld [vmem:[#allocation74_spill] sm:$0xff] }
 0x1ec   : > { %v1692_v6 = vmax.f32 %v1628_v37, 0.0  ;;  %v1559_v27 = vadd.f32 %v1495_v14, %v1171_v49  ;;  %v1562_v9 = vadd.f32 %v1498_v50, %v1174_v39  ;;  %v1695_v15 = vmax.f32 %v1631_v41, 0.0  ;;  %v11616_v49 = vld [vmem:[#allocation86_spill] sm:$0xff]  ;;  %v11617_v39 = vld [vmem:[#allocation61_spill] sm:$0xff] }
 0x1ed   : > { %v1362_v60 = vpop.permute.xlu1 %1361  ;;  %v1374_v5 = vpop.permute.xlu0 %1373  ;;  %v1115_v4 = vmul.f32 %v7462_v59, %v11616_v49  ;;  %v791_v55 = vmul.f32 %v7472_v42, %v11617_v39  ;;  %v1122_v11 = vmul.f32 %v7462_v59, %v11626_v40  ;;  %v798_v48 = vmul.f32 %v7472_v42, %v11627_v63  ;;  %v11638_v40 = vld [vmem:[#allocation71_spill] sm:$0xff]  ;;  %v11639_v63 = vld [vmem:[#allocation9_spill] sm:$0xff] }
 0x1ee   : > { %v1630_v32 = vadd.f32 %v7505_v35, %v1559_v27  ;;  %v1497_v47 = vmul.f32 %v7480_v58, %v1362_v60  ;;  %v1500_v20 = vmul.f32 %v7480_v58, %v1374_v5  ;;  %5725 = vmatmul.mubr.msk.f32.gmra.mxu0 %vm1730_vm0, %v1692_v6  ;;  %v1633_v12 = vadd.f32 %v7505_v35, %v1562_v9  ;;  %v11620_v5 = vld [vmem:[#allocation88_spill] sm:$0xff] }
 0x1ef   : > { %5727 = vmatprep.mubr.msk.f32.mxu0 %vm1730_vm0, %v1693_v1  ;;  %v1179_v31 = vadd.f32 %v1115_v4, %v791_v55  ;;  %v7954_v4 = vld [vmem:[%s11143_s2] ss:$0 sm:$0xff]  ;;  %v1186_v39 = vadd.f32 %v1122_v11, %v798_v48  ;;  %v11629_v55 = vld [vmem:[#allocation4_spill] sm:$0xff]  ;;  %v797_v13 = vmul.f32 %v7472_v42, %v11630_v25  ;;  %v800_v38 = vmul.f32 %v7472_v42, %v11631_v56 }
 0x1f0   : > { %v1694_v21 = vmax.f32 %v1630_v32, 0.0  ;;  %v1561_v10 = vadd.f32 %v1497_v47, %v1173_v0  ;;  %v1564_v45 = vadd.f32 %v1500_v20, %v1176_v53  ;;  %v1697_v3 = vmax.f32 %v1633_v12, 0.0  ;;  %v11642_v25 = vld [vmem:[#allocation95_spill] sm:$0xff] }
 0x1f1   : > { %v1370_v16 = vpop.permute.xlu1 %1369  ;;  %v1382_v43 = vpop.permute.xlu0 %1381  ;;  %v1117_v0 = vmul.f32 %v7462_v59, %v11620_v5  ;;  %v1120_v53 = vmul.f32 %v7462_v59, %v11621_v33  ;;  %v801_v11 = vmul.f32 %v7472_v42, %v11638_v40  ;;  %v804_v48 = vmul.f32 %v7472_v42, %v11639_v63  ;;  %v11643_v56 = vld [vmem:[#allocation11_spill] sm:$0xff] }
 0x1f2   : > { %v1632_v57 = vadd.f32 %v7505_v35, %v1561_v10  ;;  %v1499_v34 = vmul.f32 %v7480_v58, %v1370_v16  ;;  %v1502_v22 = vmul.f32 %v7480_v58, %v1382_v43  ;;  %5728 = vmatmul.mubr.msk.f32.gmra.mxu0 %vm1730_vm0, %v1694_v21  ;;  %v1635_v18 = vadd.f32 %v7505_v35, %v1564_v45 }
 0x1f3   : > { %5730 = vmatprep.mubr.msk.f32.mxu0 %vm1730_vm0, %v1695_v15  ;;  %v1181_v29 = vadd.f32 %v1117_v0, %v793_v36  ;;  %v1184_v62 = vadd.f32 %v1120_v53, %v796_v54  ;;  %v1126_v36 = vmul.f32 %v7462_v59, %v11634_v52  ;;  %v802_v54 = vmul.f32 %v7472_v42, %v11635_v8 }
 0x1f4   : > { %v1696_v23 = vmax.f32 %v1632_v57, 0.0  ;;  %v1563_v17 = vadd.f32 %v1499_v34, %v1175_v51  ;;  %v1566_v7 = vadd.f32 %v1502_v22, %v1178_v28  ;;  %v1699_v19 = vmax.f32 %v1635_v18, 0.0  ;;  %v11624_v51 = vld [vmem:[#allocation90_spill] sm:$0xff]  ;;  %v11625_v28 = vld [vmem:[#allocation65_spill] sm:$0xff] }
 0x1f5   : > { %v1378_v46 = vpop.permute.xlu1 %1377  ;;  %v1390_v2 = vpop.permute.xlu0 %1389  ;;  %v1119_v15 = vmul.f32 %v7462_v59, %v11624_v51  ;;  %v795_v44 = vmul.f32 %v7472_v42, %v11625_v28  ;;  %v1190_v28 = vadd.f32 %v1126_v36, %v802_v54 }
 0x1f6   : > { %v1634_v37 = vadd.f32 %v7505_v35, %v1563_v17  ;;  %v1501_v14 = vmul.f32 %v7480_v58, %v1378_v46  ;;  %v1504_v50 = vmul.f32 %v7480_v58, %v1390_v2  ;;  %5731 = vmatmul.mubr.msk.f32.gmra.mxu0 %vm1730_vm0, %v1696_v23  ;;  %v1637_v1 = vadd.f32 %v7505_v35, %v1566_v7  ;;  %v11628_v2 = vld [vmem:[#allocation92_spill] sm:$0xff] }
 0x1f7   : > { %5733 = vmatprep.mubr.msk.f32.mxu0 %vm1730_vm0, %v1697_v3  ;;  %v1183_v17 = vadd.f32 %v1119_v15, %v795_v44  ;;  %v11637_v44 = vld [vmem:[#allocation7_spill] sm:$0xff] }
 0x1f8   : > { %v1698_v6 = vmax.f32 %v1634_v37, 0.0  ;;  %v1565_v27 = vadd.f32 %v1501_v14, %v1177_v30  ;;  %v1568_v41 = vadd.f32 %v1504_v50, %v1180_v24  ;;  %v1701_v12 = vmax.f32 %v1637_v1, 0.0 }
 0x1f9   : > { %v1386_v9 = vpop.permute.xlu1 %1385  ;;  %v1398_v60 = vpop.permute.xlu0 %1397  ;;  %v1121_v30 = vmul.f32 %v7462_v59, %v11628_v2  ;;  %v1124_v24 = vmul.f32 %v7462_v59, %v11629_v55 }
 0x1fa   : > { %v1636_v32 = vadd.f32 %v7505_v35, %v1565_v27  ;;  %v1503_v47 = vmul.f32 %v7480_v58, %v1386_v9  ;;  %v1506_v20 = vmul.f32 %v7480_v58, %v1398_v60  ;;  %5734 = vmatmul.mubr.msk.f32.gmra.mxu0 %vm1730_vm0, %v1698_v6  ;;  %v1639_v45 = vadd.f32 %v7505_v35, %v1568_v41 }
 0x1fb   : > { %5736 = vmatprep.mubr.msk.f32.mxu0 %vm1730_vm0, %v1699_v19  ;;  %v1185_v0 = vadd.f32 %v1121_v30, %v797_v13  ;;  %v1188_v53 = vadd.f32 %v1124_v24, %v800_v38  ;;  %v1130_v13 = vmul.f32 %v7462_v59, %v11642_v25  ;;  %v806_v38 = vmul.f32 %v7472_v42, %v11643_v56 }
 0x1fc   : > { %v1700_v21 = vmax.f32 %v1636_v32, 0.0  ;;  %v1567_v10 = vadd.f32 %v1503_v47, %v1179_v31  ;;  %v1570_v16 = vadd.f32 %v1506_v20, %v1182_v26  ;;  %v1703_v49 = vmax.f32 %v1639_v45, 0.0  ;;  %v11632_v31 = vld [vmem:[#allocation6_spill] sm:$0xff]  ;;  %v11633_v26 = vld [vmem:[#allocation69_spill] sm:$0xff] }
 0x1fd   : > { %v1394_v43 = vpop.permute.xlu1 %1393  ;;  %v1406_v61 = vpop.permute.xlu0 %1405  ;;  %v1123_v19 = vmul.f32 %v7462_v59, %v11632_v31  ;;  %v799_v33 = vmul.f32 %v7472_v42, %v11633_v26  ;;  %v1194_v26 = vadd.f32 %v1130_v13, %v806_v38  ;;  %v6546_v38 = vld [vmem:[%s6781_s15 + $0x38] sm:$0xff] }
 0x1fe   : > { %v1638_v57 = vadd.f32 %v7505_v35, %v1567_v10  ;;  %v1505_v34 = vmul.f32 %v7480_v58, %v1394_v43  ;;  %v1508_v22 = vmul.f32 %v7480_v58, %v1406_v61  ;;  %5737 = vmatmul.mubr.msk.f32.gmra.mxu0 %vm1730_vm0, %v1700_v21  ;;  %v1641_v3 = vadd.f32 %v7954_v4, %v1570_v16  ;;  %v11636_v61 = vld [vmem:[#allocation8_spill] sm:$0xff] }
 0x1ff   : > { %5739 = vmatprep.mubr.msk.f32.mxu0 %vm1730_vm0, %v1701_v12  ;;  %v1187_v51 = vadd.f32 %v1123_v19, %v799_v33  ;;  %v11645_v33 = vld [vmem:[#allocation10_spill] sm:$0xff] }
 0x200   : > { %v1702_v23 = vmax.f32 %v1638_v57, 0.0  ;;  %v1569_v35 = vadd.f32 %v1505_v34, %v1181_v29  ;;  %v1572_v18 = vadd.f32 %v1508_v22, %v1184_v62  ;;  %v1705_v1 = vmax.f32 %v1641_v3, 0.0 }
 0x201   : > { %v1402_v7 = vpop.permute.xlu1 %1401  ;;  %v1414_v46 = vpop.permute.xlu0 %1413  ;;  %v1125_v29 = vmul.f32 %v7462_v59, %v11636_v61  ;;  %v1128_v62 = vmul.f32 %v7462_v59, %v11637_v44 }
 0x202   : > { %v1640_v37 = vadd.f32 %v7954_v4, %v1569_v35  ;;  %v1507_v14 = vmul.f32 %v7480_v58, %v1402_v7  ;;  %v1510_v50 = vmul.f32 %v7480_v58, %v1414_v46  ;;  %5740 = vmatmul.mubr.msk.f32.gmra.mxu0 %vm1730_vm0, %v1702_v23  ;;  %v1643_v41 = vadd.f32 %v7954_v4, %v1572_v18 }
 0x203   : > { %5742 = vmatprep.mubr.msk.f32.mxu0 %vm1730_vm0, %v1703_v49  ;;  %v1189_v30 = vadd.f32 %v1125_v29, %v801_v11  ;;  %v1192_v24 = vadd.f32 %v1128_v62, %v804_v48 }
 0x204   : > { %v1704_v6 = vmax.f32 %v1640_v37, 0.0  ;;  %v1571_v27 = vadd.f32 %v1507_v14, %v1183_v17  ;;  %v1574_v9 = vadd.f32 %v1510_v50, %v1186_v39  ;;  %v1707_v15 = vmax.f32 %v1643_v41, 0.0  ;;  %v11640_v17 = vld [vmem:[#allocation93_spill] sm:$0xff] }
 0x205   : > { %v1410_v60 = vpop.permute.xlu1 %1409  ;;  %v1422_v5 = vpop.permute.xlu0 %1421  ;;  %v1127_v49 = vmul.f32 %v7462_v59, %v11640_v17  ;;  %v11641_v39 = vld [vmem:[#allocation73_spill] sm:$0xff] }
 0x206   : > { %v1642_v32 = vadd.f32 %v7954_v4, %v1571_v27  ;;  %v1509_v47 = vmul.f32 %v7480_v58, %v1410_v60  ;;  %v1512_v20 = vmul.f32 %v7480_v58, %v1422_v5  ;;  %5743 = vmatmul.mubr.msk.f32.gmra.mxu0 %vm1730_vm0, %v1704_v6  ;;  %v1645_v12 = vadd.f32 %v7954_v4, %v1574_v9  ;;  %v11644_v5 = vld [vmem:[#allocation94_spill] sm:$0xff]  ;;  %v6540_v17 = vld [vmem:[%s6781_s15 + $0x10] sm:$0xff] }
 0x207   : > { %5745 = vmatprep.mubr.msk.f32.mxu0 %vm1730_vm0, %v1705_v1  ;;  %v803_v55 = vmul.f32 %v7472_v42, %v11641_v39  ;;  %v6544_v39 = vld [vmem:[%s6781_s15 + $0x28] sm:$0xff] }
 0x208   : > { %v1706_v21 = vmax.f32 %v1642_v32, 0.0  ;;  %v1573_v10 = vadd.f32 %v1509_v47, %v1185_v0  ;;  %v1576_v45 = vadd.f32 %v1512_v20, %v1188_v53  ;;  %v1709_v3 = vmax.f32 %v1645_v12, 0.0 }
 0x209   : > { %v1418_v16 = vpop.permute.xlu1 %1417  ;;  %v1430_v43 = vpop.permute.xlu0 %1429  ;;  %v1191_v31 = vadd.f32 %v1127_v49, %v803_v55  ;;  %v1129_v0 = vmul.f32 %v7462_v59, %v11644_v5  ;;  %v805_v53 = vmul.f32 %v7472_v42, %v11645_v33  ;;  %v3358_v49 = vmul.f32 %v6540_v17, %v6540_v17 }
 0x20a   : > { %v1644_v57 = vadd.f32 %v7954_v4, %v1573_v10  ;;  %v1511_v34 = vmul.f32 %v7480_v58, %v1418_v16  ;;  %v1514_v22 = vmul.f32 %v7480_v58, %v1430_v43  ;;  %5746 = vmatmul.mubr.msk.f32.gmra.mxu0 %vm1730_vm0, %v1706_v21  ;;  %v1647_v18 = vadd.f32 %v7954_v4, %v1576_v45  ;;  %v11647_v43 = vld [vmem:[#allocation12_spill] sm:$0xff] }
 0x20b   : > { %5748 = vmatprep.mubr.msk.f32.mxu0 %vm1730_vm0, %v1707_v15  ;;  %v11646_v15 = vld [vmem:[#allocation96_spill] sm:$0xff]  ;;  %v807_v61 = vmul.f32 %v7472_v42, %v11647_v43  ;;  %v3361_v55 = vmul.f32 %v6544_v39, %v6544_v39 }
 0x20c   : > { %v1708_v23 = vmax.f32 %v1644_v57, 0.0  ;;  %v1575_v35 = vadd.f32 %v1511_v34, %v1187_v51  ;;  %v1578_v7 = vadd.f32 %v1514_v22, %v1190_v28  ;;  %v1711_v19 = vmax.f32 %v1647_v18, 0.0 }
 0x20d   : > { %v1426_v46 = vpop.permute.xlu1 %1425  ;;  %v1438_v2 = vpop.permute.xlu0 %1437  ;;  %v1193_v51 = vadd.f32 %v1129_v0, %v805_v53  ;;  %v1131_v12 = vmul.f32 %v7462_v59, %v11646_v15  ;;  %v3427_v18 = vsel %vm3420_vm1, %v3358_v49, 0.0  ;;  %v3436_v13 = vsel %vm3420_vm1, %v3361_v55, 0.0  ;;  %v6554_v15 = vld [vmem:[%s6781_s15 + $0x78] sm:$0xff] }
 0x20e   : > { %v1646_v37 = vadd.f32 %v7954_v4, %v1575_v35  ;;  %v1513_v14 = vmul.f32 %v7480_v58, %v1426_v46  ;;  %v1516_v50 = vmul.f32 %v7480_v58, %v1438_v2  ;;  %5749 = vmatmul.mubr.msk.f32.gmra.mxu0 %vm1730_vm0, %v1708_v23  ;;  %v1649_v1 = vadd.f32 %v7954_v4, %v1578_v7  ;;  %v6542_v46 = vld [vmem:[%s6781_s15 + $0x18] sm:$0xff] }
 0x20f   : > { %5751 = vmatprep.mubr.msk.f32.mxu0 %vm1730_vm0, %v1709_v3  ;;  %v1195_v44 = vadd.f32 %v1131_v12, %v807_v61  ;;  %v6541_v3 = vld [vmem:[%s6781_s15 + $0x8] sm:$0xff]  ;;  %v3359_v2 = vmul.f32 %v6542_v46, %v6542_v46  ;;  %v3371_v12 = vmul.f32 %v6554_v15, %v6554_v15  ;;  %v8091_v46 = vld [vmem:[%s11145_s4] ss:$0 sm:$0xff] }
 0x210   : > { %v1710_v6 = vmax.f32 %v1646_v37, 0.0  ;;  %v1577_v27 = vadd.f32 %v1513_v14, %v1189_v30  ;;  %v1580_v41 = vadd.f32 %v1516_v50, %v1192_v24  ;;  %v1713_v8 = vmax.f32 %v1649_v1, 0.0  ;;  %v6543_v30 = vld [vmem:[%s6781_s15 + $0x20] sm:$0xff]  ;;  %v6545_v24 = vld [vmem:[%s6781_s15 + $0x30] sm:$0xff] }
 0x211   : > { %v1434_v9 = vpop.permute.xlu1 %1433  ;;  %v1446_v60 = vpop.permute.xlu0 %1445  ;;  %v3360_v37 = vmul.f32 %v6543_v30, %v6543_v30  ;;  %v3430_v14 = vsel %vm3420_vm1, %v3359_v2, 0.0  ;;  %v3362_v25 = vmul.f32 %v6545_v24, %v6545_v24  ;;  %v3466_v43 = vsel %vm3420_vm1, %v3371_v12, 0.0  ;;  %v6565_v24 = vld [vmem:[%s6781_s15 + $0xd0] sm:$0xff] }
 0x212   : > { %v1648_v32 = vadd.f32 %v7954_v4, %v1577_v27  ;;  %v1515_v47 = vmul.f32 %v7480_v58, %v1434_v9  ;;  %v1518_v20 = vmul.f32 %v7480_v58, %v1446_v60  ;;  %5752 = vmatmul.mubr.msk.f32.gmra.mxu0 %vm1730_vm0, %v1710_v6  ;;  %v1651_v54 = vadd.f32 %v7954_v4, %v1580_v41  ;;  %v6547_v27 = vld [vmem:[%s6781_s15 + $0x40] sm:$0xff]  ;;  %v6548_v41 = vld [vmem:[%s6781_s15 + $0x48] sm:$0xff]  ;;  %v6549_v60 = vld [vmem:[%s6781_s15 + $0x50] sm:$0xff] }
 0x213   : > { %5754 = vmatprep.mubr.msk.f32.mxu0 %vm1730_vm0, %v1711_v19  ;;  %v3433_v50 = vsel %vm3420_vm1, %v3360_v37, 0.0  ;;  %v3439_v56 = vsel %vm3420_vm1, %v3362_v25, 0.0  ;;  %v3363_v6 = vmul.f32 %v6546_v38, %v6546_v38  ;;  %v3365_v9 = vmul.f32 %v6548_v41, %v6548_v41 }
 0x214   : > { %v1712_v52 = vmax.f32 %v1648_v32, 0.0  ;;  %v1579_v36 = vadd.f32 %v1515_v47, %v1191_v31  ;;  %v1582_v21 = vadd.f32 %v1518_v20, %v1194_v26  ;;  %v1715_v34 = vmax.f32 %v1651_v54, 0.0  ;;  %v6550_v47 = vld [vmem:[%s6781_s15 + $0x58] sm:$0xff]  ;;  %v6551_v26 = vld [vmem:[%s6781_s15 + $0x60] sm:$0xff]  ;;  %v6553_v54 = vld [vmem:[%s6781_s15 + $0x70] sm:$0xff] }
 0x215   : > { %v1442_v10 = vpop.permute.xlu1 %1441  ;;  %v3364_v31 = vmul.f32 %v6547_v27, %v6547_v27  ;;  %v3442_v19 = vsel %vm3420_vm1, %v3363_v6, 0.0  ;;  %v3366_v5 = vmul.f32 %v6549_v60, %v6549_v60  ;;  %v3448_v0 = vsel %vm3420_vm1, %v3365_v9, 0.0  ;;  %v6566_v27 = vld [vmem:[%s6781_s15 + $0xd8] sm:$0xff] }
 0x216   : > { %v1650_v45 = vadd.f32 %v7954_v4, %v1579_v36  ;;  %v1517_v16 = vmul.f32 %v7480_v58, %v1442_v10  ;;  %5755 = vmatmul.mubr.msk.f32.gmra.mxu0 %vm1730_vm0, %v1712_v52  ;;  %v1653_v22 = vadd.f32 %v7954_v4, %v1582_v21  ;;  %v3367_v20 = vmul.f32 %v6550_v47, %v6550_v47  ;;  %v6552_v36 = vld [vmem:[%s6781_s15 + $0x68] sm:$0xff] }
 0x217   : > { %5757 = vmatprep.mubr.msk.f32.mxu0 %vm1730_vm0, %v1713_v8  ;;  %v3445_v1 = vsel %vm3420_vm1, %v3364_v31, 0.0  ;;  %v3451_v32 = vsel %vm3420_vm1, %v3366_v5, 0.0  ;;  %v3368_v33 = vmul.f32 %v6551_v26, %v6551_v26  ;;  %v3369_v8 = vmul.f32 %v6552_v36, %v6552_v36  ;;  %v6568_v5 = vld [vmem:[%s6781_s15 + $0xe8] sm:$0xff] }
 0x218   : > { %v1714_v29 = vmax.f32 %v1650_v45, 0.0  ;;  %v1581_v57 = vadd.f32 %v1517_v16, %v1193_v51  ;;  %v1717_v11 = vmax.f32 %v1653_v22, 0.0  ;;  %v3454_v53 = vsel %vm3420_vm1, %v3367_v20, 0.0  ;;  %v6555_v45 = vld [vmem:[%s6781_s15 + $0x80] sm:$0xff] }
 0x219   : > { %v1450_v28 = vpop.permute.xlu1 %1449  ;;  %v3457_v52 = vsel %vm3420_vm1, %v3368_v33, 0.0  ;;  %v3370_v21 = vmul.f32 %v6553_v54, %v6553_v54  ;;  %v3460_v10 = vsel %vm3420_vm1, %v3369_v8, 0.0  ;;  %v3372_v16 = vmul.f32 %v6555_v45, %v6555_v45 }
 0x21a   : > { %v1652_v59 = vadd.f32 %v7954_v4, %v1581_v57  ;;  %v1519_v62 = vmul.f32 %v7480_v58, %v1450_v28  ;;  %5758 = vmatmul.mubr.msk.f32.gmra.mxu0 %vm1730_vm0, %v1714_v29  ;;  %v6539_v58 = vld [vmem:[%s6781_s15] sm:$0xff]  ;;  %v6556_v29 = vld [vmem:[%s6781_s15 + $0x88] sm:$0xff]  ;;  %v3382_v25 = vmul.f32 %v6565_v24, %v6565_v24  ;;  %v3383_v31 = vmul.f32 %v6566_v27, %v6566_v27 }
 0x21b   : > { %5760 = vmatprep.mubr.msk.f32.mxu0 %vm1730_vm0, %v1715_v34  ;;  %v3356_v23 = vmul.f32 %v6539_v58, %v6539_v58  ;;  %v3463_v51 = vsel %vm3420_vm1, %v3370_v21, 0.0  ;;  %v3469_v61 = vsel %vm3420_vm1, %v3372_v16, 0.0  ;;  %v3373_v57 = vmul.f32 %v6556_v29, %v6556_v29  ;;  %v6557_v34 = vld [vmem:[%s6781_s15 + $0x90] sm:$0xff]  ;;  %v6571_v21 = vld [vmem:[%s6781_s15 + $0x100] sm:$0xff] }
 0x21c   : > { %v1716_v40 = vmax.f32 %v1652_v59, 0.0  ;;  %v1583_v42 = vadd.f32 %v1519_v62, %v1195_v44  ;;  %v3374_v22 = vmul.f32 %v6557_v34, %v6557_v34  ;;  %v6558_v59 = vld [vmem:[%s6781_s15 + $0x98] sm:$0xff]  ;;  %v3499_v38 = vsel %vm3420_vm1, %v3382_v25, 0.0 }
 0x21d   : > { %v3421_v35 = vsel %vm3420_vm1, %v3356_v23, 0.0  ;;  %v3472_v28 = vsel %vm3420_vm1, %v3373_v57, 0.0  ;;  %v3375_v62 = vmul.f32 %v6558_v59, %v6558_v59  ;;  %v6561_v23 = vld [vmem:[%s6781_s15 + $0xb0] sm:$0xff]  ;;  %v3502_v60 = vsel %vm3420_vm1, %v3383_v31, 0.0 }
 0x21e   : > { %v1654_v63 = vadd.f32 %v7954_v4, %v1583_v42  ;;  %5761 = vmatmul.mubr.msk.f32.gmra.mxu0 %vm1730_vm0, %v1716_v40  ;;  %3422 = vadd.xlane.f32.xlu0 %v3421_v35  ;;  %v3357_v4 = vmul.f32 %v6541_v3, %v6541_v3  ;;  %v3475_v44 = vsel %vm3420_vm1, %v3374_v22, 0.0  ;;  %v6559_v40 = vld [vmem:[%s6781_s15 + $0xa0] sm:$0xff]  ;;  %v3378_v35 = vmul.f32 %v6561_v23, %v6561_v23  ;;  %v6562_v3 = vld [vmem:[%s6781_s15 + $0xb8] sm:$0xff]  ;;  %v6573_v22 = vld [vmem:[%s6781_s15 + $0x110] sm:$0xff] }
 0x21f   : > { %5763 = vmatprep.mubr.msk.f32.mxu0 %vm1730_vm0, %v1717_v11  ;;  %v3376_v42 = vmul.f32 %v6559_v40, %v6559_v40  ;;  %v3478_v11 = vsel %vm3420_vm1, %v3375_v62, 0.0 }
 0x220   : > { %v1718_v48 = vmax.f32 %v1654_v63, 0.0  ;;  %v3424_v7 = vsel %vm3420_vm1, %v3357_v4, 0.0  ;;  %v3487_v49 = vsel %vm3420_vm1, %v3378_v35, 0.0  ;;  %v3379_v4 = vmul.f32 %v6562_v3, %v6562_v3  ;;  %v6575_v35 = vld [vmem:[%s6781_s15 + $0x120] sm:$0xff] }
 0x221   : > { %3425 = vadd.xlane.f32.xlu1 %v3424_v7  ;;  %v3481_v63 = vsel %vm3420_vm1, %v3376_v42, 0.0 }
 0x222   : > { %5764 = vmatmul.mubr.msk.f32.gmra.mxu0 %vm1730_vm0, %v1718_v48  ;;  %3428 = vadd.xlane.f32.xlu0 %v3427_v18  ;;  %v6560_v48 = vld [vmem:[%s6781_s15 + $0xa8] sm:$0xff]  ;;  %v6563_v18 = vld [vmem:[%s6781_s15 + $0xc0] sm:$0xff]  ;;  %v3490_v2 = vsel %vm3420_vm1, %v3379_v4, 0.0 }
 0x223   : > { %v3377_v58 = vmul.f32 %v6560_v48, %v6560_v48  ;;  %v3380_v7 = vmul.f32 %v6563_v18, %v6563_v18 }
 0x225   : > { %3434 = vadd.xlane.f32.xlu1 %v3433_v50  ;;  %v3484_v17 = vsel %vm3420_vm1, %v3377_v58, 0.0  ;;  %v3493_v37 = vsel %vm3420_vm1, %v3380_v7, 0.0 }
 0x226   : > { %3431 = vadd.xlane.f32.xlu0 %v3430_v14  ;;  %v6564_v14 = vld [vmem:[%s6781_s15 + $0xc8] sm:$0xff] }
 0x227   : > { %v3381_v50 = vmul.f32 %v6564_v14, %v6564_v14 }
 0x229   : > { %3440 = vadd.xlane.f32.xlu1 %v3439_v56  ;;  %v3496_v56 = vsel %vm3420_vm1, %v3381_v50, 0.0 }
 0x22a   : > { %3437 = vadd.xlane.f32.xlu0 %v3436_v13 }
 0x22d   : > { %3446 = vadd.xlane.f32.xlu1 %v3445_v1  ;;  %v6567_v1 = vld [vmem:[%s6781_s15 + $0xe0] sm:$0xff] }
 0x22e   : > { %3443 = vadd.xlane.f32.xlu0 %v3442_v19  ;;  %v3384_v41 = vmul.f32 %v6567_v1, %v6567_v1 }
 0x230   : > { %v3505_v20 = vsel %vm3420_vm1, %v3384_v41, 0.0  ;;  %v6578_v41 = vld [vmem:[%s6781_s15 + $0x138] sm:$0xff] }
 0x231   : > { %3452 = vadd.xlane.f32.xlu1 %v3451_v32  ;;  %v6569_v32 = vld [vmem:[%s6781_s15 + $0xf0] sm:$0xff] }
 0x232   : > { %3449 = vadd.xlane.f32.xlu0 %v3448_v0  ;;  %v3385_v0 = vmul.f32 %v6568_v5, %v6568_v5  ;;  %v3386_v47 = vmul.f32 %v6569_v32, %v6569_v32 }
 0x234   : > { %v3511_v54 = vsel %vm3420_vm1, %v3386_v47, 0.0 }
 0x235   : > { %3458 = vadd.xlane.f32.xlu1 %v3457_v52  ;;  %v6570_v52 = vld [vmem:[%s6781_s15 + $0xf8] sm:$0xff] }
 0x236   : > { %3455 = vadd.xlane.f32.xlu0 %v3454_v53  ;;  %v3508_v53 = vsel %vm3420_vm1, %v3385_v0, 0.0  ;;  %v3387_v36 = vmul.f32 %v6570_v52, %v6570_v52  ;;  %v6579_v0 = vld [vmem:[%s6781_s15 + $0x140] sm:$0xff] }
 0x237   : > { %v3396_v32 = vmul.f32 %v6579_v0, %v6579_v0 }
 0x239   : > { %3464 = vadd.xlane.f32.xlu1 %v3463_v51 }
 0x23a   : > { %3461 = vadd.xlane.f32.xlu0 %v3460_v10  ;;  %v3388_v10 = vmul.f32 %v6571_v21, %v6571_v21 }
 0x23c   : > { %v3517_v34 = vsel %vm3420_vm1, %v3388_v10, 0.0 }
 0x23d   : > { %3470 = vadd.xlane.f32.xlu1 %v3469_v61  ;;  %v6572_v61 = vld [vmem:[%s6781_s15 + $0x108] sm:$0xff] }
 0x23e   : > { %3467 = vadd.xlane.f32.xlu0 %v3466_v43  ;;  %v3514_v43 = vsel %vm3420_vm1, %v3387_v36, 0.0  ;;  %v3389_v29 = vmul.f32 %v6572_v61, %v6572_v61 }
 0x241   : > { %3476 = vadd.xlane.f32.xlu1 %v3475_v44 }
 0x242   : > { %3473 = vadd.xlane.f32.xlu0 %v3472_v28  ;;  %v3390_v28 = vmul.f32 %v6573_v22, %v6573_v22 }
 0x244   : > { %v3523_v23 = vsel %vm3420_vm1, %v3390_v28, 0.0 }
 0x245   : > { %3482 = vadd.xlane.f32.xlu1 %v3481_v63  ;;  %v6574_v63 = vld [vmem:[%s6781_s15 + $0x118] sm:$0xff] }
 0x246   : > { %3479 = vadd.xlane.f32.xlu0 %v3478_v11  ;;  %v3520_v11 = vsel %vm3420_vm1, %v3389_v29, 0.0  ;;  %v3391_v48 = vmul.f32 %v6574_v63, %v6574_v63 }
 0x249   : > { %3488 = vadd.xlane.f32.xlu1 %v3487_v49 }
 0x24a   : > { %3485 = vadd.xlane.f32.xlu0 %v3484_v17  ;;  %v3392_v17 = vmul.f32 %v6575_v35, %v6575_v35 }
 0x24c   : > { %v3529_v50 = vsel %vm3420_vm1, %v3392_v17, 0.0 }
 0x24d   : > { %3494 = vadd.xlane.f32.xlu1 %v3493_v37 }
 0x24e   : > { %3491 = vadd.xlane.f32.xlu0 %v3490_v2  ;;  %v3526_v2 = vsel %vm3420_vm1, %v3391_v48, 0.0 }
 0x251   : > { %3500 = vadd.xlane.f32.xlu1 %v3499_v38 }
 0x252   : > { %3497 = vadd.xlane.f32.xlu0 %v3496_v56 }
 0x255   : > { %3506 = vadd.xlane.f32.xlu1 %v3505_v20 }
 0x256   : > { %3503 = vadd.xlane.f32.xlu0 %v3502_v60 }
 0x259   : > { %3512 = vadd.xlane.f32.xlu1 %v3511_v54  ;;  %v6580_v54 = vld [vmem:[%s6781_s15 + $0x148] sm:$0xff] }
 0x25a   : > { %3509 = vadd.xlane.f32.xlu0 %v3508_v53  ;;  %v3397_v21 = vmul.f32 %v6580_v54, %v6580_v54 }
 0x25d   : > { %3518 = vadd.xlane.f32.xlu1 %v3517_v34 }
 0x25e   : > { %3515 = vadd.xlane.f32.xlu0 %v3514_v43 }
 0x261   : > { %3524 = vadd.xlane.f32.xlu1 %v3523_v23  ;;  %v6583_v23 = vld [vmem:[%s6781_s15 + $0x160] sm:$0xff] }
 0x262   : > { %3521 = vadd.xlane.f32.xlu0 %v3520_v11  ;;  %v3400_v35 = vmul.f32 %v6583_v23, %v6583_v23 }
 0x263   : > { %v5672_v30 = vpop.f32.mrf.mxu0 }
 0x264   : > { %v8097_v39 = vadd.f32 %v5672_v30, %v8091_v46  ;;  %v6576_v30 = vld [vmem:[%s6781_s15 + $0x128] sm:$0xff] }
 0x265   : > { %v1989_v55 = vpop.f32.mrf.mxu0  ;;  %v3393_v37 = vmul.f32 %v6576_v30, %v6576_v30  ;;  %3530 = vadd.xlane.f32.xlu1 %v3529_v50  ;;  %v6584_v50 = vld [vmem:[%s6781_s15 + $0x168] sm:$0xff] }
 0x266   : > { %11648 = vst [vmem:[#allocation18_spill] sm:$0xff] %v8097_v39  ;;  %v8101_v13 = vadd.f32 %v8091_v46, %v1989_v55  ;;  %v11216_v19 = vmax.f32 %v8097_v39, 0.0  ;;  %v6577_v55 = vld [vmem:[%s6781_s15 + $0x130] sm:$0xff]  ;;  %3527 = vadd.xlane.f32.xlu0 %v3526_v2 }
 0x267   : > { %v3394_v24 = vmul.f32 %v6577_v55, %v6577_v55  ;;  %v3532_v1 = vsel %vm3420_vm1, %v3393_v37, 0.0  ;;  %v3401_v55 = vmul.f32 %v6584_v50, %v6584_v50 }
 0x268   : > { %11649 = vst [vmem:[#allocation16_spill] sm:$0xff] %v8101_v13  ;;  %v11217_v6 = vmax.f32 %v8101_v13, 0.0 }
 0x269   : > { %v3535_v5 = vsel %vm3420_vm1, %v3394_v24, 0.0 }
 0x26a   : > { %v5675_v9 = vpop.f32.mrf.mxu0  ;;  %5798 = vmatprep.mubr.f32.mxu0 %v11217_v6  ;;  %3533 = vadd.xlane.f32.xlu0 %v3532_v1 }
 0x26b   : > { %5799 = vmatmul.mubr.f32.vlgmr.msra.gmra.mxu0 %v11216_v19  ;;  %v8118_v26 = vadd.f32 %v5675_v9, %v8091_v46  ;;  %v3395_v9 = vmul.f32 %v6578_v41, %v6578_v41  ;;  %3536 = vadd.xlane.f32.xlu1 %v3535_v5 }
 0x26c   : > { %v1999_v33 = vpop.f32.mrf.mxu0 }
 0x26d   : > { %11650 = vst [vmem:[#allocation75_spill] sm:$0xff] %v8118_v26  ;;  %v8123_v8 = vadd.f32 %v8091_v46, %v1999_v33  ;;  %v11212_v12 = vmax.f32 %v8118_v26, 0.0  ;;  %v3538_v36 = vsel %vm3420_vm1, %v3395_v9, 0.0 }
 0x26e   : > { %v5678_v51 = vpop.f32.mrf.mxu0  ;;  %3539 = vadd.xlane.f32.xlu0 %v3538_v36 }
 0x26f   : > { %11651 = vst [vmem:[#allocation13_spill] sm:$0xff] %v8123_v8  ;;  %v11213_v15 = vmax.f32 %v8123_v8, 0.0  ;;  %v8130_v45 = vadd.f32 %v5678_v51, %v8091_v46  ;;  %v3541_v51 = vsel %vm3420_vm1, %v3396_v32, 0.0 }
 0x270   : > { %v2009_v16 = vpop.f32.mrf.mxu0  ;;  %3542 = vadd.xlane.f32.xlu1 %v3541_v51  ;;  %v6587_v51 = vld [vmem:[%s6781_s15 + $0x180] sm:$0xff] }
 0x271   : > { %11652 = vst [vmem:[#allocation15_spill] sm:$0xff] %v8130_v45  ;;  %v8135_v57 = vadd.f32 %v8091_v46, %v2009_v16  ;;  %5801 = vmatprep.mubr.f32.mxu0 %v11213_v15  ;;  %v11205_v62 = vmax.f32 %v8130_v45, 0.0  ;;  %v6581_v16 = vld [vmem:[%s6781_s15 + $0x150] sm:$0xff] }
 0x272   : > { %v5681_v44 = vpop.f32.mrf.mxu0  ;;  %5802 = vmatmul.mubr.f32.gmra.mxu0 %v11212_v12  ;;  %v3398_v43 = vmul.f32 %v6581_v16, %v6581_v16  ;;  %v3404_v16 = vmul.f32 %v6587_v51, %v6587_v51 }
 0x273   : > { %11653 = vst [vmem:[#allocation20_spill] sm:$0xff] %v8135_v57  ;;  %v11209_v59 = vmax.f32 %v8135_v57, 0.0  ;;  %v8146_v40 = vadd.f32 %v5681_v44, %v8091_v46  ;;  %v3544_v44 = vsel %vm3420_vm1, %v3397_v21, 0.0 }
 0x274   : > { %v2019_v42 = vpop.f32.mrf.mxu0  ;;  %v3547_v48 = vsel %vm3420_vm1, %v3398_v43, 0.0  ;;  %3545 = vadd.xlane.f32.xlu0 %v3544_v44 }
 0x275   : > { %11654 = vst [vmem:[#allocation76_spill] sm:$0xff] %v8146_v40  ;;  %v8151_v58 = vadd.f32 %v8091_v46, %v2019_v42  ;;  %5804 = vmatprep.mubr.f32.mxu0 %v11209_v59  ;;  %v11197_v4 = vmax.f32 %v8146_v40, 0.0  ;;  %v6582_v42 = vld [vmem:[%s6781_s15 + $0x158] sm:$0xff]  ;;  %3548 = vadd.xlane.f32.xlu1 %v3547_v48  ;;  %v6588_v48 = vld [vmem:[%s6781_s15 + $0x188] sm:$0xff] }
 0x276   : > { %v5684_v49 = vpop.f32.mrf.mxu0  ;;  %5805 = vmatmul.mubr.f32.gmra.mxu0 %v11205_v62  ;;  %v3399_v11 = vmul.f32 %v6582_v42, %v6582_v42  ;;  %v3405_v23 = vmul.f32 %v6588_v48, %v6588_v48 }
 0x277   : > { %11655 = vst [vmem:[#allocation14_spill] sm:$0xff] %v8151_v58  ;;  %v11201_v3 = vmax.f32 %v8151_v58, 0.0  ;;  %v8162_v18 = vadd.f32 %v5684_v49, %v8091_v46 }
 0x278   : > { %v2029_v7 = vpop.f32.mrf.mxu0  ;;  %v3550_v37 = vsel %vm3420_vm1, %v3399_v11, 0.0 }
 0x279   : > { %11656 = vst [vmem:[#allocation17_spill] sm:$0xff] %v8162_v18  ;;  %v8167_v14 = vadd.f32 %v8091_v46, %v2029_v7  ;;  %5807 = vmatprep.mubr.f32.mxu1 %v11201_v3  ;;  %v11186_v38 = vmax.f32 %v8162_v18, 0.0  ;;  %3551 = vadd.xlane.f32.xlu0 %v3550_v37 }
 0x27a   : > { %v5687_v25 = vpop.f32.mrf.mxu0  ;;  %5808 = vmatmul.mubr.f32.vlgmr.msra.gmra.mxu1 %v11197_v4 }
 0x27b   : > { %11657 = vst [vmem:[#allocation22_spill] sm:$0xff] %v8167_v14  ;;  %v11193_v56 = vmax.f32 %v8167_v14, 0.0  ;;  %v8178_v27 = vadd.f32 %v5687_v25, %v8091_v46  ;;  %v3553_v25 = vsel %vm3420_vm1, %v3400_v35, 0.0 }
 0x27c   : > { %v2039_v31 = vpop.f32.mrf.mxu0  ;;  %3554 = vadd.xlane.f32.xlu1 %v3553_v25 }
 0x27d   : > { %11658 = vst [vmem:[#allocation19_spill] sm:$0xff] %v8178_v27  ;;  %v8183_v60 = vadd.f32 %v8091_v46, %v2039_v31  ;;  %5810 = vmatprep.mubr.f32.mxu1 %v11193_v56  ;;  %v11179_v33 = vmax.f32 %v8178_v27, 0.0  ;;  %v6585_v31 = vld [vmem:[%s6781_s15 + $0x170] sm:$0xff] }
 0x27e   : > { %v5690_v47 = vpop.f32.mrf.mxu0  ;;  %5811 = vmatmul.mubr.f32.gmra.mxu1 %v11186_v38  ;;  %v3402_v1 = vmul.f32 %v6585_v31, %v6585_v31 }
 0x27f   : > { %11659 = vst [vmem:[#allocation24_spill] sm:$0xff] %v8183_v60  ;;  %v11182_v20 = vmax.f32 %v8183_v60, 0.0  ;;  %v8194_v53 = vadd.f32 %v5690_v47, %v8091_v46  ;;  %v3556_v47 = vsel %vm3420_vm1, %v3401_v55, 0.0 }
 0x280   : > { %v2049_v52 = vpop.f32.mrf.mxu0  ;;  %v3559_v21 = vsel %vm3420_vm1, %v3402_v1, 0.0  ;;  %3557 = vadd.xlane.f32.xlu0 %v3556_v47 }
 0x281   : > { %11660 = vst [vmem:[#allocation21_spill] sm:$0xff] %v8194_v53  ;;  %v8199_v10 = vadd.f32 %v8091_v46, %v2049_v52  ;;  %5813 = vmatprep.mubr.f32.mxu1 %v11182_v20  ;;  %v11170_v34 = vmax.f32 %v8194_v53, 0.0  ;;  %v6586_v52 = vld [vmem:[%s6781_s15 + $0x178] sm:$0xff]  ;;  %3560 = vadd.xlane.f32.xlu1 %v3559_v21  ;;  %v6591_v21 = vld [vmem:[%s6781_s15 + $0x1a0] sm:$0xff] }
 0x282   : > { %v5693_v61 = vpop.f32.mrf.mxu0  ;;  %5814 = vmatmul.mubr.f32.gmra.mxu1 %v11179_v33  ;;  %v3403_v36 = vmul.f32 %v6586_v52, %v6586_v52  ;;  %v3408_v51 = vmul.f32 %v6591_v21, %v6591_v21 }
 0x283   : > { %11661 = vst [vmem:[#allocation26_spill] sm:$0xff] %v8199_v10  ;;  %v11173_v29 = vmax.f32 %v8199_v10, 0.0  ;;  %v8210_v22 = vadd.f32 %v5693_v61, %v8091_v46 }
 0x284   : > { %v2059_v28 = vpop.f32.mrf.mxu0  ;;  %v3562_v11 = vsel %vm3420_vm1, %v3403_v36, 0.0 }
 0x285   : > { %11662 = vst [vmem:[#allocation23_spill] sm:$0xff] %v8210_v22  ;;  %v8215_v63 = vadd.f32 %v8091_v46, %v2059_v28  ;;  %5816 = vmatprep.mubr.f32.mxu1 %v11173_v29  ;;  %v11168_v7 = vmax.f32 %v8210_v22, 0.0  ;;  %3563 = vadd.xlane.f32.xlu0 %v3562_v11 }
 0x286   : > { %v5696_v17 = vpop.f32.mrf.mxu0  ;;  %5817 = vmatmul.mubr.f32.gmra.mxu1 %v11170_v34 }
 0x287   : > { %11663 = vst [vmem:[#allocation28_spill] sm:$0xff] %v8215_v63  ;;  %v11169_v49 = vmax.f32 %v8215_v63, 0.0  ;;  %v8226_v2 = vadd.f32 %v5696_v17, %v8091_v46  ;;  %v3565_v17 = vsel %vm3420_vm1, %v3404_v16, 0.0 }
 0x288   : > { %v2069_v30 = vpop.f32.mrf.mxu0  ;;  %3566 = vadd.xlane.f32.xlu1 %v3565_v17  ;;  %v6592_v17 = vld [vmem:[%s6781_s15 + $0x1a8] sm:$0xff] }
 0x289   : > { %11664 = vst [vmem:[#allocation25_spill] sm:$0xff] %v8226_v2  ;;  %v8231_v24 = vadd.f32 %v8091_v46, %v2069_v30  ;;  %5819 = vmatprep.mubr.f32.mxu1 %v11169_v49  ;;  %v11204_v5 = vmax.f32 %v8226_v2, 0.0  ;;  %v6589_v30 = vld [vmem:[%s6781_s15 + $0x190] sm:$0xff] }
 0x28a   : > { %v5699_v41 = vpop.f32.mrf.mxu0  ;;  %5820 = vmatmul.mubr.f32.gmra.mxu1 %v11168_v7  ;;  %v3406_v37 = vmul.f32 %v6589_v30, %v6589_v30  ;;  %v3409_v30 = vmul.f32 %v6592_v17, %v6592_v17  ;;  %v6595_v7 = vld [vmem:[%s6781_s15 + $0x1c0] sm:$0xff] }
 0x28b   : > { %11665 = vst [vmem:[#allocation30_spill] sm:$0xff] %v8231_v24  ;;  %v11208_v9 = vmax.f32 %v8231_v24, 0.0  ;;  %v8242_v0 = vadd.f32 %v5699_v41, %v8091_v46  ;;  %v3568_v41 = vsel %vm3420_vm1, %v3405_v23, 0.0  ;;  %v3412_v49 = vmul.f32 %v6595_v7, %v6595_v7 }
 0x28c   : > { %v2079_v32 = vpop.f32.mrf.mxu0  ;;  %v3571_v36 = vsel %vm3420_vm1, %v3406_v37, 0.0  ;;  %3569 = vadd.xlane.f32.xlu0 %v3568_v41 }
 0x28d   : > { %11666 = vst [vmem:[#allocation27_spill] sm:$0xff] %v8242_v0  ;;  %v8247_v54 = vadd.f32 %v8091_v46, %v2079_v32  ;;  %5822 = vmatprep.mubr.f32.mxu1 %v11208_v9  ;;  %v11196_v28 = vmax.f32 %v8242_v0, 0.0  ;;  %v6590_v32 = vld [vmem:[%s6781_s15 + $0x198] sm:$0xff]  ;;  %3572 = vadd.xlane.f32.xlu1 %v3571_v36  ;;  %v11296_v0 = vmov 0.0  }
 0x28e   : > { %v5702_v43 = vpop.f32.mrf.mxu0  ;;  %5823 = vmatmul.mubr.f32.gmra.mxu1 %v11204_v5  ;;  %v3407_v47 = vmul.f32 %v6590_v32, %v6590_v32 }
 0x28f   : > { %11667 = vst [vmem:[#allocation32_spill] sm:$0xff] %v8247_v54  ;;  %v11200_v61 = vmax.f32 %v8247_v54, 0.0  ;;  %v8258_v44 = vadd.f32 %v5702_v43, %v8091_v46 }
 0x290   : > { %v2089_v42 = vpop.f32.mrf.mxu0  ;;  %v3574_v23 = vsel %vm3420_vm1, %v3407_v47, 0.0 }
 0x291   : > { %11668 = vst [vmem:[#allocation29_spill] sm:$0xff] %v8258_v44  ;;  %v8263_v35 = vadd.f32 %v8091_v46, %v2089_v42  ;;  %5825 = vmatprep.mubr.f32.mxu1 %v11200_v61  ;;  %v11184_v25 = vmax.f32 %v8258_v44, 0.0  ;;  %3575 = vadd.xlane.f32.xlu0 %v3574_v23 }
 0x292   : > { %v5705_v50 = vpop.f32.mrf.mxu0  ;;  %5826 = vmatmul.mubr.f32.gmra.mxu1 %v11196_v28 }
 0x293   : > { %11669 = vst [vmem:[#allocation34_spill] sm:$0xff] %v8263_v35  ;;  %v11192_v55 = vmax.f32 %v8263_v35, 0.0  ;;  %v8274_v31 = vadd.f32 %v5705_v50, %v8091_v46  ;;  %v3577_v50 = vsel %vm3420_vm1, %v3408_v51, 0.0  ;;  %v6594_v51 = vld [vmem:[%s6781_s15 + $0x1b8] sm:$0xff] }
 0x294   : > { %v2099_v1 = vpop.f32.mrf.mxu0  ;;  %3578 = vadd.xlane.f32.xlu1 %v3577_v50  ;;  %v3411_v17 = vmul.f32 %v6594_v51, %v6594_v51 }
 0x295   : > { %11670 = vst [vmem:[#allocation31_spill] sm:$0xff] %v8274_v31  ;;  %v8279_v52 = vadd.f32 %v8091_v46, %v2099_v1  ;;  %5828 = vmatprep.mubr.f32.mxu1 %v11192_v55  ;;  %v11174_v42 = vmax.f32 %v8274_v31, 0.0  ;;  %v6593_v1 = vld [vmem:[%s6781_s15 + $0x1b0] sm:$0xff] }
 0x296   : > { %v5708_v16 = vpop.f32.mrf.mxu0  ;;  %5829 = vmatmul.mubr.f32.gmra.mxu1 %v11184_v25  ;;  %v3410_v41 = vmul.f32 %v6593_v1, %v6593_v1  ;;  %v3586_v34 = vsel %vm3420_vm1, %v3411_v17, 0.0 }
 0x297   : > { %11671 = vst [vmem:[#allocation36_spill] sm:$0xff] %v8279_v52  ;;  %v11181_v43 = vmax.f32 %v8279_v52, 0.0  ;;  %v8290_v11 = vadd.f32 %v5708_v16, %v8091_v46 }
 0x298   : > { %v2109_v48 = vpop.f32.mrf.mxu0  ;;  %v3583_v23 = vsel %vm3420_vm1, %v3410_v41, 0.0  ;;  %v6596_v41 = vld [vmem:[%s6781_s15 + $0x1c8] sm:$0xff] }
 0x299   : > { %11672 = vst [vmem:[#allocation33_spill] sm:$0xff] %v8290_v11  ;;  %v8295_v37 = vadd.f32 %v8091_v46, %v2109_v48  ;;  %5831 = vmatprep.mubr.f32.mxu1 %v11181_v43  ;;  %v11172_v36 = vmax.f32 %v8290_v11, 0.0  ;;  %v3580_v48 = vsel %vm3420_vm1, %v3409_v30, 0.0  ;;  %3584 = vadd.xlane.f32.xlu1 %v3583_v23  ;;  %v6600_v43 = vld [vmem:[%s6781_s15 + $0x1e8] sm:$0xff] }
 0x29a   : > { %v5711_v32 = vpop.f32.mrf.mxu0  ;;  %5832 = vmatmul.mubr.f32.gmra.mxu1 %v11174_v42  ;;  %3581 = vadd.xlane.f32.xlu0 %v3580_v48  ;;  %v6597_v48 = vld [vmem:[%s6781_s15 + $0x1d0] sm:$0xff] }
 0x29b   : > { %11673 = vst [vmem:[#allocation38_spill] sm:$0xff] %v8295_v37  ;;  %v11171_v47 = vmax.f32 %v8295_v37, 0.0  ;;  %v8306_v21 = vadd.f32 %v5711_v32, %v8091_v46  ;;  %v3414_v29 = vmul.f32 %v6597_v48, %v6597_v48 }
 0x29c   : > { %v2119_v16 = vpop.f32.mrf.mxu0 }
 0x29d   : > { %11674 = vst [vmem:[#allocation35_spill] sm:$0xff] %v8306_v21  ;;  %v8311_v1 = vadd.f32 %v8091_v46, %v2119_v16  ;;  %5834 = vmatprep.mubr.f32.mxu1 %v11171_v47  ;;  %v11175_v50 = vmax.f32 %v8306_v21, 0.0  ;;  %v3413_v47 = vmul.f32 %v6596_v41, %v6596_v41  ;;  %v3595_v48 = vsel %vm3420_vm1, %v3414_v29, 0.0  ;;  %v6599_v29 = vld [vmem:[%s6781_s15 + $0x1e0] sm:$0xff] }
 0x29e   : > { %v5714_v32 = vpop.f32.mrf.mxu0  ;;  %5835 = vmatmul.mubr.f32.gmra.mxu1 %v11172_v36  ;;  %v3589_v36 = vsel %vm3420_vm1, %v3412_v49, 0.0  ;;  %3587 = vadd.xlane.f32.xlu0 %v3586_v34 }
 0x29f   : > { %11675 = vst [vmem:[#allocation40_spill] sm:$0xff] %v8311_v1  ;;  %v11176_v30 = vmax.f32 %v8311_v1, 0.0  ;;  %v8322_v16 = vadd.f32 %v5714_v32, %v8091_v46  ;;  %3590 = vadd.xlane.f32.xlu1 %v3589_v36  ;;  %v3592_v41 = vsel %vm3420_vm1, %v3413_v47, 0.0 }
 0x2a0   : > { %v2129_v51 = vpop.f32.mrf.mxu0 }
 0x2a1   : > { %11676 = vst [vmem:[#allocation37_spill] sm:$0xff] %v8322_v16  ;;  %v8327_v7 = vadd.f32 %v8091_v46, %v2129_v51  ;;  %5837 = vmatprep.mubr.f32.mxu1 %v11176_v30  ;;  %v11178_v17 = vmax.f32 %v8322_v16, 0.0 }
 0x2a2   : > { %v5717_v42 = vpop.f32.mrf.mxu0  ;;  %5838 = vmatmul.mubr.f32.gmra.mxu1 %v11175_v50  ;;  %3593 = vadd.xlane.f32.xlu0 %v3592_v41 }
 0x2a3   : > { %11677 = vst [vmem:[#allocation42_spill] sm:$0xff] %v8327_v7  ;;  %v11177_v23 = vmax.f32 %v8327_v7, 0.0  ;;  %v8338_v32 = vadd.f32 %v5717_v42, %v8091_v46  ;;  %3596 = vadd.xlane.f32.xlu1 %v3595_v48 }
 0x2a4   : > { %v2139_v51 = vpop.f32.mrf.mxu0 }
 0x2a5   : > { %11678 = vst [vmem:[#allocation39_spill] sm:$0xff] %v8338_v32  ;;  %v8342_v49 = vadd.f32 %v8091_v46, %v2139_v51  ;;  %5840 = vmatprep.mubr.f32.mxu1 %v11177_v23  ;;  %v11183_v36 = vmax.f32 %v8338_v32, 0.0  ;;  %v6598_v51 = vld [vmem:[%s6781_s15 + $0x1d8] sm:$0xff] }
 0x2a6   : > { %v5720_v34 = vpop.f32.mrf.mxu0  ;;  %5841 = vmatmul.mubr.f32.gmra.mxu1 %v11178_v17  ;;  %v3415_v30 = vmul.f32 %v6598_v51, %v6598_v51  ;;  %v3416_v17 = vmul.f32 %v6599_v29, %v6599_v29  ;;  %v3417_v29 = vmul.f32 %v6600_v43, %v6600_v43 }
 0x2a7   : > { %11679 = vst [vmem:[#allocation44_spill] sm:$0xff] %v8342_v49  ;;  %v11180_v42 = vmax.f32 %v8342_v49, 0.0  ;;  %v8352_v47 = vadd.f32 %v5720_v34, %v8091_v46 }
 0x2a8   : > { %v2149_v50 = vpop.f32.mrf.mxu0  ;;  %v3598_v34 = vsel %vm3420_vm1, %v3415_v30, 0.0  ;;  %v3601_v51 = vsel %vm3420_vm1, %v3416_v17, 0.0  ;;  %v6601_v30 = vld [vmem:[%s6781_s15 + $0x1f0] sm:$0xff]  ;;  %v3604_v17 = vsel %vm3420_vm1, %v3417_v29, 0.0 }
 0x2a9   : > { %11680 = vst [vmem:[#allocation41_spill] sm:$0xff] %v8352_v47  ;;  %v8356_v23 = vadd.f32 %v8091_v46, %v2149_v50  ;;  %5843 = vmatprep.mubr.f32.mxu1 %v11180_v42  ;;  %3599 = vadd.xlane.f32.xlu0 %v3598_v34  ;;  %v11189_v50 = vmax.f32 %v8352_v47, 0.0  ;;  %v3418_v34 = vmul.f32 %v6601_v30, %v6601_v30 }
 0x2aa   : > { %v5723_v41 = vpop.f32.mrf.mxu0  ;;  %5844 = vmatmul.mubr.f32.gmra.mxu1 %v11183_v36  ;;  %3602 = vadd.xlane.f32.xlu1 %v3601_v51 }
 0x2ab   : > { %11681 = vst [vmem:[#allocation46_spill] sm:$0xff] %v8356_v23  ;;  %v11185_v48 = vmax.f32 %v8356_v23, 0.0  ;;  %v8368_v33 = vadd.f32 %v5723_v41, %v8091_v46  ;;  %v3607_v51 = vsel %vm3420_vm1, %v3418_v34, 0.0 }
 0x2ac   : > { %v2159_v42 = vpop.f32.mrf.mxu0 }
 0x2ad   : > { %11682 = vst [vmem:[#allocation43_spill] sm:$0xff] %v8368_v33  ;;  %v8372_v20 = vadd.f32 %v8091_v46, %v2159_v42  ;;  %5846 = vmatprep.mubr.f32.mxu1 %v11185_v48  ;;  %3605 = vadd.xlane.f32.xlu0 %v3604_v17  ;;  %v11188_v43 = vmax.f32 %v8368_v33, 0.0  ;;  %v6602_v48 = vld [vmem:[%s6781_s15 + $0x1f8] sm:$0xff]  ;;  %s10909_s15 = scalar_lea.vmem [#allocation2], %s5306_s25 }
 0x2ae   : > { %v5726_v36 = vpop.f32.mrf.mxu0  ;;  %5847 = vmatmul.mubr.f32.gmra.mxu1 %v11189_v50  ;;  %3608 = vadd.xlane.f32.xlu1 %v3607_v51  ;;  %v3419_v30 = vmul.f32 %v6602_v48, %v6602_v48 }
 0x2af   : > { %11683 = vst [vmem:[#allocation48_spill] sm:$0xff] %v8372_v20  ;;  %v11187_v41 = vmax.f32 %v8372_v20, 0.0  ;;  %v8384_v42 = vadd.f32 %v5726_v36, %v8091_v46 }
 0x2b0   : > { %v2169_v25 = vpop.f32.mrf.mxu0  ;;  %v3610_v34 = vsel %vm3420_vm1, %v3419_v30, 0.0 }
 0x2b1   : > { %11684 = vst [vmem:[#allocation45_spill] sm:$0xff] %v8384_v42  ;;  %v8388_v38 = vadd.f32 %v8091_v46, %v2169_v25  ;;  %5849 = vmatprep.mubr.f32.mxu1 %v11187_v41  ;;  %3611 = vadd.xlane.f32.xlu0 %v3610_v34  ;;  %v11190_v36 = vmax.f32 %v8384_v42, 0.0 }
 0x2b2   : > { %v5729_v29 = vpop.f32.mrf.mxu0  ;;  %5850 = vmatmul.mubr.f32.gmra.mxu1 %v11188_v43 }
 0x2b3   : > { %11685 = vst [vmem:[#allocation50_spill] sm:$0xff] %v8388_v38  ;;  %v11191_v17 = vmax.f32 %v8388_v38, 0.0  ;;  %v8398_v51 = vadd.f32 %v5729_v29, %v8091_v46 }
 0x2b4   : > { %v2179_v48 = vpop.f32.mrf.mxu0 }
 0x2b5   : > { %11686 = vst [vmem:[#allocation47_spill] sm:$0xff] %v8398_v51  ;;  %v8401_v25 = vadd.f32 %v8091_v46, %v2179_v48  ;;  %5852 = vmatprep.mubr.f32.mxu1 %v11191_v17  ;;  %v11194_v34 = vmax.f32 %v8398_v51, 0.0 }
 0x2b6   : > { %v5732_v41 = vpop.f32.mrf.mxu0  ;;  %5853 = vmatmul.mubr.f32.gmra.mxu1 %v11190_v36 }
 0x2b7   : > { %11687 = vst [vmem:[#allocation52_spill] sm:$0xff] %v8401_v25  ;;  %v11195_v30 = vmax.f32 %v8401_v25, 0.0  ;;  %v8410_v43 = vadd.f32 %v5732_v41, %v8091_v46 }
 0x2b8   : > { %v2189_v29 = vpop.f32.mrf.mxu0 }
 0x2b9   : > { %11688 = vst [vmem:[#allocation49_spill] sm:$0xff] %v8410_v43  ;;  %v8413_v50 = vadd.f32 %v8091_v46, %v2189_v29  ;;  %5855 = vmatprep.mubr.f32.mxu1 %v11195_v30  ;;  %v11198_v17 = vmax.f32 %v8410_v43, 0.0 }
 0x2ba   : > { %v5735_v48 = vpop.f32.mrf.mxu0  ;;  %5856 = vmatmul.mubr.f32.gmra.mxu1 %v11194_v34 }
 0x2bb   : > { %11689 = vst [vmem:[#allocation54_spill] sm:$0xff] %v8413_v50  ;;  %v11199_v36 = vmax.f32 %v8413_v50, 0.0  ;;  %v8422_v55 = vadd.f32 %v5735_v48, %v8091_v46 }
 0x2bc   : > { %v2199_v41 = vpop.f32.mrf.mxu0 }
 0x2bd   : > { %11690 = vst [vmem:[#allocation77_spill] sm:$0xff] %v8422_v55  ;;  %v8425_v56 = vadd.f32 %v8091_v46, %v2199_v41  ;;  %5858 = vmatprep.mubr.f32.mxu1 %v11199_v36  ;;  %v11202_v30 = vmax.f32 %v8422_v55, 0.0 }
 0x2be   : > { %v5738_v29 = vpop.f32.mrf.mxu0  ;;  %5859 = vmatmul.mubr.f32.gmra.mxu1 %v11198_v17 }
 0x2bf   : > { %11691 = vst [vmem:[#allocation79_spill] sm:$0xff] %v8425_v56  ;;  %v11203_v34 = vmax.f32 %v8425_v56, 0.0  ;;  %v8434_v28 = vadd.f32 %v5738_v29, %v8091_v46 }
 0x2c0   : > { %v2209_v48 = vpop.f32.mrf.mxu0 }
 0x2c1   : > { %11692 = vst [vmem:[#allocation51_spill] sm:$0xff] %v8434_v28  ;;  %v8437_v4 = vadd.f32 %v8091_v46, %v2209_v48  ;;  %5861 = vmatprep.mubr.f32.mxu1 %v11203_v34  ;;  %v11206_v36 = vmax.f32 %v8434_v28, 0.0 }
 0x2c2   : > { %v5741_v41 = vpop.f32.mrf.mxu0  ;;  %5862 = vmatmul.mubr.f32.gmra.mxu1 %v11202_v30 }
 0x2c3   : > { %11693 = vst [vmem:[#allocation56_spill] sm:$0xff] %v8437_v4  ;;  %v11207_v17 = vmax.f32 %v8437_v4, 0.0  ;;  %v8446_v61 = vadd.f32 %v5741_v41, %v8091_v46 }
 0x2c4   : > { %v2219_v29 = vpop.f32.mrf.mxu0 }
 0x2c5   : > { %11694 = vst [vmem:[#allocation78_spill] sm:$0xff] %v8446_v61  ;;  %v8449_v3 = vadd.f32 %v8091_v46, %v2219_v29  ;;  %5864 = vmatprep.mubr.f32.mxu1 %v11207_v17  ;;  %v11210_v34 = vmax.f32 %v8446_v61, 0.0 }
 0x2c6   : > { %v5744_v48 = vpop.f32.mrf.mxu0  ;;  %5865 = vmatmul.mubr.f32.gmra.mxu1 %v11206_v36 }
 0x2c7   : > { %11695 = vst [vmem:[#allocation53_spill] sm:$0xff] %v8449_v3  ;;  %v11211_v30 = vmax.f32 %v8449_v3, 0.0  ;;  %v8458_v5 = vadd.f32 %v5744_v48, %v8091_v46 }
 0x2c8   : > { %v2229_v41 = vpop.f32.mrf.mxu0 }
 0x2c9   : > { %11696 = vst [vmem:[#allocation81_spill] sm:$0xff] %v8458_v5  ;;  %v8461_v62 = vadd.f32 %v8091_v46, %v2229_v41  ;;  %5867 = vmatprep.mubr.f32.mxu1 %v11211_v30  ;;  %v11214_v17 = vmax.f32 %v8458_v5, 0.0 }
 0x2ca   : > { %v5747_v29 = vpop.f32.mrf.mxu0  ;;  %5868 = vmatmul.mubr.f32.gmra.mxu1 %v11210_v34 }
 0x2cb   : > { %11697 = vst [vmem:[#allocation58_spill] sm:$0xff] %v8461_v62  ;;  %v11215_v36 = vmax.f32 %v8461_v62, 0.0  ;;  %v8470_v9 = vadd.f32 %v5747_v29, %v8091_v46 }
 0x2cc   : > { %v2239_v48 = vpop.f32.mrf.mxu0 }
 0x2cd   : > { %11698 = vst [vmem:[#allocation80_spill] sm:$0xff] %v8470_v9  ;;  %v8473_v59 = vadd.f32 %v8091_v46, %v2239_v48  ;;  %5870 = vmatprep.mubr.f32.mxu1 %v11215_v36  ;;  %v11218_v30 = vmax.f32 %v8470_v9, 0.0 }
 0x2ce   : > { %v5750_v41 = vpop.f32.mrf.mxu0  ;;  %5871 = vmatmul.mubr.f32.gmra.mxu1 %v11214_v17 }
 0x2cf   : > { %11699 = vst [vmem:[#allocation83_spill] sm:$0xff] %v8473_v59  ;;  %v11219_v34 = vmax.f32 %v8473_v59, 0.0  ;;  %v8482_v12 = vadd.f32 %v5750_v41, %v8091_v46 }
 0x2d0   : > { %v2249_v29 = vpop.f32.mrf.mxu0 }
 0x2d1   : > { %11700 = vst [vmem:[#allocation55_spill] sm:$0xff] %v8482_v12  ;;  %v8485_v15 = vadd.f32 %v8091_v46, %v2249_v29  ;;  %5873 = vmatprep.mubr.f32.mxu1 %v11219_v34  ;;  %v11222_v36 = vmax.f32 %v8482_v12, 0.0 }
 0x2d2   : > { %v5753_v48 = vpop.f32.mrf.mxu0  ;;  %5874 = vmatmul.mubr.f32.gmra.mxu1 %v11218_v30 }
 0x2d3   : > { %11701 = vst [vmem:[#allocation60_spill] sm:$0xff] %v8485_v15  ;;  %v11223_v17 = vmax.f32 %v8485_v15, 0.0  ;;  %v8494_v19 = vadd.f32 %v5753_v48, %v8091_v46 }
 0x2d4   : > { %v2259_v41 = vpop.f32.mrf.mxu0 }
 0x2d5   : > { %11702 = vst [vmem:[#allocation82_spill] sm:$0xff] %v8494_v19  ;;  %v8497_v6 = vadd.f32 %v8091_v46, %v2259_v41  ;;  %5876 = vmatprep.mubr.f32.mxu1 %v11223_v17  ;;  %v11226_v34 = vmax.f32 %v8494_v19, 0.0 }
 0x2d6   : > { %v5756_v29 = vpop.f32.mrf.mxu0  ;;  %5877 = vmatmul.mubr.f32.gmra.mxu1 %v11222_v36 }
 0x2d7   : > { %11703 = vst [vmem:[#allocation57_spill] sm:$0xff] %v8497_v6  ;;  %v11227_v30 = vmax.f32 %v8497_v6, 0.0  ;;  %v8506_v61 = vadd.f32 %v5756_v29, %v8091_v46  ;;  %v8588_v6 = vld [vmem:[%s11147_s6] ss:$0 sm:$0xff] }
 0x2d8   : > { %v2269_v48 = vpop.f32.mrf.mxu0 }
 0x2d9   : > { %11704 = vst [vmem:[#allocation85_spill] sm:$0xff] %v8506_v61  ;;  %v8509_v3 = vadd.f32 %v8091_v46, %v2269_v48  ;;  %5879 = vmatprep.mubr.f32.mxu1 %v11227_v30  ;;  %v11230_v17 = vmax.f32 %v8506_v61, 0.0 }
 0x2da   : > { %v5759_v41 = vpop.f32.mrf.mxu0  ;;  %5880 = vmatmul.mubr.f32.gmra.mxu1 %v11226_v34 }
 0x2db   : > { %11705 = vst [vmem:[#allocation62_spill] sm:$0xff] %v8509_v3  ;;  %v11231_v36 = vmax.f32 %v8509_v3, 0.0  ;;  %v8518_v28 = vadd.f32 %v5759_v41, %v8091_v46 }
 0x2dc   : > { %v2279_v29 = vpop.f32.mrf.mxu0 }
 0x2dd   : > { %11706 = vst [vmem:[#allocation84_spill] sm:$0xff] %v8518_v28  ;;  %v8521_v4 = vadd.f32 %v8091_v46, %v2279_v29  ;;  %5882 = vmatprep.mubr.f32.mxu1 %v11231_v36  ;;  %v11234_v30 = vmax.f32 %v8518_v28, 0.0 }
 0x2de   : > { %v5762_v48 = vpop.f32.mrf.mxu0  ;;  %5883 = vmatmul.mubr.f32.gmra.mxu1 %v11230_v17 }
 0x2df   : > { %11707 = vst [vmem:[#allocation87_spill] sm:$0xff] %v8521_v4  ;;  %v11236_v34 = vmax.f32 %v8521_v4, 0.0  ;;  %v8530_v19 = vadd.f32 %v5762_v48, %v8091_v46 }
 0x2e0   : > { %v2289_v41 = vpop.f32.mrf.mxu0 }
 0x2e1   : > { %11708 = vst [vmem:[#allocation59_spill] sm:$0xff] %v8530_v19  ;;  %v8533_v55 = vadd.f32 %v8091_v46, %v2289_v41  ;;  %5885 = vmatprep.mubr.f32.mxu1 %v11236_v34  ;;  %v11237_v36 = vmax.f32 %v8530_v19, 0.0 }
 0x2e2   : > { %v5765_v29 = vpop.f32.mrf.mxu0  ;;  %5886 = vmatmul.mubr.f32.gmra.mxu1 %v11234_v30 }
 0x2e3   : > { %11709 = vst [vmem:[#allocation64_spill] sm:$0xff] %v8533_v55  ;;  %v11235_v17 = vmax.f32 %v8533_v55, 0.0  ;;  %v8542_v61 = vadd.f32 %v5765_v29, %v8091_v46  ;;  %v8557_v29 = vpop.xlane.xlu0 %3422 }
 0x2e4   : > { %v2299_v48 = vpop.f32.mrf.mxu0 }
 0x2e5   : > { %11710 = vst [vmem:[#allocation86_spill] sm:$0xff] %v8542_v61  ;;  %v8545_v3 = vadd.f32 %v8091_v46, %v2299_v48  ;;  %5888 = vmatprep.mubr.f32.mxu1 %v11235_v17  ;;  %v11242_v30 = vmax.f32 %v8542_v61, 0.0  ;;  %v8561_v48 = vpop.xlane.xlu1 %3425 }
 0x2e6   : > { %5889 = vmatmul.mubr.f32.gmra.mxu1 %v11237_v36 }
 0x2e7   : > { %11711 = vst [vmem:[#allocation61_spill] sm:$0xff] %v8545_v3  ;;  %v11240_v41 = vmax.f32 %v8545_v3, 0.0  ;;  %v8559_v46 = vpop.xlane.xlu0 %3428 }
 0x2e9   : > { %5891 = vmatprep.mubr.f32.mxu1 %v11240_v41  ;;  %v8565_v34 = vpop.xlane.xlu1 %3434 }
 0x2ea   : > { %5892 = vmatmul.mubr.f32.gmra.mxu1 %v11242_v30 }
 0x2eb   : > { %v8563_v17 = vpop.xlane.xlu0 %3431 }
 0x2ed   : > { %v8569_v19 = vpop.xlane.xlu1 %3440 }
 0x2ef   : > { %v8567_v36 = vpop.xlane.xlu0 %3437 }
 0x2f1   : > { %v8573_v41 = vpop.xlane.xlu1 %3446 }
 0x2f3   : > { %v8571_v55 = vpop.xlane.xlu0 %3443 }
 0x2f5   : > { %v8577_v30 = vpop.xlane.xlu1 %3452 }
 0x2f7   : > { %v8575_v61 = vpop.xlane.xlu0 %3449 }
 0x2f9   : > { %v8581_v28 = vpop.xlane.xlu1 %3458 }
 0x2fb   : > { %v8579_v3 = vpop.xlane.xlu0 %3455 }
 0x2fc   : > { %11712 = vst [vmem:[#allocation89_spill] sm:$0xff] %v8579_v3 }
 0x2fd   : > { %v8593_v15 = vpop.xlane.xlu1 %3464 }
 0x2ff   : > { %v8583_v4 = vpop.xlane.xlu0 %3461 }
 0x300   : > { %11713 = vst [vmem:[#allocation66_spill] sm:$0xff] %v8583_v4 }
 0x303   : > { %v8599_v51 = vpop.xlane.xlu0 %3467 }
 0x304   : > { %11714 = vst [vmem:[#allocation88_spill] sm:$0xff] %v8599_v51 }
 0x307   : > { %v8607_v62 = vpop.xlane.xlu0 %3473 }
 0x308   : > { %11715 = vst [vmem:[#allocation91_spill] sm:$0xff] %v8607_v62 }
 0x30b   : > { %v8623_v47 = vpop.xlane.xlu0 %3479 }
 0x30c   : > { %11717 = vst [vmem:[#allocation68_spill] sm:$0xff] %v8623_v47 }
 0x32b   : > { %v5800_v56 = vpop.f32.mrf.mxu0 }
 0x32c   : > { %v8591_v12 = vadd.f32 %v5800_v56, %v8588_v6  ;;  %v8605_v56 = vpop.xlane.xlu1 %3470 }
 0x32d   : > { %v2461_v43 = vpop.f32.mrf.mxu0 }
 0x32e   : > { %v5381_v50 = vmul.f32 -1.442695, %v8591_v12  ;;  %v8597_v9 = vadd.f32 %v8588_v6, %v2461_v43 }
 0x330   : > { %6154 = vpow2.f32 %v5381_v50  ;;  %v5380_v59 = vmul.f32 -1.442695, %v8597_v9  ;;  %v8621_v20 = vpop.xlane.xlu1 %3476 }
 0x331   : > { %11716 = vst [vmem:[#allocation63_spill] sm:$0xff] %v8621_v20 }
 0x332   : > { %6156 = vpow2.f32 %v5380_v59  ;;  %v5803_v25 = vpop.f32.mrf.mxu0 }
 0x333   : > { %v8603_v5 = vadd.f32 %v5803_v25, %v8588_v6 }
 0x334   : > { %v2471_v42 = vpop.f32.mrf.mxu0  ;;  %v8637_v63 = vpop.xlane.xlu1 %3482 }
 0x335   : > { %v5383_v38 = vmul.f32 -1.442695, %v8603_v5  ;;  %v8611_v43 = vadd.f32 %v8588_v6, %v2471_v42  ;;  %11718 = vst [vmem:[#allocation90_spill] sm:$0xff] %v8637_v63 }
 0x336   : > { %v5806_v32 = vpop.f32.mrf.mxu0 }
 0x337   : > { %6158 = vpow2.f32 %v5383_v38  ;;  %v5382_v50 = vmul.f32 -1.442695, %v8611_v43  ;;  %v8615_v59 = vadd.f32 %v5806_v32, %v8588_v6 }
 0x338   : > { %v2481_v33 = vpop.f32.mrf.mxu0 }
 0x339   : > { %6160 = vpow2.f32 %v5382_v50  ;;  %v5385_v25 = vmul.f32 -1.442695, %v8615_v59  ;;  %v8619_v49 = vadd.f32 %v8588_v6, %v2481_v33 }
 0x33a   : > { %v5809_v16 = vpop.f32.mrf.mxu1 }
 0x33b   : > { %6162 = vpow2.f32 %v5385_v25  ;;  %v5384_v38 = vmul.f32 -1.442695, %v8619_v49  ;;  %v8627_v42 = vadd.f32 %v5809_v16, %v8588_v6 }
 0x33c   : > { %v2491_v32 = vpop.f32.mrf.mxu1 }
 0x33d   : > { %v6155_v7 = vpop.eup %6154  ;;  %6164 = vpow2.f32 %v5384_v38  ;;  %v5387_v50 = vmul.f32 -1.442695, %v8627_v42  ;;  %v8631_v23 = vadd.f32 %v8588_v6, %v2491_v32  ;;  %v8639_v38 = vpop.xlane.xlu0 %3485 }
 0x33e   : > { %v2973_v33 = vadd.f32 1.0, %v6155_v7  ;;  %v5812_v21 = vpop.f32.mrf.mxu1  ;;  %11719 = vst [vmem:[#allocation65_spill] sm:$0xff] %v8639_v38 }
 0x33f   : > { %v6157_v22 = vpop.eup %6156  ;;  %6166 = vpow2.f32 %v5387_v50  ;;  %v5386_v1 = vmul.f32 -1.442695, %v8631_v23  ;;  %v8635_v25 = vadd.f32 %v5812_v21, %v8588_v6 }
 0x340   : > { %6168 = vrcp.f32 %v2973_v33  ;;  %v2972_v16 = vadd.f32 1.0, %v6157_v22  ;;  %v2501_v11 = vpop.f32.mrf.mxu1 }
 0x341   : > { %6170 = vpow2.f32 %v5386_v1  ;;  %v5389_v32 = vmul.f32 -1.442695, %v8635_v25  ;;  %v8643_v7 = vadd.f32 %v8588_v6, %v2501_v11  ;;  %v8654_v11 = vpop.xlane.xlu1 %3488  ;;  %v8657_v31 = vpop.xlane.xlu0 %3491 }
 0x342   : > { %6172 = vrcp.f32 %v2972_v16  ;;  %v5815_v50 = vpop.f32.mrf.mxu1  ;;  %11722 = vst [vmem:[#allocation92_spill] sm:$0xff] %v8654_v11  ;;  %11723 = vst [vmem:[#allocation4_spill] sm:$0xff] %v8657_v31 }
 0x343   : > { %6174 = vpow2.f32 %v5389_v32  ;;  %v5388_v53 = vmul.f32 -1.442695, %v8643_v7  ;;  %v8647_v21 = vadd.f32 %v5815_v50, %v8588_v6 }
 0x344   : > { %v6159_v37 = vpop.eup %6158  ;;  %6176 = vrsqrt.f32 %v8561_v48  ;;  %v2511_v22 = vpop.f32.mrf.mxu1 }
 0x345   : > { %11720 = vst [vmem:[#allocation3_spill] sm:$0xff] %v8647_v21  ;;  %v2975_v33 = vadd.f32 1.0, %v6159_v37  ;;  %6178 = vpow2.f32 %v5388_v53  ;;  %v5391_v1 = vmul.f32 -1.442695, %v8647_v21  ;;  %v8652_v10 = vadd.f32 %v8588_v6, %v2511_v22 }
 0x346   : > { %v6161_v16 = vpop.eup %6160  ;;  %6180 = vrsqrt.f32 %v8557_v29  ;;  %v5818_v32 = vpop.f32.mrf.mxu1 }
 0x347   : > { %11721 = vst [vmem:[#allocation70_spill] sm:$0xff] %v8652_v10  ;;  %6182 = vrcp.f32 %v2975_v33  ;;  %v2974_v50 = vadd.f32 1.0, %v6161_v16  ;;  %v5390_v27 = vmul.f32 -1.442695, %v8652_v10  ;;  %v8661_v37 = vadd.f32 %v5818_v32, %v8588_v6  ;;  %v8671_v10 = vpop.xlane.xlu1 %3494 }
 0x348   : > { %v6163_v53 = vpop.eup %6162  ;;  %6184 = vpow2.f32 %v5391_v1  ;;  %v2521_v52 = vpop.f32.mrf.mxu1  ;;  %11727 = vst [vmem:[#allocation69_spill] sm:$0xff] %v8671_v10 }
 0x349   : > { %11724 = vst [vmem:[#allocation67_spill] sm:$0xff] %v8661_v37  ;;  %6186 = vrcp.f32 %v2974_v50  ;;  %v2977_v22 = vadd.f32 1.0, %v6163_v53  ;;  %v5393_v60 = vmul.f32 -1.442695, %v8661_v37  ;;  %v8665_v21 = vadd.f32 %v8588_v6, %v2521_v52  ;;  %v8673_v53 = vpop.xlane.xlu0 %3497 }
 0x34a   : > { %v6165_v44 = vpop.eup %6164  ;;  %6188 = vpow2.f32 %v5390_v27  ;;  %v5821_v18 = vpop.f32.mrf.mxu1  ;;  %11728 = vst [vmem:[#allocation5_spill] sm:$0xff] %v8673_v53 }
 0x34b   : > { %11725 = vst [vmem:[#allocation72_spill] sm:$0xff] %v8665_v21  ;;  %6190 = vrcp.f32 %v2977_v22  ;;  %v2976_v33 = vadd.f32 1.0, %v6165_v44  ;;  %v5392_v16 = vmul.f32 -1.442695, %v8665_v21  ;;  %v8669_v32 = vadd.f32 %v5821_v18, %v8588_v6 }
 0x34c   : > { %v6167_v1 = vpop.eup %6166  ;;  %6192 = vpow2.f32 %v5393_v60  ;;  %v2531_v50 = vpop.f32.mrf.mxu1 }
 0x34d   : > { %11726 = vst [vmem:[#allocation6_spill] sm:$0xff] %v8669_v32  ;;  %v6169_v37 = vpop.eup %6168  ;;  %6194 = vrcp.f32 %v2976_v33  ;;  %v2979_v52 = vadd.f32 1.0, %v6167_v1  ;;  %v5395_v27 = vmul.f32 -1.442695, %v8669_v32  ;;  %v8677_v22 = vadd.f32 %v8588_v6, %v2531_v50  ;;  %v8696_v40 = vpop.xlane.xlu0 %3503 }
 0x34e   : > { %v6171_v44 = vpop.eup %6170  ;;  %6196 = vpow2.f32 %v5392_v16  ;;  %v5824_v21 = vpop.f32.mrf.mxu1  ;;  %4127 = vrot.lane.b32.xlu0 %v6169_v37, %s6663_s18  ;;  %vm3165_vm2 = vcmp.gt.f32.partialorder %v6169_v37, 0.3  ;;  %11733 = vst [vmem:[#allocation9_spill] sm:$0xff] %v8696_v40 }
 0x34f   : > { %11729 = vst [vmem:[#allocation74_spill] sm:$0xff] %v8677_v22  ;;  %v6173_v18 = vpop.eup %6172  ;;  %6198 = vrcp.f32 %v2979_v52  ;;  %v2978_v60 = vadd.f32 1.0, %v6171_v44  ;;  %v5394_v35 = vmul.f32 -1.442695, %v8677_v22  ;;  %v8682_v33 = vadd.f32 %v5824_v21, %v8588_v6  ;;  %v8691_v44 = vpop.xlane.xlu1 %3500 }
 0x350   : > { %v6175_v1 = vpop.eup %6174  ;;  %6200 = vpow2.f32 %v5395_v27  ;;  %v2541_v32 = vpop.f32.mrf.mxu1  ;;  %4125 = vrot.lane.b32.xlu1 %v6173_v18, %s6663_s18  ;;  %vm3164_vm3 = vcmp.gt.f32.partialorder %v6173_v18, 0.3  ;;  %11732 = vst [vmem:[#allocation71_spill] sm:$0xff] %v8691_v44  ;;  %v5445_v18 = vsel %vm3165_vm2, 1.0, %v11296_v0 }
 0x351   : > { %11730 = vst [vmem:[#allocation8_spill] sm:$0xff] %v8682_v33  ;;  %v8685_v16 = vpop.eup %6176  ;;  %6202 = vrcp.f32 %v2978_v60  ;;  %v2981_v50 = vadd.f32 1.0, %v6175_v1  ;;  %v5397_v14 = vmul.f32 -1.442695, %v8682_v33  ;;  %v8689_v52 = vadd.f32 %v8588_v6, %v2541_v32 }
 0x352   : > { %v6179_v22 = vpop.eup %6178  ;;  %6204 = vpow2.f32 %v5394_v35  ;;  %v5827_v21 = vpop.f32.mrf.mxu1  ;;  %v5444_v27 = vsel %vm3164_vm3, 1.0, %v11296_v0 }
 0x353   : > { %11731 = vst [vmem:[#allocation7_spill] sm:$0xff] %v8689_v52  ;;  %v8698_v60 = vpop.eup %6180  ;;  %6206 = vrcp.f32 %v2981_v50  ;;  %v2980_v1 = vadd.f32 1.0, %v6179_v22  ;;  %v5396_v32 = vmul.f32 -1.442695, %v8689_v52  ;;  %v8702_v33 = vadd.f32 %v5827_v21, %v8588_v6 }
 0x354   : > { %v6183_v54 = vpop.eup %6182  ;;  %6208 = vpow2.f32 %v5397_v14  ;;  %v2551_v35 = vpop.f32.mrf.mxu1  ;;  %v5994_v58 = vpack.i.bf16 %v5445_v18, %v5444_v27 }
 0x355   : > { %11734 = vst [vmem:[#allocation93_spill] sm:$0xff] %v8702_v33  ;;  %v6185_v2 = vpop.eup %6184  ;;  %6210 = vrcp.f32 %v2980_v1  ;;  %v5399_v37 = vmul.f32 -1.442695, %v8702_v33  ;;  %v8706_v0 = vadd.f32 %v8588_v6, %v2551_v35  ;;  %4131 = vrot.lane.b32.xlu1 %v6183_v54, %s6663_s18  ;;  %v8714_v18 = vpop.xlane.xlu1 %3506  ;;  %vm3167_vm6 = vcmp.gt.f32.partialorder %v6183_v54, 0.3 }
 0x356   : > { %v6187_v50 = vpop.eup %6186  ;;  %v2983_v22 = vadd.f32 1.0, %v6185_v2  ;;  %6212 = vpow2.f32 %v5396_v32  ;;  %5995 = vrot.lane.b32.xlu0 %v5994_v58, %s6665_s19  ;;  %v5830_v21 = vpop.f32.mrf.mxu1  ;;  %11737 = vst [vmem:[#allocation11_spill] sm:$0xff] %v8714_v18 }
 0x357   : > { %11735 = vst [vmem:[#allocation73_spill] sm:$0xff] %v8706_v0  ;;  %v6189_v52 = vpop.eup %6188  ;;  %6214 = vpow2.f32 %v5399_v37  ;;  %v5398_v14 = vmul.f32 -1.442695, %v8706_v0  ;;  %v8712_v27 = vadd.f32 %v5830_v21, %v8588_v6  ;;  %vm3166_vm4 = vcmp.gt.f32.partialorder %v6187_v50, 0.3  ;;  %v8716_v2 = vpop.xlane.xlu0 %3509 }
 0x358   : > { %v6191_v1 = vpop.eup %6190  ;;  %6216 = vrcp.f32 %v2983_v22  ;;  %v2982_v35 = vadd.f32 1.0, %v6189_v52  ;;  %v2561_v33 = vpop.f32.mrf.mxu1  ;;  %11738 = vst [vmem:[#allocation94_spill] sm:$0xff] %v8716_v2  ;;  %v11740_v22 = vmov 0.0  }
 0x359   : > { %11736 = vst [vmem:[#allocation95_spill] sm:$0xff] %v8712_v27  ;;  %v6193_v32 = vpop.eup %6192  ;;  %6218 = vpow2.f32 %v5398_v14  ;;  %v5401_v58 = vmul.f32 -1.442695, %v8712_v27  ;;  %v8720_v37 = vadd.f32 %v8588_v6, %v2561_v33  ;;  %4129 = vrot.lane.b32.xlu1 %v6187_v50, %s6663_s18  ;;  %vm3169_vm5 = vcmp.gt.f32.partialorder %v6191_v1, 0.3 }
 0x35a   : > { %v6195_v21 = vpop.eup %6194  ;;  %6220 = vrcp.f32 %v2982_v35  ;;  %v2985_v0 = vadd.f32 1.0, %v6193_v32  ;;  %v5833_v45 = vpop.f32.mrf.mxu1  ;;  %v5446_v52 = vsel %vm3166_vm4, 1.0, %v11740_v22  ;;  %v5449_v50 = vsel %vm3169_vm5, 1.0, %v11740_v22 }
 0x35b   : > { %11739 = vst [vmem:[#allocation10_spill] sm:$0xff] %v8720_v37  ;;  %v6197_v24 = vpop.eup %6196  ;;  %6222 = vpow2.f32 %v5401_v58  ;;  %v5400_v14 = vmul.f32 -1.442695, %v8720_v37  ;;  %v8727_v27 = vadd.f32 %v5833_v45, %v8588_v6  ;;  %4133 = vrot.lane.b32.xlu0 %v6195_v21, %s6663_s18  ;;  %vm3168_vm7 = vcmp.gt.f32.partialorder %v6195_v21, 0.3  ;;  %v8740_v37 = vpop.xlane.xlu1 %3512 }
 0x35c   : > { %v8730_v33 = vpop.eup %6198  ;;  %6224 = vrcp.f32 %v2985_v0  ;;  %v2984_v35 = vadd.f32 1.0, %v6197_v24  ;;  %v2571_v32 = vpop.f32.mrf.mxu1  ;;  %v5448_v57 = vsel %vm3168_vm7, 1.0, %v11740_v22  ;;  %11743 = vst [vmem:[#allocation97_spill] sm:$0xff] %v8740_v37  ;;  %v5447_v39 = vsel %vm3167_vm6, 1.0, %v11740_v22 }
 0x35d   : > { %11741 = vst [vmem:[#allocation96_spill] sm:$0xff] %v8727_v27  ;;  %v6201_v26 = vpop.eup %6200  ;;  %6226 = vpow2.f32 %v5400_v14  ;;  %v5403_v58 = vmul.f32 -1.442695, %v8727_v27  ;;  %v8737_v45 = vadd.f32 %v8588_v6, %v2571_v32  ;;  %4135 = vrot.lane.b32.xlu1 %v6191_v1, %s6663_s18  ;;  %v6004_v21 = vpack.i.bf16 %v5449_v50, %v5448_v57  ;;  %v8744_v13 = vpop.xlane.xlu0 %3515 }
 0x35e   : > { %v6203_v0 = vpop.eup %6202  ;;  %6228 = vrcp.f32 %v2984_v35  ;;  %v2987_v24 = vadd.f32 1.0, %v6201_v26  ;;  %v5836_v8 = vpop.f32.mrf.mxu1  ;;  %11744 = vst [vmem:[#allocation98_spill] sm:$0xff] %v8744_v13  ;;  %v5999_v57 = vpack.i.bf16 %v5447_v39, %v5446_v52  ;;  %vm3171_vm10 = vcmp.gt.f32.partialorder %v8730_v33, 0.3 }
 0x35f   : > { %11742 = vst [vmem:[#allocation12_spill] sm:$0xff] %v8737_v45  ;;  %v6205_v14 = vpop.eup %6204  ;;  %6230 = vpow2.f32 %v5403_v58  ;;  %v5402_v27 = vmul.f32 -1.442695, %v8737_v45  ;;  %v8748_v32 = vadd.f32 %v5836_v8, %v8588_v6  ;;  %6005 = vrot.lane.b32.xlu0 %v6004_v21, %s6665_s19  ;;  %vm3170_vm8 = vcmp.gt.f32.partialorder %v6203_v0, 0.3  ;;  %v8762_v21 = vpop.xlane.xlu1 %3518 }
 0x360   : > { %v6207_v1 = vpop.eup %6206  ;;  %6232 = vrcp.f32 %v2987_v24  ;;  %v2986_v35 = vadd.f32 1.0, %v6205_v14  ;;  %v2581_v26 = vpop.f32.mrf.mxu1  ;;  %11748 = vst [vmem:[#allocation102_spill] sm:$0xff] %v8762_v21 }
 0x361   : > { %11745 = vst [vmem:[#allocation99_spill] sm:$0xff] %v8748_v32  ;;  %v6209_v50 = vpop.eup %6208  ;;  %6234 = vpow2.f32 %v5402_v27  ;;  %v5405_v54 = vmul.f32 -1.442695, %v8748_v32  ;;  %v8753_v13 = vadd.f32 %v8588_v6, %v2581_v26  ;;  %6000 = vrot.lane.b32.xlu1 %v5999_v57, %s6665_s19  ;;  %vm3173_vm9 = vcmp.gt.f32.partialorder %v6207_v1, 0.3 }
 0x362   : > { %v6211_v58 = vpop.eup %6210  ;;  %6236 = vrcp.f32 %v2986_v35  ;;  %v2989_v8 = vadd.f32 1.0, %v6209_v50  ;;  %v5839_v45 = vpop.f32.mrf.mxu1  ;;  %v5450_v26 = vsel %vm3170_vm8, 1.0, %v11740_v22 }
 0x363   : > { %11746 = vst [vmem:[#allocation100_spill] sm:$0xff] %v8753_v13  ;;  %v6213_v39 = vpop.eup %6212  ;;  %6238 = vpow2.f32 %v5405_v54  ;;  %v5404_v52 = vmul.f32 -1.442695, %v8753_v13  ;;  %v8759_v27 = vadd.f32 %v5839_v45, %v8588_v6  ;;  %4137 = vrot.lane.b32.xlu0 %v6203_v0, %s6663_s18  ;;  %vm3172_vm11 = vcmp.gt.f32.partialorder %v6211_v58, 0.3  ;;  %v8767_v50 = vpop.xlane.xlu0 %3521 }
 0x364   : > { %v6215_v24 = vpop.eup %6214  ;;  %6240 = vrcp.f32 %v2989_v8  ;;  %v2988_v14 = vadd.f32 1.0, %v6213_v39  ;;  %v2591_v57 = vpop.f32.mrf.mxu1  ;;  %v5452_v35 = vsel %vm3172_vm11, 1.0, %v11740_v22  ;;  %11749 = vst [vmem:[#allocation103_spill] sm:$0xff] %v8767_v50  ;;  %v5453_v0 = vsel %vm3173_vm9, 1.0, %v11740_v22 }
 0x365   : > { %11747 = vst [vmem:[#allocation101_spill] sm:$0xff] %v8759_v27  ;;  %v8769_v54 = vpop.eup %6216  ;;  %v2991_v45 = vadd.f32 1.0, %v6215_v24  ;;  %6242 = vpow2.f32 %v5404_v52  ;;  %v5407_v32 = vmul.f32 -1.442695, %v8759_v27  ;;  %v8773_v13 = vadd.f32 %v8588_v6, %v2591_v57  ;;  %4139 = vrot.lane.b32.xlu1 %v8730_v33, %s6663_s18 }
 0x366   : > { %v6219_v8 = vpop.eup %6218  ;;  %6244 = vrcp.f32 %v2988_v14  ;;  %v5842_v39 = vpop.f32.mrf.mxu1  ;;  %v5451_v50 = vsel %vm3171_vm10, 1.0, %v11740_v22  ;;  %vm3175_vm12 = vcmp.gt.f32.partialorder %v8769_v54, 0.3  ;;  %v6014_v40 = vpack.i.bf16 %v5453_v0, %v5452_v35 }
 0x367   : > { %11750 = vst [vmem:[#allocation104_spill] sm:$0xff] %v8773_v13  ;;  %v6221_v52 = vpop.eup %6220  ;;  %6246 = vrcp.f32 %v2991_v45  ;;  %v2990_v24 = vadd.f32 1.0, %v6219_v8  ;;  %v5406_v57 = vmul.f32 -1.442695, %v8773_v13  ;;  %v8785_v27 = vadd.f32 %v5842_v39, %v8588_v6  ;;  %4141 = vrot.lane.b32.xlu0 %v6211_v58, %s6663_s18  ;;  %v8795_v39 = vpop.xlane.xlu1 %3524 }
 0x368   : > { %v6223_v14 = vpop.eup %6222  ;;  %6248 = vpow2.f32 %v5407_v32  ;;  %v2601_v2 = vpop.f32.mrf.mxu1  ;;  %v6009_v21 = vpack.i.bf16 %v5451_v50, %v5450_v26  ;;  %vm3174_vm13 = vcmp.gt.f32.partialorder %v6221_v52, 0.3  ;;  %11753 = vst [vmem:[#allocation107_spill] sm:$0xff] %v8795_v39  ;;  %v8806_v26 = vsel %vm3175_vm12, 1.0, %v11740_v22 }
 0x369   : > { %11751 = vst [vmem:[#allocation105_spill] sm:$0xff] %v8785_v27  ;;  %v8788_v33 = vpop.eup %6224  ;;  %6250 = vrcp.f32 %v2990_v24  ;;  %v2993_v53 = vadd.f32 1.0, %v6223_v14  ;;  %v5409_v45 = vmul.f32 -1.442695, %v8785_v27  ;;  %v8792_v8 = vadd.f32 %v8588_v6, %v2601_v2  ;;  %4143 = vrot.lane.b32.xlu1 %v6207_v1, %s6663_s18  ;;  %v8797_v13 = vpop.xlane.xlu0 %3527 }
 0x36a   : > { %v6227_v58 = vpop.eup %6226  ;;  %6252 = vpow2.f32 %v5406_v57  ;;  %v5845_v32 = vpop.f32.mrf.mxu1  ;;  %11754 = vst [vmem:[#allocation108_spill] sm:$0xff] %v8797_v13  ;;  %vm3177_vm14 = vcmp.gt.f32.partialorder %v8788_v33, 0.3  ;;  %v8801_v35 = vsel %vm3174_vm13, 1.0, %v11740_v22 }
 0x36b   : > { %11752 = vst [vmem:[#allocation106_spill] sm:$0xff] %v8792_v8  ;;  %v6229_v2 = vpop.eup %6228  ;;  %6254 = vrcp.f32 %v2993_v53  ;;  %v2992_v1 = vadd.f32 1.0, %v6227_v58  ;;  %v5408_v50 = vmul.f32 -1.442695, %v8792_v8  ;;  %v8810_v0 = vadd.f32 %v5845_v32, %v8588_v6  ;;  %6015 = vrot.lane.b32.xlu0 %v6014_v40, %s6665_s19 }
 0x36c   : > { %v6231_v24 = vpop.eup %6230  ;;  %6256 = vpow2.f32 %v5409_v45  ;;  %v2611_v57 = vpop.f32.mrf.mxu1  ;;  %vm3176_vm15 = vcmp.gt.f32.partialorder %v6229_v2, 0.3  ;;  %v8828_v14 = vsel %vm3177_vm14, 1.0, %v11740_v22 }
 0x36d   : > { %11755 = vst [vmem:[#allocation109_spill] sm:$0xff] %v8810_v0  ;;  %v8815_v27 = vpop.eup %6232  ;;  %6258 = vrcp.f32 %v2992_v1  ;;  %v2995_v13 = vadd.f32 1.0, %v6231_v24  ;;  %v5411_v53 = vmul.f32 -1.442695, %v8810_v0  ;;  %v8819_v58 = vadd.f32 %v8588_v6, %v2611_v57  ;;  %6010 = vrot.lane.b32.xlu1 %v6009_v21, %s6665_s19  ;;  %v8838_v39 = vpop.xlane.xlu0 %3533 }
 0x36e   : > { %v6235_v32 = vpop.eup %6234  ;;  %6260 = vpow2.f32 %v5408_v50  ;;  %v5848_v40 = vpop.f32.mrf.mxu1  ;;  %v8823_v45 = vsel %vm3176_vm15, 1.0, %v11740_v22  ;;  %vm3179_vm0 = vcmp.gt.f32.partialorder %v8815_v27, 0.3  ;;  %11759 = vst [vmem:[#allocation113_spill] sm:$0xff] %v8838_v39 }
 0x36f   : > { %11756 = vst [vmem:[#allocation110_spill] sm:$0xff] %v8819_v58  ;;  %v6237_v1 = vpop.eup %6236  ;;  %6262 = vrcp.f32 %v2995_v13  ;;  %v2994_v24 = vadd.f32 1.0, %v6235_v32  ;;  %v5410_v57 = vmul.f32 -1.442695, %v8819_v58  ;;  %v8833_v21 = vadd.f32 %v5848_v40, %v8588_v6  ;;  %4145 = vrot.lane.b32.xlu0 %v6221_v52, %s6663_s18  ;;  %v8836_v50 = vpop.xlane.xlu1 %3530 }
 0x370   : > { %11758 = vst [vmem:[#allocation112_spill] sm:$0xff] %v8836_v50  ;;  %v6239_v0 = vpop.eup %6238  ;;  %6264 = vpow2.f32 %v5411_v53  ;;  %v2621_v8 = vpop.f32.mrf.mxu1  ;;  %vm3178_vm1 = vcmp.gt.f32.partialorder %v6237_v1, 0.3 }
 0x371   : > { %11757 = vst [vmem:[#allocation111_spill] sm:$0xff] %v8833_v21  ;;  %v8842_v13 = vpop.eup %6240  ;;  %6266 = vrcp.f32 %v2994_v24  ;;  %v2997_v32 = vadd.f32 1.0, %v6239_v0  ;;  %v5413_v40 = vmul.f32 -1.442695, %v8833_v21  ;;  %v8846_v58 = vadd.f32 %v8588_v6, %v2621_v8  ;;  %4147 = vrot.lane.b32.xlu1 %v8769_v54, %s6663_s18  ;;  %v8882_v31 = vpop.xlane.xlu0 %3539 }
 0x372   : > { %v6243_v52 = vpop.eup %6242  ;;  %6268 = vpow2.f32 %v5410_v57  ;;  %v5851_v53 = vpop.f32.mrf.mxu1  ;;  %vm3181_vm2 = vcmp.gt.f32.partialorder %v8842_v13, 0.3  ;;  %v8852_v37 = vsel %vm3178_vm1, 1.0, %v11740_v22  ;;  %v8857_v0 = vsel %vm3179_vm0, 1.0, %v11740_v22  ;;  %11764 = vst [vmem:[#allocation118_spill] sm:$0xff] %v8882_v31 }
 0x373   : > { %11760 = vst [vmem:[#allocation114_spill] sm:$0xff] %v8846_v58  ;;  %v6245_v24 = vpop.eup %6244  ;;  %6270 = vrcp.f32 %v2997_v32  ;;  %v2996_v8 = vadd.f32 1.0, %v6243_v52  ;;  %v5412_v21 = vmul.f32 -1.442695, %v8846_v58  ;;  %v8861_v54 = vadd.f32 %v5851_v53, %v8588_v6  ;;  %4149 = vrot.lane.b32.xlu0 %v6229_v2, %s6663_s18  ;;  %v8877_v2 = vpop.xlane.xlu1 %3536 }
 0x374   : > { %v8864_v57 = vpop.eup %6246  ;;  %6272 = vpow2.f32 %v5413_v40  ;;  %v2631_v39 = vpop.f32.mrf.mxu1  ;;  %vm3180_vm3 = vcmp.gt.f32.partialorder %v6245_v24, 0.3  ;;  %v8867_v50 = vsel %vm3181_vm2, 1.0, %v11740_v22  ;;  %11763 = vst [vmem:[#allocation117_spill] sm:$0xff] %v8877_v2 }
 0x375   : > { %11761 = vst [vmem:[#allocation115_spill] sm:$0xff] %v8861_v54  ;;  %v6249_v32 = vpop.eup %6248  ;;  %6274 = vrcp.f32 %v2996_v8  ;;  %v5415_v52 = vmul.f32 -1.442695, %v8861_v54  ;;  %v8873_v53 = vadd.f32 %v8588_v6, %v2631_v39  ;;  %4151 = vrot.lane.b32.xlu1 %v8788_v33, %s6663_s18  ;;  %v8880_v40 = vsel %vm3180_vm3, 1.0, %v11740_v22  ;;  %v8918_v10 = vpop.xlane.xlu0 %3545 }
 0x376   : > { %v6251_v58 = vpop.eup %6250  ;;  %v2999_v18 = vadd.f32 1.0, %v6249_v32  ;;  %6276 = vpow2.f32 %v5412_v21  ;;  %v5854_v38 = vpop.f32.mrf.mxu1  ;;  %vm3183_vm4 = vcmp.gt.f32.partialorder %v8864_v57, 0.3  ;;  %11769 = vst [vmem:[#allocation123_spill] sm:$0xff] %v8918_v10 }
 0x377   : > { %11762 = vst [vmem:[#allocation116_spill] sm:$0xff] %v8873_v53  ;;  %v6253_v39 = vpop.eup %6252  ;;  %6278 = vpow2.f32 %v5415_v52  ;;  %v5414_v33 = vmul.f32 -1.442695, %v8873_v53  ;;  %v8889_v54 = vadd.f32 %v5854_v38, %v8588_v6  ;;  %4153 = vrot.lane.b32.xlu0 %v6237_v1, %s6663_s18  ;;  %vm3182_vm5 = vcmp.gt.f32.partialorder %v6251_v58, 0.3 }
 0x378   : > { %v8892_v32 = vpop.eup %6254  ;;  %6280 = vrcp.f32 %v2999_v18  ;;  %v2998_v21 = vadd.f32 1.0, %v6253_v39  ;;  %v2641_v31 = vpop.f32.mrf.mxu1  ;;  %v8895_v2 = vsel %vm3182_vm5, 1.0, %v11740_v22  ;;  %v8898_v8 = vsel %vm3183_vm4, 1.0, %v11740_v22 }
 0x379   : > { %11765 = vst [vmem:[#allocation119_spill] sm:$0xff] %v8889_v54  ;;  %v6257_v52 = vpop.eup %6256  ;;  %6282 = vpow2.f32 %v5414_v33  ;;  %v5417_v53 = vmul.f32 -1.442695, %v8889_v54  ;;  %v8902_v38 = vadd.f32 %v8588_v6, %v2641_v31  ;;  %4155 = vrot.lane.b32.xlu1 %v8815_v27, %s6663_s18  ;;  %vm3185_vm6 = vcmp.gt.f32.partialorder %v8892_v32, 0.3  ;;  %v8914_v31 = vpop.xlane.xlu1 %3542 }
 0x37a   : > { %v6259_v18 = vpop.eup %6258  ;;  %6284 = vrcp.f32 %v2998_v21  ;;  %v3001_v1 = vadd.f32 1.0, %v6257_v52  ;;  %v5857_v39 = vpop.f32.mrf.mxu1  ;;  %11768 = vst [vmem:[#allocation122_spill] sm:$0xff] %v8914_v31 }
 0x37b   : > { %11766 = vst [vmem:[#allocation120_spill] sm:$0xff] %v8902_v38  ;;  %v6261_v47 = vpop.eup %6260  ;;  %6286 = vpow2.f32 %v5417_v53  ;;  %v5416_v33 = vmul.f32 -1.442695, %v8902_v38  ;;  %v8911_v54 = vadd.f32 %v5857_v39, %v8588_v6  ;;  %4157 = vrot.lane.b32.xlu0 %v6245_v24, %s6663_s18  ;;  %vm3184_vm7 = vcmp.gt.f32.partialorder %v6259_v18, 0.3  ;;  %v8959_v51 = vpop.xlane.xlu0 %3551 }
 0x37c   : > { %v8916_v27 = vpop.eup %6262  ;;  %6288 = vrcp.f32 %v3001_v1  ;;  %v3000_v21 = vadd.f32 1.0, %v6261_v47  ;;  %v2651_v52 = vpop.f32.mrf.mxu1  ;;  %v8921_v44 = vsel %vm3184_vm7, 1.0, %v11740_v22  ;;  %v8926_v53 = vsel %vm3185_vm6, 1.0, %v11740_v22  ;;  %11776 = vst [vmem:[#allocation130_spill] sm:$0xff] %v8959_v51 }
 0x37d   : > { %11767 = vst [vmem:[#allocation121_spill] sm:$0xff] %v8911_v54  ;;  %v6265_v39 = vpop.eup %6264  ;;  %6290 = vpow2.f32 %v5416_v33  ;;  %v5419_v24 = vmul.f32 -1.442695, %v8911_v54  ;;  %v8930_v38 = vadd.f32 %v8588_v6, %v2651_v52  ;;  %4159 = vrot.lane.b32.xlu1 %v8842_v13, %s6663_s18  ;;  %vm3187_vm8 = vcmp.gt.f32.partialorder %v8916_v27, 0.3 }
 0x37e   : > { %v6267_v1 = vpop.eup %6266  ;;  %6292 = vrcp.f32 %v3000_v21  ;;  %v3003_v10 = vadd.f32 1.0, %v6265_v39  ;;  %v5860_v31 = vpop.f32.mrf.mxu1  ;;  %v8948_v39 = vsel %vm3187_vm8, 1.0, %v11740_v22 }
 0x37f   : > { %11770 = vst [vmem:[#allocation124_spill] sm:$0xff] %v8930_v38  ;;  %v6269_v62 = vpop.eup %6268  ;;  %6294 = vpow2.f32 %v5419_v24  ;;  %v5418_v33 = vmul.f32 -1.442695, %v8930_v38  ;;  %v8939_v54 = vadd.f32 %v5860_v31, %v8588_v6  ;;  %4161 = vrot.lane.b32.xlu0 %v6251_v58, %s6663_s18  ;;  %vm3186_vm9 = vcmp.gt.f32.partialorder %v6267_v1, 0.3  ;;  %11773 = vst [vmem:[#allocation127_spill] sm:$0xff] %v8948_v39  ;;  %v8956_v58 = vpop.xlane.xlu1 %3548 }
 0x380   : > { %v8942_v13 = vpop.eup %6270  ;;  %6296 = vrcp.f32 %v3003_v10  ;;  %v3002_v52 = vadd.f32 1.0, %v6269_v62  ;;  %v2661_v47 = vpop.f32.mrf.mxu1  ;;  %v8945_v21 = vsel %vm3186_vm9, 1.0, %v11740_v22  ;;  %11775 = vst [vmem:[#allocation129_spill] sm:$0xff] %v8956_v58 }
 0x381   : > { %11771 = vst [vmem:[#allocation125_spill] sm:$0xff] %v8939_v54  ;;  %11772 = vst [vmem:[#allocation126_spill] sm:$0xff] %v8945_v21  ;;  %v6273_v24 = vpop.eup %6272  ;;  %6298 = vpow2.f32 %v5418_v33  ;;  %v5421_v38 = vmul.f32 -1.442695, %v8939_v54  ;;  %v8952_v31 = vadd.f32 %v8588_v6, %v2661_v47  ;;  %4163 = vrot.lane.b32.xlu1 %v8864_v57, %s6663_s18  ;;  %vm3189_vm10 = vcmp.gt.f32.partialorder %v8942_v13, 0.3  ;;  %v8994_v20 = vpop.xlane.xlu0 %3557 }
 0x382   : > { %v6275_v62 = vpop.eup %6274  ;;  %6300 = vrcp.f32 %v3002_v52  ;;  %v3005_v10 = vadd.f32 1.0, %v6273_v24  ;;  %v5863_v11 = vpop.f32.mrf.mxu1  ;;  %v8974_v33 = vsel %vm3189_vm10, 1.0, %v11740_v22  ;;  %11781 = vst [vmem:[#allocation135_spill] sm:$0xff] %v8994_v20 }
 0x383   : > { %11774 = vst [vmem:[#allocation128_spill] sm:$0xff] %v8952_v31  ;;  %v6277_v54 = vpop.eup %6276  ;;  %6302 = vpow2.f32 %v5421_v38  ;;  %v5420_v47 = vmul.f32 -1.442695, %v8952_v31  ;;  %v8965_v63 = vadd.f32 %v5863_v11, %v8588_v6  ;;  %4165 = vrot.lane.b32.xlu0 %v6259_v18, %s6663_s18  ;;  %vm3188_vm11 = vcmp.gt.f32.partialorder %v6275_v62, 0.3 }
 0x384   : > { %v6279_v57 = vpop.eup %6278  ;;  %6304 = vrcp.f32 %v3005_v10  ;;  %v3004_v52 = vadd.f32 1.0, %v6277_v54  ;;  %v2671_v24 = vpop.f32.mrf.mxu1  ;;  %v8969_v58 = vsel %vm3188_vm11, 1.0, %v11740_v22 }
 0x385   : > { %11777 = vst [vmem:[#allocation131_spill] sm:$0xff] %v8965_v63  ;;  %v8976_v38 = vpop.eup %6280  ;;  %v3007_v31 = vadd.f32 1.0, %v6279_v57  ;;  %6306 = vpow2.f32 %v5420_v47  ;;  %v5423_v11 = vmul.f32 -1.442695, %v8965_v63  ;;  %v8980_v18 = vadd.f32 %v8588_v6, %v2671_v24  ;;  %4167 = vrot.lane.b32.xlu1 %v8892_v32, %s6663_s18  ;;  %v8992_v24 = vpop.xlane.xlu1 %3554 }
 0x386   : > { %v6283_v54 = vpop.eup %6282  ;;  %6308 = vrcp.f32 %v3004_v52  ;;  %v5866_v10 = vpop.f32.mrf.mxu1  ;;  %vm3191_vm12 = vcmp.gt.f32.partialorder %v8976_v38, 0.3  ;;  %11780 = vst [vmem:[#allocation134_spill] sm:$0xff] %v8992_v24 }
 0x387   : > { %11778 = vst [vmem:[#allocation132_spill] sm:$0xff] %v8980_v18  ;;  %v6285_v4 = vpop.eup %6284  ;;  %6310 = vrcp.f32 %v3007_v31  ;;  %v3006_v57 = vadd.f32 1.0, %v6283_v54  ;;  %v5422_v47 = vmul.f32 -1.442695, %v8980_v18  ;;  %v8989_v63 = vadd.f32 %v5866_v10, %v8588_v6  ;;  %4169 = vrot.lane.b32.xlu0 %v6267_v1, %s6663_s18 }
 0x388   : > { %v6287_v32 = vpop.eup %6286  ;;  %6312 = vpow2.f32 %v5423_v11  ;;  %v2681_v52 = vpop.f32.mrf.mxu1  ;;  %vm3190_vm13 = vcmp.gt.f32.partialorder %v6285_v4, 0.3 }
 0x389   : > { %11779 = vst [vmem:[#allocation133_spill] sm:$0xff] %v8989_v63  ;;  %v8996_v51 = vpop.eup %6288  ;;  %6314 = vrcp.f32 %v3006_v57  ;;  %v3009_v31 = vadd.f32 1.0, %v6287_v32  ;;  %v5425_v54 = vmul.f32 -1.442695, %v8989_v63  ;;  %v9000_v18 = vadd.f32 %v8588_v6, %v2681_v52  ;;  %4171 = vrot.lane.b32.xlu1 %v8916_v27, %s6663_s18 }
 0x38a   : > { %v6291_v1 = vpop.eup %6290  ;;  %6316 = vpow2.f32 %v5422_v47  ;;  %v5869_v10 = vpop.f32.mrf.mxu1  ;;  %vm3193_vm14 = vcmp.gt.f32.partialorder %v8996_v51, 0.3  ;;  %v9006_v11 = vsel %vm3190_vm13, 1.0, %v11740_v22  ;;  %v9011_v57 = vsel %vm3191_vm12, 1.0, %v11740_v22 }
 0x38b   : > { %11782 = vst [vmem:[#allocation136_spill] sm:$0xff] %v9000_v18  ;;  %11783 = vst [vmem:[#allocation137_spill] sm:$0xff] %v9006_v11  ;;  %v6293_v32 = vpop.eup %6292  ;;  %6318 = vrcp.f32 %v3009_v31  ;;  %v3008_v52 = vadd.f32 1.0, %v6291_v1  ;;  %v5424_v63 = vmul.f32 -1.442695, %v9000_v18  ;;  %v9015_v27 = vadd.f32 %v5869_v10, %v8588_v6  ;;  %4173 = vrot.lane.b32.xlu0 %v6275_v62, %s6663_s18  ;;  %v9028_v62 = vpop.xlane.xlu1 %3560 }
 0x38c   : > { %11784 = vst [vmem:[#allocation138_spill] sm:$0xff] %v9011_v57  ;;  %v6295_v47 = vpop.eup %6294  ;;  %6320 = vpow2.f32 %v5425_v54  ;;  %v2691_v20 = vpop.f32.mrf.mxu1  ;;  %vm3192_vm15 = vcmp.gt.f32.partialorder %v6293_v32, 0.3  ;;  %11787 = vst [vmem:[#allocation141_spill] sm:$0xff] %v9028_v62 }
 0x38d   : > { %11785 = vst [vmem:[#allocation139_spill] sm:$0xff] %v9015_v27  ;;  %v9020_v21 = vpop.eup %6296  ;;  %6322 = vrcp.f32 %v3008_v52  ;;  %v3011_v39 = vadd.f32 1.0, %v6295_v47  ;;  %v5427_v31 = vmul.f32 -1.442695, %v9015_v27  ;;  %v9024_v1 = vadd.f32 %v8588_v6, %v2691_v20  ;;  %4175 = vrot.lane.b32.xlu1 %v8942_v13, %s6663_s18  ;;  %v9030_v18 = vpop.xlane.xlu0 %3563 }
 0x38e   : > { %v6299_v54 = vpop.eup %6298  ;;  %6324 = vpow2.f32 %v5424_v63  ;;  %v5872_v10 = vpop.f32.mrf.mxu1  ;;  %11788 = vst [vmem:[#allocation142_spill] sm:$0xff] %v9030_v18  ;;  %v9033_v24 = vsel %vm3192_vm15, 1.0, %v11740_v22  ;;  %v9038_v52 = vsel %vm3193_vm14, 1.0, %v11740_v22  ;;  %vm3195_vm0 = vcmp.gt.f32.partialorder %v9020_v21, 0.3 }
 0x38f   : > { %11786 = vst [vmem:[#allocation140_spill] sm:$0xff] %v9024_v1  ;;  %11789 = vst [vmem:[#allocation143_spill] sm:$0xff] %v9033_v24  ;;  %v6301_v20 = vpop.eup %6300  ;;  %6326 = vrcp.f32 %v3011_v39  ;;  %v3010_v13 = vadd.f32 1.0, %v6299_v54  ;;  %v5426_v47 = vmul.f32 -1.442695, %v9024_v1  ;;  %v9043_v63 = vadd.f32 %v5872_v10, %v8588_v6  ;;  %4177 = vrot.lane.b32.xlu0 %v6285_v4, %s6663_s18  ;;  %v9075_v62 = vpop.xlane.xlu1 %3566 }
 0x390   : > { %11790 = vst [vmem:[#allocation144_spill] sm:$0xff] %v9038_v52  ;;  %v6303_v27 = vpop.eup %6302  ;;  %6328 = vpow2.f32 %v5427_v31  ;;  %v2701_v18 = vpop.f32.mrf.mxu1  ;;  %vm3194_vm1 = vcmp.gt.f32.partialorder %v6301_v20, 0.3  ;;  %11796 = vst [vmem:[#allocation150_spill] sm:$0xff] %v9075_v62 }
 0x391   : > { %11791 = vst [vmem:[#allocation145_spill] sm:$0xff] %v9043_v63  ;;  %v9048_v11 = vpop.eup %6304  ;;  %6330 = vrcp.f32 %v3010_v13  ;;  %v3013_v57 = vadd.f32 1.0, %v6303_v27  ;;  %v5429_v39 = vmul.f32 -1.442695, %v9043_v63  ;;  %v9052_v54 = vadd.f32 %v8588_v6, %v2701_v18  ;;  %4179 = vrot.lane.b32.xlu1 %v8976_v38, %s6663_s18  ;;  %v9069_v38 = vld [vmem:[%s11147_s6] ss:$0 sm:$0xff] }
 0x392   : > { %v6307_v4 = vpop.eup %6306  ;;  %6332 = vpow2.f32 %v5426_v47  ;;  %v5875_v31 = vpop.f32.mrf.mxu1  ;;  %vm3197_vm2 = vcmp.gt.f32.partialorder %v9048_v11, 0.3  ;;  %v9058_v10 = vsel %vm3194_vm1, 1.0, %v11740_v22  ;;  %v9063_v27 = vsel %vm3195_vm0, 1.0, %v11740_v22 }
 0x393   : > { %11792 = vst [vmem:[#allocation146_spill] sm:$0xff] %v9052_v54  ;;  %11793 = vst [vmem:[#allocation147_spill] sm:$0xff] %v9058_v10  ;;  %v6309_v13 = vpop.eup %6308  ;;  %6334 = vrcp.f32 %v3013_v57  ;;  %v3012_v6 = vadd.f32 1.0, %v6307_v4  ;;  %v5428_v18 = vmul.f32 -1.442695, %v9052_v54  ;;  %v9072_v47 = vadd.f32 %v9069_v38, %v5875_v31  ;;  %4181 = vrot.lane.b32.xlu0 %v6293_v32, %s6663_s18  ;;  %v9079_v57 = vpop.xlane.xlu0 %3569 }
 0x394   : > { %11794 = vst [vmem:[#allocation148_spill] sm:$0xff] %v9063_v27  ;;  %v9077_v1 = vpop.eup %6310  ;;  %6336 = vpow2.f32 %v5429_v39  ;;  %v2711_v63 = vpop.f32.mrf.mxu1  ;;  %11797 = vst [vmem:[#allocation151_spill] sm:$0xff] %v9079_v57  ;;  %vm3196_vm3 = vcmp.gt.f32.partialorder %v6309_v13, 0.3  ;;  %v9084_v4 = vsel %vm3197_vm2, 1.0, %v11740_v22 }
 0x395   : > { %11795 = vst [vmem:[#allocation149_spill] sm:$0xff] %v9072_v47  ;;  %11798 = vst [vmem:[#allocation152_spill] sm:$0xff] %v9084_v4  ;;  %v6313_v54 = vpop.eup %6312  ;;  %6338 = vrcp.f32 %v3012_v6  ;;  %v5431_v32 = vmul.f32 -1.442695, %v9072_v47  ;;  %v9090_v62 = vadd.f32 %v9069_v38, %v2711_v63  ;;  %4183 = vrot.lane.b32.xlu1 %v8996_v51, %s6663_s18  ;;  %v9095_v39 = vsel %vm3196_vm3, 1.0, %v11740_v22 }
 0x396   : > { %11800 = vst [vmem:[#allocation154_spill] sm:$0xff] %v9095_v39  ;;  %v6315_v57 = vpop.eup %6314  ;;  %v3015_v24 = vadd.f32 1.0, %v6313_v54  ;;  %6340 = vpow2.f32 %v5428_v18  ;;  %v5878_v52 = vpop.f32.mrf.mxu1  ;;  %vm3199_vm4 = vcmp.gt.f32.partialorder %v9077_v1, 0.3 }
 0x397   : > { %11799 = vst [vmem:[#allocation153_spill] sm:$0xff] %v9090_v62  ;;  %v6317_v6 = vpop.eup %6316  ;;  %6342 = vpow2.f32 %v5431_v32  ;;  %v5430_v63 = vmul.f32 -1.442695, %v9090_v62  ;;  %v9102_v47 = vadd.f32 %v9069_v38, %v5878_v52  ;;  %4185 = vrot.lane.b32.xlu0 %v6301_v20, %s6663_s18  ;;  %vm3198_vm5 = vcmp.gt.f32.partialorder %v6315_v57, 0.3  ;;  %v9119_v20 = vpop.xlane.xlu1 %3572 }
 0x398   : > { %v9105_v51 = vpop.eup %6318  ;;  %6344 = vrcp.f32 %v3015_v24  ;;  %v3014_v54 = vadd.f32 1.0, %v6317_v6  ;;  %v2721_v18 = vpop.f32.mrf.mxu1  ;;  %v9108_v10 = vsel %vm3198_vm5, 1.0, %v11740_v22  ;;  %v9111_v31 = vsel %vm3199_vm4, 1.0, %v11740_v22  ;;  %11805 = vst [vmem:[#allocation159_spill] sm:$0xff] %v9119_v20 }
 0x399   : > { %11801 = vst [vmem:[#allocation155_spill] sm:$0xff] %v9102_v47  ;;  %11802 = vst [vmem:[#allocation156_spill] sm:$0xff] %v9108_v10  ;;  %v6321_v32 = vpop.eup %6320  ;;  %6346 = vpow2.f32 %v5430_v63  ;;  %v5433_v62 = vmul.f32 -1.442695, %v9102_v47  ;;  %v9115_v52 = vadd.f32 %v9069_v38, %v2721_v18  ;;  %4187 = vrot.lane.b32.xlu1 %v9020_v21, %s6663_s18  ;;  %vm3201_vm6 = vcmp.gt.f32.partialorder %v9105_v51, 0.3  ;;  %v9122_v39 = vpop.xlane.xlu0 %3575 }
 0x39a   : > { %11803 = vst [vmem:[#allocation157_spill] sm:$0xff] %v9111_v31  ;;  %v6323_v24 = vpop.eup %6322  ;;  %6348 = vrcp.f32 %v3014_v54  ;;  %v3017_v6 = vadd.f32 1.0, %v6321_v32  ;;  %v5881_v27 = vpop.f32.mrf.mxu1  ;;  %11806 = vst [vmem:[#allocation160_spill] sm:$0xff] %v9122_v39 }
 0x39b   : > { %11804 = vst [vmem:[#allocation158_spill] sm:$0xff] %v9115_v52  ;;  %v6325_v47 = vpop.eup %6324  ;;  %6350 = vpow2.f32 %v5433_v62  ;;  %v5432_v18 = vmul.f32 -1.442695, %v9115_v52  ;;  %v9128_v4 = vadd.f32 %v9069_v38, %v5881_v27  ;;  %4189 = vrot.lane.b32.xlu0 %v6309_v13, %s6663_s18  ;;  %vm3200_vm7 = vcmp.gt.f32.partialorder %v6323_v24, 0.3 }
 0x39c   : > { %v9131_v21 = vpop.eup %6326  ;;  %6352 = vrcp.f32 %v3017_v6  ;;  %v3016_v54 = vadd.f32 1.0, %v6325_v47  ;;  %v2731_v32 = vpop.f32.mrf.mxu1  ;;  %v9134_v39 = vsel %vm3200_vm7, 1.0, %v11740_v22  ;;  %v9139_v62 = vsel %vm3201_vm6, 1.0, %v11740_v22 }
 0x39d   : > { %11807 = vst [vmem:[#allocation161_spill] sm:$0xff] %v9128_v4  ;;  %11808 = vst [vmem:[#allocation162_spill] sm:$0xff] %v9134_v39  ;;  %v6329_v63 = vpop.eup %6328  ;;  %6354 = vpow2.f32 %v5432_v18  ;;  %v5435_v27 = vmul.f32 -1.442695, %v9128_v4  ;;  %v9143_v13 = vadd.f32 %v9069_v38, %v2731_v32  ;;  %4191 = vrot.lane.b32.xlu1 %v9048_v11, %s6663_s18  ;;  %vm3203_vm8 = vcmp.gt.f32.partialorder %v9131_v21, 0.3  ;;  %v9155_v32 = vpop.xlane.xlu1 %3578 }
 0x39e   : > { %11809 = vst [vmem:[#allocation163_spill] sm:$0xff] %v9139_v62  ;;  %v6331_v6 = vpop.eup %6330  ;;  %6356 = vrcp.f32 %v3016_v54  ;;  %v3019_v52 = vadd.f32 1.0, %v6329_v63  ;;  %v5884_v20 = vpop.f32.mrf.mxu1  ;;  %11812 = vst [vmem:[#allocation166_spill] sm:$0xff] %v9155_v32 }
 0x39f   : > { %11810 = vst [vmem:[#allocation164_spill] sm:$0xff] %v9143_v13  ;;  %v6333_v10 = vpop.eup %6332  ;;  %6358 = vpow2.f32 %v5435_v27  ;;  %v5434_v18 = vmul.f32 -1.442695, %v9143_v13  ;;  %v9152_v4 = vadd.f32 %v9069_v38, %v5884_v20  ;;  %4193 = vrot.lane.b32.xlu0 %v6315_v57, %s6663_s18  ;;  %vm3202_vm9 = vcmp.gt.f32.partialorder %v6331_v6, 0.3  ;;  %v9159_v47 = vpop.xlane.xlu0 %3581 }
 0x3a0   : > { %v9157_v11 = vpop.eup %6334  ;;  %6360 = vrcp.f32 %v3019_v52  ;;  %v3018_v54 = vadd.f32 1.0, %v6333_v10  ;;  %v2741_v63 = vpop.f32.mrf.mxu1  ;;  %11813 = vst [vmem:[#allocation167_spill] sm:$0xff] %v9159_v47  ;;  %v9162_v31 = vsel %vm3202_vm9, 1.0, %v11740_v22  ;;  %v9165_v27 = vsel %vm3203_vm8, 1.0, %v11740_v22 }
 0x3a1   : > { %11811 = vst [vmem:[#allocation165_spill] sm:$0xff] %v9152_v4  ;;  %11814 = vst [vmem:[#allocation168_spill] sm:$0xff] %v9162_v31  ;;  %v6337_v20 = vpop.eup %6336  ;;  %6362 = vpow2.f32 %v5434_v18  ;;  %v5437_v57 = vmul.f32 -1.442695, %v9152_v4  ;;  %v9169_v13 = vadd.f32 %v9069_v38, %v2741_v63  ;;  %4195 = vrot.lane.b32.xlu1 %v9077_v1, %s6663_s18  ;;  %vm3205_vm10 = vcmp.gt.f32.partialorder %v9157_v11, 0.3 }
 0x3a2   : > { %11815 = vst [vmem:[#allocation169_spill] sm:$0xff] %v9165_v27  ;;  %v6339_v10 = vpop.eup %6338  ;;  %6364 = vrcp.f32 %v3018_v54  ;;  %v3021_v52 = vadd.f32 1.0, %v6337_v20  ;;  %v5887_v47 = vpop.f32.mrf.mxu1  ;;  %v9187_v20 = vsel %vm3205_vm10, 1.0, %v11740_v22  ;;  %vm3622_vm9 = vcmp.eq.f32.partialorder %v8561_v48, inf }
 0x3a3   : > { %11816 = vst [vmem:[#allocation170_spill] sm:$0xff] %v9169_v13  ;;  %v6341_v39 = vpop.eup %6340  ;;  %6366 = vpow2.f32 %v5437_v57  ;;  %v5436_v18 = vmul.f32 -1.442695, %v9169_v13  ;;  %v9178_v4 = vadd.f32 %v9069_v38, %v5887_v47  ;;  %4197 = vrot.lane.b32.xlu0 %v6323_v24, %s6663_s18  ;;  %vm3204_vm11 = vcmp.gt.f32.partialorder %v6339_v10, 0.3  ;;  %11819 = vst [vmem:[#allocation173_spill] sm:$0xff] %v9187_v20  ;;  %v9199_v31 = vpop.xlane.xlu0 %3587 }
 0x3a4   : > { %v6343_v1 = vpop.eup %6342  ;;  %6368 = vrcp.f32 %v3021_v52  ;;  %v3020_v63 = vadd.f32 1.0, %v6341_v39  ;;  %v2751_v62 = vpop.f32.mrf.mxu1  ;;  %v9182_v54 = vsel %vm3204_vm11, 1.0, %v11740_v22  ;;  %11822 = vst [vmem:[#allocation176_spill] sm:$0xff] %v9199_v31 }
 0x3a5   : > { %11817 = vst [vmem:[#allocation171_spill] sm:$0xff] %v9178_v4  ;;  %11818 = vst [vmem:[#allocation172_spill] sm:$0xff] %v9182_v54  ;;  %v9189_v57 = vpop.eup %6344  ;;  %v3023_v32 = vadd.f32 1.0, %v6343_v1  ;;  %6370 = vpow2.f32 %v5436_v18  ;;  %v5439_v47 = vmul.f32 -1.442695, %v9178_v4  ;;  %v9193_v24 = vadd.f32 %v9069_v38, %v2751_v62  ;;  %4199 = vrot.lane.b32.xlu1 %v9105_v51, %s6663_s18  ;;  %v9197_v39 = vpop.xlane.xlu1 %3584 }
 0x3a6   : > { %11821 = vst [vmem:[#allocation175_spill] sm:$0xff] %v9197_v39  ;;  %v6347_v52 = vpop.eup %6346  ;;  %6372 = vrcp.f32 %v3020_v63  ;;  %v5890_v13 = vpop.f32.mrf.mxu1  ;;  %vm3207_vm12 = vcmp.gt.f32.partialorder %v9189_v57, 0.3 }
 0x3a7   : > { %11820 = vst [vmem:[#allocation174_spill] sm:$0xff] %v9193_v24  ;;  %v6349_v18 = vpop.eup %6348  ;;  %6374 = vrcp.f32 %v3023_v32  ;;  %v3022_v1 = vadd.f32 1.0, %v6347_v52  ;;  %v5438_v62 = vmul.f32 -1.442695, %v9193_v24  ;;  %v9206_v4 = vadd.f32 %v9069_v38, %v5890_v13  ;;  %4201 = vrot.lane.b32.xlu0 %v6331_v6, %s6663_s18  ;;  %v9233_v54 = vpop.xlane.xlu0 %3593 }
 0x3a8   : > { %v6351_v51 = vpop.eup %6350  ;;  %6376 = vpow2.f32 %v5439_v47  ;;  %v2761_v63 = vpop.f32.mrf.mxu1  ;;  %vm3206_vm13 = vcmp.gt.f32.partialorder %v6349_v18, 0.3  ;;  %v9224_v47 = vsel %vm3207_vm12, 1.0, %v11740_v22  ;;  %11829 = vst [vmem:[#allocation183_spill] sm:$0xff] %v9233_v54  ;;  %vm3624_vm12 = vcmp.eq.f32.partialorder %v8561_v48, 0.0 }
 0x3a9   : > { %11823 = vst [vmem:[#allocation177_spill] sm:$0xff] %v9206_v4  ;;  %v9209_v31 = vpop.eup %6352  ;;  %6378 = vrcp.f32 %v3022_v1  ;;  %v3025_v27 = vadd.f32 1.0, %v6351_v51  ;;  %v5441_v39 = vmul.f32 -1.442695, %v9206_v4  ;;  %v9213_v32 = vadd.f32 %v9069_v38, %v2761_v63  ;;  %4203 = vrot.lane.b32.xlu1 %v9131_v21, %s6663_s18  ;;  %11826 = vst [vmem:[#allocation180_spill] sm:$0xff] %v9224_v47 }
 0x3aa   : > { %v6355_v13 = vpop.eup %6354  ;;  %6380 = vpow2.f32 %v5438_v62  ;;  %v5893_v52 = vpop.f32.mrf.mxu1  ;;  %vm3209_vm14 = vcmp.gt.f32.partialorder %v9209_v31, 0.3  ;;  %v9219_v6 = vsel %vm3206_vm13, 1.0, %v11740_v22 }
 0x3ab   : > { %11824 = vst [vmem:[#allocation178_spill] sm:$0xff] %v9213_v32  ;;  %11825 = vst [vmem:[#allocation179_spill] sm:$0xff] %v9219_v6  ;;  %v6357_v1 = vpop.eup %6356  ;;  %6382 = vrcp.f32 %v3025_v27  ;;  %v3024_v51 = vadd.f32 1.0, %v6355_v13  ;;  %v5440_v63 = vmul.f32 -1.442695, %v9213_v32  ;;  %v9228_v21 = vadd.f32 %v9069_v38, %v5893_v52  ;;  %4205 = vrot.lane.b32.xlu0 %v6339_v10, %s6663_s18  ;;  %v9231_v62 = vpop.xlane.xlu1 %3590 }
 0x3ac   : > { %11828 = vst [vmem:[#allocation182_spill] sm:$0xff] %v9231_v62  ;;  %v6359_v24 = vpop.eup %6358  ;;  %6384 = vpow2.f32 %v5441_v39  ;;  %v2771_v4 = vpop.f32.mrf.mxu1  ;;  %vm3208_vm15 = vcmp.gt.f32.partialorder %v6357_v1, 0.3  ;;  %v9249_v20 = vsel %vm3209_vm14, 1.0, %v11740_v22  ;;  %vm3615_vm14 = vcmp.eq.f32.partialorder %v8557_v29, inf }
 0x3ad   : > { %11827 = vst [vmem:[#allocation181_spill] sm:$0xff] %v9228_v21  ;;  %v6361_v27 = vpop.eup %6360  ;;  %6386 = vrcp.f32 %v3024_v51  ;;  %v3027_v13 = vadd.f32 1.0, %v6359_v24  ;;  %v5443_v32 = vmul.f32 -1.442695, %v9228_v21  ;;  %v9239_v52 = vadd.f32 %v9069_v38, %v2771_v4  ;;  %4207 = vrot.lane.b32.xlu1 %v9157_v11, %s6663_s18  ;;  %11832 = vst [vmem:[#allocation186_spill] sm:$0xff] %v9249_v20  ;;  %v9265_v4 = vpop.xlane.xlu0 %3599 }
 0x3ae   : > { %v6363_v10 = vpop.eup %6362  ;;  %6388 = vpow2.f32 %v5440_v63  ;;  %v9244_v39 = vsel %vm3208_vm15, 1.0, %v11740_v22  ;;  %vm3211_vm0 = vcmp.gt.f32.partialorder %v6361_v27, 0.3  ;;  %11836 = vst [vmem:[#allocation190_spill] sm:$0xff] %v9265_v4  ;;  %vm3643_vm15 = vcmp.eq.f32.partialorder %v8565_v34, inf }
 0x3af   : > { %11830 = vst [vmem:[#allocation184_spill] sm:$0xff] %v9239_v52  ;;  %11831 = vst [vmem:[#allocation185_spill] sm:$0xff] %v9244_v39  ;;  %v6365_v24 = vpop.eup %6364  ;;  %6390 = vrcp.f32 %v3027_v13  ;;  %v3026_v51 = vadd.f32 1.0, %v6363_v10  ;;  %v5442_v38 = vmul.f32 -1.442695, %v9239_v52  ;;  %4209 = vrot.lane.b32.xlu0 %v6349_v18, %s6663_s18  ;;  %v9261_v13 = vsel %vm3211_vm0, 1.0, %v11740_v22  ;;  %v9263_v18 = vpop.xlane.xlu1 %3596 }
 0x3b0   : > { %v6367_v11 = vpop.eup %6366  ;;  %6392 = vpow2.f32 %v5443_v32  ;;  %vm3210_vm1 = vcmp.gt.f32.partialorder %v6365_v24, 0.3  ;;  %11834 = vst [vmem:[#allocation188_spill] sm:$0xff] %v9261_v13  ;;  %11835 = vst [vmem:[#allocation189_spill] sm:$0xff] %v9263_v18  ;;  %vm3617_vm0 = vcmp.eq.f32.partialorder %v8557_v29, 0.0 }
 0x3b1   : > { %v6369_v63 = vpop.eup %6368  ;;  %6394 = vrcp.f32 %v3026_v51  ;;  %v3029_v21 = vadd.f32 1.0, %v6367_v11  ;;  %4211 = vrot.lane.b32.xlu1 %v9189_v57, %s6663_s18  ;;  %v9258_v54 = vsel %vm3210_vm1, 1.0, %v11740_v22  ;;  %v9286_v62 = vpop.xlane.xlu0 %3605 }
 0x3b2   : > { %11833 = vst [vmem:[#allocation187_spill] sm:$0xff] %v9258_v54  ;;  %v6371_v10 = vpop.eup %6370  ;;  %6396 = vpow2.f32 %v5442_v38  ;;  %vm3213_vm2 = vcmp.gt.f32.partialorder %v6369_v63, 0.3  ;;  %11840 = vst [vmem:[#allocation194_spill] sm:$0xff] %v9286_v62 }
 0x3b3   : > { %v6373_v51 = vpop.eup %6372  ;;  %6398 = vrcp.f32 %v3029_v21  ;;  %v3028_v11 = vadd.f32 1.0, %v6371_v10  ;;  %4213 = vrot.lane.b32.xlu0 %v6357_v1, %s6663_s18  ;;  %v9277_v4 = vsel %vm3213_vm2, 1.0, %v11740_v22  ;;  %v9284_v18 = vpop.xlane.xlu1 %3602  ;;  %vm4573_vm2 = vcmask 64512  }
 0x3b4   : > { %v6375_v57 = vpop.eup %6374  ;;  %6400 = vrsqrt.f32 %v8565_v34  ;;  %vm3212_vm3 = vcmp.gt.f32.partialorder %v6373_v51, 0.3  ;;  %11838 = vst [vmem:[#allocation192_spill] sm:$0xff] %v9277_v4  ;;  %11839 = vst [vmem:[#allocation193_spill] sm:$0xff] %v9284_v18 }
 0x3b5   : > { %v6377_v52 = vpop.eup %6376  ;;  %6402 = vrcp.f32 %v3028_v11  ;;  %4215 = vrot.lane.b32.xlu1 %v9209_v31, %s6663_s18  ;;  %v9274_v38 = vsel %vm3212_vm3, 1.0, %v11740_v22  ;;  %vm3215_vm4 = vcmp.gt.f32.partialorder %v6375_v57, 0.3  ;;  %vm4638_vm3 = vcmask 72704  }
 0x3b6   : > { %11837 = vst [vmem:[#allocation191_spill] sm:$0xff] %v9274_v38  ;;  %v6379_v21 = vpop.eup %6378  ;;  %v3031_v10 = vadd.f32 1.0, %v6377_v52  ;;  %v9292_v52 = vsel %vm3215_vm4, 1.0, %v11740_v22  ;;  %v9318_v38 = vpop.xlane.xlu0 %3611  ;;  %vm4703_vm4 = vcmask 80896  }
 0x3b7   : > { %v6381_v32 = vpop.eup %6380  ;;  %4217 = vrot.lane.b32.xlu0 %v6365_v24, %s6663_s18  ;;  %vm3214_vm5 = vcmp.gt.f32.partialorder %v6379_v21, 0.3  ;;  %11842 = vst [vmem:[#allocation196_spill] sm:$0xff] %v9292_v52  ;;  %v3621_v24 = vmul.f32 %v8685_v16, %v8561_v48  ;;  %v9316_v52 = vpop.xlane.xlu1 %3608  ;;  %11846 = vst [vmem:[#allocation200_spill] sm:$0xff] %v9318_v38 }
 0x3b8   : > { %v9282_v11 = vpop.eup %6382  ;;  %6404 = vrcp.f32 %v3031_v10  ;;  %v3030_v31 = vadd.f32 1.0, %v6381_v32  ;;  %v9289_v54 = vsel %vm3214_vm5, 1.0, %v11740_v22  ;;  %11845 = vst [vmem:[#allocation199_spill] sm:$0xff] %v9316_v52  ;;  %v3625_v52 = vand.u32 2147483648, %v8561_v48 }
 0x3b9   : > { %11841 = vst [vmem:[#allocation195_spill] sm:$0xff] %v9289_v54  ;;  %v6385_v13 = vpop.eup %6384  ;;  %4219 = vrot.lane.b32.xlu1 %v6361_v27, %s6663_s18  ;;  %vm3217_vm6 = vcmp.gt.f32.partialorder %v9282_v11, 0.3 }
 0x3ba   : > { %v6387_v10 = vpop.eup %6386  ;;  %6406 = vrcp.f32 %v3030_v31  ;;  %v9307_v27 = vsel %vm3217_vm6, 1.0, %v11740_v22  ;;  %vm11436_vm6 = vcmask 89088  }
 0x3bb   : > { %v6389_v32 = vpop.eup %6388  ;;  %6408 = vrsqrt.f32 %v8559_v46  ;;  %4221 = vrot.lane.b32.xlu0 %v6373_v51, %s6663_s18  ;;  %vm3216_vm7 = vcmp.gt.f32.partialorder %v6387_v10, 0.3  ;;  %11844 = vst [vmem:[#allocation198_spill] sm:$0xff] %v9307_v27 }
 0x3bc   : > { %v9300_v1 = vpop.eup %6390  ;;  %6410 = vrsqrt.f32 %v8567_v36  ;;  %v9304_v62 = vsel %vm3216_vm7, 1.0, %v11740_v22  ;;  %v3032_v38 = vadd.f32 1.0, %v6389_v32  ;;  %v3614_v32 = vmul.f32 %v8698_v60, %v8557_v29 }
 0x3bd   : > { %11843 = vst [vmem:[#allocation197_spill] sm:$0xff] %v9304_v62  ;;  %v6393_v18 = vpop.eup %6392  ;;  %6412 = vrsqrt.f32 %v8563_v17  ;;  %4223 = vrot.lane.b32.xlu1 %v6369_v63, %s6663_s18  ;;  %vm3219_vm8 = vcmp.gt.f32.partialorder %v9300_v1, 0.3  ;;  %vm3645_vm7 = vcmp.eq.f32.partialorder %v8565_v34, 0.0 }
 0x3be   : > { %v6395_v51 = vpop.eup %6394  ;;  %v3035_v54 = vadd.f32 1.0, %v6393_v18  ;;  %6414 = vrsqrt.f32 %v8573_v41  ;;  %v9329_v16 = vsel %vm3219_vm8, 1.0, %v11740_v22  ;;  %vm3650_vm8 = vcmp.eq.f32.partialorder %v8567_v36, inf }
 0x3bf   : > { %v6397_v4 = vpop.eup %6396  ;;  %4225 = vrot.lane.b32.xlu0 %v6379_v21, %s6663_s18  ;;  %vm3218_vm10 = vcmp.gt.f32.partialorder %v6395_v51, 0.3  ;;  %11848 = vst [vmem:[#allocation202_spill] sm:$0xff] %v9329_v16 }
 0x3c0   : > { %v9323_v63 = vpop.eup %6398  ;;  %6416 = vrcp.f32 %v3035_v54  ;;  %v3034_v31 = vadd.f32 1.0, %v6397_v4  ;;  %v9326_v62 = vsel %vm3218_vm10, 1.0, %v11740_v22  ;;  %v3623_v4 = vsel %vm3622_vm9, %v8561_v48, %v3621_v24 }
 0x3c1   : > { %11847 = vst [vmem:[#allocation201_spill] sm:$0xff] %v9326_v62  ;;  %v6401_v18 = vpop.eup %6400  ;;  %4227 = vrot.lane.b32.xlu1 %v6375_v57, %s6663_s18  ;;  %vm3221_vm11 = vcmp.gt.f32.partialorder %v9323_v63, 0.3  ;;  %v3033_v57 = vadd.f32 1.0, %v6385_v13  ;;  %v4128_v62 = vpop.permute.xlu0 %4127  ;;  %v3626_v13 = vsel %vm3624_vm12, %v3625_v52, %v3623_v4  ;;  %vm3629_vm9 = vcmp.eq.f32.partialorder %v8559_v46, inf }
 0x3c2   : > { %v6403_v27 = vpop.eup %6402  ;;  %6418 = vrcp.f32 %v3034_v31  ;;  %v4126_v54 = vpop.permute.xlu1 %4125  ;;  %v3642_v21 = vmul.f32 %v6401_v18, %v8565_v34  ;;  %v9352_v48 = vsel %vm3221_vm11, 1.0, %v11740_v22  ;;  %vm3636_vm10 = vcmp.eq.f32.partialorder %v8563_v17, inf }
 0x3c3   : > { %6420 = vrsqrt.f32 %v8569_v19  ;;  %4229 = vrot.lane.b32.xlu0 %v6387_v10, %s6663_s18  ;;  %vm3220_vm13 = vcmp.gt.f32.partialorder %v6403_v27, 0.3  ;;  %11850 = vst [vmem:[#allocation204_spill] sm:$0xff] %v9352_v48  ;;  %v3646_v10 = vand.u32 2147483648, %v8565_v34  ;;  %vm3631_vm12 = vcmp.eq.f32.partialorder %v8559_v46, 0.0 }
 0x3c4   : > { %v9347_v31 = vsel %vm3220_vm13, 1.0, %v11740_v22  ;;  %6422 = vrcp.f32 %v3032_v38  ;;  %v3616_v38 = vsel %vm3615_vm14, %v8557_v29, %v3614_v32  ;;  %vm3652_vm13 = vcmp.eq.f32.partialorder %v8567_v36, 0.0 }
 0x3c5   : > { %11849 = vst [vmem:[#allocation203_spill] sm:$0xff] %v9347_v31  ;;  %v9354_v60 = vpop.eup %6404  ;;  %4231 = vrot.lane.b32.xlu1 %v9282_v11, %s6663_s18  ;;  %6424 = vrsqrt.f32 %v8571_v55  ;;  %v3618_v11 = vand.u32 2147483648, %v8557_v29 }
 0x3c6   : > { %vm3223_vm1 = vcmp.gt.f32.partialorder %v9354_v60, 0.3  ;;  %6426 = vrcp.f32 %v3033_v57 }
 0x3c7   : > { %v6407_v18 = vpop.eup %6406  ;;  %v9369_v52 = vpop.permute.xlu1 %4131  ;;  %4233 = vrot.lane.b32.xlu0 %v6395_v51, %s6663_s18  ;;  %6428 = vrsqrt.f32 %v8575_v61  ;;  %v9381_v51 = vsel %vm3223_vm1, 1.0, %v11740_v22  ;;  %v3619_v47 = vsel %vm3617_vm0, %v3618_v11, %v3616_v38  ;;  %v3632_v11 = vand.u32 2147483648, %v8559_v46 }
 0x3c8   : > { %v6409_v4 = vpop.eup %6408  ;;  %v5996_v24 = vpop.permute.xlu0 %5995  ;;  %vm3222_vm5 = vcmp.gt.f32.partialorder %v6407_v18, 0.3  ;;  %vm3671_vm0 = vcmp.eq.f32.partialorder %v8573_v41, inf  ;;  %vm3678_vm1 = vcmp.eq.f32.partialorder %v8575_v61, inf  ;;  %6430 = vrsqrt.f32 %v8581_v28 }
 0x3c9   : > { %v6411_v57 = vpop.eup %6410  ;;  %v5998_v16 = vunpack.i.h.bf16 %v5996_v24  ;;  %v5997_v31 = vunpack.i.l.bf16 %v5996_v24  ;;  %4235 = vrot.lane.b32.xlu1 %v9300_v1, %s6663_s18  ;;  %v9376_v32 = vsel %vm3222_vm5, 1.0, %v11740_v22  ;;  %v4575_v24 = vsel %vm4573_vm2, %v8591_v12, %v4128_v62 }
 0x3ca   : > { %v6413_v48 = vpop.eup %6412  ;;  %v4574_v1 = vsel %vm4573_vm2, %v8597_v9, %v4126_v54  ;;  %v3644_v12 = vsel %vm3643_vm15, %v8565_v34, %v3642_v21  ;;  %v3649_v62 = vmul.f32 %v6411_v57, %v8567_v36  ;;  %vm3638_vm15 = vcmp.eq.f32.partialorder %v8563_v17, 0.0 }
 0x3cb   : > { %v4640_v39 = vsel %vm4638_vm3, %v4575_v24, %v5998_v16  ;;  %v4639_v20 = vsel %vm4638_vm3, %v4574_v1, %v5997_v31  ;;  %v4130_v3 = vpop.permute.xlu1 %4129  ;;  %4237 = vrot.lane.b32.xlu0 %v6403_v27, %s6663_s18  ;;  %v6415_v9 = vpop.eup %6414  ;;  %v3628_v16 = vmul.f32 %v6409_v4, %v8559_v46  ;;  %v3635_v31 = vmul.f32 %v6413_v48, %v8563_v17 }
 0x3cc   : > { %v4705_v54 = vsel %vm4703_vm4, %v4640_v39, %v3626_v13  ;;  %v4704_v29 = vsel %vm4703_vm4, %v4639_v20, %v3619_v47  ;;  %v3670_v47 = vmul.f32 %v6415_v9, %v8573_v41  ;;  %v3647_v21 = vsel %vm3645_vm7, %v3646_v10, %v3644_v12 }
 0x3cd   : > { %v9408_v38 = vpop.eup %6416  ;;  %4770 = vst.msk [vmem:[%s9388_s14 + $0x8] sm:$0xff] %vm11436_vm6, %v4705_v54  ;;  %4769 = vst.msk [vmem:[%s9388_s14] sm:$0xff] %vm11436_vm6, %v4704_v29  ;;  %4239 = vrot.lane.b32.xlu1 %v9323_v63, %s6663_s18  ;;  %v4134_v27 = vpop.permute.xlu0 %4133  ;;  %v3653_v63 = vand.u32 2147483648, %v8567_v36  ;;  %v3651_v13 = vsel %vm3650_vm8, %v8567_v36, %v3649_v62  ;;  %v3630_v34 = vsel %vm3629_vm9, %v8559_v46, %v3628_v16  ;;  %v3639_v12 = vand.u32 2147483648, %v8563_v17 }
 0x3ce   : > { %vm3227_vm11 = vcmp.gt.f32.partialorder %v9408_v38, 0.3  ;;  %v3637_v10 = vsel %vm3636_vm10, %v8563_v17, %v3635_v31  ;;  %v4578_v54 = vsel %vm4573_vm2, %v8619_v49, %v4134_v27  ;;  %v4577_v36 = vsel %vm4573_vm2, %v8603_v5, %v9369_v52 }
 0x3cf   : > { %v6419_v20 = vpop.eup %6418  ;;  %v4136_v39 = vpop.permute.xlu1 %4135  ;;  %4241 = vrot.lane.b32.xlu0 %v6407_v18, %s6663_s18  ;;  %v9445_v57 = vsel %vm3227_vm11, 1.0, %v11740_v22  ;;  %v3654_v16 = vsel %vm3652_vm13, %v3653_v63, %v3651_v13  ;;  %v3633_v5 = vsel %vm3631_vm12, %v3632_v11, %v3630_v34  ;;  %v3672_v11 = vsel %vm3671_vm0, %v8573_v41, %v3670_v47 }
 0x3d0   : > { %v6421_v48 = vpop.eup %6420  ;;  %vm3226_vm14 = vcmp.gt.f32.partialorder %v6419_v20, 0.3  ;;  %v4579_v29 = vsel %vm4573_vm2, %v8615_v59, %v4136_v39  ;;  %v4576_v39 = vsel %vm4573_vm2, %v8611_v43, %v4130_v3  ;;  %v3640_v3 = vsel %vm3638_vm15, %v3639_v12, %v3637_v10 }
 0x3d1   : > { %4243 = vrot.lane.b32.xlu1 %v9354_v60, %s6663_s18  ;;  %v6006_v4 = vpop.permute.xlu0 %6005  ;;  %v9440_v18 = vsel %vm3226_vm14, 1.0, %v11740_v22  ;;  %v9447_v24 = vpop.eup %6422  ;;  %v3656_v17 = vmul.f32 %v6421_v48, %v8569_v19  ;;  %vm3673_vm5 = vcmp.eq.f32.partialorder %v8573_v41, 0.0  ;;  %vm3657_vm7 = vcmp.eq.f32.partialorder %v8569_v19, inf }
 0x3d2   : > { %v6008_v60 = vunpack.i.h.bf16 %v6006_v4  ;;  %v6007_v1 = vunpack.i.l.bf16 %v6006_v4  ;;  %v6425_v62 = vpop.eup %6424  ;;  %v11851_v48 = vpack.i.bf16 %v8828_v14, %v8823_v45  ;;  %vm3664_vm8 = vcmp.eq.f32.partialorder %v8571_v55, inf }
 0x3d3   : > { %v6001_v31 = vpop.permute.xlu1 %6000  ;;  %4245 = vrot.lane.b32.xlu0 %v9447_v24, %s6663_s18  ;;  %v9461_v4 = vpop.eup %6426  ;;  %vm3680_vm9 = vcmp.eq.f32.partialorder %v8575_v61, 0.0  ;;  %vm3659_vm10 = vcmp.eq.f32.partialorder %v8569_v19, 0.0  ;;  %v3660_v14 = vand.u32 2147483648, %v8569_v19  ;;  %vm3666_vm11 = vcmp.eq.f32.partialorder %v8571_v55, 0.0 }
 0x3d4   : > { %v4644_v9 = vsel %vm4638_vm3, %v4579_v29, %v6008_v60  ;;  %v4643_v49 = vsel %vm4638_vm3, %v4578_v54, %v6007_v1  ;;  %v6003_v27 = vunpack.i.h.bf16 %v6001_v31  ;;  %v6002_v6 = vunpack.i.l.bf16 %v6001_v31  ;;  %v6429_v59 = vpop.eup %6428 }
 0x3d5   : > { %v4709_v63 = vsel %vm4703_vm4, %v4644_v9, %v3654_v16  ;;  %v4708_v13 = vsel %vm4703_vm4, %v4643_v49, %v3647_v21  ;;  %4247 = vrot.lane.b32.xlu1 %v9461_v4, %s6663_s18  ;;  %v4138_v60 = vpop.permute.xlu0 %4137  ;;  %v3677_v54 = vmul.f32 %v6429_v59, %v8575_v61  ;;  %v3667_v31 = vand.u32 2147483648, %v8571_v55 }
 0x3d6   : > { %4774 = vst.msk [vmem:[%s9388_s14 + $0x28] sm:$0xff] %vm11436_vm6, %v4709_v63  ;;  %4773 = vst.msk [vmem:[%s9388_s14 + $0x20] sm:$0xff] %vm11436_vm6, %v4708_v13  ;;  %v4642_v1 = vsel %vm4638_vm3, %v4577_v36, %v6003_v27  ;;  %v4641_v43 = vsel %vm4638_vm3, %v4576_v39, %v6002_v6  ;;  %v3674_v6 = vand.u32 2147483648, %v8573_v41  ;;  %v11852_v41 = vpack.i.bf16 %v8806_v26, %v8801_v35 }
 0x3d7   : > { %v4706_v52 = vsel %vm4703_vm4, %v4641_v43, %v3633_v5  ;;  %v4707_v21 = vsel %vm4703_vm4, %v4642_v1, %v3640_v3  ;;  %v4140_v9 = vpop.permute.xlu1 %4139  ;;  %4249 = vrot.lane.b32.xlu0 %v6419_v20, %s6663_s18  ;;  %v3663_v20 = vmul.f32 %v6425_v62, %v8571_v55  ;;  %v3679_v10 = vsel %vm3678_vm1, %v8575_v61, %v3677_v54 }
 0x3d8   : > { %4771 = vst.msk [vmem:[%s9388_s14 + $0x10] sm:$0xff] %vm11436_vm6, %v4706_v52  ;;  %4772 = vst.msk [vmem:[%s9388_s14 + $0x18] sm:$0xff] %vm11436_vm6, %v4707_v21  ;;  %v3675_v47 = vsel %vm3673_vm5, %v3674_v6, %v3672_v11  ;;  %v3658_v62 = vsel %vm3657_vm7, %v8569_v19, %v3656_v17  ;;  %v11853_v27 = vpack.i.bf16 %v8867_v50, %v8880_v40  ;;  %6432 = vrsqrt.f32 %v8577_v30  ;;  %v11859_v21 = vld [vmem:[#allocation127_spill] sm:$0xff]  ;;  %v11868_v11 = vld [vmem:[#allocation137_spill] sm:$0xff] }
 0x3d9   : > { %4251 = vrot.lane.b32.xlu1 %v9408_v38, %s6663_s18  ;;  %v4142_v46 = vpop.permute.xlu0 %4141  ;;  %v3681_v38 = vand.u32 2147483648, %v8575_v61  ;;  %v3665_v16 = vsel %vm3664_vm8, %v8571_v55, %v3663_v20  ;;  %v4580_v63 = vsel %vm4573_vm2, %v8631_v23, %v4138_v60  ;;  %v11854_v50 = vpack.i.bf16 %v8857_v0, %v8852_v37  ;;  %v11864_v6 = vld [vmem:[#allocation143_spill] sm:$0xff]  ;;  %s5511_s18 = sshll.u32 (%p6757_p5), %s5043_s16, 3 }
 0x3da   : > { %v4582_v61 = vsel %vm4573_vm2, %v8643_v7, %v4142_v46  ;;  %v3661_v23 = vsel %vm3659_vm10, %v3660_v14, %v3658_v62  ;;  %v3668_v60 = vsel %vm3666_vm11, %v3667_v31, %v3665_v16  ;;  %v11855_v19 = vpack.i.bf16 %v8926_v53, %v8921_v44  ;;  %v11858_v53 = vld [vmem:[#allocation89_spill] sm:$0xff]  ;;  %v11863_v46 = vld [vmem:[#allocation144_spill] sm:$0xff]  ;;  %v6431_v62 = vpop.eup %6430  ;;  %v11877_v31 = vld [vmem:[#allocation147_spill] sm:$0xff]  ;;  %s10999_s22 = scalar_lea.vmem (%p6757_p5), %s11148_s7, %s5511_s18 }
 0x3db   : > { %v4144_v34 = vpop.permute.xlu1 %4143  ;;  %6025 = vrot.lane.b32.xlu0 %v11851_v48, %s6665_s19  ;;  %v3682_v26 = vsel %vm3680_vm9, %v3681_v38, %v3679_v10  ;;  %6434 = vrsqrt.f32 %v8593_v15  ;;  %v11856_v55 = vpack.i.bf16 %v8898_v8, %v8895_v2  ;;  %v11857_v44 = vpack.i.bf16 %v8974_v33, %v8969_v58  ;;  %v11862_v8 = vld [vmem:[#allocation63_spill] sm:$0xff]  ;;  %v11866_v58 = vld [vmem:[#allocation66_spill] sm:$0xff]  ;;  %v11874_v14 = vld [vmem:[#allocation88_spill] sm:$0xff] }
 0x3dc   : > { %v4583_v35 = vsel %vm4573_vm2, %v8635_v25, %v4144_v34  ;;  %v4581_v25 = vsel %vm4573_vm2, %v8627_v42, %v4140_v9  ;;  %6436 = vrsqrt.f32 %v8605_v56  ;;  %v11860_v9 = vld [vmem:[#allocation126_spill] sm:$0xff]  ;;  %v11865_v20 = vpack.i.bf16 %v11863_v46, %v11864_v6  ;;  %v11876_v16 = vld [vmem:[#allocation148_spill] sm:$0xff] }
 0x3dd   : > { %6020 = vrot.lane.b32.xlu1 %v11852_v41, %s6665_s19  ;;  %v6016_v12 = vpop.permute.xlu0 %6015  ;;  %6438 = vrsqrt.f32 %v11858_v53  ;;  %v11861_v54 = vpack.i.bf16 %v11859_v21, %v11860_v9  ;;  %v11867_v33 = vld [vmem:[#allocation138_spill] sm:$0xff]  ;;  %v11871_v41 = vld [vmem:[#allocation152_spill] sm:$0xff]  ;;  %vm3699_vm12 = vcmp.eq.f32.partialorder %v8581_v28, inf  ;;  %vm3685_vm13 = vcmp.eq.f32.partialorder %v8577_v30, inf }
 0x3de   : > { %v6018_v45 = vunpack.i.h.bf16 %v6016_v12  ;;  %v6017_v29 = vunpack.i.l.bf16 %v6016_v12  ;;  %6440 = vrsqrt.f32 %v11862_v8  ;;  %v11869_v34 = vpack.i.bf16 %v11867_v33, %v11868_v11  ;;  %v11870_v38 = vld [vmem:[#allocation90_spill] sm:$0xff]  ;;  %v11894_v11 = vld [vmem:[#allocation68_spill] sm:$0xff] }
 0x3df   : > { %v6011_v49 = vpop.permute.xlu1 %6010  ;;  %6035 = vrot.lane.b32.xlu0 %v11853_v27, %s6665_s19  ;;  %6442 = vrsqrt.f32 %v11866_v58  ;;  %v3698_v27 = vmul.f32 %v6431_v62, %v8581_v28  ;;  %vm3713_vm14 = vcmp.eq.f32.partialorder %v8593_v15, inf  ;;  %vm3701_vm15 = vcmp.eq.f32.partialorder %v8581_v28, 0.0 }
 0x3e0   : > { %v4648_v59 = vsel %vm4638_vm3, %v4583_v35, %v6018_v45  ;;  %v4647_v36 = vsel %vm4638_vm3, %v4582_v61, %v6017_v29  ;;  %v6013_v39 = vunpack.i.h.bf16 %v6011_v49  ;;  %v6012_v7 = vunpack.i.l.bf16 %v6011_v49  ;;  %v11875_v29 = vld [vmem:[#allocation92_spill] sm:$0xff] }
 0x3e1   : > { %v4713_v13 = vsel %vm4703_vm4, %v4648_v59, %v3682_v26  ;;  %v4712_v1 = vsel %vm4703_vm4, %v4647_v36, %v3675_v47  ;;  %6030 = vrot.lane.b32.xlu1 %v11854_v50, %s6665_s19  ;;  %v9540_v40 = vpop.permute.xlu0 %4145  ;;  %6444 = vrsqrt.f32 %v11870_v38  ;;  %v11872_v47 = vld [vmem:[#allocation154_spill] sm:$0xff]  ;;  %v11878_v61 = vpack.i.bf16 %v11876_v16, %v11877_v31  ;;  %v11881_v36 = vld [vmem:[#allocation163_spill] sm:$0xff]  ;;  %v11886_v50 = vld [vmem:[#allocation156_spill] sm:$0xff] }
 0x3e2   : > { %4778 = vst.msk [vmem:[%s9388_s14 + $0x48] sm:$0xff] %vm11436_vm6, %v4713_v13  ;;  %4777 = vst.msk [vmem:[%s9388_s14 + $0x40] sm:$0xff] %vm11436_vm6, %v4712_v1  ;;  %v4646_v42 = vsel %vm4638_vm3, %v4581_v25, %v6013_v39  ;;  %v4645_v5 = vsel %vm4638_vm3, %v4580_v63, %v6012_v7  ;;  %v11873_v12 = vpack.i.bf16 %v11871_v41, %v11872_v47  ;;  %6446 = vrsqrt.f32 %v11874_v14  ;;  %v11882_v39 = vld [vmem:[#allocation162_spill] sm:$0xff]  ;;  %v11884_v25 = vld [vmem:[#allocation91_spill] sm:$0xff] }
 0x3e3   : > { %v4710_v37 = vsel %vm4703_vm4, %v4645_v5, %v3661_v23  ;;  %v4711_v0 = vsel %vm4703_vm4, %v4646_v42, %v3668_v60  ;;  %v9555_v3 = vpop.permute.xlu1 %4147  ;;  %6045 = vrot.lane.b32.xlu0 %v11855_v19, %s6665_s19  ;;  %6448 = vrsqrt.f32 %v11875_v29  ;;  %v11883_v7 = vpack.i.bf16 %v11881_v36, %v11882_v39  ;;  %v11885_v1 = vld [vmem:[#allocation157_spill] sm:$0xff]  ;;  %v11896_v41 = vld [vmem:[#allocation168_spill] sm:$0xff]  ;;  %v11899_v31 = vld [vmem:[#allocation71_spill] sm:$0xff] }
 0x3e4   : > { %4775 = vst.msk [vmem:[%s9388_s14 + $0x30] sm:$0xff] %vm11436_vm6, %v4710_v37  ;;  %4776 = vst.msk [vmem:[%s9388_s14 + $0x38] sm:$0xff] %vm11436_vm6, %v4711_v0  ;;  %6450 = vrsqrt.f32 %v11884_v25  ;;  %v11887_v23 = vpack.i.bf16 %v11885_v1, %v11886_v50  ;;  %v11889_v37 = vld [vmem:[#allocation69_spill] sm:$0xff]  ;;  %v3702_v0 = vand.u32 2147483648, %v8581_v28  ;;  %v3700_v9 = vsel %vm3699_vm12, %v8581_v28, %v3698_v27  ;;  %v11902_v39 = vld [vmem:[#allocation186_spill] sm:$0xff] }
 0x3e5   : > { %6040 = vrot.lane.b32.xlu1 %v11856_v55, %s6665_s19  ;;  %v9571_v43 = vpop.permute.xlu0 %4149  ;;  %v6433_v45 = vpop.eup %6432  ;;  %6452 = vrsqrt.f32 %v11889_v37  ;;  %v11891_v55 = vld [vmem:[#allocation173_spill] sm:$0xff]  ;;  %vm3687_vm0 = vcmp.eq.f32.partialorder %v8577_v30, 0.0  ;;  %vm3727_vm1 = vcmp.eq.f32.partialorder %v8605_v56, inf  ;;  %v3688_v6 = vand.u32 2147483648, %v8577_v30  ;;  %v11907_v28 = vld [vmem:[#allocation179_spill] sm:$0xff] }
 0x3e6   : > { %v3684_v63 = vmul.f32 %v6433_v45, %v8577_v30  ;;  %vm3715_vm5 = vcmp.eq.f32.partialorder %v8593_v15, 0.0  ;;  %6454 = vrsqrt.f32 %v11894_v11  ;;  %v3730_v62 = vand.u32 2147483648, %v8605_v56  ;;  %v11900_v27 = vld [vmem:[#allocation65_spill] sm:$0xff] }
 0x3e7   : > { %v9574_v52 = vpop.permute.xlu1 %4151  ;;  %6055 = vrot.lane.b32.xlu0 %v11857_v44, %s6665_s19  ;;  %v11892_v44 = vld [vmem:[#allocation172_spill] sm:$0xff]  ;;  %6456 = vrsqrt.f32 %v11899_v31  ;;  %vm3692_vm7 = vcmp.eq.f32.partialorder %v11858_v53, inf  ;;  %vm3729_vm8 = vcmp.eq.f32.partialorder %v8605_v56, 0.0  ;;  %v3695_v50 = vand.u32 2147483648, %v11858_v53 }
 0x3e8   : > { %v6435_v26 = vpop.eup %6434  ;;  %v11893_v21 = vpack.i.bf16 %v11891_v55, %v11892_v44  ;;  %v3686_v46 = vsel %vm3685_vm13, %v8577_v30, %v3684_v63  ;;  %6458 = vrsqrt.f32 %v11900_v27  ;;  %vm3741_vm9 = vcmp.eq.f32.partialorder %v11862_v8, inf  ;;  %v11906_v55 = vld [vmem:[#allocation180_spill] sm:$0xff] }
 0x3e9   : > { %6050 = vrot.lane.b32.xlu1 %v11861_v54, %s6665_s19  ;;  %v9585_v2 = vpop.permute.xlu0 %4153  ;;  %v6437_v49 = vpop.eup %6436  ;;  %v3712_v13 = vmul.f32 %v6435_v26, %v8593_v15  ;;  %v9682_v1 = vsel %vm3687_vm0, %v3688_v6, %v3686_v46  ;;  %vm3694_vm10 = vcmp.eq.f32.partialorder %v11858_v53, 0.0  ;;  %vm3706_vm11 = vcmp.eq.f32.partialorder %v11866_v58, inf  ;;  %v11912_v6 = vld [vmem:[#allocation4_spill] sm:$0xff] }
 0x3ea   : > { %v6439_v60 = vpop.eup %6438  ;;  %v3726_v5 = vmul.f32 %v6437_v49, %v8605_v56  ;;  %v3744_v46 = vand.u32 2147483648, %v11862_v8  ;;  %vm3755_vm12 = vcmp.eq.f32.partialorder %v11870_v38, inf  ;;  %vm3743_vm13 = vcmp.eq.f32.partialorder %v11862_v8, 0.0 }
 0x3eb   : > { %v9588_v17 = vpop.permute.xlu1 %4155  ;;  %6065 = vrot.lane.b32.xlu0 %v11865_v20, %s6665_s19  ;;  %v6441_v54 = vpop.eup %6440  ;;  %v3716_v20 = vand.u32 2147483648, %v8593_v15  ;;  %v3691_v33 = vmul.f32 %v6439_v60, %v11858_v53  ;;  %v3714_v45 = vsel %vm3713_vm14, %v8593_v15, %v3712_v13  ;;  %v9678_v13 = vsel %vm3701_vm15, %v3702_v0, %v3700_v9 }
 0x3ec   : > { %v6443_v16 = vpop.eup %6442  ;;  %v3740_v49 = vmul.f32 %v6441_v54, %v11862_v8  ;;  %v11908_v0 = vpack.i.bf16 %v11906_v55, %v11907_v28  ;;  %v11911_v54 = vld [vmem:[#allocation11_spill] sm:$0xff]  ;;  %vm3708_vm14 = vcmp.eq.f32.partialorder %v11866_v58, 0.0  ;;  %vm3720_vm15 = vcmp.eq.f32.partialorder %v11874_v14, inf }
 0x3ed   : > { %6060 = vrot.lane.b32.xlu1 %v11869_v34, %s6665_s19  ;;  %v9599_v48 = vpop.permute.xlu0 %4157  ;;  %v11895_v34 = vld [vmem:[#allocation169_spill] sm:$0xff]  ;;  %v3693_v30 = vsel %vm3692_vm7, %v11858_v53, %v3691_v33  ;;  %6460 = vrsqrt.f32 %v11911_v54  ;;  %v11914_v33 = vld [vmem:[#allocation192_spill] sm:$0xff]  ;;  %vm3769_vm0 = vcmp.eq.f32.partialorder %v11875_v29, inf  ;;  %vm3722_vm7 = vcmp.eq.f32.partialorder %v11874_v14, 0.0 }
 0x3ee   : > { %v11897_v47 = vpack.i.bf16 %v11895_v34, %v11896_v41  ;;  %v6445_v26 = vpop.eup %6444  ;;  %6462 = vrsqrt.f32 %v11912_v6  ;;  %v11915_v34 = vld [vmem:[#allocation191_spill] sm:$0xff]  ;;  %v11922_v53 = vld [vmem:[#allocation5_spill] sm:$0xff] }
 0x3ef   : > { %v9602_v10 = vpop.permute.xlu1 %4159  ;;  %6075 = vrot.lane.b32.xlu0 %v11873_v12, %s6665_s19  ;;  %v6447_v60 = vpop.eup %6446  ;;  %v3754_v9 = vmul.f32 %v6445_v26, %v11870_v38  ;;  %v11916_v41 = vpack.i.bf16 %v11914_v33, %v11915_v34  ;;  %v11928_v33 = vld [vmem:[#allocation102_spill] sm:$0xff] }
 0x3f1   : > { %6070 = vrot.lane.b32.xlu1 %v11878_v61, %s6665_s19  ;;  %v9614_v35 = vpop.permute.xlu0 %4161  ;;  %v3728_v61 = vsel %vm3727_vm1, %v8605_v56, %v3726_v5  ;;  %v3705_v5 = vmul.f32 %v6443_v16, %v11866_v58  ;;  %v3742_v56 = vsel %vm3741_vm9, %v11862_v8, %v3740_v49  ;;  %v9726_v16 = vsel %vm3694_vm10, %v3695_v50, %v3693_v30  ;;  %v11926_v30 = vld [vmem:[#allocation197_spill] sm:$0xff] }
 0x3f2   : > { %11879 = vst [vmem:[#allocation89_spill] sm:$0xff] %v9614_v35  ;;  %v9703_v15 = vsel %vm3729_vm8, %v3730_v62, %v3728_v61  ;;  %v11917_v62 = vld [vmem:[#allocation97_spill] sm:$0xff]  ;;  %v3756_v50 = vsel %vm3755_vm12, %v11870_v38, %v3754_v9  ;;  %vm3224_vm1 = vcmp.gt.f32.partialorder %v9447_v24, 0.3  ;;  %v3758_v9 = vand.u32 2147483648, %v11870_v38 }
 0x3f3   : > { %v9617_v59 = vpop.permute.xlu1 %4163  ;;  %6085 = vrot.lane.b32.xlu0 %v11883_v7, %s6665_s19  ;;  %v11903_v7 = vld [vmem:[#allocation185_spill] sm:$0xff]  ;;  %11910 = vst [vmem:[#allocation137_spill] sm:$0xff] %v9703_v15  ;;  %6464 = vrsqrt.f32 %v11917_v62  ;;  %v3707_v8 = vsel %vm3706_vm11, %v11866_v58, %v3705_v5  ;;  %v3723_v5 = vand.u32 2147483648, %v11874_v14  ;;  %vm3225_vm8 = vcmp.gt.f32.partialorder %v9461_v4, 0.3 }
 0x3f4   : > { %11880 = vst [vmem:[#allocation127_spill] sm:$0xff] %v9617_v59  ;;  %v11904_v63 = vpack.i.bf16 %v11902_v39, %v11903_v7  ;;  %v11918_v39 = vld [vmem:[#allocation188_spill] sm:$0xff]  ;;  %v11919_v7 = vld [vmem:[#allocation187_spill] sm:$0xff]  ;;  %6466 = vrsqrt.f32 %v11922_v53  ;;  %vm3734_vm9 = vcmp.eq.f32.partialorder %v11884_v25, inf  ;;  %vm3771_vm10 = vcmp.eq.f32.partialorder %v11875_v29, 0.0 }
 0x3f5   : > { %6080 = vrot.lane.b32.xlu1 %v11887_v23, %s6665_s19  ;;  %v9631_v42 = vpop.permute.xlu0 %4165  ;;  %v9687_v23 = vsel %vm3715_vm5, %v3716_v20, %v3714_v45  ;;  %v3709_v45 = vand.u32 2147483648, %v11866_v58  ;;  %vm3757_vm5 = vcmp.eq.f32.partialorder %v11870_v38, 0.0  ;;  %6468 = vrsqrt.f32 %v11928_v33  ;;  %v11941_v38 = vld [vmem:[#allocation202_spill] sm:$0xff]  ;;  %v12019_v59 = vld [vmem:[#allocation199_spill] sm:$0xff] }
 0x3f6   : > { %11888 = vst [vmem:[#allocation126_spill] sm:$0xff] %v9631_v42  ;;  %11905 = vst [vmem:[#allocation66_spill] sm:$0xff] %v9687_v23  ;;  %v9793_v24 = vsel %vm3757_vm5, %v3758_v9, %v3756_v50  ;;  %vm3783_vm11 = vcmp.eq.f32.partialorder %v11889_v37, inf  ;;  %vm3736_vm12 = vcmp.eq.f32.partialorder %v11884_v25, 0.0  ;;  %vm3799_vm5 = vcmp.eq.f32.partialorder %v11899_v31, 0.0  ;;  %v12032_v23 = vld [vmem:[#allocation20_spill] sm:$0xff] }
 0x3f7   : > { %v9638_v19 = vpop.permute.xlu1 %4167  ;;  %6095 = vrot.lane.b32.xlu0 %v11893_v21, %s6665_s19  ;;  %v6449_v21 = vpop.eup %6448  ;;  %11939 = vst [vmem:[#allocation163_spill] sm:$0xff] %v9793_v24 }
 0x3f8   : > { %11890 = vst [vmem:[#allocation63_spill] sm:$0xff] %v9638_v19  ;;  %v6451_v61 = vpop.eup %6450  ;;  %v3768_v26 = vmul.f32 %v6449_v21, %v11875_v29 }
 0x3f9   : > { %6090 = vrot.lane.b32.xlu1 %v11897_v47, %s6665_s19  ;;  %v9658_v12 = vpop.permute.xlu0 %4169  ;;  %v3719_v47 = vmul.f32 %v6447_v60, %v11874_v14  ;;  %v9742_v60 = vsel %vm3743_vm13, %v3744_v46, %v3742_v56  ;;  %v6453_v55 = vpop.eup %6452  ;;  %v3733_v46 = vmul.f32 %v6451_v61, %v11884_v25  ;;  %v11930_v56 = vld [vmem:[#allocation195_spill] sm:$0xff]  ;;  %vm3748_vm13 = vcmp.eq.f32.partialorder %v11894_v11, inf }
 0x3fa   : > { %11898 = vst [vmem:[#allocation144_spill] sm:$0xff] %v9658_v12  ;;  %11923 = vst [vmem:[#allocation154_spill] sm:$0xff] %v9742_v60  ;;  %v3770_v61 = vsel %vm3769_vm0, %v11875_v29, %v3768_v26  ;;  %vm3762_vm0 = vcmp.eq.f32.partialorder %v11900_v27, inf  ;;  %v11985_v12 = vld [vmem:[#allocation159_spill] sm:$0xff] }
 0x3fb   : > { %v9670_v36 = vpop.permute.xlu1 %4171  ;;  %6105 = vrot.lane.b32.xlu0 %v11904_v63, %s6665_s19  ;;  %v11920_v63 = vpack.i.bf16 %v11918_v39, %v11919_v7  ;;  %v3721_v34 = vsel %vm3720_vm15, %v11874_v14, %v3719_v47  ;;  %v6455_v47 = vpop.eup %6454  ;;  %v3735_v58 = vsel %vm3734_vm9, %v11884_v25, %v3733_v46  ;;  %v3737_v14 = vand.u32 2147483648, %v11884_v25  ;;  %v11946_v46 = vld [vmem:[#allocation94_spill] sm:$0xff] }
 0x3fc   : > { %11901 = vst [vmem:[#allocation143_spill] sm:$0xff] %v9670_v36  ;;  %vm3797_vm15 = vcmp.eq.f32.partialorder %v11899_v31, inf  ;;  %vm3776_vm9 = vcmp.eq.f32.partialorder %v11912_v6, inf }
 0x3fd   : > { %6100 = vrot.lane.b32.xlu1 %v11908_v0, %s6665_s19  ;;  %v9695_v44 = vpop.permute.xlu0 %4173  ;;  %v11925_v0 = vld [vmem:[#allocation198_spill] sm:$0xff] }
 0x3fe   : > { %11909 = vst [vmem:[#allocation138_spill] sm:$0xff] %v9695_v44  ;;  %v11927_v21 = vpack.i.bf16 %v11925_v0, %v11926_v30  ;;  %v3782_v0 = vmul.f32 %v6453_v55, %v11889_v37  ;;  %v11933_v30 = vld [vmem:[#allocation9_spill] sm:$0xff]  ;;  %v9789_v55 = vsel %vm3722_vm7, %v3723_v5, %v3721_v34  ;;  %vm3764_vm7 = vcmp.eq.f32.partialorder %v11900_v27, 0.0 }
 0x3ff   : > { %v9710_v20 = vpop.permute.xlu1 %4175  ;;  %6115 = vrot.lane.b32.xlu0 %v11916_v41, %s6665_s19  ;;  %v11929_v41 = vld [vmem:[#allocation196_spill] sm:$0xff]  ;;  %6470 = vrsqrt.f32 %v11933_v30  ;;  %11938 = vst [vmem:[#allocation147_spill] sm:$0xff] %v9789_v55 }
 0x400   : > { %11913 = vst [vmem:[#allocation90_spill] sm:$0xff] %v9710_v20  ;;  %v11931_v39 = vpack.i.bf16 %v11929_v41, %v11930_v56  ;;  %v6457_v41 = vpop.eup %6456  ;;  %v3784_v34 = vsel %vm3783_vm11, %v11889_v37, %v3782_v0  ;;  %v3786_v0 = vand.u32 2147483648, %v11889_v37  ;;  %vm3813_vm11 = vcmp.eq.f32.partialorder %v11911_v54, 0.0  ;;  %v11990_v20 = vld [vmem:[#allocation142_spill] sm:$0xff] }
 0x401   : > { %6110 = vrot.lane.b32.xlu1 %v11920_v63, %s6665_s19  ;;  %v9733_v49 = vpop.permute.xlu0 %4177  ;;  %v3772_v63 = vand.u32 2147483648, %v11875_v29  ;;  %v3796_v4 = vmul.f32 %v6457_v41, %v11899_v31 }
 0x402   : > { %11921 = vst [vmem:[#allocation152_spill] sm:$0xff] %v9733_v49  ;;  %v9785_v49 = vsel %vm3708_vm14, %v3709_v45, %v3707_v8  ;;  %v3747_v45 = vmul.f32 %v6455_v47, %v11894_v11  ;;  %v11942_v8 = vld [vmem:[#allocation201_spill] sm:$0xff]  ;;  %vm3785_vm14 = vcmp.eq.f32.partialorder %v11889_v37, 0.0 }
 0x403   : > { %v9745_v28 = vpop.permute.xlu1 %4179  ;;  %6125 = vrot.lane.b32.xlu0 %v11927_v21, %s6665_s19  ;;  %v5504_v21 = vsel %vm3224_vm1, 1.0, %v11740_v22  ;;  %v11943_v50 = vpack.i.bf16 %v11941_v38, %v11942_v8  ;;  %vm3750_vm1 = vcmp.eq.f32.partialorder %v11894_v11, 0.0 }
 0x404   : > { %11924 = vst [vmem:[#allocation88_spill] sm:$0xff] %v9745_v28  ;;  %v11936_v28 = vld [vmem:[#allocation203_spill] sm:$0xff]  ;;  %v3749_v8 = vsel %vm3748_vm13, %v11894_v11, %v3747_v45  ;;  %vm3778_vm13 = vcmp.eq.f32.partialorder %v11912_v6, 0.0 }
 0x405   : > { %6120 = vrot.lane.b32.xlu1 %v11931_v39, %s6665_s19  ;;  %v9763_v7 = vpop.permute.xlu0 %4181  ;;  %v11935_v39 = vld [vmem:[#allocation204_spill] sm:$0xff] }
 0x406   : > { %11932 = vst [vmem:[#allocation92_spill] sm:$0xff] %v9763_v7  ;;  %v11937_v26 = vpack.i.bf16 %v11935_v39, %v11936_v28  ;;  %v11940_v7 = vld [vmem:[#allocation107_spill] sm:$0xff]  ;;  %v5505_v28 = vsel %vm3225_vm8, 1.0, %v11740_v22  ;;  %v9814_v22 = vsel %vm3771_vm10, %v3772_v63, %v3770_v61  ;;  %v11949_v61 = vld [vmem:[#allocation98_spill] sm:$0xff]  ;;  %v3751_v63 = vand.u32 2147483648, %v11894_v11 }
 0x407   : > { %v9777_v56 = vpop.permute.xlu1 %4183  ;;  %6472 = vrsqrt.f32 %v11940_v7  ;;  %v6144_v9 = vpack.i.bf16 %v5505_v28, %v5504_v21  ;;  %11945 = vst [vmem:[#allocation91_spill] sm:$0xff] %v9814_v22  ;;  %v11951_v28 = vpack.i.bf16 %v9381_v51, %v9376_v32  ;;  %v11953_v51 = vld [vmem:[#allocation103_spill] sm:$0xff]  ;;  %vm3811_vm8 = vcmp.eq.f32.partialorder %v11911_v54, inf  ;;  %v11962_v11 = vld [vmem:[#allocation122_spill] sm:$0xff] }
 0x408   : > { %11934 = vst [vmem:[#allocation148_spill] sm:$0xff] %v9777_v56  ;;  %6135 = vrot.lane.b32.xlu0 %v11937_v26, %s6665_s19  ;;  %v6459_v56 = vpop.eup %6458  ;;  %6474 = vrsqrt.f32 %v11946_v46  ;;  %v11947_v26 = vld [vmem:[#allocation112_spill] sm:$0xff]  ;;  %v9863_v22 = vsel %vm3785_vm14, %v3786_v0, %v3784_v34  ;;  %vm3825_vm10 = vcmp.eq.f32.partialorder %v11917_v62, inf  ;;  %vm3839_vm14 = vcmp.eq.f32.partialorder %v11928_v33, inf }
 0x409   : > { %6130 = vrot.lane.b32.xlu1 %v11943_v50, %s6665_s19  ;;  %v9809_v5 = vpop.permute.xlu0 %4185  ;;  %v6461_v47 = vpop.eup %6460  ;;  %v3761_v39 = vmul.f32 %v6459_v56, %v11900_v27  ;;  %6476 = vrsqrt.f32 %v11947_v26  ;;  %v11950_v56 = vld [vmem:[#allocation117_spill] sm:$0xff]  ;;  %v3800_v50 = vand.u32 2147483648, %v11899_v31  ;;  %11956 = vst [vmem:[#allocation172_spill] sm:$0xff] %v9863_v22 }
 0x40a   : > { %11944 = vst [vmem:[#allocation162_spill] sm:$0xff] %v9809_v5  ;;  %v6463_v29 = vpop.eup %6462  ;;  %6478 = vrsqrt.f32 %v11949_v61  ;;  %v3798_v5 = vsel %vm3797_vm15, %v11899_v31, %v3796_v4  ;;  %v9859_v4 = vsel %vm3736_vm12, %v3737_v14, %v3735_v58  ;;  %vm3790_vm12 = vcmp.eq.f32.partialorder %v11922_v53, inf }
 0x40b   : > { %v9822_v21 = vpop.permute.xlu1 %4187  ;;  %v6465_v41 = vpop.eup %6464  ;;  %6480 = vrsqrt.f32 %v11950_v56  ;;  %v3763_v45 = vsel %vm3762_vm0, %v11900_v27, %v3761_v39  ;;  %11955 = vst [vmem:[#allocation173_spill] sm:$0xff] %v9859_v4  ;;  %v11957_v39 = vpack.i.bf16 %v9445_v57, %v9440_v18  ;;  %v9878_v25 = vsel %vm3799_vm5, %v3800_v50, %v3798_v5  ;;  %v12034_v4 = vld [vmem:[#allocation30_spill] sm:$0xff] }
 0x40c   : > { %11948 = vst [vmem:[#allocation157_spill] sm:$0xff] %v9822_v21  ;;  %6145 = vrot.lane.b32.xlu0 %v6144_v9, %s6665_s19  ;;  %v3810_v9 = vmul.f32 %v6461_v47, %v11911_v54  ;;  %v3765_v21 = vand.u32 2147483648, %v11900_v27  ;;  %v6467_v32 = vpop.eup %6466  ;;  %6482 = vrsqrt.f32 %v11953_v51  ;;  %v3775_v47 = vmul.f32 %v6463_v29, %v11912_v6  ;;  %11960 = vst [vmem:[#allocation168_spill] sm:$0xff] %v9878_v25  ;;  %v11974_v25 = vld [vmem:[#allocation134_spill] sm:$0xff] }
 0x40d   : > { %6140 = vrot.lane.b32.xlu1 %v11951_v28, %s6665_s19  ;;  %v9836_v38 = vpop.permute.xlu0 %4189  ;;  %v9873_v29 = vsel %vm3750_vm1, %v3751_v63, %v3749_v8  ;;  %v3789_v37 = vmul.f32 %v6467_v32, %v11922_v53  ;;  %6484 = vrsqrt.f32 %v11962_v11  ;;  %v3779_v31 = vand.u32 2147483648, %v11912_v6  ;;  %v11965_v32 = vld [vmem:[#allocation108_spill] sm:$0xff] }
 0x40e   : > { %11952 = vst [vmem:[#allocation156_spill] sm:$0xff] %v9836_v38  ;;  %v3824_v38 = vmul.f32 %v6465_v41, %v11917_v62  ;;  %11959 = vst [vmem:[#allocation169_spill] sm:$0xff] %v9873_v29  ;;  %v9882_v58 = vsel %vm3764_vm7, %v3765_v21, %v3763_v45  ;;  %v3812_v18 = vsel %vm3811_vm8, %v11911_v54, %v3810_v9  ;;  %v3814_v5 = vand.u32 2147483648, %v11911_v54  ;;  %v11966_v45 = vld [vmem:[#allocation129_spill] sm:$0xff]  ;;  %v11987_v29 = vld [vmem:[#allocation135_spill] sm:$0xff] }
 0x40f   : > { %v9848_v28 = vpop.permute.xlu1 %4191  ;;  %11961 = vst [vmem:[#allocation71_spill] sm:$0xff] %v9882_v58  ;;  %v3777_v21 = vsel %vm3776_vm9, %v11912_v6, %v3775_v47  ;;  %v3793_v8 = vand.u32 2147483648, %v11922_v53  ;;  %vm3827_vm15 = vcmp.eq.f32.partialorder %v11917_v62, 0.0  ;;  %v3828_v50 = vand.u32 2147483648, %v11917_v62 }
 0x410   : > { %11954 = vst [vmem:[#allocation69_spill] sm:$0xff] %v9848_v28  ;;  %v6469_v28 = vpop.eup %6468  ;;  %v3826_v63 = vsel %vm3825_vm10, %v11917_v62, %v3824_v38  ;;  %6486 = vrsqrt.f32 %v11965_v32  ;;  %vm3792_vm0 = vcmp.eq.f32.partialorder %v11922_v53, 0.0  ;;  %vm3804_vm1 = vcmp.eq.f32.partialorder %v11933_v30, inf }
 0x411   : > { %6150 = vrot.lane.b32.xlu1 %v11957_v39, %s6665_s19  ;;  %v9869_v27 = vpop.permute.xlu0 %4193  ;;  %v6471_v57 = vpop.eup %6470  ;;  %v3838_v34 = vmul.f32 %v6469_v28, %v11928_v33  ;;  %v3791_v28 = vsel %vm3790_vm12, %v11922_v53, %v3789_v37  ;;  %6488 = vrsqrt.f32 %v11966_v45  ;;  %v9911_v39 = vsel %vm3813_vm11, %v3814_v5, %v3812_v18 }
 0x412   : > { %11958 = vst [vmem:[#allocation68_spill] sm:$0xff] %v9869_v27  ;;  %v3803_v9 = vmul.f32 %v6471_v57, %v11933_v30  ;;  %11968 = vst [vmem:[#allocation180_spill] sm:$0xff] %v9911_v39  ;;  %vm3841_vm5 = vcmp.eq.f32.partialorder %v11928_v33, 0.0  ;;  %v9923_v54 = vsel %vm3792_vm0, %v3793_v8, %v3791_v28  ;;  %v9927_v18 = vsel %vm3778_vm13, %v3779_v31, %v3777_v21  ;;  %v11984_v39 = vld [vmem:[#allocation130_spill] sm:$0xff] }
 0x413   : > { %v9887_v14 = vpop.permute.xlu1 %4195  ;;  %v3840_v53 = vsel %vm3839_vm14, %v11928_v33, %v3838_v34  ;;  %11971 = vst [vmem:[#allocation11_spill] sm:$0xff] %v9923_v54  ;;  %11972 = vst [vmem:[#allocation4_spill] sm:$0xff] %v9927_v18  ;;  %v9931_v5 = vsel %vm3827_vm15, %v3828_v50, %v3826_v63  ;;  %vm3853_vm7 = vcmp.eq.f32.partialorder %v11940_v7, inf  ;;  %v3807_v28 = vand.u32 2147483648, %v11933_v30 }
 0x414   : > { %11963 = vst [vmem:[#allocation65_spill] sm:$0xff] %v9887_v14  ;;  %v6473_v0 = vpop.eup %6472  ;;  %v3842_v14 = vand.u32 2147483648, %v11928_v33  ;;  %11973 = vst [vmem:[#allocation192_spill] sm:$0xff] %v9931_v5  ;;  %v3805_v8 = vsel %vm3804_vm1, %v11933_v30, %v3803_v9  ;;  %vm3818_vm8 = vcmp.eq.f32.partialorder %v11946_v46, inf  ;;  %vm3806_vm9 = vcmp.eq.f32.partialorder %v11933_v30, 0.0 }
 0x415   : > { %v9896_v41 = vpop.permute.xlu0 %4197  ;;  %v6475_v38 = vpop.eup %6474  ;;  %v3852_v27 = vmul.f32 %v6473_v0, %v11940_v7  ;;  %vm3867_vm10 = vcmp.eq.f32.partialorder %v11947_v26, inf  ;;  %vm3855_vm11 = vcmp.eq.f32.partialorder %v11940_v7, 0.0  ;;  %v3856_v50 = vand.u32 2147483648, %v11940_v7 }
 0x416   : > { %11964 = vst [vmem:[#allocation186_spill] sm:$0xff] %v9896_v41  ;;  %v6477_v57 = vpop.eup %6476  ;;  %v11969_v41 = vld [vmem:[#allocation113_spill] sm:$0xff]  ;;  %v3817_v34 = vmul.f32 %v6475_v38, %v11946_v46  ;;  %v9947_v62 = vsel %vm3841_vm5, %v3842_v14, %v3840_v53  ;;  %v3821_v33 = vand.u32 2147483648, %v11946_v46  ;;  %vm3820_vm12 = vcmp.eq.f32.partialorder %v11946_v46, 0.0 }
 0x417   : > { %v9907_v47 = vpop.permute.xlu1 %4199  ;;  %6490 = vrsqrt.f32 %v11969_v41  ;;  %v6479_v37 = vpop.eup %6478  ;;  %v3866_v6 = vmul.f32 %v6477_v57, %v11947_v26  ;;  %11976 = vst [vmem:[#allocation97_spill] sm:$0xff] %v9947_v62  ;;  %v3854_v63 = vsel %vm3853_vm7, %v11940_v7, %v3852_v27  ;;  %v11977_v57 = vld [vmem:[#allocation118_spill] sm:$0xff]  ;;  %vm3832_vm13 = vcmp.eq.f32.partialorder %v11949_v61, inf  ;;  %v11979_v53 = vld [vmem:[#allocation141_spill] sm:$0xff] }
 0x418   : > { %11967 = vst [vmem:[#allocation185_spill] sm:$0xff] %v9907_v47  ;;  %v6481_v0 = vpop.eup %6480  ;;  %6492 = vrsqrt.f32 %v11974_v25  ;;  %v3831_v9 = vmul.f32 %v6479_v37, %v11949_v61  ;;  %v3819_v14 = vsel %vm3818_vm8, %v11946_v46, %v3817_v34  ;;  %vm3881_vm14 = vcmp.eq.f32.partialorder %v11950_v56, inf  ;;  %v11981_v34 = vld [vmem:[#allocation123_spill] sm:$0xff] }
 0x419   : > { %v9921_v47 = vpop.permute.xlu0 %4201  ;;  %v6483_v21 = vpop.eup %6482  ;;  %v3880_v38 = vmul.f32 %v6481_v0, %v11950_v56  ;;  %6494 = vrsqrt.f32 %v11977_v57  ;;  %v3868_v0 = vsel %vm3867_vm10, %v11947_v26, %v3866_v6  ;;  %vm3869_vm15 = vcmp.eq.f32.partialorder %v11947_v26, 0.0 }
 0x41a   : > { %11970 = vst [vmem:[#allocation179_spill] sm:$0xff] %v9921_v47  ;;  %v3845_v27 = vmul.f32 %v6483_v21, %v11953_v51  ;;  %6496 = vrsqrt.f32 %v11979_v53  ;;  %v6485_v47 = vpop.eup %6484  ;;  %vm3846_vm0 = vcmp.eq.f32.partialorder %v11953_v51, inf  ;;  %v3870_v5 = vand.u32 2147483648, %v11947_v26  ;;  %v11982_v21 = vld [vmem:[#allocation150_spill] sm:$0xff] }
 0x41b   : > { %v9941_v31 = vpop.permute.xlu1 %4203  ;;  %6498 = vrsqrt.f32 %v11981_v34  ;;  %vm3834_vm1 = vcmp.eq.f32.partialorder %v11949_v61, 0.0  ;;  %v3882_v6 = vsel %vm3881_vm14, %v11950_v56, %v3880_v38  ;;  %v3849_v18 = vand.u32 2147483648, %v11953_v51 }
 0x41c   : > { %11975 = vst [vmem:[#allocation191_spill] sm:$0xff] %v9941_v31  ;;  %6500 = vrsqrt.f32 %v11982_v21  ;;  %vm3883_vm5 = vcmp.eq.f32.partialorder %v11950_v56, 0.0  ;;  %v3884_v22 = vand.u32 2147483648, %v11950_v56  ;;  %v3894_v36 = vmul.f32 %v6485_v47, %v11962_v11  ;;  %v12002_v56 = vld [vmem:[#allocation16_spill] sm:$0xff] }
 0x41d   : > { %v9956_v31 = vpop.permute.xlu0 %4205  ;;  %6502 = vrsqrt.f32 %v11984_v39  ;;  %v6487_v54 = vpop.eup %6486  ;;  %vm3848_vm7 = vcmp.eq.f32.partialorder %v11953_v51, 0.0  ;;  %v9996_v60 = vsel %vm3806_vm9, %v3807_v28, %v3805_v8  ;;  %v10000_v47 = vsel %vm3855_vm11, %v3856_v50, %v3854_v63  ;;  %v11995_v28 = vld [vmem:[#allocation166_spill] sm:$0xff] }
 0x41e   : > { %11978 = vst [vmem:[#allocation188_spill] sm:$0xff] %v9956_v31  ;;  %v3835_v31 = vand.u32 2147483648, %v11949_v61  ;;  %6504 = vrsqrt.f32 %v11985_v12  ;;  %v6489_v38 = vpop.eup %6488  ;;  %11988 = vst [vmem:[#allocation197_spill] sm:$0xff] %v9996_v60  ;;  %vm3895_vm8 = vcmp.eq.f32.partialorder %v11962_v11, inf  ;;  %v10016_v7 = vsel %vm3869_vm15, %v3870_v5, %v3868_v0  ;;  %v12005_v0 = vld [vmem:[#allocation160_spill] sm:$0xff] }
 0x41f   : > { %v9965_v37 = vpop.permute.xlu1 %4207  ;;  %6506 = vrsqrt.f32 %v11987_v29  ;;  %11989 = vst [vmem:[#allocation102_spill] sm:$0xff] %v10000_v47  ;;  %11994 = vst [vmem:[#allocation204_spill] sm:$0xff] %v10016_v7  ;;  %v3859_v8 = vmul.f32 %v6487_v54, %v11965_v32  ;;  %v10024_v50 = vsel %vm3883_vm5, %v3884_v22, %v3882_v6  ;;  %vm3860_vm9 = vcmp.eq.f32.partialorder %v11965_v32, inf  ;;  %v12001_v22 = vld [vmem:[#allocation182_spill] sm:$0xff]  ;;  %v12009_v47 = vld [vmem:[#allocation193_spill] sm:$0xff] }
 0x420   : > { %11980 = vst [vmem:[#allocation187_spill] sm:$0xff] %v9965_v37  ;;  %v3833_v37 = vsel %vm3832_vm13, %v11949_v61, %v3831_v9  ;;  %v3847_v9 = vsel %vm3846_vm0, %v11953_v51, %v3845_v27  ;;  %6508 = vrsqrt.f32 %v11990_v20  ;;  %v10008_v51 = vsel %vm3820_vm12, %v3821_v33, %v3819_v14  ;;  %11997 = vst [vmem:[#allocation107_spill] sm:$0xff] %v10024_v50  ;;  %v11998_v61 = vld [vmem:[#allocation175_spill] sm:$0xff] }
 0x421   : > { %v9976_v62 = vpop.permute.xlu0 %4209  ;;  %11992 = vst [vmem:[#allocation195_spill] sm:$0xff] %v10008_v51  ;;  %v10012_v30 = vsel %vm3834_vm1, %v3835_v31, %v3833_v37  ;;  %6510 = vrsqrt.f32 %v11995_v28  ;;  %v10020_v63 = vsel %vm3848_vm7, %v3849_v18, %v3847_v9  ;;  %v3908_v33 = vmul.f32 %v6489_v38, %v11966_v45  ;;  %v12000_v18 = vld [vmem:[#allocation151_spill] sm:$0xff]  ;;  %v12006_v9 = vld [vmem:[#allocation189_spill] sm:$0xff] }
 0x422   : > { %11983 = vst [vmem:[#allocation5_spill] sm:$0xff] %v9976_v62  ;;  %11993 = vst [vmem:[#allocation9_spill] sm:$0xff] %v10012_v30  ;;  %6512 = vrsqrt.f32 %v11998_v61  ;;  %v3896_v26 = vsel %vm3895_vm8, %v11962_v11, %v3894_v36  ;;  %vm3897_vm10 = vcmp.eq.f32.partialorder %v11962_v11, 0.0  ;;  %vm3909_vm11 = vcmp.eq.f32.partialorder %v11966_v45, inf  ;;  %v12008_v50 = vld [vmem:[#allocation167_spill] sm:$0xff] }
 0x423   : > { %v9987_v62 = vpop.permute.xlu1 %4211  ;;  %11996 = vst [vmem:[#allocation203_spill] sm:$0xff] %v10020_v63  ;;  %6514 = vrsqrt.f32 %v12000_v18  ;;  %v12003_v5 = vmax.f32 %v12002_v56, 0.0  ;;  %vm3874_vm12 = vcmp.eq.f32.partialorder %v11969_v41, inf  ;;  %v3863_v27 = vand.u32 2147483648, %v11965_v32 }
 0x424   : > { %11986 = vst [vmem:[#allocation198_spill] sm:$0xff] %v9987_v62  ;;  %v6491_v62 = vpop.eup %6490  ;;  %6516 = vrsqrt.f32 %v12001_v22  ;;  %v3898_v36 = vand.u32 2147483648, %v11962_v11  ;;  %v3861_v6 = vsel %vm3860_vm9, %v11965_v32, %v3859_v8  ;;  %vm3862_vm13 = vcmp.eq.f32.partialorder %v11965_v32, 0.0  ;;  %v12022_v11 = vld [vmem:[#allocation13_spill] sm:$0xff] }
 0x425   : > { %v10004_v44 = vpop.permute.xlu0 %4213  ;;  %v6493_v46 = vpop.eup %6492  ;;  %v3873_v54 = vmul.f32 %v6491_v62, %v11969_v41  ;;  %6518 = vrsqrt.f32 %v12005_v0  ;;  %vm3923_vm14 = vcmp.eq.f32.partialorder %v11974_v25, inf  ;;  %v3910_v56 = vsel %vm3909_vm11, %v11966_v45, %v3908_v33 }
 0x426   : > { %11991 = vst [vmem:[#allocation196_spill] sm:$0xff] %v10004_v44  ;;  %v6495_v62 = vpop.eup %6494  ;;  %v3922_v37 = vmul.f32 %v6493_v46, %v11974_v25  ;;  %6520 = vrsqrt.f32 %v12006_v9  ;;  %vm3911_vm15 = vcmp.eq.f32.partialorder %v11966_v45, 0.0  ;;  %vm3876_vm0 = vcmp.eq.f32.partialorder %v11969_v41, 0.0 }
 0x427   : > { %v10028_v31 = vpop.permute.xlu1 %4215  ;;  %6522 = vrsqrt.f32 %v12008_v50  ;;  %v3875_v46 = vsel %vm3874_vm12, %v11969_v41, %v3873_v54  ;;  %v3887_v44 = vmul.f32 %v6495_v62, %v11977_v57  ;;  %v3926_v30 = vand.u32 2147483648, %v11974_v25  ;;  %v12013_v54 = vld [vmem:[#allocation176_spill] sm:$0xff] }
 0x428   : > { %11999 = vst [vmem:[#allocation202_spill] sm:$0xff] %v10028_v31  ;;  %v3877_v31 = vand.u32 2147483648, %v11969_v41  ;;  %6524 = vrsqrt.f32 %v12009_v47  ;;  %vm3888_vm1 = vcmp.eq.f32.partialorder %v11977_v57, inf  ;;  %v3924_v62 = vsel %vm3923_vm14, %v11974_v25, %v3922_v37 }
 0x429   : > { %v10041_v14 = vpop.permute.xlu0 %4217  ;;  %6526 = vrsqrt.f32 %v12013_v54  ;;  %vm3925_vm5 = vcmp.eq.f32.partialorder %v11974_v25, 0.0  ;;  %v10083_v51 = vsel %vm3897_vm10, %v3898_v36, %v3896_v26  ;;  %v3891_v32 = vand.u32 2147483648, %v11977_v57 }
 0x42a   : > { %4833 = vxpose.xlu0.b32.start [1/16] %v12003_v5, 128  ;;  %12004 = vst [vmem:[#allocation201_spill] sm:$0xff] %v10041_v14  ;;  %v3912_v5 = vand.u32 2147483648, %v11966_v45  ;;  %v6497_v14 = vpop.eup %6496  ;;  %12017 = vst [vmem:[#allocation103_spill] sm:$0xff] %v10083_v51  ;;  %v12023_v26 = vmax.f32 %v12022_v11, 0.0  ;;  %vm3890_vm7 = vcmp.eq.f32.partialorder %v11977_v57, 0.0  ;;  %v10107_v41 = vsel %vm3925_vm5, %v3926_v30, %v3924_v62 }
 0x42b   : > { %v10051_v38 = vpop.permute.xlu1 %4219  ;;  %v6499_v8 = vpop.eup %6498  ;;  %v3936_v58 = vmul.f32 %v6497_v14, %v11979_v53  ;;  %v3889_v14 = vsel %vm3888_vm1, %v11977_v57, %v3887_v44  ;;  %12025 = vst [vmem:[#allocation113_spill] sm:$0xff] %v10107_v41  ;;  %vm3937_vm8 = vcmp.eq.f32.partialorder %v11979_v53, inf  ;;  %vm3939_vm9 = vcmp.eq.f32.partialorder %v11979_v53, 0.0 }
 0x42c   : > { %12007 = vst [vmem:[#allocation94_spill] sm:$0xff] %v10051_v38  ;;  %v12010_v38 = vld [vmem:[#allocation18_spill] sm:$0xff]  ;;  %v6501_v63 = vpop.eup %6500  ;;  %v10087_v24 = vsel %vm3911_vm15, %v3912_v5, %v3910_v56  ;;  %v3901_v36 = vmul.f32 %v6499_v8, %v11981_v34  ;;  %vm3902_vm10 = vcmp.eq.f32.partialorder %v11981_v34, inf  ;;  %v3940_v25 = vand.u32 2147483648, %v11979_v53 }
 0x42d   : > { %v12011_v7 = vmax.f32 %v12010_v38, 0.0  ;;  %v10064_v33 = vpop.permute.xlu0 %4221  ;;  %v6503_v60 = vpop.eup %6502  ;;  %v12014_v38 = vld [vmem:[#allocation194_spill] sm:$0xff]  ;;  %12018 = vst [vmem:[#allocation122_spill] sm:$0xff] %v10087_v24  ;;  %v3950_v44 = vmul.f32 %v6501_v63, %v11982_v21  ;;  %vm3904_vm11 = vcmp.eq.f32.partialorder %v11981_v34, 0.0  ;;  %v3905_v62 = vand.u32 2147483648, %v11981_v34 }
 0x42e   : > { %12012 = vst [vmem:[#allocation112_spill] sm:$0xff] %v10064_v33  ;;  %6528 = vrsqrt.f32 %v12014_v38  ;;  %v10079_v33 = vsel %vm3862_vm13, %v3863_v27, %v3861_v6  ;;  %v6505_v37 = vpop.eup %6504  ;;  %v12021_v6 = vld [vmem:[#allocation183_spill] sm:$0xff]  ;;  %v12026_v56 = vld [vmem:[#allocation190_spill] sm:$0xff]  ;;  %vm3916_vm12 = vcmp.eq.f32.partialorder %v11984_v39, inf  ;;  %vm3930_vm13 = vcmp.eq.f32.partialorder %v11987_v29, inf }
 0x42f   : > { %4834 = vxpose.xlu0.b32.cont [2/16] %v12011_v7, 128  ;;  %v10075_v7 = vpop.permute.xlu1 %4223  ;;  %12016 = vst [vmem:[#allocation117_spill] sm:$0xff] %v10079_v33  ;;  %6530 = vrsqrt.f32 %v12019_v59  ;;  %v6507_v27 = vpop.eup %6506  ;;  %vm3951_vm14 = vcmp.eq.f32.partialorder %v11982_v21, inf  ;;  %v3903_v41 = vsel %vm3902_vm10, %v11981_v34, %v3901_v36  ;;  %v3919_v51 = vand.u32 2147483648, %v11984_v39 }
 0x430   : > { %12015 = vst [vmem:[#allocation98_spill] sm:$0xff] %v10075_v7  ;;  %v10093_v7 = vsel %vm3876_vm0, %v3877_v31, %v3875_v46  ;;  %6532 = vrsqrt.f32 %v12021_v6  ;;  %v6509_v31 = vpop.eup %6508  ;;  %v3915_v46 = vmul.f32 %v6503_v60, %v11984_v39  ;;  %v3929_v8 = vmul.f32 %v6507_v27, %v11987_v29 }
 0x431   : > { %12020 = vst [vmem:[#allocation108_spill] sm:$0xff] %v10093_v7  ;;  %v10099_v45 = vpop.permute.xlu0 %4225  ;;  %6534 = vrsqrt.f32 %v12026_v56  ;;  %v6511_v5 = vpop.eup %6510  ;;  %v3943_v60 = vmul.f32 %v6509_v31, %v11990_v20  ;;  %v3938_v27 = vsel %vm3937_vm8, %v11979_v53, %v3936_v58  ;;  %vm3953_vm15 = vcmp.eq.f32.partialorder %v11982_v21, 0.0  ;;  %v12036_v53 = vld [vmem:[#allocation15_spill] sm:$0xff] }
 0x432   : > { %12024 = vst [vmem:[#allocation129_spill] sm:$0xff] %v10099_v45  ;;  %v6513_v30 = vpop.eup %6512  ;;  %v12028_v45 = vld [vmem:[#allocation75_spill] sm:$0xff]  ;;  %vm3944_vm0 = vcmp.eq.f32.partialorder %v11990_v20, inf  ;;  %vm3918_vm1 = vcmp.eq.f32.partialorder %v11984_v39, 0.0  ;;  %v3954_v58 = vand.u32 2147483648, %v11982_v21  ;;  %v3931_v33 = vsel %vm3930_vm13, %v11987_v29, %v3929_v8 }
 0x433   : > { %4835 = vxpose.xlu0.b32.cont [3/16] %v12023_v26, 128  ;;  %v10115_v11 = vpop.permute.xlu1 %4227  ;;  %v6515_v26 = vpop.eup %6514  ;;  %v12029_v63 = vmax.f32 %v12028_v45, 0.0  ;;  %vm3932_vm5 = vcmp.eq.f32.partialorder %v11987_v29, 0.0  ;;  %v3952_v7 = vsel %vm3951_vm14, %v11982_v21, %v3950_v44  ;;  %v10158_v42 = vsel %vm3890_vm7, %v3891_v32, %v3889_v14 }
 0x434   : > { %12027 = vst [vmem:[#allocation134_spill] sm:$0xff] %v10115_v11  ;;  %v6517_v24 = vpop.eup %6516  ;;  %v3957_v55 = vmul.f32 %v6515_v26, %v12000_v18  ;;  %v3945_v8 = vsel %vm3944_vm0, %v11990_v20, %v3943_v60  ;;  %vm3946_vm8 = vcmp.eq.f32.partialorder %v11990_v20, 0.0  ;;  %v3964_v15 = vmul.f32 %v6505_v37, %v11985_v12 }
 0x435   : > { %v10126_v11 = vpop.permute.xlu0 %4229  ;;  %v6519_v45 = vpop.eup %6518  ;;  %v12035_v26 = vmax.f32 %v12034_v4, 0.0  ;;  %vm3958_vm7 = vcmp.eq.f32.partialorder %v12000_v18, inf  ;;  %v3978_v14 = vmul.f32 %v6511_v5, %v11995_v28  ;;  %v10185_v4 = vsel %vm3953_vm15, %v3954_v58, %v3952_v7  ;;  %v12040_v58 = vld [vmem:[#allocation200_spill] sm:$0xff] }
 0x436   : > { %12030 = vst [vmem:[#allocation118_spill] sm:$0xff] %v10126_v11  ;;  %v3917_v11 = vsel %vm3916_vm12, %v11984_v39, %v3915_v46  ;;  %v6521_v36 = vpop.eup %6520  ;;  %v12033_v46 = vmax.f32 %v12032_v23, 0.0  ;;  %v10169_v23 = vsel %vm3904_vm11, %v3905_v62, %v3903_v41  ;;  %v10189_v39 = vsel %vm3939_vm9, %v3940_v25, %v3938_v27 }
 0x437   : > { %4836 = vxpose.xlu0.b32.cont [4/16] %v12029_v63, 128  ;;  %v10137_v31 = vpop.permute.xlu1 %4231  ;;  %v3933_v63 = vand.u32 2147483648, %v11987_v29  ;;  %v6523_v35 = vpop.eup %6522  ;;  %v10173_v57 = vsel %vm3918_vm1, %v3919_v51, %v3917_v11  ;;  %v10192_v51 = vmul.f32 %v6513_v30, %v11998_v61  ;;  %v3961_v41 = vand.u32 2147483648, %v12000_v18 }
 0x438   : > { %12031 = vst [vmem:[#allocation141_spill] sm:$0xff] %v10137_v31  ;;  %v3947_v31 = vand.u32 2147483648, %v11990_v20  ;;  %v6525_v44 = vpop.eup %6524  ;;  %vm3979_vm10 = vcmp.eq.f32.partialorder %v11995_v28, inf  ;;  %v3971_v21 = vmul.f32 %v6519_v45, %v12005_v0  ;;  %v12037_v7 = vmax.f32 %v12036_v53, 0.0  ;;  %v12042_v53 = vld [vmem:[#allocation14_spill] sm:$0xff] }
 0x439   : > { %v10154_v19 = vpop.permute.xlu0 %4233  ;;  %v6527_v32 = vpop.eup %6526  ;;  %v10181_v37 = vsel %vm3932_vm5, %v3933_v63, %v3931_v33  ;;  %v4006_v33 = vmul.f32 %v6517_v24, %v12001_v22  ;;  %v3959_v25 = vsel %vm3958_vm7, %v12000_v18, %v3957_v55  ;;  %vm3960_vm9 = vcmp.eq.f32.partialorder %v12000_v18, 0.0  ;;  %v12038_v24 = vld [vmem:[#allocation25_spill] sm:$0xff] }
 0x43a   : > { %4865 = vxpose.xlu1.b32.start [1/16] %v12035_v26, 128  ;;  %v10197_v5 = vsel %vm3946_vm8, %v3947_v31, %v3945_v8  ;;  %v3985_v30 = vmul.f32 %v6523_v35, %v12008_v50  ;;  %v10212_v62 = vmul.f32 %v6521_v36, %v12006_v9  ;;  %vm4042_vm11 = vcmp.eq.f32.partialorder %v12014_v38, inf }
 0x43b   : > { %4837 = vxpose.xlu0.b32.cont [5/16] %v12033_v46, 128  ;;  %v10177_v60 = vpop.permute.xlu1 %4235  ;;  %v6529_v34 = vpop.eup %6528  ;;  %v12039_v27 = vmax.f32 %v12038_v24, 0.0  ;;  %v3982_v45 = vand.u32 2147483648, %v11995_v28  ;;  %6536 = vrsqrt.f32 %v12040_v58  ;;  %v3980_v35 = vsel %vm3979_vm10, %v11995_v28, %v3978_v14 }
 0x43c   : > { %v6531_v29 = vpop.eup %6530  ;;  %v4041_v63 = vmul.f32 %v6529_v34, %v12014_v38  ;;  %vm3981_vm12 = vcmp.eq.f32.partialorder %v11995_v28, 0.0  ;;  %v4034_v36 = vmul.f32 %v6525_v44, %v12009_v47  ;;  %vm3986_vm13 = vcmp.eq.f32.partialorder %v12008_v50, inf }
 0x43d   : > { %v10204_v11 = vpop.permute.xlu0 %4237  ;;  %v6533_v20 = vpop.eup %6532  ;;  %v3999_v26 = vmul.f32 %v6527_v32, %v12013_v54  ;;  %v10232_v34 = vmul.f32 %v6531_v29, %v12019_v59  ;;  %v10240_v28 = vsel %vm3960_vm9, %v3961_v41, %v3959_v25  ;;  %vm3965_vm14 = vcmp.eq.f32.partialorder %v11985_v12, inf  ;;  %v12045_v32 = vld [vmem:[#allocation32_spill] sm:$0xff] }
 0x43e   : > { %4866 = vxpose.xlu1.b32.cont [2/16] %v12039_v27, 128  ;;  %v6535_v31 = vpop.eup %6534  ;;  %v4013_v44 = vmul.f32 %v6533_v20, %v12021_v6  ;;  %vm4044_vm15 = vcmp.eq.f32.partialorder %v12014_v38, 0.0  ;;  %v12046_v29 = vmax.f32 %v12045_v32, 0.0  ;;  %v10250_v27 = vsel %vm3981_vm12, %v3982_v45, %v3980_v35  ;;  %v12048_v45 = vld [vmem:[#allocation76_spill] sm:$0xff] }
 0x43f   : > { %4838 = vxpose.xlu0.b32.cont [6/16] %v12037_v7, 128  ;;  %v10220_v55 = vpop.permute.xlu1 %4239  ;;  %12041 = vst [vmem:[#allocation123_spill] sm:$0xff] %v10232_v34  ;;  %v12043_v7 = vmax.f32 %v12042_v53, 0.0  ;;  %v10245_v14 = vmul.f32 %v6535_v31, %v12026_v56  ;;  %vm3972_vm0 = vcmp.eq.f32.partialorder %v12005_v0, inf  ;;  %v4043_v18 = vsel %vm4042_vm11, %v12014_v38, %v4041_v63 }
 0x440   : > { %v3987_v25 = vsel %vm3986_vm13, %v12008_v50, %v3985_v30  ;;  %vm3988_vm1 = vcmp.eq.f32.partialorder %v12008_v50, 0.0  ;;  %vm4007_vm5 = vcmp.eq.f32.partialorder %v12001_v22, inf  ;;  %v3989_v20 = vand.u32 2147483648, %v12008_v50 }
 0x441   : > { %v10236_v24 = vpop.permute.xlu0 %4241  ;;  %v3966_v31 = vsel %vm3965_vm14, %v11985_v12, %v3964_v15  ;;  %vm3967_vm8 = vcmp.eq.f32.partialorder %v11985_v12, 0.0  ;;  %vm4014_vm7 = vcmp.eq.f32.partialorder %v12021_v6, inf  ;;  %v12049_v35 = vmax.f32 %v12048_v45, 0.0 }
 0x442   : > { %12044 = vst [vmem:[#allocation150_spill] sm:$0xff] %v10236_v24  ;;  %4867 = vxpose.xlu1.b32.cont [3/16] %v12046_v29, 128  ;;  %v3968_v53 = vand.u32 2147483648, %v11985_v12  ;;  %v3973_v30 = vsel %vm3972_vm0, %v12005_v0, %v3971_v21  ;;  %vm3974_vm10 = vcmp.eq.f32.partialorder %v12005_v0, 0.0  ;;  %vm3993_vm9 = vcmp.eq.f32.partialorder %v11998_v61, inf }
 0x443   : > { %4839 = vxpose.xlu0.b32.cont [7/16] %v12043_v7, 128  ;;  %v10256_v41 = vpop.permute.xlu1 %4243  ;;  %v12051_v7 = vld [vmem:[#allocation27_spill] sm:$0xff]  ;;  %v3975_v15 = vand.u32 2147483648, %v12005_v0  ;;  %v4008_v29 = vsel %vm4007_vm5, %v12001_v22, %v4006_v33  ;;  %vm4009_vm11 = vcmp.eq.f32.partialorder %v12001_v22, 0.0  ;;  %vm4000_vm12 = vcmp.eq.f32.partialorder %v12013_v54, inf  ;;  %v12054_v33 = vld [vmem:[#allocation22_spill] sm:$0xff] }
 0x444   : > { %12047 = vst [vmem:[#allocation130_spill] sm:$0xff] %v10256_v41  ;;  %v12052_v32 = vmax.f32 %v12051_v7, 0.0  ;;  %v4015_v21 = vsel %vm4014_vm7, %v12021_v6, %v4013_v44  ;;  %vm4016_vm13 = vcmp.eq.f32.partialorder %v12021_v6, 0.0  ;;  %vm4035_vm14 = vcmp.eq.f32.partialorder %v12009_v47, inf }
 0x445   : > { %v10267_v63 = vpop.permute.xlu0 %4245  ;;  %v4017_v7 = vand.u32 2147483648, %v12021_v6  ;;  %vm3995_vm0 = vcmp.eq.f32.partialorder %v11998_v61, 0.0  ;;  %vm4021_vm5 = vcmp.eq.f32.partialorder %v12006_v9, inf  ;;  %v12055_v8 = vmax.f32 %v12054_v33, 0.0 }
 0x446   : > { %12050 = vst [vmem:[#allocation159_spill] sm:$0xff] %v10267_v63  ;;  %4868 = vxpose.xlu1.b32.cont [4/16] %v12052_v32, 128  ;;  %v3994_v32 = vsel %vm3993_vm9, %v11998_v61, %v10192_v51  ;;  %v3996_v44 = vand.u32 2147483648, %v11998_v61  ;;  %v4001_v34 = vsel %vm4000_vm12, %v12013_v54, %v3999_v26  ;;  %v4003_v41 = vand.u32 2147483648, %v12013_v54 }
 0x447   : > { %4840 = vxpose.xlu0.b32.cont [8/16] %v12049_v35, 128  ;;  %v10279_v45 = vpop.permute.xlu1 %4247  ;;  %v4010_v35 = vand.u32 2147483648, %v12001_v22  ;;  %v4038_v24 = vand.u32 2147483648, %v12009_v47  ;;  %vm4002_vm7 = vcmp.eq.f32.partialorder %v12013_v54, 0.0  ;;  %v4036_v51 = vsel %vm4035_vm14, %v12009_v47, %v4034_v36 }
 0x448   : > { %12053 = vst [vmem:[#allocation135_spill] sm:$0xff] %v10279_v45  ;;  %v12057_v45 = vld [vmem:[#allocation34_spill] sm:$0xff]  ;;  %vm4037_vm9 = vcmp.eq.f32.partialorder %v12009_v47, 0.0  ;;  %v10308_v26 = vsel %vm3988_vm1, %v3989_v20, %v3987_v25  ;;  %vm4023_vm12 = vcmp.eq.f32.partialorder %v12006_v9, 0.0  ;;  %vm4028_vm6 = vcmp.eq.f32.partialorder %v12026_v56, inf  ;;  %v12060_v25 = vld [vmem:[#allocation17_spill] sm:$0xff] }
 0x449   : > { %v10292_v46 = vpop.permute.xlu0 %4249  ;;  %v12058_v63 = vmax.f32 %v12057_v45, 0.0  ;;  %v10316_v36 = vsel %vm3967_vm8, %v3968_v53, %v3966_v31  ;;  %v10320_v45 = vsel %vm3974_vm10, %v3975_v15, %v3973_v30  ;;  %v10324_v50 = vsel %vm4009_vm11, %v4010_v35, %v4008_v29  ;;  %v12063_v15 = vld [vmem:[#allocation29_spill] sm:$0xff] }
 0x44a   : > { %12056 = vst [vmem:[#allocation142_spill] sm:$0xff] %v10292_v46  ;;  %v4022_v46 = vsel %vm4021_vm5, %v12006_v9, %v10212_v62  ;;  %v10328_v62 = vsel %vm4016_vm13, %v4017_v7, %v4015_v21  ;;  %v12061_v20 = vmax.f32 %v12060_v25, 0.0  ;;  %v10334_v12 = vsel %vm3995_vm0, %v3996_v44, %v3994_v32  ;;  %v12067_v7 = vld [vmem:[#allocation70_spill] sm:$0xff]  ;;  %v12068_v44 = vld [vmem:[#allocation3_spill] sm:$0xff] }
 0x44b   : > { %4841 = vxpose.xlu0.b32.cont [9/16] %v12055_v8, 128  ;;  %4869 = vxpose.xlu1.b32.cont [5/16] %v12058_v63, 128  ;;  %v4024_v8 = vand.u32 2147483648, %v12006_v9  ;;  %v10304_v33 = vpop.permute.xlu1 %4251  ;;  %v6537_v63 = vpop.eup %6536  ;;  %v10338_v0 = vsel %vm4002_vm7, %v4003_v41, %v4001_v34  ;;  %v10342_v22 = vsel %vm4037_vm9, %v4038_v24, %v4036_v51  ;;  %v12062_v6 = vand.u32 2147483648, %v12014_v38  ;;  %v12065_v34 = vld [vmem:[#allocation72_spill] sm:$0xff] }
 0x44c   : > { %12059 = vst [vmem:[#allocation166_spill] sm:$0xff] %v10304_v33  ;;  %v12064_v61 = vmax.f32 %v12063_v15, 0.0  ;;  %v10360_v47 = vsel %vm4028_vm6, %v12026_v56, %v10245_v14  ;;  %v10363_v38 = vmul.f32 %v6537_v63, %v12040_v58  ;;  %v4586_v24 = vsel %vm4573_vm2, %v12065_v34, %v9571_v43 }
 0x44d   : > { %v6026_v33 = vpop.permute.xlu0 %6025  ;;  %v10348_v31 = vsel %vm4044_vm15, %v12062_v6, %v4043_v18  ;;  %v10354_v54 = vsel %vm4023_vm12, %v4024_v8, %v4022_v46  ;;  %v12066_v18 = vld [vmem:[#allocation67_spill] sm:$0xff]  ;;  %v4031_v41 = vand.u32 2147483648, %v12026_v56  ;;  %v4584_v32 = vsel %vm4573_vm2, %v12067_v7, %v9540_v40  ;;  %v12069_v8 = vld [vmem:[#allocation24_spill] sm:$0xff] }
 0x44e   : > { %v6028_v53 = vunpack.i.h.bf16 %v6026_v33  ;;  %v6027_v30 = vunpack.i.l.bf16 %v6026_v33  ;;  %v4587_v9 = vsel %vm4573_vm2, %v12066_v18, %v9574_v52  ;;  %v4585_v43 = vsel %vm4573_vm2, %v12068_v44, %v9555_v3 }
 0x44f   : > { %4842 = vxpose.xlu0.b32.cont [10/16] %v12061_v20, 128  ;;  %4870 = vxpose.xlu1.b32.cont [6/16] %v12064_v61, 128  ;;  %v6021_v46 = vpop.permute.xlu1 %6020  ;;  %v12070_v33 = vmax.f32 %v12069_v8, 0.0  ;;  %vm12071_vm6 = vcmask 89088   ;;  %v12087_v8 = vld [vmem:[#allocation31_spill] sm:$0xff] }
 0x450   : > { %v4652_v29 = vsel %vm4638_vm3, %v4587_v9, %v6028_v53  ;;  %v4651_v14 = vsel %vm4638_vm3, %v4586_v24, %v6027_v30  ;;  %v6023_v35 = vunpack.i.h.bf16 %v6021_v46  ;;  %v6022_v21 = vunpack.i.l.bf16 %v6021_v46  ;;  %vm12072_vm15 = vmmov %vm12071_vm6  ;;  %v12076_v30 = vld [vmem:[#allocation8_spill] sm:$0xff] }
 0x451   : > { %v4717_v52 = vsel %vm4703_vm4, %v4652_v29, %v9785_v49  ;;  %v4716_v51 = vsel %vm4703_vm4, %v4651_v14, %v9678_v13  ;;  %v6036_v63 = vpop.permute.xlu0 %6035  ;;  %v12073_v49 = vld [vmem:[#allocation36_spill] sm:$0xff]  ;;  %v12075_v13 = vld [vmem:[#allocation7_spill] sm:$0xff]  ;;  %v4591_v15 = vsel %vm4573_vm2, %v12076_v30, %v9602_v10  ;;  %vm12077_vm1 = vmmov %vm12071_vm6 }
 0x452   : > { %4782 = vst.msk [vmem:[%s9388_s14 + $0x68] sm:$0xff] %vm12071_vm6, %v4717_v52  ;;  %v4650_v40 = vsel %vm4638_vm3, %v4585_v43, %v6023_v35  ;;  %v4649_v3 = vsel %vm4638_vm3, %v4584_v32, %v6022_v21  ;;  %v6038_v25 = vunpack.i.h.bf16 %v6036_v63  ;;  %v6037_v20 = vunpack.i.l.bf16 %v6036_v63  ;;  %vm12078_vm8 = vmmov %vm12077_vm1  ;;  %v12079_v10 = vld [vmem:[#allocation74_spill] sm:$0xff]  ;;  %v12082_v21 = vld [vmem:[#allocation137_spill] sm:$0xff] }
 0x453   : > { %4843 = vxpose.xlu0.b32.cont [11/16] %v12070_v33, 128  ;;  %4781 = vst.msk [vmem:[%s9388_s14 + $0x60] sm:$0xff] %vm12072_vm15, %v4716_v51  ;;  %v12074_v6 = vmax.f32 %v12073_v49, 0.0  ;;  %v4590_v53 = vsel %vm4573_vm2, %v12075_v13, %v9599_v48  ;;  %v4714_v61 = vsel %vm4703_vm4, %v4649_v3, %v9682_v1  ;;  %v4715_v34 = vsel %vm4703_vm4, %v4650_v40, %v9726_v16  ;;  %v6031_v24 = vpop.permute.xlu1 %6030  ;;  %v12080_v1 = vld [vmem:[#allocation6_spill] sm:$0xff]  ;;  %v12081_v16 = vld [vmem:[#allocation173_spill] sm:$0xff]  ;;  %v12083_v32 = vld [vmem:[#allocation19_spill] sm:$0xff] }
 0x454   : > { %4779 = vst.msk [vmem:[%s9388_s14 + $0x50] sm:$0xff] %vm12077_vm1, %v4714_v61  ;;  %v4656_v18 = vsel %vm4638_vm3, %v4591_v15, %v6038_v25  ;;  %v4655_v48 = vsel %vm4638_vm3, %v4590_v53, %v6037_v20  ;;  %v6033_v9 = vunpack.i.h.bf16 %v6031_v24  ;;  %v6032_v46 = vunpack.i.l.bf16 %v6031_v24  ;;  %vm12085_vm10 = vmmov %vm12077_vm1  ;;  %v12089_v63 = vld [vmem:[#allocation126_spill] sm:$0xff]  ;;  %v12091_v25 = vld [vmem:[#allocation63_spill] sm:$0xff] }
 0x455   : > { %4871 = vxpose.xlu1.b32.cont [7/16] %v12074_v6, 128  ;;  %4780 = vst.msk [vmem:[%s9388_s14 + $0x58] sm:$0xff] %vm12078_vm8, %v4715_v34  ;;  %v4588_v29 = vsel %vm4573_vm2, %v12079_v10, %v9585_v2  ;;  %v4589_v14 = vsel %vm4573_vm2, %v12080_v1, %v9588_v17  ;;  %v4721_v35 = vsel %vm4703_vm4, %v4656_v18, %v12081_v16  ;;  %v12084_v44 = vmax.f32 %v12083_v32, 0.0  ;;  %v6046_v43 = vpop.permute.xlu0 %6045  ;;  %vm12086_vm11 = vmmov %vm12077_vm1  ;;  %v12090_v40 = vld [vmem:[#allocation10_spill] sm:$0xff]  ;;  %v12092_v20 = vld [vmem:[#allocation95_spill] sm:$0xff] }
 0x456   : > { %v4720_v7 = vsel %vm4703_vm4, %v4655_v48, %v12082_v21  ;;  %4786 = vst.msk [vmem:[%s9388_s14 + $0x88] sm:$0xff] %vm12085_vm10, %v4721_v35  ;;  %v4654_v2 = vsel %vm4638_vm3, %v4589_v14, %v6033_v9  ;;  %v4653_v17 = vsel %vm4638_vm3, %v4588_v29, %v6032_v46  ;;  %v6048_v52 = vunpack.i.h.bf16 %v6046_v43  ;;  %v12093_v6 = vld [vmem:[#allocation66_spill] sm:$0xff]  ;;  %v12094_v53 = vld [vmem:[#allocation147_spill] sm:$0xff]  ;;  %vm12095_vm13 = vmmov %vm12077_vm1 }
 0x457   : > { %4844 = vxpose.xlu0.b32.cont [12/16] %v12084_v44, 128  ;;  %4785 = vst.msk [vmem:[%s9388_s14 + $0x80] sm:$0xff] %vm12086_vm11, %v4720_v7  ;;  %v6047_v51 = vunpack.i.l.bf16 %v6046_v43  ;;  %v12088_v33 = vmax.f32 %v12087_v8, 0.0  ;;  %v4594_v3 = vsel %vm4573_vm2, %v12090_v40, %v12089_v63  ;;  %v4595_v49 = vsel %vm4573_vm2, %v12092_v20, %v12091_v25  ;;  %v6041_v15 = vpop.permute.xlu1 %6040  ;;  %vm12096_vm14 = vmmov %vm12077_vm1  ;;  %v12097_v48 = vld [vmem:[#allocation89_spill] sm:$0xff]  ;;  %v12099_v10 = vld [vmem:[#allocation127_spill] sm:$0xff] }
 0x458   : > { %v4718_v13 = vsel %vm4703_vm4, %v4653_v17, %v12093_v6  ;;  %v4719_v30 = vsel %vm4703_vm4, %v4654_v2, %v12094_v53  ;;  %v4660_v61 = vsel %vm4638_vm3, %v4595_v49, %v6048_v52  ;;  %v6043_v24 = vunpack.i.h.bf16 %v6041_v15  ;;  %v12098_v9 = vld [vmem:[#allocation73_spill] sm:$0xff]  ;;  %v12101_v14 = vld [vmem:[#allocation71_spill] sm:$0xff]  ;;  %v12103_v7 = vld [vmem:[#allocation26_spill] sm:$0xff] }
 0x459   : > { %4872 = vxpose.xlu1.b32.cont [8/16] %v12088_v33, 128  ;;  %4783 = vst.msk [vmem:[%s9388_s14 + $0x70] sm:$0xff] %vm12095_vm13, %v4718_v13  ;;  %v4659_v34 = vsel %vm4638_vm3, %v4594_v3, %v6047_v51  ;;  %v6042_v18 = vunpack.i.l.bf16 %v6041_v15  ;;  %v4592_v46 = vsel %vm4573_vm2, %v12098_v9, %v12097_v48  ;;  %v12100_v29 = vld [vmem:[#allocation93_spill] sm:$0xff]  ;;  %v4725_v16 = vsel %vm4703_vm4, %v4660_v61, %v12101_v14  ;;  %v12102_v35 = vld [vmem:[#allocation163_spill] sm:$0xff]  ;;  %v6056_v44 = vpop.permute.xlu0 %6055  ;;  %vm12105_vm0 = vmmov %vm12077_vm1 }
 0x45a   : > { %4784 = vst.msk [vmem:[%s9388_s14 + $0x78] sm:$0xff] %vm12096_vm14, %v4719_v30  ;;  %v4593_v1 = vsel %vm4573_vm2, %v12100_v29, %v12099_v10  ;;  %v4724_v21 = vsel %vm4703_vm4, %v4659_v34, %v12102_v35  ;;  %v12104_v32 = vmax.f32 %v12103_v7, 0.0  ;;  %vm12106_vm5 = vmmov %vm12105_vm0  ;;  %v6058_v17 = vunpack.i.h.bf16 %v6056_v44  ;;  %v12107_v51 = vld [vmem:[#allocation38_spill] sm:$0xff]  ;;  %v12110_v63 = vld [vmem:[#allocation100_spill] sm:$0xff] }
 0x45b   : > { %4790 = vst.msk [vmem:[%s9388_s14 + $0xa8] sm:$0xff] %vm12105_vm0, %v4725_v16  ;;  %v4658_v43 = vsel %vm4638_vm3, %v4593_v1, %v6043_v24  ;;  %v4657_v2 = vsel %vm4638_vm3, %v4592_v46, %v6042_v18  ;;  %v6057_v52 = vunpack.i.l.bf16 %v6056_v44  ;;  %v12108_v8 = vmax.f32 %v12107_v51, 0.0  ;;  %v12109_v33 = vld [vmem:[#allocation138_spill] sm:$0xff]  ;;  %v12112_v25 = vld [vmem:[#allocation99_spill] sm:$0xff]  ;;  %v12114_v13 = vld [vmem:[#allocation169_spill] sm:$0xff]  ;;  %v6051_v30 = vpop.permute.xlu1 %6050 }
 0x45c   : > { %4845 = vxpose.xlu0.b32.cont [13/16] %v12104_v32, 128  ;;  %4789 = vst.msk [vmem:[%s9388_s14 + $0xa0] sm:$0xff] %vm12106_vm5, %v4724_v21  ;;  %v4598_v40 = vsel %vm4573_vm2, %v12110_v63, %v12109_v33  ;;  %v12111_v3 = vld [vmem:[#allocation90_spill] sm:$0xff]  ;;  %v4723_v53 = vsel %vm4703_vm4, %v4658_v43, %v12114_v13  ;;  %vm12115_vm7 = vmmov %vm12105_vm0  ;;  %v6053_v34 = vunpack.i.h.bf16 %v6051_v30  ;;  %v6052_v24 = vunpack.i.l.bf16 %v6051_v30  ;;  %v12117_v18 = vld [vmem:[#allocation144_spill] sm:$0xff] }
 0x45d   : > { %4873 = vxpose.xlu1.b32.cont [9/16] %v12108_v8, 128  ;;  %v4599_v20 = vsel %vm4573_vm2, %v12112_v25, %v12111_v3  ;;  %v12113_v49 = vld [vmem:[#allocation154_spill] sm:$0xff]  ;;  %vm12116_vm9 = vmmov %vm12105_vm0  ;;  %v4663_v61 = vsel %vm4638_vm3, %v4598_v40, %v6057_v52  ;;  %v12118_v48 = vld [vmem:[#allocation12_spill] sm:$0xff]  ;;  %v6066_v32 = vpop.permute.xlu0 %6065 }
 0x45e   : > { %v4722_v6 = vsel %vm4703_vm4, %v4657_v2, %v12113_v49  ;;  %4788 = vst.msk [vmem:[%s9388_s14 + $0x98] sm:$0xff] %vm12116_vm9, %v4723_v53  ;;  %v4664_v15 = vsel %vm4638_vm3, %v4599_v20, %v6058_v17  ;;  %v4596_v9 = vsel %vm4573_vm2, %v12118_v48, %v12117_v18  ;;  %v12119_v46 = vld [vmem:[#allocation143_spill] sm:$0xff]  ;;  %v12120_v10 = vld [vmem:[#allocation96_spill] sm:$0xff]  ;;  %v12123_v21 = vld [vmem:[#allocation21_spill] sm:$0xff]  ;;  %v6068_v2 = vunpack.i.h.bf16 %v6066_v32 }
 0x45f   : > { %4787 = vst.msk [vmem:[%s9388_s14 + $0x90] sm:$0xff] %vm12115_vm7, %v4722_v6  ;;  %v4597_v29 = vsel %vm4573_vm2, %v12120_v10, %v12119_v46  ;;  %v12121_v1 = vld [vmem:[#allocation11_spill] sm:$0xff]  ;;  %v12122_v16 = vld [vmem:[#allocation172_spill] sm:$0xff]  ;;  %v12124_v7 = vmax.f32 %v12123_v21, 0.0  ;;  %vm12125_vm12 = vmmov %vm12105_vm0  ;;  %v4661_v43 = vsel %vm4638_vm3, %v4596_v9, %v6052_v24  ;;  %v6067_v17 = vunpack.i.l.bf16 %v6066_v32  ;;  %v6061_v53 = vpop.permute.xlu1 %6060 }
 0x460   : > { %v4729_v14 = vsel %vm4703_vm4, %v4664_v15, %v12121_v1  ;;  %v4728_v35 = vsel %vm4703_vm4, %v4663_v61, %v12122_v16  ;;  %vm12126_vm6 = vmmov %vm12105_vm0  ;;  %v4662_v44 = vsel %vm4638_vm3, %v4597_v29, %v6053_v34  ;;  %v12127_v52 = vld [vmem:[#allocation33_spill] sm:$0xff]  ;;  %v12129_v8 = vld [vmem:[#allocation92_spill] sm:$0xff]  ;;  %v6063_v61 = vunpack.i.h.bf16 %v6061_v53 }
 0x461   : > { %4846 = vxpose.xlu0.b32.cont [14/16] %v12124_v7, 128  ;;  %4794 = vst.msk [vmem:[%s9388_s14 + $0xc8] sm:$0xff] %vm12125_vm12, %v4729_v14  ;;  %v12128_v51 = vmax.f32 %v12127_v52, 0.0  ;;  %v12130_v33 = vld [vmem:[#allocation106_spill] sm:$0xff]  ;;  %v12131_v40 = vld [vmem:[#allocation148_spill] sm:$0xff]  ;;  %v12132_v3 = vld [vmem:[#allocation105_spill] sm:$0xff]  ;;  %v6062_v34 = vunpack.i.l.bf16 %v6061_v53  ;;  %v6076_v7 = vpop.permute.xlu0 %6075 }
 0x462   : > { %4793 = vst.msk [vmem:[%s9388_s14 + $0xc0] sm:$0xff] %vm12126_vm6, %v4728_v35  ;;  %v4602_v63 = vsel %vm4573_vm2, %v12130_v33, %v12129_v8  ;;  %v4603_v25 = vsel %vm4573_vm2, %v12132_v3, %v12131_v40  ;;  %v12133_v20 = vld [vmem:[#allocation91_spill] sm:$0xff]  ;;  %v12134_v6 = vld [vmem:[#allocation4_spill] sm:$0xff]  ;;  %vm12135_vm15 = vmmov %vm12105_vm0 }
 0x463   : > { %4874 = vxpose.xlu1.b32.cont [10/16] %v12128_v51, 128  ;;  %v4726_v49 = vsel %vm4703_vm4, %v4661_v43, %v12133_v20  ;;  %v4727_v13 = vsel %vm4703_vm4, %v4662_v44, %v12134_v6  ;;  %vm12136_vm1 = vmmov %vm12105_vm0  ;;  %v4668_v30 = vsel %vm4638_vm3, %v4603_v25, %v6068_v2  ;;  %v4667_v15 = vsel %vm4638_vm3, %v4602_v63, %v6067_v17  ;;  %v12137_v24 = vld [vmem:[#allocation152_spill] sm:$0xff]  ;;  %v12140_v46 = vld [vmem:[#allocation101_spill] sm:$0xff] }
 0x464   : > { %4791 = vst.msk [vmem:[%s9388_s14 + $0xb0] sm:$0xff] %vm12135_vm15, %v4726_v49  ;;  %v12138_v18 = vld [vmem:[#allocation104_spill] sm:$0xff]  ;;  %v12141_v29 = vld [vmem:[#allocation195_spill] sm:$0xff]  ;;  %vm12145_vm8 = vmmov %vm12105_vm0  ;;  %v6078_v43 = vunpack.i.h.bf16 %v6076_v7  ;;  %v6077_v2 = vunpack.i.l.bf16 %v6076_v7 }
 0x465   : > { %4792 = vst.msk [vmem:[%s9388_s14 + $0xb8] sm:$0xff] %vm12136_vm1, %v4727_v13  ;;  %v4600_v48 = vsel %vm4573_vm2, %v12138_v18, %v12137_v24  ;;  %v12139_v9 = vld [vmem:[#allocation88_spill] sm:$0xff]  ;;  %v4733_v1 = vsel %vm4703_vm4, %v4668_v30, %v12141_v29  ;;  %vm12146_vm10 = vmmov %vm12105_vm0  ;;  %v12150_v8 = vld [vmem:[#allocation114_spill] sm:$0xff]  ;;  %v6071_v13 = vpop.permute.xlu1 %6070 }
 0x466   : > { %v4601_v10 = vsel %vm4573_vm2, %v12140_v46, %v12139_v9  ;;  %v12142_v14 = vld [vmem:[#allocation180_spill] sm:$0xff]  ;;  %4798 = vst.msk [vmem:[%s9388_s14 + $0xe8] sm:$0xff] %vm12145_vm8, %v4733_v1  ;;  %v4665_v44 = vsel %vm4638_vm3, %v4600_v48, %v6062_v34  ;;  %v12151_v63 = vld [vmem:[#allocation69_spill] sm:$0xff]  ;;  %v12152_v40 = vld [vmem:[#allocation111_spill] sm:$0xff] }
 0x467   : > { %v4732_v16 = vsel %vm4703_vm4, %v4667_v15, %v12142_v14  ;;  %v12143_v35 = vld [vmem:[#allocation28_spill] sm:$0xff]  ;;  %v4666_v32 = vsel %vm4638_vm3, %v4601_v10, %v6063_v61  ;;  %v4607_v3 = vsel %vm4573_vm2, %v12152_v40, %v12151_v63  ;;  %v12154_v49 = vld [vmem:[#allocation197_spill] sm:$0xff]  ;;  %vm12155_vm11 = vmmov %vm12105_vm0  ;;  %v6073_v15 = vunpack.i.h.bf16 %v6071_v13 }
 0x468   : > { %v12144_v21 = vmax.f32 %v12143_v35, 0.0  ;;  %4797 = vst.msk [vmem:[%s9388_s14 + $0xe0] sm:$0xff] %vm12146_vm10, %v4732_v16  ;;  %v12147_v17 = vld [vmem:[#allocation40_spill] sm:$0xff]  ;;  %v4731_v6 = vsel %vm4703_vm4, %v4666_v32, %v12154_v49  ;;  %vm12156_vm13 = vmmov %vm12105_vm0  ;;  %v4672_v53 = vsel %vm4638_vm3, %v4607_v3, %v6078_v43  ;;  %v6072_v61 = vunpack.i.l.bf16 %v6071_v13  ;;  %v12157_v34 = vld [vmem:[#allocation162_spill] sm:$0xff] }
 0x469   : > { %v12148_v52 = vmax.f32 %v12147_v17, 0.0  ;;  %v12149_v51 = vld [vmem:[#allocation156_spill] sm:$0xff]  ;;  %4796 = vst.msk [vmem:[%s9388_s14 + $0xd8] sm:$0xff] %vm12156_vm13, %v4731_v6  ;;  %v12158_v24 = vld [vmem:[#allocation110_spill] sm:$0xff]  ;;  %v12159_v48 = vld [vmem:[#allocation157_spill] sm:$0xff]  ;;  %v6081_v6 = vpop.permute.xlu1 %6080 }
 0x46a   : > { %4847 = vxpose.xlu0.b32.cont [15/16] %v12144_v21, 128  ;;  %v4606_v33 = vsel %vm4573_vm2, %v12150_v8, %v12149_v51  ;;  %v12153_v25 = vld [vmem:[#allocation168_spill] sm:$0xff]  ;;  %v4604_v18 = vsel %vm4573_vm2, %v12158_v24, %v12157_v34  ;;  %v12160_v9 = vld [vmem:[#allocation109_spill] sm:$0xff]  ;;  %v12161_v10 = vld [vmem:[#allocation203_spill] sm:$0xff]  ;;  %v6086_v21 = vpop.permute.xlu0 %6085 }
 0x46b   : > { %4875 = vxpose.xlu1.b32.cont [11/16] %v12148_v52, 128  ;;  %v4730_v20 = vsel %vm4703_vm4, %v4665_v44, %v12153_v25  ;;  %v4671_v30 = vsel %vm4638_vm3, %v4606_v33, %v6077_v2  ;;  %v4605_v46 = vsel %vm4573_vm2, %v12160_v9, %v12159_v48  ;;  %v4737_v29 = vsel %vm4703_vm4, %v4672_v53, %v12161_v10  ;;  %v12162_v1 = vld [vmem:[#allocation97_spill] sm:$0xff]  ;;  %v12163_v16 = vld [vmem:[#allocation23_spill] sm:$0xff]  ;;  %vm12165_vm14 = vmmov %vm12105_vm0 }
 0x46c   : > { %4795 = vst.msk [vmem:[%s9388_s14 + $0xd0] sm:$0xff] %vm12155_vm11, %v4730_v20  ;;  %v4736_v14 = vsel %vm4703_vm4, %v4671_v30, %v12162_v1  ;;  %v12164_v35 = vmax.f32 %v12163_v16, 0.0  ;;  %v4670_v7 = vsel %vm4638_vm3, %v4605_v46, %v6073_v15  ;;  %v4669_v32 = vsel %vm4638_vm3, %v4604_v18, %v6072_v61  ;;  %v12166_v2 = vld [vmem:[#allocation35_spill] sm:$0xff]  ;;  %v12168_v52 = vld [vmem:[#allocation186_spill] sm:$0xff]  ;;  %v12169_v51 = vld [vmem:[#allocation120_spill] sm:$0xff] }
 0x46d   : > { %4802 = vst.msk [vmem:[%s9388_s14 + $0x108] sm:$0xff] %vm12165_vm14, %v4737_v29  ;;  %v6088_v44 = vunpack.i.h.bf16 %v6086_v21  ;;  %v6087_v43 = vunpack.i.l.bf16 %v6086_v21  ;;  %v12167_v17 = vmax.f32 %v12166_v2, 0.0  ;;  %v4610_v8 = vsel %vm4573_vm2, %v12169_v51, %v12168_v52  ;;  %v12170_v33 = vld [vmem:[#allocation185_spill] sm:$0xff]  ;;  %v12171_v63 = vld [vmem:[#allocation119_spill] sm:$0xff]  ;;  %v12172_v3 = vld [vmem:[#allocation192_spill] sm:$0xff] }
 0x46e   : > { %4848 = vxpose.xlu0.b32.end [16/16] %v12164_v35, 128  ;;  %4801 = vst.msk [vmem:[%s9388_s14 + $0x100] sm:$0xff] %vm12105_vm0, %v4736_v14  ;;  %v4611_v40 = vsel %vm4573_vm2, %v12171_v63, %v12170_v33  ;;  %v4734_v25 = vsel %vm4703_vm4, %v4669_v32, %v12172_v3  ;;  %v12173_v20 = vld [vmem:[#allocation9_spill] sm:$0xff]  ;;  %vm12174_vm5 = vmmov %vm12105_vm0  ;;  %v6083_v30 = vunpack.i.h.bf16 %v6081_v6  ;;  %v6082_v15 = vunpack.i.l.bf16 %v6081_v6  ;;  %v12176_v61 = vld [vmem:[#allocation68_spill] sm:$0xff]  ;;  %v6096_v35 = vpop.permute.xlu0 %6095 }
 0x46f   : > { %4876 = vxpose.xlu1.b32.cont [12/16] %v12167_v17, 128  ;;  %v4735_v49 = vsel %vm4703_vm4, %v4670_v7, %v12173_v20  ;;  %4799 = vst.msk [vmem:[%s9388_s14 + $0xf0] sm:$0xff] %vm12174_vm5, %v4734_v25  ;;  %vm12175_vm7 = vmmov %vm12105_vm0  ;;  %v4676_v13 = vsel %vm4638_vm3, %v4611_v40, %v6088_v44  ;;  %v4675_v53 = vsel %vm4638_vm3, %v4610_v8, %v6087_v43  ;;  %v12177_v34 = vld [vmem:[#allocation116_spill] sm:$0xff]  ;;  %v12178_v18 = vld [vmem:[#allocation65_spill] sm:$0xff]  ;;  %v6098_v32 = vunpack.i.h.bf16 %v6096_v35 }
 0x470   : > { %4800 = vst.msk [vmem:[%s9388_s14 + $0xf8] sm:$0xff] %vm12175_vm7, %v4735_v49  ;;  %v4608_v24 = vsel %vm4573_vm2, %v12177_v34, %v12176_v61  ;;  %v12179_v48 = vld [vmem:[#allocation115_spill] sm:$0xff]  ;;  %v12180_v46 = vld [vmem:[#allocation108_spill] sm:$0xff]  ;;  %v12182_v14 = vld [vmem:[#allocation46_spill] sm:$0xff]  ;;  %v6097_v44 = vunpack.i.l.bf16 %v6096_v35  ;;  %v6091_v49 = vpop.permute.xlu1 %6090 }
 0x471   : > { %v4609_v9 = vsel %vm4573_vm2, %v12179_v48, %v12178_v18  ;;  %v4741_v10 = vsel %vm4703_vm4, %v4676_v13, %v12180_v46  ;;  %v12181_v29 = vld [vmem:[#allocation204_spill] sm:$0xff]  ;;  %v12183_v16 = vmax.f32 %v12182_v14, 0.0  ;;  %vm12184_vm9 = vmmov %vm12105_vm0  ;;  %v4673_v7 = vsel %vm4638_vm3, %v4608_v24, %v6082_v15  ;;  %v12186_v43 = vld [vmem:[#allocation42_spill] sm:$0xff] }
 0x472   : > { %v4740_v1 = vsel %vm4703_vm4, %v4675_v53, %v12181_v29  ;;  %4806 = vst.msk [vmem:[%s9388_s14 + $0x128] sm:$0xff] %vm12184_vm9, %v4741_v10  ;;  %vm12185_vm12 = vmmov %vm12105_vm0  ;;  %v4674_v21 = vsel %vm4638_vm3, %v4609_v9, %v6083_v30  ;;  %v12187_v2 = vmax.f32 %v12186_v43, 0.0  ;;  %v12188_v17 = vld [vmem:[#allocation188_spill] sm:$0xff]  ;;  %v12190_v8 = vld [vmem:[#allocation187_spill] sm:$0xff]  ;;  %v6093_v53 = vunpack.i.h.bf16 %v6091_v49  ;;  %v6106_v14 = vpop.permute.xlu0 %6105 }
 0x473   : > { %4897 = vxpose.xlu0.b32.start [1/16] %v12183_v16, 128  ;;  %4805 = vst.msk [vmem:[%s9388_s14 + $0x120] sm:$0xff] %vm12185_vm12, %v4740_v1  ;;  %v12189_v52 = vld [vmem:[#allocation128_spill] sm:$0xff]  ;;  %v12191_v33 = vld [vmem:[#allocation125_spill] sm:$0xff]  ;;  %v12192_v40 = vld [vmem:[#allocation102_spill] sm:$0xff]  ;;  %v6092_v30 = vunpack.i.l.bf16 %v6091_v49  ;;  %vm4030_vm12 = vcmp.eq.f32.partialorder %v12026_v56, 0.0 }
 0x474   : > { %4877 = vxpose.xlu1.b32.cont [13/16] %v12187_v2, 128  ;;  %v4614_v51 = vsel %vm4573_vm2, %v12189_v52, %v12188_v17  ;;  %v4615_v63 = vsel %vm4573_vm2, %v12191_v33, %v12190_v8  ;;  %v4738_v3 = vsel %vm4703_vm4, %v4673_v7, %v12192_v40  ;;  %v12193_v25 = vld [vmem:[#allocation117_spill] sm:$0xff]  ;;  %vm12194_vm6 = vmmov %vm12105_vm0  ;;  %v12196_v15 = vld [vmem:[#allocation179_spill] sm:$0xff]  ;;  %v6107_v7 = vunpack.i.l.bf16 %v6106_v14  ;;  %v6101_v40 = vpop.permute.xlu1 %6100 }
 0x475   : > { %v4739_v20 = vsel %vm4703_vm4, %v4674_v21, %v12193_v25  ;;  %4803 = vst.msk [vmem:[%s9388_s14 + $0x110] sm:$0xff] %vm12194_vm6, %v4738_v3  ;;  %vm12195_vm15 = vmmov %vm12105_vm0  ;;  %v4680_v6 = vsel %vm4638_vm3, %v4615_v63, %v6098_v32  ;;  %v4679_v13 = vsel %vm4638_vm3, %v4614_v51, %v6097_v44  ;;  %v12197_v61 = vld [vmem:[#allocation124_spill] sm:$0xff]  ;;  %v12198_v24 = vld [vmem:[#allocation191_spill] sm:$0xff]  ;;  %v6108_v21 = vunpack.i.h.bf16 %v6106_v14 }
 0x476   : > { %4804 = vst.msk [vmem:[%s9388_s14 + $0x118] sm:$0xff] %vm12195_vm15, %v4739_v20  ;;  %v4612_v34 = vsel %vm4573_vm2, %v12197_v61, %v12196_v15  ;;  %v12199_v18 = vld [vmem:[#allocation121_spill] sm:$0xff]  ;;  %v4745_v9 = vsel %vm4703_vm4, %v4680_v6, %v10169_v23  ;;  %v12200_v46 = vld [vmem:[#allocation103_spill] sm:$0xff]  ;;  %vm12203_vm1 = vmmov %vm12105_vm0  ;;  %v6103_v20 = vunpack.i.h.bf16 %v6101_v40  ;;  %v6102_v49 = vunpack.i.l.bf16 %v6101_v40 }
 0x477   : > { %v4613_v48 = vsel %vm4573_vm2, %v12199_v18, %v12198_v24  ;;  %v4744_v10 = vsel %vm4703_vm4, %v4679_v13, %v12200_v46  ;;  %v12201_v29 = vld [vmem:[#allocation41_spill] sm:$0xff]  ;;  %4810 = vst.msk [vmem:[%s9388_s14 + $0x148] sm:$0xff] %vm12203_vm1, %v4745_v9  ;;  %vm12204_vm8 = vmmov %vm12105_vm0  ;;  %v4677_v35 = vsel %vm4638_vm3, %v4612_v34, %v6092_v30  ;;  %v12207_v44 = vld [vmem:[#allocation196_spill] sm:$0xff]  ;;  %v6116_v9 = vpop.permute.xlu0 %6115  ;;  %vm4056_vm6 = vcmp.eq.f32.partialorder %v12040_v58, inf }
 0x478   : > { %v12202_v1 = vmax.f32 %v12201_v29, 0.0  ;;  %4809 = vst.msk [vmem:[%s9388_s14 + $0x140] sm:$0xff] %vm12204_vm8, %v4744_v10  ;;  %v4678_v16 = vsel %vm4638_vm3, %v4613_v48, %v6093_v53  ;;  %v12205_v23 = vld [vmem:[#allocation37_spill] sm:$0xff]  ;;  %v12208_v43 = vld [vmem:[#allocation136_spill] sm:$0xff]  ;;  %v12209_v17 = vld [vmem:[#allocation202_spill] sm:$0xff]  ;;  %v6118_v29 = vunpack.i.h.bf16 %v6116_v9  ;;  %vm4049_vm8 = vcmp.eq.f32.partialorder %v12019_v59, inf }
 0x479   : > { %v12206_v32 = vmax.f32 %v12205_v23, 0.0  ;;  %v4618_v2 = vsel %vm4573_vm2, %v12208_v43, %v12207_v44  ;;  %v12210_v52 = vld [vmem:[#allocation133_spill] sm:$0xff]  ;;  %v12211_v8 = vld [vmem:[#allocation107_spill] sm:$0xff]  ;;  %v4743_v63 = vsel %vm4703_vm4, %v4678_v16, %v10158_v42  ;;  %vm12212_vm10 = vmmov %vm12105_vm0 }
 0x47a   : > { %4898 = vxpose.xlu0.b32.cont [2/16] %v12202_v1, 128  ;;  %v4619_v51 = vsel %vm4573_vm2, %v12210_v52, %v12209_v17  ;;  %v4742_v33 = vsel %vm4703_vm4, %v4677_v35, %v12211_v8  ;;  %vm12213_vm11 = vmmov %vm12105_vm0  ;;  %v4683_v25 = vsel %vm4638_vm3, %v4618_v2, %v6107_v7  ;;  %v12214_v6 = vld [vmem:[#allocation5_spill] sm:$0xff]  ;;  %v12215_v13 = vld [vmem:[#allocation132_spill] sm:$0xff]  ;;  %v6117_v1 = vunpack.i.l.bf16 %v6116_v9  ;;  %v6111_v17 = vpop.permute.xlu1 %6110 }
 0x47b   : > { %4878 = vxpose.xlu1.b32.cont [14/16] %v12206_v32, 128  ;;  %4807 = vst.msk [vmem:[%s9388_s14 + $0x130] sm:$0xff] %vm12212_vm10, %v4742_v33  ;;  %v4684_v3 = vsel %vm4638_vm3, %v4619_v51, %v6108_v21  ;;  %v4616_v53 = vsel %vm4573_vm2, %v12215_v13, %v12214_v6  ;;  %v12216_v30 = vld [vmem:[#allocation198_spill] sm:$0xff]  ;;  %v12217_v15 = vld [vmem:[#allocation131_spill] sm:$0xff]  ;;  %v12218_v34 = vld [vmem:[#allocation113_spill] sm:$0xff]  ;;  %v6113_v8 = vunpack.i.h.bf16 %v6111_v17  ;;  %v6112_v33 = vunpack.i.l.bf16 %v6111_v17 }
 0x47c   : > { %4808 = vst.msk [vmem:[%s9388_s14 + $0x138] sm:$0xff] %vm12213_vm11, %v4743_v63  ;;  %v4617_v61 = vsel %vm4573_vm2, %v12217_v15, %v12216_v30  ;;  %v4749_v42 = vsel %vm4703_vm4, %v4684_v3, %v10181_v37  ;;  %v4748_v24 = vsel %vm4703_vm4, %v4683_v25, %v12218_v34  ;;  %v12219_v18 = vld [vmem:[#allocation48_spill] sm:$0xff]  ;;  %vm12221_vm13 = vmmov %vm12105_vm0  ;;  %v4681_v10 = vsel %vm4638_vm3, %v4616_v53, %v6102_v49  ;;  %v12226_v35 = vld [vmem:[#allocation146_spill] sm:$0xff]  ;;  %v6126_v30 = vpop.permute.xlu0 %6125 }
 0x47d   : > { %v12220_v48 = vmax.f32 %v12219_v18, 0.0  ;;  %4814 = vst.msk [vmem:[%s9388_s14 + $0x168] sm:$0xff] %vm12221_vm13, %v4749_v42  ;;  %vm12222_vm14 = vmmov %vm12105_vm0  ;;  %v4682_v46 = vsel %vm4638_vm3, %v4617_v61, %v6103_v20  ;;  %v12223_v37 = vld [vmem:[#allocation44_spill] sm:$0xff]  ;;  %v12227_v7 = vld [vmem:[#allocation98_spill] sm:$0xff]  ;;  %v6128_v42 = vunpack.i.h.bf16 %v6126_v30  ;;  %v6127_v34 = vunpack.i.l.bf16 %v6126_v30 }
 0x47e   : > { %4813 = vst.msk [vmem:[%s9388_s14 + $0x160] sm:$0xff] %vm12222_vm14, %v4748_v24  ;;  %v12224_v14 = vmax.f32 %v12223_v37, 0.0  ;;  %v12225_v16 = vld [vmem:[#allocation112_spill] sm:$0xff]  ;;  %v12228_v23 = vld [vmem:[#allocation145_spill] sm:$0xff]  ;;  %v12229_v44 = vld [vmem:[#allocation122_spill] sm:$0xff]  ;;  %v4747_v2 = vsel %vm4703_vm4, %v4682_v46, %v10173_v57  ;;  %v6121_v37 = vpop.permute.xlu1 %6120  ;;  %vm4058_vm13 = vcmp.eq.f32.partialorder %v12040_v58, 0.0 }
 0x47f   : > { %4899 = vxpose.xlu0.b32.cont [3/16] %v12220_v48, 128  ;;  %v4622_v21 = vsel %vm4573_vm2, %v12226_v35, %v12225_v16  ;;  %v4623_v32 = vsel %vm4573_vm2, %v12228_v23, %v12227_v7  ;;  %v4746_v43 = vsel %vm4703_vm4, %v4681_v10, %v12229_v44  ;;  %vm12230_vm5 = vmmov %vm12105_vm0  ;;  %v12231_v63 = vld [vmem:[#allocation201_spill] sm:$0xff]  ;;  %v12232_v40 = vld [vmem:[#allocation140_spill] sm:$0xff]  ;;  %v6123_v35 = vunpack.i.h.bf16 %v6121_v37 }
 0x480   : > { %4879 = vxpose.xlu1.b32.cont [15/16] %v12224_v14, 128  ;;  %4811 = vst.msk [vmem:[%s9388_s14 + $0x150] sm:$0xff] %vm12105_vm0, %v4746_v43  ;;  %v4688_v52 = vsel %vm4638_vm3, %v4623_v32, %v6118_v29  ;;  %v4687_v51 = vsel %vm4638_vm3, %v4622_v21, %v6117_v1  ;;  %v4620_v3 = vsel %vm4573_vm2, %v12232_v40, %v12231_v63  ;;  %v12233_v25 = vld [vmem:[#allocation94_spill] sm:$0xff]  ;;  %v12234_v20 = vld [vmem:[#allocation139_spill] sm:$0xff]  ;;  %vm12237_vm7 = vmmov %vm12105_vm0  ;;  %vm4051_vm14 = vcmp.eq.f32.partialorder %v12019_v59, 0.0 }
 0x481   : > { %4812 = vst.msk [vmem:[%s9388_s14 + $0x158] sm:$0xff] %vm12230_vm5, %v4747_v2  ;;  %v4621_v49 = vsel %vm4573_vm2, %v12234_v20, %v12233_v25  ;;  %v4753_v57 = vsel %vm4703_vm4, %v4688_v52, %v10240_v28  ;;  %v4752_v6 = vsel %vm4703_vm4, %v4687_v51, %v10185_v4  ;;  %v12235_v13 = vld [vmem:[#allocation43_spill] sm:$0xff]  ;;  %vm12238_vm9 = vmmov %vm12105_vm0  ;;  %v4685_v61 = vsel %vm4638_vm3, %v4620_v3, %v6112_v33  ;;  %v12241_v4 = vld [vmem:[#allocation118_spill] sm:$0xff]  ;;  %v6136_v51 = vpop.permute.xlu0 %6135 }
 0x482   : > { %v12236_v53 = vmax.f32 %v12235_v13, 0.0  ;;  %4818 = vst.msk [vmem:[%s9388_s14 + $0x188] sm:$0xff] %vm12237_vm7, %v4753_v57  ;;  %v4686_v15 = vsel %vm4638_vm3, %v4621_v49, %v6113_v8  ;;  %v12239_v28 = vld [vmem:[#allocation39_spill] sm:$0xff]  ;;  %v12242_v18 = vld [vmem:[#allocation158_spill] sm:$0xff]  ;;  %v12243_v9 = vld [vmem:[#allocation141_spill] sm:$0xff]  ;;  %v4750_v29 = vsel %vm4703_vm4, %v4685_v61, %v10189_v39  ;;  %v6122_v39 = vunpack.i.l.bf16 %v6121_v37  ;;  %v6131_v13 = vpop.permute.xlu1 %6130 }
 0x483   : > { %4817 = vst.msk [vmem:[%s9388_s14 + $0x180] sm:$0xff] %vm12238_vm9, %v4752_v6  ;;  %v12240_v24 = vmax.f32 %v12239_v28, 0.0  ;;  %v4626_v48 = vsel %vm4573_vm2, %v12242_v18, %v12241_v4  ;;  %v12244_v46 = vld [vmem:[#allocation155_spill] sm:$0xff]  ;;  %v4751_v1 = vsel %vm4703_vm4, %v4686_v15, %v10197_v5  ;;  %vm12245_vm15 = vmmov %vm12105_vm0  ;;  %v12247_v5 = vld [vmem:[#allocation129_spill] sm:$0xff]  ;;  %v6138_v63 = vunpack.i.h.bf16 %v6136_v51 }
 0x484   : > { %4900 = vxpose.xlu0.b32.cont [4/16] %v12236_v53, 128  ;;  %v4627_v10 = vsel %vm4573_vm2, %v12244_v46, %v12243_v9  ;;  %4815 = vst.msk [vmem:[%s9388_s14 + $0x170] sm:$0xff] %vm12245_vm15, %v4750_v29  ;;  %vm12246_vm1 = vmmov %vm12105_vm0  ;;  %v4691_v16 = vsel %vm4638_vm3, %v4626_v48, %v6127_v34  ;;  %v12248_v21 = vld [vmem:[#allocation153_spill] sm:$0xff]  ;;  %v12249_v23 = vld [vmem:[#allocation134_spill] sm:$0xff]  ;;  %v6137_v40 = vunpack.i.l.bf16 %v6136_v51  ;;  %v6132_v30 = vunpack.i.l.bf16 %v6131_v13 }
 0x485   : > { %4880 = vxpose.xlu1.b32.end [16/16] %v12240_v24, 128  ;;  %4816 = vst.msk [vmem:[%s9388_s14 + $0x178] sm:$0xff] %vm12246_vm1, %v4751_v1  ;;  %v4692_v14 = vsel %vm4638_vm3, %v4627_v10, %v6128_v42  ;;  %v4624_v7 = vsel %vm4573_vm2, %v12248_v21, %v12247_v5  ;;  %v12250_v32 = vld [vmem:[#allocation149_spill] sm:$0xff]  ;;  %v4756_v2 = vsel %vm4703_vm4, %v4691_v16, %v10250_v27  ;;  %v12251_v17 = vld [vmem:[#allocation50_spill] sm:$0xff]  ;;  %vm12253_vm10 = vmmov %vm12105_vm0  ;;  %v6146_v4 = vpop.permute.xlu0 %6145 }
 0x486   : > { %v4625_v44 = vsel %vm4573_vm2, %v12250_v32, %v12249_v23  ;;  %v4757_v43 = vsel %vm4703_vm4, %v4692_v14, %v10308_v26  ;;  %v12252_v52 = vmax.f32 %v12251_v17, 0.0  ;;  %vm12254_vm11 = vmmov %vm12105_vm0  ;;  %v4689_v33 = vsel %vm4638_vm3, %v4624_v7, %v6122_v39  ;;  %v12255_v26 = vld [vmem:[#allocation58_spill] sm:$0xff]  ;;  %v12258_v20 = vld [vmem:[#allocation165_spill] sm:$0xff] }
 0x487   : > { %4822 = vst.msk [vmem:[%s9388_s14 + $0x1a8] sm:$0xff] %vm12253_vm10, %v4757_v43  ;;  %v4690_v8 = vsel %vm4638_vm3, %v4625_v44, %v6123_v35  ;;  %v12256_v3 = vmax.f32 %v12255_v26, 0.0  ;;  %v12257_v27 = vld [vmem:[#allocation170_spill] sm:$0xff]  ;;  %v4631_v49 = vsel %vm4573_vm2, %v12258_v20, %v10220_v55  ;;  %v4754_v57 = vsel %vm4703_vm4, %v4689_v33, %v10316_v36  ;;  %vm12259_vm5 = vmmov %vm12105_vm0  ;;  %v12260_v36 = vld [vmem:[#allocation164_spill] sm:$0xff]  ;;  %v6141_v35 = vpop.permute.xlu1 %6140 }
 0x488   : > { %4901 = vxpose.xlu0.b32.cont [5/16] %v12252_v52, 128  ;;  %4821 = vst.msk [vmem:[%s9388_s14 + $0x1a0] sm:$0xff] %vm12254_vm11, %v4756_v2  ;;  %v4630_v25 = vsel %vm4573_vm2, %v12257_v27, %v10204_v11  ;;  %v4755_v6 = vsel %vm4703_vm4, %v4690_v8, %v10320_v45  ;;  %v4696_v11 = vsel %vm4638_vm3, %v4631_v49, %v6138_v63  ;;  %v6133_v55 = vunpack.i.h.bf16 %v6131_v13  ;;  %v12261_v45 = vld [vmem:[#allocation161_spill] sm:$0xff]  ;;  %vm12264_vm7 = vmmov %vm12105_vm0  ;;  %v12268_v46 = vld [vmem:[#allocation159_spill] sm:$0xff] }
 0x489   : > { %4929 = vxpose.xlu1.b32.start [1/16] %v12256_v3, 128  ;;  %4819 = vst.msk [vmem:[%s9388_s14 + $0x190] sm:$0xff] %vm12105_vm0, %v4754_v57  ;;  %v4695_v53 = vsel %vm4638_vm3, %v4630_v25, %v6137_v40  ;;  %v4628_v15 = vsel %vm4573_vm2, %v12260_v36, %v10154_v19  ;;  %v4629_v61 = vsel %vm4573_vm2, %v12261_v45, %v10177_v60  ;;  %v12262_v28 = vld [vmem:[#allocation45_spill] sm:$0xff]  ;;  %vm12265_vm9 = vmmov %vm12105_vm0  ;;  %v6148_v18 = vunpack.i.h.bf16 %v6146_v4  ;;  %v12270_v29 = vld [vmem:[#allocation135_spill] sm:$0xff] }
 0x48a   : > { %4820 = vst.msk [vmem:[%s9388_s14 + $0x198] sm:$0xff] %vm12259_vm5, %v4755_v6  ;;  %v4761_v42 = vsel %vm4703_vm4, %v4696_v11, %v10328_v62  ;;  %v4760_v34 = vsel %vm4703_vm4, %v4695_v53, %v10324_v50  ;;  %v12263_v24 = vmax.f32 %v12262_v28, 0.0  ;;  %v4694_v19 = vsel %vm4638_vm3, %v4629_v61, %v6133_v55  ;;  %v12266_v62 = vld [vmem:[#allocation81_spill] sm:$0xff]  ;;  %v12269_v50 = vld [vmem:[#allocation178_spill] sm:$0xff]  ;;  %vm12272_vm15 = vmmov %vm12105_vm0 }
 0x48b   : > { %4826 = vst.msk [vmem:[%s9388_s14 + $0x1c8] sm:$0xff] %vm12264_vm7, %v4761_v42  ;;  %v4693_v60 = vsel %vm4638_vm3, %v4628_v15, %v6132_v30  ;;  %v6147_v48 = vunpack.i.l.bf16 %v6146_v4  ;;  %v12267_v9 = vmax.f32 %v12266_v62, 0.0  ;;  %v4634_v10 = vsel %vm4573_vm2, %v12269_v50, %v12268_v46  ;;  %v12271_v1 = vld [vmem:[#allocation177_spill] sm:$0xff]  ;;  %vm12273_vm1 = vmmov %vm12105_vm0  ;;  %v12274_v23 = vld [vmem:[#allocation150_spill] sm:$0xff] }
 0x48c   : > { %4902 = vxpose.xlu0.b32.cont [6/16] %v12263_v24, 128  ;;  %4825 = vst.msk [vmem:[%s9388_s14 + $0x1c0] sm:$0xff] %vm12265_vm9, %v4760_v34  ;;  %v4635_v37 = vsel %vm4573_vm2, %v12271_v1, %v12270_v29  ;;  %v4758_v14 = vsel %vm4703_vm4, %v4693_v60, %v10334_v12  ;;  %v4759_v16 = vsel %vm4703_vm4, %v4694_v19, %v10338_v0  ;;  %v6143_v21 = vunpack.i.h.bf16 %v6141_v35  ;;  %v12275_v32 = vld [vmem:[#allocation174_spill] sm:$0xff]  ;;  %v12277_v12 = vld [vmem:[#allocation171_spill] sm:$0xff]  ;;  %v12278_v52 = vld [vmem:[#allocation52_spill] sm:$0xff] }
 0x48d   : > { %4930 = vxpose.xlu1.b32.cont [2/16] %v12267_v9, 128  ;;  %4823 = vst.msk [vmem:[%s9388_s14 + $0x1b0] sm:$0xff] %vm12272_vm15, %v4758_v14  ;;  %v4700_v39 = vsel %vm4638_vm3, %v4635_v37, %v6148_v18  ;;  %v4699_v5 = vsel %vm4638_vm3, %v4634_v10, %v6147_v48  ;;  %v6142_v7 = vunpack.i.l.bf16 %v6141_v35  ;;  %v4632_v44 = vsel %vm4573_vm2, %v12275_v32, %v12274_v23  ;;  %v12276_v43 = vld [vmem:[#allocation130_spill] sm:$0xff]  ;;  %vm12280_vm10 = vmmov %vm12105_vm0  ;;  %v12282_v63 = vld [vmem:[#allocation83_spill] sm:$0xff] }
 0x48e   : > { %4824 = vst.msk [vmem:[%s9388_s14 + $0x1b8] sm:$0xff] %vm12273_vm1, %v4759_v16  ;;  %v4633_v2 = vsel %vm4573_vm2, %v12277_v12, %v12276_v43  ;;  %v4765_v0 = vsel %vm4703_vm4, %v4700_v39, %v10348_v31  ;;  %v4764_v17 = vsel %vm4703_vm4, %v4699_v5, %v10342_v22  ;;  %v12279_v51 = vmax.f32 %v12278_v52, 0.0  ;;  %vm12281_vm11 = vmmov %vm12105_vm0  ;;  %v12284_v25 = vld [vmem:[#allocation123_spill] sm:$0xff]  ;;  %v12287_v49 = vld [vmem:[#allocation184_spill] sm:$0xff] }
 0x48f   : > { %4830 = vst.msk [vmem:[%s9388_s14 + $0x1e8] sm:$0xff] %vm12280_vm10, %v4765_v0  ;;  %v4698_v8 = vsel %vm4638_vm3, %v4633_v2, %v6143_v21  ;;  %v4032_v33 = vsel %vm4030_vm12, %v4031_v41, %v10360_v47  ;;  %v4697_v31 = vsel %vm4638_vm3, %v4632_v44, %v6142_v7  ;;  %v12283_v40 = vmax.f32 %v12282_v63, 0.0  ;;  %v6151_v47 = vpop.permute.xlu1 %6150  ;;  %vm12285_vm12 = vmmov %vm12105_vm0  ;;  %v12288_v57 = vld [vmem:[#allocation166_spill] sm:$0xff]  ;;  %v12289_v6 = vld [vmem:[#allocation181_spill] sm:$0xff] }
 0x490   : > { %4903 = vxpose.xlu0.b32.cont [7/16] %v12279_v51, 128  ;;  %4829 = vst.msk [vmem:[%s9388_s14 + $0x1e0] sm:$0xff] %vm12281_vm11, %v4764_v17  ;;  %v4052_v22 = vand.u32 2147483648, %v12019_v59  ;;  %v4057_v26 = vsel %vm4056_vm6, %v12040_v58, %v10363_v38  ;;  %v4762_v3 = vsel %vm4703_vm4, %v4697_v31, %v10354_v54  ;;  %v4763_v27 = vsel %vm4703_vm4, %v4698_v8, %v4032_v33  ;;  %v12286_v38 = vld [vmem:[#allocation142_spill] sm:$0xff]  ;;  %v12290_v11 = vld [vmem:[#allocation47_spill] sm:$0xff]  ;;  %v12293_v61 = vld [vmem:[#allocation80_spill] sm:$0xff] }
 0x491   : > { %4931 = vxpose.xlu1.b32.cont [3/16] %v12283_v40, 128  ;;  %v4050_v56 = vsel %vm4049_vm8, %v12019_v59, %v12284_v25  ;;  %4827 = vst.msk [vmem:[%s9388_s14 + $0x1d0] sm:$0xff] %vm12285_vm12, %v4762_v3  ;;  %v6153_v41 = vunpack.i.h.bf16 %v6151_v47  ;;  %v6152_v20 = vunpack.i.l.bf16 %v6151_v47  ;;  %v4636_v54 = vsel %vm4573_vm2, %v12287_v49, %v12286_v38  ;;  %vm12296_vm6 = vmmov %vm12105_vm0  ;;  %v12297_v59 = vld [vmem:[#allocation54_spill] sm:$0xff]  ;;  %v12299_v4 = vld [vmem:[#allocation60_spill] sm:$0xff] }
 0x492   : > { %4828 = vst.msk [vmem:[%s9388_s14 + $0x1d8] sm:$0xff] %vm12105_vm0, %v4763_v27  ;;  %v4637_v13 = vsel %vm4573_vm2, %v12289_v6, %v12288_v57  ;;  %v12291_v53 = vmax.f32 %v12290_v11, 0.0  ;;  %v4053_v55 = vsel %vm4051_vm14, %v4052_v22, %v4050_v56  ;;  %v12292_v36 = vand.u32 2147483648, %v12040_v58  ;;  %vm12295_vm2 = vmmov %vm12105_vm0  ;;  %v12301_v19 = vld [vmem:[#allocation49_spill] sm:$0xff]  ;;  %v12303_v18 = vld [vmem:[#allocation55_spill] sm:$0xff] }
 0x493   : > { %v4702_v30 = vsel %vm4638_vm3, %v4637_v13, %v6153_v41  ;;  %v4701_v45 = vsel %vm4638_vm3, %v4636_v54, %v6152_v20  ;;  %v12294_v42 = vmax.f32 %v12293_v61, 0.0  ;;  %v12298_v24 = vmax.f32 %v12297_v59, 0.0  ;;  %v12305_v62 = vld [vmem:[#allocation79_spill] sm:$0xff]  ;;  %v12307_v46 = vld [vmem:[#allocation57_spill] sm:$0xff]  ;;  %v12311_v1 = vld [vmem:[#allocation82_spill] sm:$0xff] }
 0x494   : > { %4904 = vxpose.xlu0.b32.cont [8/16] %v12291_v53, 128  ;;  %v4060_v15 = vsel %vm4058_vm13, %v12292_v36, %v4057_v26  ;;  %v4766_v34 = vsel %vm4703_vm4, %v4701_v45, %v4053_v55  ;;  %v12300_v58 = vmax.f32 %v12299_v4, 0.0  ;;  %v12302_v60 = vmax.f32 %v12301_v19, 0.0  ;;  %v12309_v10 = vld [vmem:[#allocation77_spill] sm:$0xff]  ;;  %v12313_v14 = vld [vmem:[#allocation56_spill] sm:$0xff]  ;;  %v12315_v35 = vld [vmem:[#allocation62_spill] sm:$0xff] }
 0x495   : > { %4932 = vxpose.xlu1.b32.cont [4/16] %v12294_v42, 128  ;;  %v4767_v28 = vsel %vm4703_vm4, %v4702_v30, %v4060_v15  ;;  %4831 = vst.msk [vmem:[%s9388_s14 + $0x1f0] sm:$0xff] %vm12295_vm2, %v4766_v34  ;;  %v12304_v48 = vmax.f32 %v12303_v18, 0.0  ;;  %v12306_v9 = vmax.f32 %v12305_v62, 0.0  ;;  %v12308_v50 = vmax.f32 %v12307_v46, 0.0  ;;  %v12317_v5 = vld [vmem:[#allocation51_spill] sm:$0xff]  ;;  %v12319_v7 = vld [vmem:[#allocation85_spill] sm:$0xff] }
 0x496   : > { %4832 = vst.msk [vmem:[%s9388_s14 + $0x1f8] sm:$0xff] %vm12296_vm6, %v4767_v28  ;;  %v12310_v29 = vmax.f32 %v12309_v10, 0.0  ;;  %v12312_v37 = vmax.f32 %v12311_v1, 0.0  ;;  %v12314_v16 = vmax.f32 %v12313_v14, 0.0  ;;  %v12316_v39 = vmax.f32 %v12315_v35, 0.0  ;;  %v12321_v32 = vld [vmem:[#allocation53_spill] sm:$0xff] }
 0x497   : > { %v12318_v21 = vmax.f32 %v12317_v5, 0.0  ;;  %v12320_v23 = vmax.f32 %v12319_v7, 0.0  ;;  %v12322_v44 = vmax.f32 %v12321_v32, 0.0  ;;  %v12323_v43 = vld [vmem:[#allocation87_spill] sm:$0xff]  ;;  %v12325_v2 = vld [vmem:[#allocation78_spill] sm:$0xff]  ;;  %v12327_v52 = vld [vmem:[#allocation84_spill] sm:$0xff] }
 0x498   : > { %4905 = vxpose.xlu0.b32.cont [9/16] %v12298_v24, 128  ;;  %v12324_v12 = vmax.f32 %v12323_v43, 0.0  ;;  %v12326_v0 = vmax.f32 %v12325_v2, 0.0  ;;  %v12328_v51 = vmax.f32 %v12327_v52, 0.0  ;;  %v12329_v33 = vld [vmem:[#allocation64_spill] sm:$0xff]  ;;  %v12331_v40 = vld [vmem:[#allocation59_spill] sm:$0xff]  ;;  %v12333_v3 = vld [vmem:[#allocation61_spill] sm:$0xff] }
 0x499   : > { %4933 = vxpose.xlu1.b32.cont [5/16] %v12300_v58, 128  ;;  %v12330_v31 = vmax.f32 %v12329_v33, 0.0  ;;  %v12332_v22 = vmax.f32 %v12331_v40, 0.0  ;;  %v12334_v27 = vmax.f32 %v12333_v3, 0.0  ;;  %v12335_v56 = vld [vmem:[#allocation86_spill] sm:$0xff] }
 0x49a   : > { %v12336_v47 = vmax.f32 %v12335_v56, 0.0 }
 0x49c   : > { %4906 = vxpose.xlu0.b32.cont [10/16] %v12302_v60, 128 }
 0x49d   : > { %4934 = vxpose.xlu1.b32.cont [6/16] %v12304_v48, 128 }
 0x4a0   : > { %4907 = vxpose.xlu0.b32.cont [11/16] %v12306_v9, 128 }
 0x4a1   : > { %4935 = vxpose.xlu1.b32.cont [7/16] %v12308_v50, 128 }
 0x4a4   : > { %4908 = vxpose.xlu0.b32.cont [12/16] %v12310_v29, 128 }
 0x4a5   : > { %4936 = vxpose.xlu1.b32.cont [8/16] %v12312_v37, 128 }
 0x4a8   : > { %4909 = vxpose.xlu0.b32.cont [13/16] %v12314_v16, 128 }
 0x4a9   : > { %4937 = vxpose.xlu1.b32.cont [9/16] %v12316_v39, 128 }
 0x4ac   : > { %4910 = vxpose.xlu0.b32.cont [14/16] %v12318_v21, 128 }
 0x4ad   : > { %4938 = vxpose.xlu1.b32.cont [10/16] %v12320_v23, 128 }
 0x4ae   : > { %v4849_v17 = vpop.trf.xlu0 }
 0x4af   : > { %4961 = vst [vmem:[%s10909_s15] sm:$0xff] %v4849_v17 }
 0x4b0   : > { %4911 = vxpose.xlu0.b32.cont [15/16] %v12322_v44, 128 }
 0x4b1   : > { %4939 = vxpose.xlu1.b32.cont [11/16] %v12324_v12, 128 }
 0x4b2   : > { %v4850_v8 = vpop.trf.xlu0 }
 0x4b3   : > { %4965 = vst [vmem:[%s10909_s15 + $0x20] sm:$0xff] %v4850_v8 }
 0x4b4   : > { %4912 = vxpose.xlu0.b32.end [16/16] %v12326_v0, 128 }
 0x4b5   : > { %4940 = vxpose.xlu1.b32.cont [12/16] %v12328_v51, 128 }
 0x4b6   : > { %v4851_v63 = vpop.trf.xlu0  ;;  %v5058_v3 = vld [vmem:[%s10909_s15] sm:$0xff] (%p6757_p5) }
 0x4b7   : > { %4969 = vst [vmem:[%s10909_s15 + $0x40] sm:$0xff] %v4851_v63  ;;  %5059 = vst [vmem:[%s10999_s22] sm:$0xff] (%p6757_p5), %v5058_v3 }
 0x4b9   : > { %4941 = vxpose.xlu1.b32.cont [13/16] %v12330_v31, 128 }
 0x4ba   : > { %v4852_v26 = vpop.trf.xlu0 }
 0x4bb   : > { %4973 = vst [vmem:[%s10909_s15 + $0x60] sm:$0xff] %v4852_v26 }
 0x4bd   : > { %4942 = vxpose.xlu1.b32.cont [14/16] %v12332_v22, 128 }
 0x4be   : > { %v4853_v25 = vpop.trf.xlu0 }
 0x4bf   : > { %4977 = vst [vmem:[%s10909_s15 + $0x80] sm:$0xff] %v4853_v25 }
 0x4c1   : > { %4943 = vxpose.xlu1.b32.cont [15/16] %v12334_v27, 128 }
 0x4c2   : > { %v4854_v20 = vpop.trf.xlu0 }
 0x4c3   : > { %4981 = vst [vmem:[%s10909_s15 + $0xa0] sm:$0xff] %v4854_v20 }
 0x4c5   : > { %4944 = vxpose.xlu1.b32.end [16/16] %v12336_v47, 128  ;;  %v4881_v41 = vpop.trf.xlu1  ;;  %v5066_v47 = vld [vmem:[%s10909_s15 + $0x20] sm:$0xff] (%p6757_p5) }
 0x4c6   : > { %4962 = vst [vmem:[%s10909_s15 + $0x8] sm:$0xff] %v4881_v41  ;;  %v4855_v49 = vpop.trf.xlu0  ;;  %5067 = vst [vmem:[%s10999_s22 + $0x40] sm:$0xff] (%p6757_p5), %v5066_v47 }
 0x4c7   : > { %4985 = vst [vmem:[%s10909_s15 + $0xc0] sm:$0xff] %v4855_v49  ;;  %v5074_v49 = vld [vmem:[%s10909_s15 + $0x40] sm:$0xff] (%p6757_p5) }
 0x4c8   : > { %5075 = vst [vmem:[%s10999_s22 + $0x80] sm:$0xff] (%p6757_p5), %v5074_v49 }
 0x4c9   : > { %v4882_v38 = vpop.trf.xlu1 }
 0x4ca   : > { %4966 = vst [vmem:[%s10909_s15 + $0x28] sm:$0xff] %v4882_v38  ;;  %v4856_v57 = vpop.trf.xlu0 }
 0x4cb   : > { %4989 = vst [vmem:[%s10909_s15 + $0xe0] sm:$0xff] %v4856_v57 }
 0x4cd   : > { %v4883_v54 = vpop.trf.xlu1  ;;  %v5060_v27 = vld [vmem:[%s10909_s15 + $0x8] sm:$0xff] (%p6757_p5) }
 0x4ce   : > { %4970 = vst [vmem:[%s10909_s15 + $0x48] sm:$0xff] %v4883_v54  ;;  %v4857_v13 = vpop.trf.xlu0  ;;  %5061 = vst [vmem:[%s10999_s22 + $0x8] sm:$0xff] (%p6757_p5), %v5060_v27 }
 0x4cf   : > { %4993 = vst [vmem:[%s10909_s15 + $0x100] sm:$0xff] %v4857_v13  ;;  %v5082_v13 = vld [vmem:[%s10909_s15 + $0x60] sm:$0xff] (%p6757_p5) }
 0x4d0   : > { %5083 = vst [vmem:[%s10999_s22 + $0xc0] sm:$0xff] (%p6757_p5), %v5082_v13 }
 0x4d1   : > { %v4884_v6 = vpop.trf.xlu1  ;;  %v5068_v41 = vld [vmem:[%s10909_s15 + $0x28] sm:$0xff] (%p6757_p5) }
 0x4d2   : > { %4974 = vst [vmem:[%s10909_s15 + $0x68] sm:$0xff] %v4884_v6  ;;  %v4858_v53 = vpop.trf.xlu0  ;;  %5069 = vst [vmem:[%s10999_s22 + $0x48] sm:$0xff] (%p6757_p5), %v5068_v41 }
 0x4d3   : > { %4997 = vst [vmem:[%s10909_s15 + $0x120] sm:$0xff] %v4858_v53 }
 0x4d5   : > { %v4885_v11 = vpop.trf.xlu1  ;;  %v5076_v54 = vld [vmem:[%s10909_s15 + $0x48] sm:$0xff] (%p6757_p5) }
 0x4d6   : > { %4978 = vst [vmem:[%s10909_s15 + $0x88] sm:$0xff] %v4885_v11  ;;  %v4859_v30 = vpop.trf.xlu0  ;;  %5077 = vst [vmem:[%s10999_s22 + $0x88] sm:$0xff] (%p6757_p5), %v5076_v54 }
 0x4d7   : > { %5001 = vst [vmem:[%s10909_s15 + $0x140] sm:$0xff] %v4859_v30  ;;  %v5090_v30 = vld [vmem:[%s10909_s15 + $0x80] sm:$0xff] (%p6757_p5) }
 0x4d8   : > { %5091 = vst [vmem:[%s10999_s22 + $0x100] sm:$0xff] (%p6757_p5), %v5090_v30 }
 0x4d9   : > { %v4886_v55 = vpop.trf.xlu1  ;;  %v5084_v11 = vld [vmem:[%s10909_s15 + $0x68] sm:$0xff] (%p6757_p5) }
 0x4da   : > { %4982 = vst [vmem:[%s10909_s15 + $0xa8] sm:$0xff] %v4886_v55  ;;  %v4860_v15 = vpop.trf.xlu0  ;;  %5085 = vst [vmem:[%s10999_s22 + $0xc8] sm:$0xff] (%p6757_p5), %v5084_v11 }
 0x4db   : > { %5005 = vst [vmem:[%s10909_s15 + $0x160] sm:$0xff] %v4860_v15 }
 0x4dd   : > { %v4887_v36 = vpop.trf.xlu1 }
 0x4de   : > { %4986 = vst [vmem:[%s10909_s15 + $0xc8] sm:$0xff] %v4887_v36  ;;  %v4861_v61 = vpop.trf.xlu0  ;;  %v5092_v36 = vld [vmem:[%s10909_s15 + $0x88] sm:$0xff] (%p6757_p5) }
 0x4df   : > { %5009 = vst [vmem:[%s10909_s15 + $0x180] sm:$0xff] %v4861_v61  ;;  %5093 = vst [vmem:[%s10999_s22 + $0x108] sm:$0xff] (%p6757_p5), %v5092_v36  ;;  %v5098_v61 = vld [vmem:[%s10909_s15 + $0xa0] sm:$0xff] (%p6757_p5) }
 0x4e0   : > { %5099 = vst [vmem:[%s10999_s22 + $0x140] sm:$0xff] (%p6757_p5), %v5098_v61 }
 0x4e1   : > { %v4888_v45 = vpop.trf.xlu1 }
 0x4e2   : > { %4990 = vst [vmem:[%s10909_s15 + $0xe8] sm:$0xff] %v4888_v45  ;;  %v4862_v34 = vpop.trf.xlu0 }
 0x4e3   : > { %5013 = vst [vmem:[%s10909_s15 + $0x1a0] sm:$0xff] %v4862_v34 }
 0x4e5   : > { %v4889_v42 = vpop.trf.xlu1 }
 0x4e6   : > { %4994 = vst [vmem:[%s10909_s15 + $0x108] sm:$0xff] %v4889_v42  ;;  %v4863_v59 = vpop.trf.xlu0  ;;  %v5100_v42 = vld [vmem:[%s10909_s15 + $0xa8] sm:$0xff] (%p6757_p5) }
 0x4e7   : > { %5017 = vst [vmem:[%s10909_s15 + $0x1c0] sm:$0xff] %v4863_v59  ;;  %5101 = vst [vmem:[%s10999_s22 + $0x148] sm:$0xff] (%p6757_p5), %v5100_v42  ;;  %v5106_v59 = vld [vmem:[%s10909_s15 + $0xc0] sm:$0xff] (%p6757_p5) }
 0x4e8   : > { %5107 = vst [vmem:[%s10999_s22 + $0x180] sm:$0xff] (%p6757_p5), %v5106_v59 }
 0x4e9   : > { %v4890_v28 = vpop.trf.xlu1 }
 0x4ea   : > { %4998 = vst [vmem:[%s10909_s15 + $0x128] sm:$0xff] %v4890_v28  ;;  %v4864_v4 = vpop.trf.xlu0 }
 0x4eb   : > { %5021 = vst [vmem:[%s10909_s15 + $0x1e0] sm:$0xff] %v4864_v4 }
 0x4ed   : > { %v4891_v24 = vpop.trf.xlu1 }
 0x4ee   : > { %5002 = vst [vmem:[%s10909_s15 + $0x148] sm:$0xff] %v4891_v24  ;;  %v5108_v24 = vld [vmem:[%s10909_s15 + $0xc8] sm:$0xff] (%p6757_p5) }
 0x4ef   : > { %5109 = vst [vmem:[%s10999_s22 + $0x188] sm:$0xff] (%p6757_p5), %v5108_v24 }
 0x4f1   : > { %v4892_v58 = vpop.trf.xlu1 }
 0x4f2   : > { %5006 = vst [vmem:[%s10909_s15 + $0x168] sm:$0xff] %v4892_v58 }
 0x4f4   : > { %v4913_v19 = vpop.trf.xlu0 }
 0x4f5   : > { %v4893_v60 = vpop.trf.xlu1  ;;  %4963 = vst [vmem:[%s10909_s15 + $0x10] sm:$0xff] %v4913_v19  ;;  %v5114_v19 = vld [vmem:[%s10909_s15 + $0xe0] sm:$0xff] (%p6757_p5) }
 0x4f6   : > { %5010 = vst [vmem:[%s10909_s15 + $0x188] sm:$0xff] %v4893_v60  ;;  %v5116_v60 = vld [vmem:[%s10909_s15 + $0xe8] sm:$0xff] (%p6757_p5)  ;;  %5115 = vst [vmem:[%s10999_s22 + $0x1c0] sm:$0xff] (%p6757_p5), %v5114_v19 }
 0x4f7   : > { %5117 = vst [vmem:[%s10999_s22 + $0x1c8] sm:$0xff] (%p6757_p5), %v5116_v60 }
 0x4f8   : > { %v4914_v18 = vpop.trf.xlu0 }
 0x4f9   : > { %v4894_v48 = vpop.trf.xlu1  ;;  %4967 = vst [vmem:[%s10909_s15 + $0x30] sm:$0xff] %v4914_v18 }
 0x4fa   : > { %5014 = vst [vmem:[%s10909_s15 + $0x1a8] sm:$0xff] %v4894_v48 }
 0x4fc   : > { %v4915_v62 = vpop.trf.xlu0  ;;  %v5062_v25 = vld [vmem:[%s10909_s15 + $0x10] sm:$0xff] (%p6757_p5) }
 0x4fd   : > { %v4895_v9 = vpop.trf.xlu1  ;;  %4971 = vst [vmem:[%s10909_s15 + $0x50] sm:$0xff] %v4915_v62  ;;  %5063 = vst [vmem:[%s10999_s22 + $0x10] sm:$0xff] (%p6757_p5), %v5062_v25  ;;  %v5122_v62 = vld [vmem:[%s10909_s15 + $0x100] sm:$0xff] (%p6757_p5) }
 0x4fe   : > { %5018 = vst [vmem:[%s10909_s15 + $0x1c8] sm:$0xff] %v4895_v9  ;;  %5123 = vst [vmem:[%s10999_s22 + $0x200] sm:$0xff] (%p6757_p5), %v5122_v62  ;;  %v5124_v9 = vld [vmem:[%s10909_s15 + $0x108] sm:$0xff] (%p6757_p5) }
 0x4ff   : > { %5125 = vst [vmem:[%s10999_s22 + $0x208] sm:$0xff] (%p6757_p5), %v5124_v9 }
 0x500   : > { %v4916_v46 = vpop.trf.xlu0  ;;  %v5070_v20 = vld [vmem:[%s10909_s15 + $0x30] sm:$0xff] (%p6757_p5) }
 0x501   : > { %v4896_v50 = vpop.trf.xlu1  ;;  %4975 = vst [vmem:[%s10909_s15 + $0x70] sm:$0xff] %v4916_v46  ;;  %5071 = vst [vmem:[%s10999_s22 + $0x50] sm:$0xff] (%p6757_p5), %v5070_v20 }
 0x502   : > { %5022 = vst [vmem:[%s10909_s15 + $0x1e8] sm:$0xff] %v4896_v50 }
 0x504   : > { %v4917_v10 = vpop.trf.xlu0  ;;  %v5078_v57 = vld [vmem:[%s10909_s15 + $0x50] sm:$0xff] (%p6757_p5) }
 0x505   : > { %v4945_v29 = vpop.trf.xlu1  ;;  %4979 = vst [vmem:[%s10909_s15 + $0x90] sm:$0xff] %v4917_v10  ;;  %5079 = vst [vmem:[%s10999_s22 + $0x90] sm:$0xff] (%p6757_p5), %v5078_v57  ;;  %v5130_v10 = vld [vmem:[%s10909_s15 + $0x120] sm:$0xff] (%p6757_p5) }
 0x506   : > { %4964 = vst [vmem:[%s10909_s15 + $0x18] sm:$0xff] %v4945_v29  ;;  %v5132_v29 = vld [vmem:[%s10909_s15 + $0x128] sm:$0xff] (%p6757_p5)  ;;  %5131 = vst [vmem:[%s10999_s22 + $0x240] sm:$0xff] (%p6757_p5), %v5130_v10 }
 0x507   : > { %5133 = vst [vmem:[%s10999_s22 + $0x248] sm:$0xff] (%p6757_p5), %v5132_v29 }
 0x508   : > { %v4918_v1 = vpop.trf.xlu0  ;;  %v5086_v53 = vld [vmem:[%s10909_s15 + $0x70] sm:$0xff] (%p6757_p5) }
 0x509   : > { %v4946_v37 = vpop.trf.xlu1  ;;  %4983 = vst [vmem:[%s10909_s15 + $0xb0] sm:$0xff] %v4918_v1  ;;  %5087 = vst [vmem:[%s10999_s22 + $0xd0] sm:$0xff] (%p6757_p5), %v5086_v53 }
 0x50a   : > { %4968 = vst [vmem:[%s10909_s15 + $0x38] sm:$0xff] %v4946_v37 }
 0x50c   : > { %v4919_v14 = vpop.trf.xlu0  ;;  %v5094_v15 = vld [vmem:[%s10909_s15 + $0x90] sm:$0xff] (%p6757_p5) }
 0x50d   : > { %v4947_v16 = vpop.trf.xlu1  ;;  %4987 = vst [vmem:[%s10909_s15 + $0xd0] sm:$0xff] %v4919_v14  ;;  %v5064_v56 = vld [vmem:[%s10909_s15 + $0x18] sm:$0xff] (%p6757_p5)  ;;  %5095 = vst [vmem:[%s10999_s22 + $0x110] sm:$0xff] (%p6757_p5), %v5094_v15  ;;  %v5138_v14 = vld [vmem:[%s10909_s15 + $0x140] sm:$0xff] (%p6757_p5) }
 0x50e   : > { %4972 = vst [vmem:[%s10909_s15 + $0x58] sm:$0xff] %v4947_v16  ;;  %5065 = vst [vmem:[%s10999_s22 + $0x18] sm:$0xff] (%p6757_p5), %v5064_v56  ;;  %v5140_v16 = vld [vmem:[%s10909_s15 + $0x148] sm:$0xff] (%p6757_p5) }
 0x50f   : > { %5139 = vst [vmem:[%s10999_s22 + $0x280] sm:$0xff] (%p6757_p5), %v5138_v14  ;;  %5141 = vst [vmem:[%s10999_s22 + $0x288] sm:$0xff] (%p6757_p5), %v5140_v16 }
 0x510   : > { %v4920_v35 = vpop.trf.xlu0  ;;  %v5102_v34 = vld [vmem:[%s10909_s15 + $0xb0] sm:$0xff] (%p6757_p5) }
 0x511   : > { %v4948_v39 = vpop.trf.xlu1  ;;  %4991 = vst [vmem:[%s10909_s15 + $0xf0] sm:$0xff] %v4920_v35  ;;  %v5072_v38 = vld [vmem:[%s10909_s15 + $0x38] sm:$0xff] (%p6757_p5)  ;;  %5103 = vst [vmem:[%s10999_s22 + $0x150] sm:$0xff] (%p6757_p5), %v5102_v34 }
 0x512   : > { %4976 = vst [vmem:[%s10909_s15 + $0x78] sm:$0xff] %v4948_v39  ;;  %5073 = vst [vmem:[%s10999_s22 + $0x58] sm:$0xff] (%p6757_p5), %v5072_v38 }
 0x514   : > { %v4921_v5 = vpop.trf.xlu0  ;;  %v5110_v4 = vld [vmem:[%s10909_s15 + $0xd0] sm:$0xff] (%p6757_p5) }
 0x515   : > { %v4949_v21 = vpop.trf.xlu1  ;;  %4995 = vst [vmem:[%s10909_s15 + $0x110] sm:$0xff] %v4921_v5  ;;  %v5080_v6 = vld [vmem:[%s10909_s15 + $0x58] sm:$0xff] (%p6757_p5)  ;;  %5111 = vst [vmem:[%s10999_s22 + $0x190] sm:$0xff] (%p6757_p5), %v5110_v4  ;;  %v5146_v5 = vld [vmem:[%s10909_s15 + $0x160] sm:$0xff] (%p6757_p5) }
 0x516   : > { %4980 = vst [vmem:[%s10909_s15 + $0x98] sm:$0xff] %v4949_v21  ;;  %5081 = vst [vmem:[%s10999_s22 + $0x98] sm:$0xff] (%p6757_p5), %v5080_v6  ;;  %v5148_v21 = vld [vmem:[%s10909_s15 + $0x168] sm:$0xff] (%p6757_p5) }
 0x517   : > { %5147 = vst [vmem:[%s10999_s22 + $0x2c0] sm:$0xff] (%p6757_p5), %v5146_v5  ;;  %5149 = vst [vmem:[%s10999_s22 + $0x2c8] sm:$0xff] (%p6757_p5), %v5148_v21 }
 0x518   : > { %v4922_v7 = vpop.trf.xlu0  ;;  %v5118_v18 = vld [vmem:[%s10909_s15 + $0xf0] sm:$0xff] (%p6757_p5) }
 0x519   : > { %v4950_v23 = vpop.trf.xlu1  ;;  %4999 = vst [vmem:[%s10909_s15 + $0x130] sm:$0xff] %v4922_v7  ;;  %v5088_v55 = vld [vmem:[%s10909_s15 + $0x78] sm:$0xff] (%p6757_p5)  ;;  %5119 = vst [vmem:[%s10999_s22 + $0x1d0] sm:$0xff] (%p6757_p5), %v5118_v18 }
 0x51a   : > { %4984 = vst [vmem:[%s10909_s15 + $0xb8] sm:$0xff] %v4950_v23  ;;  %5089 = vst [vmem:[%s10999_s22 + $0xd8] sm:$0xff] (%p6757_p5), %v5088_v55 }
 0x51c   : > { %v4923_v32 = vpop.trf.xlu0  ;;  %v5126_v46 = vld [vmem:[%s10909_s15 + $0x110] sm:$0xff] (%p6757_p5) }
 0x51d   : > { %v4951_v44 = vpop.trf.xlu1  ;;  %5003 = vst [vmem:[%s10909_s15 + $0x150] sm:$0xff] %v4923_v32  ;;  %v5096_v45 = vld [vmem:[%s10909_s15 + $0x98] sm:$0xff] (%p6757_p5)  ;;  %5127 = vst [vmem:[%s10999_s22 + $0x210] sm:$0xff] (%p6757_p5), %v5126_v46  ;;  %v5154_v32 = vld [vmem:[%s10909_s15 + $0x180] sm:$0xff] (%p6757_p5) }
 0x51e   : > { %4988 = vst [vmem:[%s10909_s15 + $0xd8] sm:$0xff] %v4951_v44  ;;  %5097 = vst [vmem:[%s10999_s22 + $0x118] sm:$0xff] (%p6757_p5), %v5096_v45  ;;  %v5156_v44 = vld [vmem:[%s10909_s15 + $0x188] sm:$0xff] (%p6757_p5) }
 0x51f   : > { %5155 = vst [vmem:[%s10999_s22 + $0x300] sm:$0xff] (%p6757_p5), %v5154_v32  ;;  %5157 = vst [vmem:[%s10999_s22 + $0x308] sm:$0xff] (%p6757_p5), %v5156_v44 }
 0x520   : > { %v4924_v43 = vpop.trf.xlu0  ;;  %v5134_v1 = vld [vmem:[%s10909_s15 + $0x130] sm:$0xff] (%p6757_p5) }
 0x521   : > { %v4952_v12 = vpop.trf.xlu1  ;;  %5007 = vst [vmem:[%s10909_s15 + $0x170] sm:$0xff] %v4924_v43  ;;  %v5104_v28 = vld [vmem:[%s10909_s15 + $0xb8] sm:$0xff] (%p6757_p5)  ;;  %5135 = vst [vmem:[%s10999_s22 + $0x250] sm:$0xff] (%p6757_p5), %v5134_v1 }
 0x522   : > { %4992 = vst [vmem:[%s10909_s15 + $0xf8] sm:$0xff] %v4952_v12  ;;  %5105 = vst [vmem:[%s10999_s22 + $0x158] sm:$0xff] (%p6757_p5), %v5104_v28 }
 0x524   : > { %v4925_v2 = vpop.trf.xlu0  ;;  %v5142_v35 = vld [vmem:[%s10909_s15 + $0x150] sm:$0xff] (%p6757_p5) }
 0x525   : > { %v4953_v0 = vpop.trf.xlu1  ;;  %5011 = vst [vmem:[%s10909_s15 + $0x190] sm:$0xff] %v4925_v2  ;;  %v5112_v58 = vld [vmem:[%s10909_s15 + $0xd8] sm:$0xff] (%p6757_p5)  ;;  %5143 = vst [vmem:[%s10999_s22 + $0x290] sm:$0xff] (%p6757_p5), %v5142_v35  ;;  %v5162_v2 = vld [vmem:[%s10909_s15 + $0x1a0] sm:$0xff] (%p6757_p5) }
 0x526   : > { %4996 = vst [vmem:[%s10909_s15 + $0x118] sm:$0xff] %v4953_v0  ;;  %5113 = vst [vmem:[%s10999_s22 + $0x198] sm:$0xff] (%p6757_p5), %v5112_v58  ;;  %v5164_v0 = vld [vmem:[%s10909_s15 + $0x1a8] sm:$0xff] (%p6757_p5) }
 0x527   : > { %5163 = vst [vmem:[%s10999_s22 + $0x340] sm:$0xff] (%p6757_p5), %v5162_v2  ;;  %5165 = vst [vmem:[%s10999_s22 + $0x348] sm:$0xff] (%p6757_p5), %v5164_v0 }
 0x528   : > { %v4926_v17 = vpop.trf.xlu0  ;;  %v5150_v7 = vld [vmem:[%s10909_s15 + $0x170] sm:$0xff] (%p6757_p5) }
 0x529   : > { %v4954_v52 = vpop.trf.xlu1  ;;  %5015 = vst [vmem:[%s10909_s15 + $0x1b0] sm:$0xff] %v4926_v17  ;;  %v5120_v48 = vld [vmem:[%s10909_s15 + $0xf8] sm:$0xff] (%p6757_p5)  ;;  %5151 = vst [vmem:[%s10999_s22 + $0x2d0] sm:$0xff] (%p6757_p5), %v5150_v7 }
 0x52a   : > { %5000 = vst [vmem:[%s10909_s15 + $0x138] sm:$0xff] %v4954_v52  ;;  %5121 = vst [vmem:[%s10999_s22 + $0x1d8] sm:$0xff] (%p6757_p5), %v5120_v48 }
 0x52c   : > { %v4927_v51 = vpop.trf.xlu0  ;;  %v5158_v43 = vld [vmem:[%s10909_s15 + $0x190] sm:$0xff] (%p6757_p5) }
 0x52d   : > { %v4955_v8 = vpop.trf.xlu1  ;;  %5019 = vst [vmem:[%s10909_s15 + $0x1d0] sm:$0xff] %v4927_v51  ;;  %v5128_v50 = vld [vmem:[%s10909_s15 + $0x118] sm:$0xff] (%p6757_p5)  ;;  %5159 = vst [vmem:[%s10999_s22 + $0x310] sm:$0xff] (%p6757_p5), %v5158_v43  ;;  %v5170_v51 = vld [vmem:[%s10909_s15 + $0x1c0] sm:$0xff] (%p6757_p5) }
 0x52e   : > { %5004 = vst [vmem:[%s10909_s15 + $0x158] sm:$0xff] %v4955_v8  ;;  %5129 = vst [vmem:[%s10999_s22 + $0x218] sm:$0xff] (%p6757_p5), %v5128_v50  ;;  %v5172_v8 = vld [vmem:[%s10909_s15 + $0x1c8] sm:$0xff] (%p6757_p5) }
 0x52f   : > { %5171 = vst [vmem:[%s10999_s22 + $0x380] sm:$0xff] (%p6757_p5), %v5170_v51  ;;  %5173 = vst [vmem:[%s10999_s22 + $0x388] sm:$0xff] (%p6757_p5), %v5172_v8 }
 0x530   : > { %v4928_v33 = vpop.trf.xlu0  ;;  %v5166_v17 = vld [vmem:[%s10909_s15 + $0x1b0] sm:$0xff] (%p6757_p5) }
 0x531   : > { %v4956_v31 = vpop.trf.xlu1  ;;  %5023 = vst [vmem:[%s10909_s15 + $0x1f0] sm:$0xff] %v4928_v33  ;;  %v5136_v37 = vld [vmem:[%s10909_s15 + $0x138] sm:$0xff] (%p6757_p5)  ;;  %5167 = vst [vmem:[%s10999_s22 + $0x350] sm:$0xff] (%p6757_p5), %v5166_v17 }
 0x532   : > { %5008 = vst [vmem:[%s10909_s15 + $0x178] sm:$0xff] %v4956_v31  ;;  %5137 = vst [vmem:[%s10999_s22 + $0x258] sm:$0xff] (%p6757_p5), %v5136_v37 }
 0x534   : > { %v5174_v33 = vld [vmem:[%s10909_s15 + $0x1d0] sm:$0xff] (%p6757_p5) }
 0x535   : > { %v4957_v63 = vpop.trf.xlu1  ;;  %v5144_v39 = vld [vmem:[%s10909_s15 + $0x158] sm:$0xff] (%p6757_p5)  ;;  %5175 = vst [vmem:[%s10999_s22 + $0x390] sm:$0xff] (%p6757_p5), %v5174_v33 }
 0x536   : > { %5012 = vst [vmem:[%s10909_s15 + $0x198] sm:$0xff] %v4957_v63  ;;  %5145 = vst [vmem:[%s10999_s22 + $0x298] sm:$0xff] (%p6757_p5), %v5144_v39  ;;  %v5178_v63 = vld [vmem:[%s10909_s15 + $0x1e0] sm:$0xff] (%p6757_p5) }
 0x537   : > { %5179 = vst [vmem:[%s10999_s22 + $0x3c0] sm:$0xff] (%p6757_p5), %v5178_v63 }
 0x539   : > { %v4958_v40 = vpop.trf.xlu1  ;;  %v5152_v23 = vld [vmem:[%s10909_s15 + $0x178] sm:$0xff] (%p6757_p5) }
 0x53a   : > { %5016 = vst [vmem:[%s10909_s15 + $0x1b8] sm:$0xff] %v4958_v40  ;;  %5153 = vst [vmem:[%s10999_s22 + $0x2d8] sm:$0xff] (%p6757_p5), %v5152_v23  ;;  %v5180_v40 = vld [vmem:[%s10909_s15 + $0x1e8] sm:$0xff] (%p6757_p5) }
 0x53b   : > { %5181 = vst [vmem:[%s10999_s22 + $0x3c8] sm:$0xff] (%p6757_p5), %v5180_v40 }
 0x53d   : > { %v4959_v22 = vpop.trf.xlu1  ;;  %v5160_v12 = vld [vmem:[%s10909_s15 + $0x198] sm:$0xff] (%p6757_p5) }
 0x53e   : > { %5020 = vst [vmem:[%s10909_s15 + $0x1d8] sm:$0xff] %v4959_v22  ;;  %5040 = sbr.rel (!%p6757_p5) target bundleno = 1355 (0x54b), region = 52  ;;  %5161 = vst [vmem:[%s10999_s22 + $0x318] sm:$0xff] (%p6757_p5), %v5160_v12  ;;  %v5182_v22 = vld [vmem:[%s10909_s15 + $0x1f0] sm:$0xff] (%p6757_p5) }
 0x53f   : > { %5183 = vst [vmem:[%s10999_s22 + $0x3d0] sm:$0xff] (%p6757_p5), %v5182_v22 }
 0x541   : > { %v4960_v26 = vpop.trf.xlu1  ;;  %v5168_v52 = vld [vmem:[%s10909_s15 + $0x1b8] sm:$0xff] (%p6757_p5) }
 0x542   : > { %5024 = vst [vmem:[%s10909_s15 + $0x1f8] sm:$0xff] %v4960_v26  ;;  %5169 = vst [vmem:[%s10999_s22 + $0x358] sm:$0xff] (%p6757_p5), %v5168_v52 }
 0x545   : > { %v5176_v31 = vld [vmem:[%s10909_s15 + $0x1d8] sm:$0xff] }
 0x546   : > { %5177 = vst [vmem:[%s10999_s22 + $0x398] sm:$0xff] %v5176_v31 }
 0x549   : > { %v5184_v26 = vld [vmem:[%s10909_s15 + $0x1f8] sm:$0xff] }
 0x54a   : > { %5185 = vst [vmem:[%s10999_s22 + $0x3d8] sm:$0xff] %v5184_v26 }
 0x54b PF: > { %s19_s11 = sadd.s32 1, %s6658_s11   ;;  %s12337_s27 = smov %s6638_s28 }
 0x54c   : > { %p16_p11 = scmp.ge.s32.totalorder %s19_s11, 6   ;;  %s12338_s28 = smov %s6768_s20 }
 0x54d   : > { %s12339_s29 = smov %s6650_s9  ;;  %s12340_s30 = smov %s6654_s10 }
 0x54e   : > { %s12341_s9 = smov %s12344_s12  ;;  %s12342_s10 = smov %s12348_s13 }
 0x54f   :  { %18 = sbr.rel (!%p16_p11) target bundleno = 4 (0x4), region = 113 }

// kernel: point_rcnn_forward.3
= control target key start
LH: loop header
LB: loop body
LE: loop exit
PB: predicated region body
PF: predicated region fallthrough
CT: control target
= control target key end

     0   :  { %v326_v0 = vmov 0.0   ;;  %vm52_vm0 = vcmask 15360   ;;  %vm65_vm1 = vcmask 1041408   ;;  %vm173_vm2 = vcmask 523264   ;;  %s499_s1 = inlined_call_operand.vmem [shape: f32[130,64], index: 1, kind: input, shape index: {}]   ;;  %s500_s0 = inlined_call_operand.vmem [shape: f32[32,130], index: 0, kind: input, shape index: {}]   ;;  %s501_s3 = inlined_call_operand.vmem [shape: f32[64,8], index: 3, kind: input, shape index: {}]   ;;  %s502_s2 = inlined_call_operand.vmem [shape: f32[1,64], index: 2, kind: input, shape index: {}]   ;;  %s503_s4 = inlined_call_operand.vmem [shape: f32[1,8], index: 4, kind: input, shape index: {}]   ;;  %s504_s5 = inlined_call_operand.vmem [shape: f32[32,8], index: 5, kind: output, shape index: {}]  }
   0x1   :  { %69 = vmatprep.subr.mxu0 %v326_v0  ;;  %v43_v1 = vld [vmem:[%s499_s1 + $0x78] sm:$0xff]  ;;  %v42_v2 = vld [vmem:[%s499_s1 + $0x70] sm:$0xff]  ;;  %v41_v3 = vld [vmem:[%s499_s1 + $0x68] sm:$0xff]  ;;  %vm271_vm3 = vcmask 64512  }
   0x2   :  { %70 = vmatpush1.msra.mxu0 %v43_v1  ;;  %v40_v4 = vld [vmem:[%s499_s1 + $0x60] sm:$0xff]  ;;  %v21_v5 = vld [vmem:[%s500_s0 + $0x8] sm:$0xff]  ;;  %v39_v6 = vld [vmem:[%s499_s1 + $0x58] sm:$0xff] }
   0x3   :  { %71 = vmatprep.subr.mxu0 %v326_v0  ;;  %282 = vmatprep.mubr.msk.f32.mxu0 %vm52_vm0, %v21_v5  ;;  %v38_v7 = vld [vmem:[%s499_s1 + $0x50] sm:$0xff]  ;;  %v165_v8 = vld [vmem:[%s501_s3 + $0x38] sm:$0xff]  ;;  %v37_v10 = vld [vmem:[%s499_s1 + $0x48] sm:$0xff] }
   0x4   :  { %72 = vmatpush1.msra.mxu0 %v42_v2  ;;  %v164_v9 = vld [vmem:[%s501_s3 + $0x30] sm:$0xff]  ;;  %303 = vmatprep.subr.mxu1 %v165_v8  ;;  %v163_v11 = vld [vmem:[%s501_s3 + $0x28] sm:$0xff]  ;;  %v36_v12 = vld [vmem:[%s499_s1 + $0x40] sm:$0xff] }
   0x5   :  { %73 = vmatprep.subr.mxu0 %v326_v0  ;;  %304 = vmatpush3.msra.mxu1 %v165_v8  ;;  %v162_v13 = vld [vmem:[%s501_s3 + $0x20] sm:$0xff]  ;;  %v35_v14 = vld [vmem:[%s499_s1 + $0x38] sm:$0xff]  ;;  %v34_v15 = vld [vmem:[%s499_s1 + $0x30] sm:$0xff] }
   0x6   :  { %74 = vmatpush1.msra.mxu0 %v41_v3  ;;  %305 = vmatprep.subr.mxu1 %v164_v9  ;;  %v33_v16 = vld [vmem:[%s499_s1 + $0x28] sm:$0xff]  ;;  %v32_v17 = vld [vmem:[%s499_s1 + $0x20] sm:$0xff]  ;;  %v31_v18 = vld [vmem:[%s499_s1 + $0x18] sm:$0xff] }
   0x7   :  { %75 = vmatprep.subr.mxu0 %v326_v0  ;;  %306 = vmatpush3.msra.mxu1 %v164_v9  ;;  %v30_v19 = vld [vmem:[%s499_s1 + $0x10] sm:$0xff]  ;;  %v29_v20 = vld [vmem:[%s499_s1 + $0x8] sm:$0xff]  ;;  %v28_v21 = vld [vmem:[%s499_s1] sm:$0xff] }
   0x8   :  { %76 = vmatpush1.msra.mxu0 %v40_v4  ;;  %307 = vmatprep.subr.mxu1 %v163_v11  ;;  %v44_v22 = vld [vmem:[%s499_s1 + $0x80] sm:$0x3]  ;;  %v23_v24 = vld [vmem:[%s500_s0 + $0x18] sm:$0xff]  ;;  %v22_v25 = vld [vmem:[%s500_s0 + $0x10] sm:$0xff] }
   0x9   :  { %77 = vmatprep.subr.mxu0 %v326_v0  ;;  %308 = vmatpush3.msra.mxu1 %v163_v11  ;;  %v20_v23 = vld [vmem:[%s500_s0] sm:$0xff]  ;;  %v25_v26 = vld [vmem:[%s500_s0 + $0x28] sm:$0xff]  ;;  %v27_v28 = vld [vmem:[%s500_s0 + $0x38] sm:$0xff] }
   0xa   :  { %78 = vmatpush1.msra.mxu0 %v39_v6  ;;  %309 = vmatprep.subr.mxu1 %v162_v13  ;;  %v24_v27 = vld [vmem:[%s500_s0 + $0x20] sm:$0xff]  ;;  %v26_v29 = vld [vmem:[%s500_s0 + $0x30] sm:$0xff]  ;;  %v161_v30 = vld [vmem:[%s501_s3 + $0x18] sm:$0xff] }
   0xb   :  { %79 = vmatprep.subr.mxu0 %v326_v0  ;;  %310 = vmatpush3.msra.mxu1 %v162_v13  ;;  %v160_v31 = vld [vmem:[%s501_s3 + $0x10] sm:$0xff]  ;;  %v159_v32 = vld [vmem:[%s501_s3 + $0x8] sm:$0xff]  ;;  %v158_v33 = vld [vmem:[%s501_s3] sm:$0xff] }
   0xc   :  { %80 = vmatpush1.msra.mxu0 %v38_v7  ;;  %311 = vmatprep.subr.mxu1 %v161_v30  ;;  %v280_v34 = vld [vmem:[%s502_s2] ss:$0 sm:$0xff] }
   0xd   :  { %81 = vmatprep.subr.mxu0 %v326_v0  ;;  %312 = vmatpush3.msra.mxu1 %v161_v30  ;;  %v286_v51 = vld [vmem:[%s503_s4] ss:$0 sm:$0xff] }
   0xe   :  { %82 = vmatpush1.msra.mxu0 %v37_v10  ;;  %313 = vmatprep.subr.mxu1 %v160_v31 }
   0xf   :  { %83 = vmatprep.subr.mxu0 %v326_v0  ;;  %314 = vmatpush3.msra.mxu1 %v160_v31 }
  0x10   :  { %84 = vmatpush1.msra.mxu0 %v36_v12  ;;  %315 = vmatprep.subr.mxu1 %v159_v32 }
  0x11   :  { %85 = vmatprep.subr.mxu0 %v326_v0  ;;  %316 = vmatpush3.msra.mxu1 %v159_v32 }
  0x12   :  { %86 = vmatpush1.msra.mxu0 %v35_v14  ;;  %317 = vmatprep.subr.mxu1 %v158_v33 }
  0x13   :  { %87 = vmatprep.subr.mxu0 %v326_v0  ;;  %318 = vmatpush3.msra.mxu1 %v158_v33 }
  0x14   :  { %88 = vmatpush1.msra.mxu0 %v34_v15 }
  0x15   :  { %89 = vmatprep.subr.mxu0 %v326_v0 }
  0x16   :  { %90 = vmatpush1.msra.mxu0 %v33_v16 }
  0x17   :  { %91 = vmatprep.subr.mxu0 %v326_v0 }
  0x18   :  { %92 = vmatpush1.msra.mxu0 %v32_v17 }
  0x19   :  { %93 = vmatprep.subr.mxu0 %v326_v0 }
  0x1a   :  { %94 = vmatpush1.msra.mxu0 %v31_v18 }
  0x1b   :  { %95 = vmatprep.subr.mxu0 %v326_v0 }
  0x1c   :  { %96 = vmatpush1.msra.mxu0 %v30_v19 }
  0x1d   :  { %97 = vmatprep.subr.mxu0 %v326_v0 }
  0x1e   :  { %98 = vmatpush1.msra.mxu0 %v29_v20 }
  0x1f   :  { %99 = vmatprep.subr.mxu0 %v326_v0 }
  0x20   :  { %100 = vmatpush1.msra.mxu0 %v28_v21 }
  0x21   :  { %131 = vmatprep.subr.mxu0 %v326_v0 }
  0x22   :  { %281 = vmatpush2.msk.msra.mxu0 %vm65_vm1, %v44_v22 }
  0x23   :  { %134 = vmatmul.mubr.f32.vlgmr.msra.gmra.mxu0 %v20_v23 }
  0x24   :  { %283 = vmatprep.mubr.msk.f32.mxu0 %vm52_vm0, %v23_v24 }
  0x27   :  { %139 = vmatmul.mubr.f32.gmra.mxu0 %v22_v25 }
  0x28   :  { %284 = vmatprep.mubr.msk.f32.mxu0 %vm52_vm0, %v25_v26 }
  0x2b   :  { %144 = vmatmul.mubr.f32.gmra.mxu0 %v24_v27 }
  0x2c   :  { %285 = vmatprep.mubr.msk.f32.mxu0 %vm52_vm0, %v27_v28 }
  0x2f   :  { %149 = vmatmul.mubr.f32.gmra.mxu0 %v26_v29 }
  0xe3   :  { %v135_v35 = vpop.f32.mrf.mxu0 }
  0xe4   :  { %v136_v36 = vadd.f32 %v280_v34, %v135_v35 }
  0xe5   :  { %v137_v37 = vpop.f32.mrf.mxu0 }
  0xe6   :  { %v154_v38 = vmax.f32 %v136_v36, 0.0 }
  0xe7   :  { %v140_v39 = vpop.f32.mrf.mxu0 }
  0xe8   :  { %v141_v40 = vadd.f32 %v280_v34, %v140_v39  ;;  %319 = vmatprep.mubr.msk.f32.mxu1 %vm173_vm2, %v154_v38 }
  0xe9   :  { %v142_v41 = vpop.f32.mrf.mxu0 }
  0xea   :  { %v155_v42 = vmax.f32 %v141_v40, 0.0 }
  0xeb   :  { %v145_v43 = vpop.f32.mrf.mxu0 }
  0xec   :  { %v146_v44 = vadd.f32 %v280_v34, %v145_v43  ;;  %320 = vmatmul.mubr.msk.f32.vlgmr.msra.gmra.mxu1 %vm173_vm2, %v155_v42 }
  0xed   :  { %v147_v45 = vpop.f32.mrf.mxu0 }
  0xee   :  { %v156_v46 = vmax.f32 %v146_v44, 0.0 }
  0xef   :  { %v150_v47 = vpop.f32.mrf.mxu0 }
  0xf0   :  { %v151_v48 = vadd.f32 %v280_v34, %v150_v47  ;;  %322 = vmatprep.mubr.msk.f32.mxu1 %vm173_vm2, %v156_v46 }
  0xf1   :  { %v152_v49 = vpop.f32.mrf.mxu0 }
  0xf2   :  { %v157_v50 = vmax.f32 %v151_v48, 0.0 }
  0xf4   :  { %323 = vmatmul.mubr.msk.f32.gmra.mxu1 %vm173_vm2, %v157_v50 }
 0x1ac   :  { %v321_v52 = vpop.f32.mrf.mxu1 }
 0x1ad   :  { %v258_v53 = vadd.f32 %v321_v52, %v286_v51 }
 0x1ae   :  { %v252_v54 = vpop.f32.mrf.mxu1 }
 0x1af   :  { %273 = vst.msk [vmem:[%s504_s5 + $0x8] sm:$0xff] %vm271_vm3, %v258_v53  ;;  %v253_v55 = vadd.f32 %v286_v51, %v252_v54 }
 0x1b1   :  { %272 = vst.msk [vmem:[%s504_s5] sm:$0xff] %vm271_vm3, %v253_v55 }
 0x1b4   :  { %v324_v56 = vpop.f32.mrf.mxu1 }
 0x1b5   :  { %v268_v57 = vadd.f32 %v324_v56, %v286_v51 }
 0x1b6   :  { %v262_v58 = vpop.f32.mrf.mxu1 }
 0x1b7   :  { %275 = vst.msk [vmem:[%s504_s5 + $0x18] sm:$0xff] %vm271_vm3, %v268_v57  ;;  %v263_v59 = vadd.f32 %v286_v51, %v262_v58 }
 0x1b9   :  { %274 = vst.msk [vmem:[%s504_s5 + $0x10] sm:$0xff] %vm271_vm3, %v263_v59 }

</bundles_post_ra>
